<compile_context>
chip_gen: v6e
topology: v6e:2x2x1
jax: 0.10.0
libtpu: 0.0.40
codegen_flags: <defaults>
</compile_context>

<pallas_src>
import jax
import jax.numpy as jnp
from jax.experimental import pallas as pl
from jax.experimental.pallas import tpu as pltpu


OBS_SPACE = 4
ACT_SPACE = 2
HIDDEN = (512, 1024, 1024, 512)
HEAD_PAD = 128          # lane-dense padded head width
BATCH_TILE = 512        # max batch tile (per-step VMEM never scales past this)


def _round_up(n, m):
    return ((n + m - 1) // m) * m


def _mlp_kernel(x_ref,
                w1_ref, b1_ref,
                q2_ref, s2_ref, b2_ref,
                q3_ref, s3_ref, b3_ref,
                q4_ref, s4_ref, b4_ref,
                w5_ref, b5_ref,
                o_ref):
    # Activations cast to bf16 before each dot; accumulation stays f32.
    h = x_ref[...].astype(jnp.bfloat16)

    # Layer 1: (tb,4) @ (4,512) + (1,512), ReLU.  Tiny weight -> keep bf16.
    h = jnp.dot(h, w1_ref[...], preferred_element_type=jnp.float32) + b1_ref[...]
    h = jnp.maximum(h, 0.0).astype(jnp.bfloat16)

    # Layers 2-4: int8 weights streamed from HBM.  int8 values are exact in
    # bf16, so the dot uses the bf16 MXU path on every TPU generation; the
    # per-output-channel scale is applied to the (tb, out) result.
    for q_ref, s_ref, b_ref in ((q2_ref, s2_ref, b2_ref),
                                (q3_ref, s3_ref, b3_ref),
                                (q4_ref, s4_ref, b4_ref)):
        y = jnp.dot(h, q_ref[...].astype(jnp.bfloat16),
                    preferred_element_type=jnp.float32)
        h = jnp.maximum(y * s_ref[...] + b_ref[...], 0.0).astype(jnp.bfloat16)

    # Layer 5 (head, no activation), zero-padded to 128 lanes for a lane-dense
    # unmasked store.
    out = jnp.dot(h, w5_ref[...], preferred_element_type=jnp.float32) + b5_ref[...]
    o_ref[...] = out.astype(o_ref.dtype)


def prepare_params(params):
    """Native f32 (in,out)/(1,out) params -> kernel-ready flat arg list.

    Layer 1 / head weights -> bf16 (tiny); hidden layers 2-4 -> int8 with
    per-output-channel f32 scales; head weight/bias zero-padded to HEAD_PAD.
    """
    (w1, b1), (w2, b2), (w3, b3), (w4, b4), (w5, b5) = params
    flat = [w1.astype(jnp.bfloat16), b1.astype(jnp.float32)]
    for w, b in ((w2, b2), (w3, b3), (w4, b4)):
        scale = jnp.maximum(jnp.max(jnp.abs(w), axis=0, keepdims=True), 1e-12) / 127.0
        q = jnp.clip(jnp.round(w / scale), -127, 127).astype(jnp.int8)
        flat += [q, scale.astype(jnp.float32), b.astype(jnp.float32)]
    d_out = w5.shape[1]
    flat.append(jnp.pad(w5, ((0, 0), (0, HEAD_PAD - d_out))).astype(jnp.bfloat16))
    flat.append(jnp.pad(b5, ((0, 0), (0, HEAD_PAD - d_out))).astype(jnp.float32))
    return flat


def cart_pole_policy_forward(x, params):
    """x: (B, OBS_SPACE) float32; params: list of (W (in,out) f32, b (1,out) f32)."""
    B = x.shape[0]
    flat = prepare_params(params)

    # Batch tiling: tile capped at BATCH_TILE; awkward batch sizes are
    # zero-padded up to a tile multiple (padded rows computed and discarded),
    # so per-step VMEM never scales with B.
    tb = min(BATCH_TILE, _round_up(B, 8))
    b_pad = _round_up(B, tb)
    x_in = x if b_pad == B else jnp.pad(x, ((0, b_pad - B), (0, 0)))
    grid = (b_pad // tb,)

    # Advisory cost estimate (flops include the padded head; bytes dominated by
    # the int8/bf16 weight stream).
    mac = (OBS_SPACE * HIDDEN[0] + HIDDEN[0] * HIDDEN[1] + HIDDEN[1] * HIDDEN[2]
           + HIDDEN[2] * HIDDEN[3] + HIDDEN[3] * HEAD_PAD)
    param_bytes = sum(int(a.size) * a.dtype.itemsize for a in flat)
    cost = pl.CostEstimate(
        flops=2 * b_pad * mac,
        transcendentals=0,
        bytes_accessed=param_bytes + b_pad * OBS_SPACE * 4 + b_pad * HEAD_PAD * 4,
    )

    def build(single_buffer_params):
        x_spec = pl.BlockSpec((tb, OBS_SPACE), lambda i: (i, 0))
        out_spec = pl.BlockSpec((tb, HEAD_PAD), lambda i: (i, 0))
        if single_buffer_params:
            # Constant-index weight/scale/bias blocks don't need a second
            # pipeline buffer -> reclaim ~2.2 MB of VMEM.
            p_specs = [pl.BlockSpec(a.shape, lambda i: (0, 0),
                                    pipeline_mode=pl.Buffered(1)) for a in flat]
        else:
            p_specs = [pl.BlockSpec(a.shape, lambda i: (0, 0)) for a in flat]
        return pl.pallas_call(
            _mlp_kernel,
            out_shape=jax.ShapeDtypeStruct((b_pad, HEAD_PAD), jnp.float32),
            grid_spec=pltpu.PrefetchScalarGridSpec(
                num_scalar_prefetch=0,
                grid=grid,
                in_specs=[x_spec] + p_specs,
                out_specs=out_spec,
            ),
            compiler_params=pltpu.CompilerParams(
                # At tb=512 per-tile MXU work exceeds the int8 weight stream on
                # all gens, so splitting the batch grid across the two v7x
                # TensorCores is worth the duplicated weight DMA.
                dimension_semantics=("parallel",),
                vmem_limit_bytes=32 << 20,  # above v5e's 16 MiB scoped default
            ),
            cost_estimate=cost,
        )

    try:
        out_padded = build(True)(x_in, *flat)
    except Exception:
        # pipeline_mode=pl.Buffered(1) not supported by this JAX/Mosaic build:
        # fall back to default double buffering (still fits VMEM comfortably).
        out_padded = build(False)(x_in, *flat)

    return out_padded[:B, :ACT_SPACE]


def init_params(key):
    """Deterministic synthetic init matching nn.Linear shapes (transposed to (in,out))."""
    dims = (OBS_SPACE,) + HIDDEN + (ACT_SPACE,)
    params = []
    for i in range(len(dims) - 1):
        d_in, d_out = dims[i], dims[i + 1]
        key, kw, kb = jax.random.split(key, 3)
        scale = 1.0 / jnp.sqrt(jnp.float32(d_in))  # ~ PyTorch default bound
        w = jax.random.uniform(kw, (d_in, d_out), jnp.float32, -scale, scale)
        b = jax.random.uniform(kb, (1, d_out), jnp.float32, -scale, scale)
        params.append((w, b))
    return params


def reference_forward_f32(x, params):
    """Pure-JAX f32 reference of the PyTorch forward pass."""
    h = x
    n = len(params)
    for i, (w, b) in enumerate(params):
        h = h @ w + b
        if i < n - 1:
            h = jnp.maximum(h, 0.0)
    return h


def reference_forward_quantized(x, flat):
    """Pure-JAX mirror of the kernel's bf16-act / int8-weight / f32-accum math."""
    w1, b1, q2, s2, b2, q3, s3, b3, q4, s4, b4, w5, b5 = flat
    h = x.astype(jnp.bfloat16)
    h = jnp.maximum(jnp.dot(h, w1, preferred_element_type=jnp.float32) + b1,
                    0.0).astype(jnp.bfloat16)
    for q, s, b in ((q2, s2, b2), (q3, s3, b3), (q4, s4, b4)):
        y = jnp.dot(h, q.astype(jnp.bfloat16), preferred_element_type=jnp.float32)
        h = jnp.maximum(y * s + b, 0.0).astype(jnp.bfloat16)
    out = jnp.dot(h, w5, preferred_element_type=jnp.float32) + b5
    return out[:, :ACT_SPACE]


if __name__ == "__main__":
    key = jax.random.PRNGKey(0)
    key, kx = jax.random.split(key)

    B = 8  # small batch
    x = jax.random.normal(kx, (B, OBS_SPACE), jnp.float32)
    params = init_params(key)

    out = jax.block_until_ready(cart_pole_policy_forward(x, params))
    assert out.shape == (B, ACT_SPACE), out.shape

    # Tight check against a reference that uses the exact same quantized math.
    flat = prepare_params(params)
    ref_q = reference_forward_quantized(x, flat)
    err_q = float(jnp.max(jnp.abs(out - ref_q)))
    assert jnp.allclose(out, ref_q, atol=5e-3, rtol=5e-3), (
        f"max abs err vs quantized reference = {err_q}")

    # Loose sanity check against the full-f32 PyTorch-equivalent forward
    # (bf16 activations + int8 hidden weights -> a few-percent drift).
    ref_f32 = reference_forward_f32(x, params)
    err_f32 = float(jnp.max(jnp.abs(out - ref_f32)))
    assert jnp.allclose(out, ref_f32, atol=1e-1, rtol=1e-1), (
        f"max abs err vs f32 reference = {err_f32}")

    # Exercise the fixed non-aligned-batch path (B padded up to a tile multiple).
    B2 = 5
    x2 = jax.random.normal(jax.random.PRNGKey(1), (B2, OBS_SPACE), jnp.float32)
    out2 = jax.block_until_ready(cart_pole_policy_forward(x2, params))
    assert out2.shape == (B2, ACT_SPACE), out2.shape
    ref2 = reference_forward_f32(x2, params)
    assert jnp.allclose(out2, ref2, atol=1e-1, rtol=1e-1)

    print("KERNEL_OK")
</pallas_src>

<mosaic_0001>
module attributes {stable_mosaic.version = 11 : i64} {
  func.func @_mlp_kernel(%arg0: i32, %arg1: memref<8x4xf32, #tpu.memory_space<vmem>>, %arg2: memref<4x512xbf16, #tpu.memory_space<vmem>>, %arg3: memref<1x512xf32, #tpu.memory_space<vmem>>, %arg4: memref<512x1024xi8, #tpu.memory_space<vmem>>, %arg5: memref<1x1024xf32, #tpu.memory_space<vmem>>, %arg6: memref<1x1024xf32, #tpu.memory_space<vmem>>, %arg7: memref<1024x1024xi8, #tpu.memory_space<vmem>>, %arg8: memref<1x1024xf32, #tpu.memory_space<vmem>>, %arg9: memref<1x1024xf32, #tpu.memory_space<vmem>>, %arg10: memref<1024x512xi8, #tpu.memory_space<vmem>>, %arg11: memref<1x512xf32, #tpu.memory_space<vmem>>, %arg12: memref<1x512xf32, #tpu.memory_space<vmem>>, %arg13: memref<512x128xbf16, #tpu.memory_space<vmem>>, %arg14: memref<1x128xf32, #tpu.memory_space<vmem>>, %arg15: memref<8x128xf32, #tpu.memory_space<vmem>>) attributes {dimension_semantics = [#tpu.dimension_semantics<parallel>], iteration_bounds = array<i64: 1>, scalar_prefetch = 0 : i64, scratch_operands = 0 : i64, tpu.core_type = #tpu.core_type<tc>, window_params = [{transform_indices = @transform_0, window_bounds = array<i64: 8, 4>}, {pipeline_mode = #tpu.pipeline_mode<synchronous>, transform_indices = @transform_1, window_bounds = array<i64: 4, 512>}, {pipeline_mode = #tpu.pipeline_mode<synchronous>, transform_indices = @transform_2, window_bounds = array<i64: 1, 512>}, {pipeline_mode = #tpu.pipeline_mode<synchronous>, transform_indices = @transform_3, window_bounds = array<i64: 512, 1024>}, {pipeline_mode = #tpu.pipeline_mode<synchronous>, transform_indices = @transform_4, window_bounds = array<i64: 1, 1024>}, {pipeline_mode = #tpu.pipeline_mode<synchronous>, transform_indices = @transform_5, window_bounds = array<i64: 1, 1024>}, {pipeline_mode = #tpu.pipeline_mode<synchronous>, transform_indices = @transform_6, window_bounds = array<i64: 1024, 1024>}, {pipeline_mode = #tpu.pipeline_mode<synchronous>, transform_indices = @transform_7, window_bounds = array<i64: 1, 1024>}, {pipeline_mode = #tpu.pipeline_mode<synchronous>, transform_indices = @transform_8, window_bounds = array<i64: 1, 1024>}, {pipeline_mode = #tpu.pipeline_mode<synchronous>, transform_indices = @transform_9, window_bounds = array<i64: 1024, 512>}, {pipeline_mode = #tpu.pipeline_mode<synchronous>, transform_indices = @transform_10, window_bounds = array<i64: 1, 512>}, {pipeline_mode = #tpu.pipeline_mode<synchronous>, transform_indices = @transform_11, window_bounds = array<i64: 1, 512>}, {pipeline_mode = #tpu.pipeline_mode<synchronous>, transform_indices = @transform_12, window_bounds = array<i64: 512, 128>}, {pipeline_mode = #tpu.pipeline_mode<synchronous>, transform_indices = @transform_13, window_bounds = array<i64: 1, 128>}, {transform_indices = @transform_14, window_bounds = array<i64: 8, 128>}]} {
    %c0 = arith.constant 0 : index
    %c0_0 = arith.constant 0 : index
    %0 = vector.load %arg1[%c0, %c0_0] : memref<8x4xf32, #tpu.memory_space<vmem>>, vector<8x4xf32>
    %1 = arith.truncf %0 : vector<8x4xf32> to vector<8x4xbf16>
    %c0_1 = arith.constant 0 : index
    %c0_2 = arith.constant 0 : index
    %2 = vector.load %arg2[%c0_1, %c0_2] : memref<4x512xbf16, #tpu.memory_space<vmem>>, vector<4x512xbf16>
    %cst = arith.constant dense<0.000000e+00> : vector<8x512xf32>
    %3 = tpu.matmul %1, %2, %cst {dimension_numbers = #tpu.dot_dimension_numbers<[1], [0], [0], [1], [0, 0, 1, 1], [], []>} : vector<8x4xbf16>, vector<4x512xbf16>, vector<8x512xf32> -> vector<8x512xf32>
    %c0_3 = arith.constant 0 : index
    %c0_4 = arith.constant 0 : index
    %4 = vector.load %arg3[%c0_3, %c0_4] : memref<1x512xf32, #tpu.memory_space<vmem>>, vector<1x512xf32>
    %5 = vector.broadcast %4 : vector<1x512xf32> to vector<8x512xf32>
    %6 = arith.addf %3, %5 : vector<8x512xf32>
    %cst_5 = arith.constant 0.000000e+00 : f32
    %7 = vector.broadcast %cst_5 : f32 to vector<8x512xf32>
    %8 = arith.maximumf %6, %7 : vector<8x512xf32>
    %9 = arith.truncf %8 : vector<8x512xf32> to vector<8x512xbf16>
    %c0_6 = arith.constant 0 : index
    %c0_7 = arith.constant 0 : index
    %10 = vector.load %arg4[%c0_6, %c0_7] : memref<512x1024xi8, #tpu.memory_space<vmem>>, vector<512x1024xi8>
    %11 = arith.sitofp %10 : vector<512x1024xi8> to vector<512x1024xbf16>
    %cst_8 = arith.constant dense<0.000000e+00> : vector<8x1024xf32>
    %12 = tpu.matmul %9, %11, %cst_8 {dimension_numbers = #tpu.dot_dimension_numbers<[1], [0], [0], [1], [0, 0, 1, 1], [], []>} : vector<8x512xbf16>, vector<512x1024xbf16>, vector<8x1024xf32> -> vector<8x1024xf32>
    %c0_9 = arith.constant 0 : index
    %c0_10 = arith.constant 0 : index
    %13 = vector.load %arg5[%c0_9, %c0_10] : memref<1x1024xf32, #tpu.memory_space<vmem>>, vector<1x1024xf32>
    %14 = vector.broadcast %13 : vector<1x1024xf32> to vector<8x1024xf32>
    %15 = arith.mulf %12, %14 : vector<8x1024xf32>
    %c0_11 = arith.constant 0 : index
    %c0_12 = arith.constant 0 : index
    %16 = vector.load %arg6[%c0_11, %c0_12] : memref<1x1024xf32, #tpu.memory_space<vmem>>, vector<1x1024xf32>
    %17 = vector.broadcast %16 : vector<1x1024xf32> to vector<8x1024xf32>
    %18 = arith.addf %15, %17 : vector<8x1024xf32>
    %cst_13 = arith.constant 0.000000e+00 : f32
    %19 = vector.broadcast %cst_13 : f32 to vector<8x1024xf32>
    %20 = arith.maximumf %18, %19 : vector<8x1024xf32>
    %21 = arith.truncf %20 : vector<8x1024xf32> to vector<8x1024xbf16>
    %c0_14 = arith.constant 0 : index
    %c0_15 = arith.constant 0 : index
    %22 = vector.load %arg7[%c0_14, %c0_15] : memref<1024x1024xi8, #tpu.memory_space<vmem>>, vector<1024x1024xi8>
    %23 = arith.sitofp %22 : vector<1024x1024xi8> to vector<1024x1024xbf16>
    %cst_16 = arith.constant dense<0.000000e+00> : vector<8x1024xf32>
    %24 = tpu.matmul %21, %23, %cst_16 {dimension_numbers = #tpu.dot_dimension_numbers<[1], [0], [0], [1], [0, 0, 1, 1], [], []>} : vector<8x1024xbf16>, vector<1024x1024xbf16>, vector<8x1024xf32> -> vector<8x1024xf32>
    %c0_17 = arith.constant 0 : index
    %c0_18 = arith.constant 0 : index
    %25 = vector.load %arg8[%c0_17, %c0_18] : memref<1x1024xf32, #tpu.memory_space<vmem>>, vector<1x1024xf32>
    %26 = vector.broadcast %25 : vector<1x1024xf32> to vector<8x1024xf32>
    %27 = arith.mulf %24, %26 : vector<8x1024xf32>
    %c0_19 = arith.constant 0 : index
    %c0_20 = arith.constant 0 : index
    %28 = vector.load %arg9[%c0_19, %c0_20] : memref<1x1024xf32, #tpu.memory_space<vmem>>, vector<1x1024xf32>
    %29 = vector.broadcast %28 : vector<1x1024xf32> to vector<8x1024xf32>
    %30 = arith.addf %27, %29 : vector<8x1024xf32>
    %cst_21 = arith.constant 0.000000e+00 : f32
    %31 = vector.broadcast %cst_21 : f32 to vector<8x1024xf32>
    %32 = arith.maximumf %30, %31 : vector<8x1024xf32>
    %33 = arith.truncf %32 : vector<8x1024xf32> to vector<8x1024xbf16>
    %c0_22 = arith.constant 0 : index
    %c0_23 = arith.constant 0 : index
    %34 = vector.load %arg10[%c0_22, %c0_23] : memref<1024x512xi8, #tpu.memory_space<vmem>>, vector<1024x512xi8>
    %35 = arith.sitofp %34 : vector<1024x512xi8> to vector<1024x512xbf16>
    %cst_24 = arith.constant dense<0.000000e+00> : vector<8x512xf32>
    %36 = tpu.matmul %33, %35, %cst_24 {dimension_numbers = #tpu.dot_dimension_numbers<[1], [0], [0], [1], [0, 0, 1, 1], [], []>} : vector<8x1024xbf16>, vector<1024x512xbf16>, vector<8x512xf32> -> vector<8x512xf32>
    %c0_25 = arith.constant 0 : index
    %c0_26 = arith.constant 0 : index
    %37 = vector.load %arg11[%c0_25, %c0_26] : memref<1x512xf32, #tpu.memory_space<vmem>>, vector<1x512xf32>
    %38 = vector.broadcast %37 : vector<1x512xf32> to vector<8x512xf32>
    %39 = arith.mulf %36, %38 : vector<8x512xf32>
    %c0_27 = arith.constant 0 : index
    %c0_28 = arith.constant 0 : index
    %40 = vector.load %arg12[%c0_27, %c0_28] : memref<1x512xf32, #tpu.memory_space<vmem>>, vector<1x512xf32>
    %41 = vector.broadcast %40 : vector<1x512xf32> to vector<8x512xf32>
    %42 = arith.addf %39, %41 : vector<8x512xf32>
    %cst_29 = arith.constant 0.000000e+00 : f32
    %43 = vector.broadcast %cst_29 : f32 to vector<8x512xf32>
    %44 = arith.maximumf %42, %43 : vector<8x512xf32>
    %45 = arith.truncf %44 : vector<8x512xf32> to vector<8x512xbf16>
    %c0_30 = arith.constant 0 : index
    %c0_31 = arith.constant 0 : index
    %46 = vector.load %arg13[%c0_30, %c0_31] : memref<512x128xbf16, #tpu.memory_space<vmem>>, vector<512x128xbf16>
    %cst_32 = arith.constant dense<0.000000e+00> : vector<8x128xf32>
    %47 = tpu.matmul %45, %46, %cst_32 {dimension_numbers = #tpu.dot_dimension_numbers<[1], [0], [0], [1], [0, 0, 1, 1], [], []>} : vector<8x512xbf16>, vector<512x128xbf16>, vector<8x128xf32> -> vector<8x128xf32>
    %c0_33 = arith.constant 0 : index
    %c0_34 = arith.constant 0 : index
    %48 = vector.load %arg14[%c0_33, %c0_34] : memref<1x128xf32, #tpu.memory_space<vmem>>, vector<1x128xf32>
    %49 = vector.broadcast %48 : vector<1x128xf32> to vector<8x128xf32>
    %50 = arith.addf %47, %49 : vector<8x128xf32>
    %c0_35 = arith.constant 0 : index
    %c0_36 = arith.constant 0 : index
    %51 = vector.load %arg15[%c0_35, %c0_36] : memref<8x128xf32, #tpu.memory_space<vmem>>, vector<8x128xf32>
    tpu.vector_store %arg15[%c0_35, %c0_36], %50 {strides = array<i32>} : memref<8x128xf32, #tpu.memory_space<vmem>>, vector<8x128xf32>,
    return
  }
  func.func @transform_0(%arg0: i32) -> (i32, i32) {
    %c0_i32 = arith.constant 0 : i32
    %c0_i32_0 = arith.constant 0 : i32
    return %arg0, %c0_i32 : i32, i32
  }
  func.func @transform_1(%arg0: i32) -> (i32, i32) {
    %c0_i32 = arith.constant 0 : i32
    %c0_i32_0 = arith.constant 0 : i32
    %c0_i32_1 = arith.constant 0 : i32
    return %c0_i32, %c0_i32_0 : i32, i32
  }
  func.func @transform_2(%arg0: i32) -> (i32, i32) {
    %c0_i32 = arith.constant 0 : i32
    %c0_i32_0 = arith.constant 0 : i32
    %c0_i32_1 = arith.constant 0 : i32
    return %c0_i32, %c0_i32_0 : i32, i32
  }
  func.func @transform_3(%arg0: i32) -> (i32, i32) {
    %c0_i32 = arith.constant 0 : i32
    %c0_i32_0 = arith.constant 0 : i32
    %c0_i32_1 = arith.constant 0 : i32
    return %c0_i32, %c0_i32_0 : i32, i32
  }
  func.func @transform_4(%arg0: i32) -> (i32, i32) {
    %c0_i32 = arith.constant 0 : i32
    %c0_i32_0 = arith.constant 0 : i32
    %c0_i32_1 = arith.constant 0 : i32
    return %c0_i32, %c0_i32_0 : i32, i32
  }
  func.func @transform_5(%arg0: i32) -> (i32, i32) {
    %c0_i32 = arith.constant 0 : i32
    %c0_i32_0 = arith.constant 0 : i32
    %c0_i32_1 = arith.constant 0 : i32
    return %c0_i32, %c0_i32_0 : i32, i32
  }
  func.func @transform_6(%arg0: i32) -> (i32, i32) {
    %c0_i32 = arith.constant 0 : i32
    %c0_i32_0 = arith.constant 0 : i32
    %c0_i32_1 = arith.constant 0 : i32
    return %c0_i32, %c0_i32_0 : i32, i32
  }
  func.func @transform_7(%arg0: i32) -> (i32, i32) {
    %c0_i32 = arith.constant 0 : i32
    %c0_i32_0 = arith.constant 0 : i32
    %c0_i32_1 = arith.constant 0 : i32
    return %c0_i32, %c0_i32_0 : i32, i32
  }
  func.func @transform_8(%arg0: i32) -> (i32, i32) {
    %c0_i32 = arith.constant 0 : i32
    %c0_i32_0 = arith.constant 0 : i32
    %c0_i32_1 = arith.constant 0 : i32
    return %c0_i32, %c0_i32_0 : i32, i32
  }
  func.func @transform_9(%arg0: i32) -> (i32, i32) {
    %c0_i32 = arith.constant 0 : i32
    %c0_i32_0 = arith.constant 0 : i32
    %c0_i32_1 = arith.constant 0 : i32
    return %c0_i32, %c0_i32_0 : i32, i32
  }
  func.func @transform_10(%arg0: i32) -> (i32, i32) {
    %c0_i32 = arith.constant 0 : i32
    %c0_i32_0 = arith.constant 0 : i32
    %c0_i32_1 = arith.constant 0 : i32
    return %c0_i32, %c0_i32_0 : i32, i32
  }
  func.func @transform_11(%arg0: i32) -> (i32, i32) {
    %c0_i32 = arith.constant 0 : i32
    %c0_i32_0 = arith.constant 0 : i32
    %c0_i32_1 = arith.constant 0 : i32
    return %c0_i32, %c0_i32_0 : i32, i32
  }
  func.func @transform_12(%arg0: i32) -> (i32, i32) {
    %c0_i32 = arith.constant 0 : i32
    %c0_i32_0 = arith.constant 0 : i32
    %c0_i32_1 = arith.constant 0 : i32
    return %c0_i32, %c0_i32_0 : i32, i32
  }
  func.func @transform_13(%arg0: i32) -> (i32, i32) {
    %c0_i32 = arith.constant 0 : i32
    %c0_i32_0 = arith.constant 0 : i32
    %c0_i32_1 = arith.constant 0 : i32
    return %c0_i32, %c0_i32_0 : i32, i32
  }
  func.func @transform_14(%arg0: i32) -> (i32, i32) {
    %c0_i32 = arith.constant 0 : i32
    %c0_i32_0 = arith.constant 0 : i32
    return %arg0, %c0_i32 : i32, i32
  }
}

module attributes {stable_mosaic.version = 11 : i64} {
  func.func @_mlp_kernel(%arg0: i32, %arg1: memref<8x4xf32, #tpu.memory_space<vmem>>, %arg2: memref<4x512xbf16, #tpu.memory_space<vmem>>, %arg3: memref<1x512xf32, #tpu.memory_space<vmem>>, %arg4: memref<512x1024xi8, #tpu.memory_space<vmem>>, %arg5: memref<1x1024xf32, #tpu.memory_space<vmem>>, %arg6: memref<1x1024xf32, #tpu.memory_space<vmem>>, %arg7: memref<1024x1024xi8, #tpu.memory_space<vmem>>, %arg8: memref<1x1024xf32, #tpu.memory_space<vmem>>, %arg9: memref<1x1024xf32, #tpu.memory_space<vmem>>, %arg10: memref<1024x512xi8, #tpu.memory_space<vmem>>, %arg11: memref<1x512xf32, #tpu.memory_space<vmem>>, %arg12: memref<1x512xf32, #tpu.memory_space<vmem>>, %arg13: memref<512x128xbf16, #tpu.memory_space<vmem>>, %arg14: memref<1x128xf32, #tpu.memory_space<vmem>>, %arg15: memref<8x128xf32, #tpu.memory_space<vmem>>) attributes {dimension_semantics = [#tpu.dimension_semantics<parallel>], iteration_bounds = array<i64: 1>, scalar_prefetch = 0 : i64, scratch_operands = 0 : i64, tpu.core_type = #tpu.core_type<tc>, window_params = [{transform_indices = @transform_0, window_bounds = array<i64: 8, 4>}, {pipeline_mode = #tpu.pipeline_mode<synchronous>, transform_indices = @transform_1, window_bounds = array<i64: 4, 512>}, {pipeline_mode = #tpu.pipeline_mode<synchronous>, transform_indices = @transform_2, window_bounds = array<i64: 1, 512>}, {pipeline_mode = #tpu.pipeline_mode<synchronous>, transform_indices = @transform_3, window_bounds = array<i64: 512, 1024>}, {pipeline_mode = #tpu.pipeline_mode<synchronous>, transform_indices = @transform_4, window_bounds = array<i64: 1, 1024>}, {pipeline_mode = #tpu.pipeline_mode<synchronous>, transform_indices = @transform_5, window_bounds = array<i64: 1, 1024>}, {pipeline_mode = #tpu.pipeline_mode<synchronous>, transform_indices = @transform_6, window_bounds = array<i64: 1024, 1024>}, {pipeline_mode = #tpu.pipeline_mode<synchronous>, transform_indices = @transform_7, window_bounds = array<i64: 1, 1024>}, {pipeline_mode = #tpu.pipeline_mode<synchronous>, transform_indices = @transform_8, window_bounds = array<i64: 1, 1024>}, {pipeline_mode = #tpu.pipeline_mode<synchronous>, transform_indices = @transform_9, window_bounds = array<i64: 1024, 512>}, {pipeline_mode = #tpu.pipeline_mode<synchronous>, transform_indices = @transform_10, window_bounds = array<i64: 1, 512>}, {pipeline_mode = #tpu.pipeline_mode<synchronous>, transform_indices = @transform_11, window_bounds = array<i64: 1, 512>}, {pipeline_mode = #tpu.pipeline_mode<synchronous>, transform_indices = @transform_12, window_bounds = array<i64: 512, 128>}, {pipeline_mode = #tpu.pipeline_mode<synchronous>, transform_indices = @transform_13, window_bounds = array<i64: 1, 128>}, {transform_indices = @transform_14, window_bounds = array<i64: 8, 128>}]} {
    %c0 = arith.constant 0 : index
    %c0_0 = arith.constant 0 : index
    %0 = vector.load %arg1[%c0, %c0_0] : memref<8x4xf32, #tpu.memory_space<vmem>>, vector<8x4xf32>
    %1 = arith.truncf %0 : vector<8x4xf32> to vector<8x4xbf16>
    %c0_1 = arith.constant 0 : index
    %c0_2 = arith.constant 0 : index
    %2 = vector.load %arg2[%c0_1, %c0_2] : memref<4x512xbf16, #tpu.memory_space<vmem>>, vector<4x512xbf16>
    %cst = arith.constant dense<0.000000e+00> : vector<8x512xf32>
    %3 = tpu.matmul %1, %2, %cst {dimension_numbers = #tpu.dot_dimension_numbers<[1], [0], [0], [1], [0, 0, 1, 1], [], []>} : vector<8x4xbf16>, vector<4x512xbf16>, vector<8x512xf32> -> vector<8x512xf32>
    %c0_3 = arith.constant 0 : index
    %c0_4 = arith.constant 0 : index
    %4 = vector.load %arg3[%c0_3, %c0_4] : memref<1x512xf32, #tpu.memory_space<vmem>>, vector<1x512xf32>
    %5 = vector.broadcast %4 : vector<1x512xf32> to vector<8x512xf32>
    %6 = arith.addf %3, %5 : vector<8x512xf32>
    %cst_5 = arith.constant 0.000000e+00 : f32
    %7 = vector.broadcast %cst_5 : f32 to vector<8x512xf32>
    %8 = arith.maximumf %6, %7 : vector<8x512xf32>
    %9 = arith.truncf %8 : vector<8x512xf32> to vector<8x512xbf16>
    %c0_6 = arith.constant 0 : index
    %c0_7 = arith.constant 0 : index
    %10 = vector.load %arg4[%c0_6, %c0_7] : memref<512x1024xi8, #tpu.memory_space<vmem>>, vector<512x1024xi8>
    %11 = arith.sitofp %10 : vector<512x1024xi8> to vector<512x1024xbf16>
    %cst_8 = arith.constant dense<0.000000e+00> : vector<8x1024xf32>
    %12 = tpu.matmul %9, %11, %cst_8 {dimension_numbers = #tpu.dot_dimension_numbers<[1], [0], [0], [1], [0, 0, 1, 1], [], []>} : vector<8x512xbf16>, vector<512x1024xbf16>, vector<8x1024xf32> -> vector<8x1024xf32>
    %c0_9 = arith.constant 0 : index
    %c0_10 = arith.constant 0 : index
    %13 = vector.load %arg5[%c0_9, %c0_10] : memref<1x1024xf32, #tpu.memory_space<vmem>>, vector<1x1024xf32>
    %14 = vector.broadcast %13 : vector<1x1024xf32> to vector<8x1024xf32>
    %15 = arith.mulf %12, %14 : vector<8x1024xf32>
    %c0_11 = arith.constant 0 : index
    %c0_12 = arith.constant 0 : index
    %16 = vector.load %arg6[%c0_11, %c0_12] : memref<1x1024xf32, #tpu.memory_space<vmem>>, vector<1x1024xf32>
    %17 = vector.broadcast %16 : vector<1x1024xf32> to vector<8x1024xf32>
    %18 = arith.addf %15, %17 : vector<8x1024xf32>
    %cst_13 = arith.constant 0.000000e+00 : f32
    %19 = vector.broadcast %cst_13 : f32 to vector<8x1024xf32>
    %20 = arith.maximumf %18, %19 : vector<8x1024xf32>
    %21 = arith.truncf %20 : vector<8x1024xf32> to vector<8x1024xbf16>
    %c0_14 = arith.constant 0 : index
    %c0_15 = arith.constant 0 : index
    %22 = vector.load %arg7[%c0_14, %c0_15] : memref<1024x1024xi8, #tpu.memory_space<vmem>>, vector<1024x1024xi8>
    %23 = arith.sitofp %22 : vector<1024x1024xi8> to vector<1024x1024xbf16>
    %cst_16 = arith.constant dense<0.000000e+00> : vector<8x1024xf32>
    %24 = tpu.matmul %21, %23, %cst_16 {dimension_numbers = #tpu.dot_dimension_numbers<[1], [0], [0], [1], [0, 0, 1, 1], [], []>} : vector<8x1024xbf16>, vector<1024x1024xbf16>, vector<8x1024xf32> -> vector<8x1024xf32>
    %c0_17 = arith.constant 0 : index
    %c0_18 = arith.constant 0 : index
    %25 = vector.load %arg8[%c0_17, %c0_18] : memref<1x1024xf32, #tpu.memory_space<vmem>>, vector<1x1024xf32>
    %26 = vector.broadcast %25 : vector<1x1024xf32> to vector<8x1024xf32>
    %27 = arith.mulf %24, %26 : vector<8x1024xf32>
    %c0_19 = arith.constant 0 : index
    %c0_20 = arith.constant 0 : index
    %28 = vector.load %arg9[%c0_19, %c0_20] : memref<1x1024xf32, #tpu.memory_space<vmem>>, vector<1x1024xf32>
    %29 = vector.broadcast %28 : vector<1x1024xf32> to vector<8x1024xf32>
    %30 = arith.addf %27, %29 : vector<8x1024xf32>
    %cst_21 = arith.constant 0.000000e+00 : f32
    %31 = vector.broadcast %cst_21 : f32 to vector<8x1024xf32>
    %32 = arith.maximumf %30, %31 : vector<8x1024xf32>
    %33 = arith.truncf %32 : vector<8x1024xf32> to vector<8x1024xbf16>
    %c0_22 = arith.constant 0 : index
    %c0_23 = arith.constant 0 : index
    %34 = vector.load %arg10[%c0_22, %c0_23] : memref<1024x512xi8, #tpu.memory_space<vmem>>, vector<1024x512xi8>
    %35 = arith.sitofp %34 : vector<1024x512xi8> to vector<1024x512xbf16>
    %cst_24 = arith.constant dense<0.000000e+00> : vector<8x512xf32>
    %36 = tpu.matmul %33, %35, %cst_24 {dimension_numbers = #tpu.dot_dimension_numbers<[1], [0], [0], [1], [0, 0, 1, 1], [], []>} : vector<8x1024xbf16>, vector<1024x512xbf16>, vector<8x512xf32> -> vector<8x512xf32>
    %c0_25 = arith.constant 0 : index
    %c0_26 = arith.constant 0 : index
    %37 = vector.load %arg11[%c0_25, %c0_26] : memref<1x512xf32, #tpu.memory_space<vmem>>, vector<1x512xf32>
    %38 = vector.broadcast %37 : vector<1x512xf32> to vector<8x512xf32>
    %39 = arith.mulf %36, %38 : vector<8x512xf32>
    %c0_27 = arith.constant 0 : index
    %c0_28 = arith.constant 0 : index
    %40 = vector.load %arg12[%c0_27, %c0_28] : memref<1x512xf32, #tpu.memory_space<vmem>>, vector<1x512xf32>
    %41 = vector.broadcast %40 : vector<1x512xf32> to vector<8x512xf32>
    %42 = arith.addf %39, %41 : vector<8x512xf32>
    %cst_29 = arith.constant 0.000000e+00 : f32
    %43 = vector.broadcast %cst_29 : f32 to vector<8x512xf32>
    %44 = arith.maximumf %42, %43 : vector<8x512xf32>
    %45 = arith.truncf %44 : vector<8x512xf32> to vector<8x512xbf16>
    %c0_30 = arith.constant 0 : index
    %c0_31 = arith.constant 0 : index
    %46 = vector.load %arg13[%c0_30, %c0_31] : memref<512x128xbf16, #tpu.memory_space<vmem>>, vector<512x128xbf16>
    %cst_32 = arith.constant dense<0.000000e+00> : vector<8x128xf32>
    %47 = tpu.matmul %45, %46, %cst_32 {dimension_numbers = #tpu.dot_dimension_numbers<[1], [0], [0], [1], [0, 0, 1, 1], [], []>} : vector<8x512xbf16>, vector<512x128xbf16>, vector<8x128xf32> -> vector<8x128xf32>
    %c0_33 = arith.constant 0 : index
    %c0_34 = arith.constant 0 : index
    %48 = vector.load %arg14[%c0_33, %c0_34] : memref<1x128xf32, #tpu.memory_space<vmem>>, vector<1x128xf32>
    %49 = vector.broadcast %48 : vector<1x128xf32> to vector<8x128xf32>
    %50 = arith.addf %47, %49 : vector<8x128xf32>
    %c0_35 = arith.constant 0 : index
    %c0_36 = arith.constant 0 : index
    %51 = vector.load %arg15[%c0_35, %c0_36] : memref<8x128xf32, #tpu.memory_space<vmem>>, vector<8x128xf32>
    tpu.vector_store %arg15[%c0_35, %c0_36], %50 {strides = array<i32>} : memref<8x128xf32, #tpu.memory_space<vmem>>, vector<8x128xf32>,
    return
  }
  func.func @transform_0(%arg0: i32) -> (i32, i32) {
    %c0_i32 = arith.constant 0 : i32
    %c0_i32_0 = arith.constant 0 : i32
    return %arg0, %c0_i32 : i32, i32
  }
  func.func @transform_1(%arg0: i32) -> (i32, i32) {
    %c0_i32 = arith.constant 0 : i32
    %c0_i32_0 = arith.constant 0 : i32
    %c0_i32_1 = arith.constant 0 : i32
    return %c0_i32, %c0_i32_0 : i32, i32
  }
  func.func @transform_2(%arg0: i32) -> (i32, i32) {
    %c0_i32 = arith.constant 0 : i32
    %c0_i32_0 = arith.constant 0 : i32
    %c0_i32_1 = arith.constant 0 : i32
    return %c0_i32, %c0_i32_0 : i32, i32
  }
  func.func @transform_3(%arg0: i32) -> (i32, i32) {
    %c0_i32 = arith.constant 0 : i32
    %c0_i32_0 = arith.constant 0 : i32
    %c0_i32_1 = arith.constant 0 : i32
    return %c0_i32, %c0_i32_0 : i32, i32
  }
  func.func @transform_4(%arg0: i32) -> (i32, i32) {
    %c0_i32 = arith.constant 0 : i32
    %c0_i32_0 = arith.constant 0 : i32
    %c0_i32_1 = arith.constant 0 : i32
    return %c0_i32, %c0_i32_0 : i32, i32
  }
  func.func @transform_5(%arg0: i32) -> (i32, i32) {
    %c0_i32 = arith.constant 0 : i32
    %c0_i32_0 = arith.constant 0 : i32
    %c0_i32_1 = arith.constant 0 : i32
    return %c0_i32, %c0_i32_0 : i32, i32
  }
  func.func @transform_6(%arg0: i32) -> (i32, i32) {
    %c0_i32 = arith.constant 0 : i32
    %c0_i32_0 = arith.constant 0 : i32
    %c0_i32_1 = arith.constant 0 : i32
    return %c0_i32, %c0_i32_0 : i32, i32
  }
  func.func @transform_7(%arg0: i32) -> (i32, i32) {
    %c0_i32 = arith.constant 0 : i32
    %c0_i32_0 = arith.constant 0 : i32
    %c0_i32_1 = arith.constant 0 : i32
    return %c0_i32, %c0_i32_0 : i32, i32
  }
  func.func @transform_8(%arg0: i32) -> (i32, i32) {
    %c0_i32 = arith.constant 0 : i32
    %c0_i32_0 = arith.constant 0 : i32
    %c0_i32_1 = arith.constant 0 : i32
    return %c0_i32, %c0_i32_0 : i32, i32
  }
  func.func @transform_9(%arg0: i32) -> (i32, i32) {
    %c0_i32 = arith.constant 0 : i32
    %c0_i32_0 = arith.constant 0 : i32
    %c0_i32_1 = arith.constant 0 : i32
    return %c0_i32, %c0_i32_0 : i32, i32
  }
  func.func @transform_10(%arg0: i32) -> (i32, i32) {
    %c0_i32 = arith.constant 0 : i32
    %c0_i32_0 = arith.constant 0 : i32
    %c0_i32_1 = arith.constant 0 : i32
    return %c0_i32, %c0_i32_0 : i32, i32
  }
  func.func @transform_11(%arg0: i32) -> (i32, i32) {
    %c0_i32 = arith.constant 0 : i32
    %c0_i32_0 = arith.constant 0 : i32
    %c0_i32_1 = arith.constant 0 : i32
    return %c0_i32, %c0_i32_0 : i32, i32
  }
  func.func @transform_12(%arg0: i32) -> (i32, i32) {
    %c0_i32 = arith.constant 0 : i32
    %c0_i32_0 = arith.constant 0 : i32
    %c0_i32_1 = arith.constant 0 : i32
    return %c0_i32, %c0_i32_0 : i32, i32
  }
  func.func @transform_13(%arg0: i32) -> (i32, i32) {
    %c0_i32 = arith.constant 0 : i32
    %c0_i32_0 = arith.constant 0 : i32
    %c0_i32_1 = arith.constant 0 : i32
    return %c0_i32, %c0_i32_0 : i32, i32
  }
  func.func @transform_14(%arg0: i32) -> (i32, i32) {
    %c0_i32 = arith.constant 0 : i32
    %c0_i32_0 = arith.constant 0 : i32
    return %arg0, %c0_i32 : i32, i32
  }
}

</mosaic_0001>

<bundles_post_ra>
// kernel: tpu_custom_call.1
= control target key start
LH: loop header
LB: loop body
LE: loop exit
PB: predicated region body
PF: predicated region fallthrough
CT: control target
= control target key end

     0   :  { %19 = vsyncpa [#allocation3], 0  ;;  %s4558_s0 = inlined_call_operand.vmem [shape: f32[8,4], index: 0, kind: input, shape index: {}]   ;;  %s4559_s1 = inlined_call_operand.vmem [shape: bf16[4,512], index: 1, kind: input, shape index: {}]   ;;  %s4560_s2 = inlined_call_operand.hbm [shape: f32[1,512], index: 2, kind: input, shape index: {}]   ;;  %s4561_s3 = inlined_call_operand.hbm [shape: s8[512,1024], index: 3, kind: input, shape index: {}]   ;;  %s4562_s4 = inlined_call_operand.vmem [shape: f32[1,1024], index: 4, kind: input, shape index: {}]   ;;  %s4563_s5 = inlined_call_operand.hbm [shape: f32[1,1024], index: 5, kind: input, shape index: {}]   ;;  %s4564_s6 = inlined_call_operand.hbm [shape: s8[1024,1024], index: 6, kind: input, shape index: {}]   ;;  %s4565_s7 = inlined_call_operand.vmem [shape: f32[1,1024], index: 7, kind: input, shape index: {}]   ;;  %s4566_s8 = inlined_call_operand.hbm [shape: f32[1,1024], index: 8, kind: input, shape index: {}]   ;;  %s4567_s9 = inlined_call_operand.hbm [shape: s8[1024,512], index: 9, kind: input, shape index: {}]   ;;  %s4568_s10 = inlined_call_operand.vmem [shape: f32[1,512], index: 10, kind: input, shape index: {}]   ;;  %s4569_s11 = inlined_call_operand.vmem [shape: f32[1,512], index: 11, kind: input, shape index: {}]   ;;  %s4570_s12 = inlined_call_operand.hbm [shape: bf16[512,128], index: 12, kind: input, shape index: {}]   ;;  %s4571_s13 = inlined_call_operand.vmem [shape: f32[1,128], index: 13, kind: input, shape index: {}]   ;;  %s4572_s14 = inlined_call_operand.hbm [shape: f32[8,128], index: 14, kind: output, shape index: {}]  }
   0x1   :  { %20 = vsyncpa [#allocation6], 0 }
   0x2   :  { %21 = vsyncpa [#allocation9], 0 }
   0x3   :  { %22 = vsyncpa [#allocation12], 0 }
   0x4   :  { %23 = vsyncpa [#allocation4], 0  ;;  %s4091_s29 = smov [#allocation5]  }
   0x5   :  { %s43_s30 = sshll.u32 %s4091_s29, 4  ;;  %s44_s30 = int_to_ptr.vmem [resolvable:$true] %s43_s30 }
   0x6   :  { %s3929_s15 = scalar_lea.vmem %s44_s30, 16384  ;;  %p3934_p1 = scmp.lt.s32.totalorder %s44_s30, %s44_s30 }
   0x7   :  { %p3930_p0 = scmp.ne.s32.totalorder %s44_s30, %s3929_s15  ;;  %p3935_p2 = scmp.lt.s32.totalorder %s3929_s15, %s3929_s15 }
   0x9   :  { %p3936_p3 = por %p3935_p2, %p3934_p1 }
   0xb   :  { %p3937_p4 = pnand %p3936_p3, %p3930_p0 }
   0xd   :  { %3940 = shalt.err (!%p3937_p4)
}
   0xe   :  { %s4092_s16 = smov 1024   ;;  %s4093_s17 = smov 64  }
   0xf   :  { %49 = dma.hbm_to_vmem [thread:$0]  %s4561_s3, 16384, %s44_s30, [#allocation6], %s4092_s16, %s4092_s16, %s4093_s17  }
  0x10   :  { %s4094_s20 = smov [#allocation8]   ;;  %s4095_s22 = smov [#allocation11]  }
  0x11   :  { %s67_s21 = sshll.u32 %s4094_s20, 4  ;;  %s91_s23 = sshll.u32 %s4095_s22, 4  ;;  %s68_s21 = int_to_ptr.vmem [resolvable:$true] %s67_s21  ;;  %s92_s23 = int_to_ptr.vmem [resolvable:$true] %s91_s23 }
  0x12   :  { %s3949_s24 = scalar_lea.vmem %s68_s21, 32768  ;;  %p3954_p6 = scmp.lt.s32.totalorder %s68_s21, %s68_s21 }
  0x13   :  { %p3950_p5 = scmp.ne.s32.totalorder %s68_s21, %s3949_s24  ;;  %p3955_p7 = scmp.lt.s32.totalorder %s3949_s24, %s3949_s24 }
  0x15   :  { %p3956_p8 = por %p3955_p7, %p3954_p6 }
  0x17   :  { %p3957_p9 = pnand %p3956_p8, %p3950_p5 }
  0x19   :  { %3960 = shalt.err (!%p3957_p9)
}
  0x1a   :  { %73 = dma.hbm_to_vmem [thread:$0]  %s4564_s6, 32768, %s68_s21, [#allocation9], %s4092_s16, %s4092_s16, %s4093_s17  }
  0x1b   :  { %s3969_s27 = scalar_lea.vmem %s92_s23, 16384  ;;  %p3974_p11 = scmp.lt.s32.totalorder %s92_s23, %s92_s23 }
  0x1c   :  { %p3970_p10 = scmp.ne.s32.totalorder %s92_s23, %s3969_s27  ;;  %p3975_p12 = scmp.lt.s32.totalorder %s3969_s27, %s3969_s27 }
  0x1e   :  { %p3976_p13 = por %p3975_p12, %p3974_p11 }
  0x20   :  { %p3977_p0 = pnand %p3976_p13, %p3970_p10 }
  0x22   :  { %3980 = shalt.err (!%p3977_p0)
}
  0x23   :  { %s4096_s3 = smov 512   ;;  %s4097_s28 = smov 32  }
  0x24   :  { %97 = dma.hbm_to_vmem [thread:$0]  %s4567_s9, 16384, %s92_s23, [#allocation12], %s4096_s3, %s4096_s3, %s4097_s28  }
  0x25   :  { %s4098_s15 = smov [#allocation2]   ;;  %s4099_s19 = smov [#allocation7]  }
  0x26   :  { %s34_s18 = sshll.u32 %s4098_s15, 4  ;;  %s58_s20 = sshll.u32 %s4099_s19, 4  ;;  %s35_s18 = int_to_ptr.vmem [resolvable:$true] %s34_s18  ;;  %s59_s20 = int_to_ptr.vmem [resolvable:$true] %s58_s20 }
  0x27   :  { %s3989_s6 = scalar_lea.vmem %s35_s18, 64  ;;  %p3994_p2 = scmp.lt.s32.totalorder %s35_s18, %s35_s18 }
  0x28   :  { %p3990_p1 = scmp.ne.s32.totalorder %s35_s18, %s3989_s6  ;;  %p3995_p3 = scmp.lt.s32.totalorder %s3989_s6, %s3989_s6 }
  0x2a   :  { %p3996_p4 = por %p3995_p3, %p3994_p2 }
  0x2c   :  { %p3997_p5 = pnand %p3996_p4, %p3990_p1 }
  0x2e   :  { %4000 = shalt.err (!%p3997_p5)
}
  0x2f   :  { %37 = dma.hbm_to_vmem [thread:$0]  %s4560_s2, 64, %s35_s18, [#allocation3]  }
  0x30   :  { %s4009_s22 = scalar_lea.vmem %s59_s20, 128  ;;  %p4014_p7 = scmp.lt.s32.totalorder %s59_s20, %s59_s20 }
  0x31   :  { %p4010_p6 = scmp.ne.s32.totalorder %s59_s20, %s4009_s22  ;;  %p4015_p8 = scmp.lt.s32.totalorder %s4009_s22, %s4009_s22 }
  0x33   :  { %p4016_p9 = por %p4015_p8, %p4014_p7 }
  0x35   :  { %p4017_p10 = pnand %p4016_p9, %p4010_p6 }
  0x37   :  { %4020 = shalt.err (!%p4017_p10)
}
  0x38   :  { %61 = dma.hbm_to_vmem [thread:$0]  %s4563_s5, 128, %s59_s20, [#allocation6]  }
  0x39   :  { %s4100_s24 = smov [#allocation10]   ;;  %s4101_s26 = smov [#allocation13]  }
  0x3a   :  { %s82_s25 = sshll.u32 %s4100_s24, 4  ;;  %s107_s27 = sshll.u32 %s4101_s26, 4  ;;  %s83_s25 = int_to_ptr.vmem [resolvable:$true] %s82_s25  ;;  %s108_s27 = int_to_ptr.vmem [resolvable:$true] %s107_s27 }
  0x3b   :  { %s4029_s3 = scalar_lea.vmem %s83_s25, 128  ;;  %p4034_p12 = scmp.lt.s32.totalorder %s83_s25, %s83_s25 }
  0x3c   :  { %p4030_p11 = scmp.ne.s32.totalorder %s83_s25, %s4029_s3  ;;  %p4035_p13 = scmp.lt.s32.totalorder %s4029_s3, %s4029_s3 }
  0x3e   :  { %p4036_p0 = por %p4035_p13, %p4034_p12 }
  0x40   :  { %p4037_p1 = pnand %p4036_p0, %p4030_p11 }
  0x42   :  { %4040 = shalt.err (!%p4037_p1)
}
  0x43   :  { %85 = dma.hbm_to_vmem [thread:$0]  %s4566_s8, 128, %s83_s25, [#allocation9]  }
  0x44   :  { %s4049_s29 = scalar_lea.vmem %s108_s27, 4096  ;;  %p4054_p3 = scmp.lt.s32.totalorder %s108_s27, %s108_s27 }
  0x45   :  { %p4050_p2 = scmp.ne.s32.totalorder %s108_s27, %s4049_s29  ;;  %p4055_p4 = scmp.lt.s32.totalorder %s4049_s29, %s4049_s29 }
  0x47   :  { %p4056_p5 = por %p4055_p4, %p4054_p3 }
  0x49   :  { %p4057_p6 = pnand %p4056_p5, %p4050_p2 }
  0x4b   :  { %4060 = shalt.err (!%p4057_p6)
}
  0x4c   :  { %s4102_s5 = smov 4  }
  0x4d   :  { %113 = dma.hbm_to_vmem [thread:$0]  %s4570_s12, 4096, %s108_s27, [#allocation12], %s4093_s17, %s4093_s17, %s4102_s5  }
  0x4e   :  { %4081 = dma.done.wait [#allocation3], 64  }
  0x4f   :  { %4082 = vsyncadd [#allocation3], 4294967232 }
  0x50   :  { %4083 = dma.done.wait [#allocation6], 16512  }
  0x51   :  { %4084 = vsyncadd [#allocation6], 4294950784 }
  0x52   :  { %4085 = dma.done.wait [#allocation9], 32896  }
  0x53   :  { %4086 = vsyncadd [#allocation9], 4294934400 }
  0x54   :  { %4087 = dma.done.wait [#allocation12], 20480  }
  0x55   :  { %4088 = vsyncadd [#allocation12], 4294946816  ;;  %v143_v0 = vlaneseq  ;;  %v4103_v1 = vmov 1983009808   ;;  %v4104_v3 = vmov 0   ;;  %v140_v7 = vld [vmem:[%s4559_s1] sm:$0xff] }
  0x56   :  { %v166_v2 = vunpack.c.l.s4 %v4103_v1  ;;  %230 = vmatprep.mubr.bf16.mxu0 %v4104_v3  ;;  %271 = vmatprep.mubr.bf16.mxu1 %v4104_v3  ;;  %vm185_vm0 = vcmask 1041408   ;;  %v313_v8 = vld [vmem:[#allocation5 + $0xc8] sm:$0xff]  ;;  %v164_v10 = vcombine.high %v140_v7, %v140_v7  ;;  %v312_v17 = vld [vmem:[#allocation5 + $0xc0] sm:$0xff]  ;;  %vm181_vm1 = vcmask 31744   ;;  %s4105_s9 = smov [#allocation14]  }
  0x57   :  { %v4206_v4 = vshrl.u32 %v143_v0, 7  ;;  %v138_v11 = vld [vmem:[%s4558_s0] sm:$0xff]  ;;  %v473_v16 = vunpack.c.h.s8.bf16 %v313_v8  ;;  %v472_v23 = vunpack.c.h.s8.bf16 %v312_v17  ;;  %v465_v24 = vunpack.c.l.s8.bf16 %v313_v8  ;;  %s3778_s23 = sshll.u32 %s4105_s9, 4  ;;  %s3779_s23 = int_to_ptr.vmem [resolvable:$true] %s3778_s23 }
  0x58   :  { %v167_v5 = vunpack.c.0.s8 %v166_v2  ;;  %v377_v12 = vld [vmem:[#allocation5 + $0x2c8] sm:$0xff]  ;;  %v139_v20 = vpack.c.bf16 %v138_v11, %v138_v11  ;;  %v376_v22 = vld [vmem:[#allocation5 + $0x2c0] sm:$0xff]  ;;  %v464_v29 = vunpack.c.l.s8.bf16 %v312_v17  ;;  %s4061_s24 = scalar_lea.vmem %s3779_s23, 128  ;;  %p4066_p8 = scmp.lt.s32.totalorder %s3779_s23, %s3779_s23 }
  0x59   :  { %v601_v21 = vunpack.c.h.s8.bf16 %v377_v12  ;;  %v600_v25 = vunpack.c.h.s8.bf16 %v376_v22  ;;  %v305_v26 = vld [vmem:[#allocation5 + $0x88] sm:$0xff]  ;;  %v593_v27 = vunpack.c.l.s8.bf16 %v377_v12  ;;  %v304_v28 = vld [vmem:[#allocation5 + $0x80] sm:$0xff]  ;;  %v592_v33 = vunpack.c.l.s8.bf16 %v376_v22  ;;  %p4062_p7 = scmp.ne.s32.totalorder %s3779_s23, %s4061_s24  ;;  %p4067_p9 = scmp.lt.s32.totalorder %s4061_s24, %s4061_s24 }
  0x5a   :  { %v170_v6 = vsub.s32 %v167_v5, %v4206_v4  ;;  %v369_v30 = vld [vmem:[#allocation5 + $0x288] sm:$0xff]  ;;  %v457_v31 = vunpack.c.h.s8.bf16 %v305_v26  ;;  %v368_v32 = vld [vmem:[#allocation5 + $0x280] sm:$0xff]  ;;  %v456_v35 = vunpack.c.h.s8.bf16 %v304_v28  ;;  %v449_v37 = vunpack.c.l.s8.bf16 %v305_v26 }
  0x5b   :  { %v585_v34 = vunpack.c.h.s8.bf16 %v369_v30  ;;  %v297_v36 = vld [vmem:[#allocation5 + $0x48] sm:$0xff]  ;;  %v584_v38 = vunpack.c.h.s8.bf16 %v368_v32  ;;  %v577_v40 = vunpack.c.l.s8.bf16 %v369_v30  ;;  %v296_v41 = vld [vmem:[#allocation5 + $0x40] sm:$0xff]  ;;  %v448_v42 = vunpack.c.l.s8.bf16 %v304_v28  ;;  %p4068_p10 = por %p4067_p9, %p4066_p8 }
  0x5c   :  { %v171_v9 = vrot.slane %v140_v7, %v170_v6  ;;  %v178_v15 = vrot.slane %v164_v10, %v170_v6  ;;  %v361_v39 = vld [vmem:[#allocation5 + $0x248] sm:$0xff]  ;;  %v441_v43 = vunpack.c.h.s8.bf16 %v297_v36  ;;  %v360_v44 = vld [vmem:[#allocation5 + $0x240] sm:$0xff]  ;;  %v576_v45 = vunpack.c.l.s8.bf16 %v368_v32 }
  0x5d   :  { %v569_v46 = vunpack.c.h.s8.bf16 %v361_v39  ;;  %v440_v47 = vunpack.c.h.s8.bf16 %v296_v41  ;;  %v289_v48 = vld [vmem:[#allocation5 + $0x8] sm:$0xff]  ;;  %v433_v49 = vunpack.c.l.s8.bf16 %v297_v36  ;;  %v568_v50 = vunpack.c.h.s8.bf16 %v360_v44  ;;  %v288_v53 = vld [vmem:[#allocation5] sm:$0xff]  ;;  %p4069_p11 = pnand %p4068_p10, %p4062_p7 }
  0x5e   :  { %v179_v13 = vcombine.high %v171_v9, %v171_v9  ;;  %v187_v14 = vsel %vm185_vm0, %v171_v9, 0  ;;  %v180_v18 = vcombine.high %v178_v15, %v178_v15  ;;  %v193_v19 = vsel %vm185_vm0, %v178_v15, 0  ;;  %v353_v51 = vld [vmem:[#allocation5 + $0x208] sm:$0xff]  ;;  %v352_v56 = vld [vmem:[#allocation5 + $0x200] sm:$0xff] }
  0x5f   :  { %v561_v52 = vunpack.c.l.s8.bf16 %v361_v39  ;;  %v432_v54 = vunpack.c.l.s8.bf16 %v296_v41  ;;  %v425_v55 = vunpack.c.h.s8.bf16 %v289_v48  ;;  %v560_v57 = vunpack.c.l.s8.bf16 %v360_v44  ;;  %v345_v62 = vld [vmem:[#allocation5 + $0x1c8] sm:$0xff]  ;;  %v344_v3 = vld [vmem:[#allocation5 + $0x1c0] sm:$0xff] }
  0x60   :  { %3790 = vmatprep.subr.msk.bf16.mxu0 %vm185_vm0, %v179_v13  ;;  %3792 = vmatprep.subr.msk.bf16.mxu1 %vm185_vm0, %v180_v18  ;;  %v553_v58 = vunpack.c.h.s8.bf16 %v353_v51  ;;  %v424_v59 = vunpack.c.h.s8.bf16 %v288_v53  ;;  %v417_v60 = vunpack.c.l.s8.bf16 %v289_v48  ;;  %v552_v61 = vunpack.c.h.s8.bf16 %v352_v56  ;;  %v409_v1 = vld [vmem:[#allocation5 + $0x3c8] sm:$0xff]  ;;  %v408_v7 = vld [vmem:[#allocation5 + $0x3c0] sm:$0xff] }
  0x61   :  { %213 = vmatpush1.bf16.msra.mxu0 %v187_v14  ;;  %254 = vmatpush1.bf16.msra.mxu1 %v193_v19  ;;  %v545_v63 = vunpack.c.l.s8.bf16 %v353_v51  ;;  %v416_v0 = vunpack.c.l.s8.bf16 %v288_v53  ;;  %v537_v2 = vunpack.c.h.s8.bf16 %v345_v62  ;;  %v544_v5 = vunpack.c.l.s8.bf16 %v352_v56  ;;  %v337_v11 = vld [vmem:[#allocation5 + $0x188] sm:$0xff]  ;;  %v400_v19 = vld [vmem:[#allocation5 + $0x380] sm:$0xff] }
  0x62   :  { %672 = vmatprep.subr.bf16.mxu0 %v473_v16  ;;  %713 = vmatprep.subr.bf16.mxu1 %v601_v21  ;;  %v665_v6 = vunpack.c.h.s8.bf16 %v409_v1  ;;  %v536_v8 = vunpack.c.h.s8.bf16 %v344_v3  ;;  %v529_v9 = vunpack.c.l.s8.bf16 %v345_v62  ;;  %v664_v10 = vunpack.c.h.s8.bf16 %v408_v7  ;;  %v401_v14 = vld [vmem:[#allocation5 + $0x388] sm:$0xff]  ;;  %v336_v16 = vld [vmem:[#allocation5 + $0x180] sm:$0xff] }
  0x63   :  { %v657_v12 = vunpack.c.l.s8.bf16 %v409_v1  ;;  %v528_v13 = vunpack.c.l.s8.bf16 %v344_v3  ;;  %v521_v15 = vunpack.c.h.s8.bf16 %v337_v11  ;;  %v656_v17 = vunpack.c.l.s8.bf16 %v408_v7  ;;  %v393_v26 = vld [vmem:[#allocation5 + $0x348] sm:$0xff]  ;;  %v328_v28 = vld [vmem:[#allocation5 + $0x140] sm:$0xff] }
  0x64   :  { %3791 = vmatmul.mubr.msk.bf16.vlgmr.msra.gmra.mxu0 %vm181_vm1, %v139_v20  ;;  %3793 = vmatmul.mubr.msk.bf16.vlgmr.msra.gmra.mxu1 %vm181_vm1, %v139_v20  ;;  %v649_v18 = vunpack.c.h.s8.bf16 %v401_v14  ;;  %v520_v20 = vunpack.c.h.s8.bf16 %v336_v16  ;;  %v513_v21 = vunpack.c.l.s8.bf16 %v337_v11  ;;  %v648_v22 = vunpack.c.h.s8.bf16 %v400_v19  ;;  %v384_v44 = vld [vmem:[#allocation5 + $0x300] sm:$0xff] }
  0x65   :  { %673 = vmatpush1.bf16.msra.mxu0 %v472_v23  ;;  %714 = vmatpush1.bf16.msra.mxu1 %v600_v25  ;;  %v329_v23 = vld [vmem:[#allocation5 + $0x148] sm:$0xff]  ;;  %v512_v25 = vunpack.c.l.s8.bf16 %v336_v16  ;;  %v633_v30 = vunpack.c.h.s8.bf16 %v393_v26  ;;  %v504_v32 = vunpack.c.h.s8.bf16 %v328_v28  ;;  %v496_v36 = vunpack.c.l.s8.bf16 %v328_v28  ;;  %v378_v16 = vld [vmem:[#allocation5 + $0x2d0] sm:$0xff]  ;;  %v371_v28 = vld [vmem:[#allocation5 + $0x298] sm:$0xff] }
  0x66   :  { %674 = vmatprep.subr.bf16.mxu0 %v465_v24  ;;  %715 = vmatprep.subr.bf16.mxu1 %v593_v27  ;;  %v641_v24 = vunpack.c.l.s8.bf16 %v401_v14  ;;  %v505_v27 = vunpack.c.h.s8.bf16 %v329_v23  ;;  %v4223_v56 = vsub.s32 1, %v4206_v4 }
  0x69   :  { %675 = vmatpush1.bf16.msra.mxu0 %v464_v29  ;;  %716 = vmatpush1.bf16.msra.mxu1 %v592_v33  ;;  %v640_v29 = vunpack.c.l.s8.bf16 %v400_v19  ;;  %v497_v33 = vunpack.c.l.s8.bf16 %v329_v23 }
  0x6a   :  { %676 = vmatprep.subr.bf16.mxu0 %v457_v31  ;;  %717 = vmatprep.subr.bf16.mxu1 %v585_v34  ;;  %v392_v31 = vld [vmem:[#allocation5 + $0x340] sm:$0xff] }
  0x6b   :  { %v632_v34 = vunpack.c.h.s8.bf16 %v392_v31 }
  0x6d   :  { %677 = vmatpush1.bf16.msra.mxu0 %v456_v35  ;;  %718 = vmatpush1.bf16.msra.mxu1 %v584_v38  ;;  %v625_v35 = vunpack.c.l.s8.bf16 %v393_v26  ;;  %v321_v38 = vld [vmem:[#allocation5 + $0x108] sm:$0xff] }
  0x6e   :  { %678 = vmatprep.subr.bf16.mxu0 %v449_v37  ;;  %719 = vmatprep.subr.bf16.mxu1 %v577_v40  ;;  %v624_v37 = vunpack.c.l.s8.bf16 %v392_v31  ;;  %v489_v39 = vunpack.c.h.s8.bf16 %v321_v38  ;;  %v320_v40 = vld [vmem:[#allocation5 + $0x100] sm:$0xff]  ;;  %v594_v31 = vunpack.c.l.s8.bf16 %v378_v16 }
  0x6f   :  { %v488_v41 = vunpack.c.h.s8.bf16 %v320_v40 }
  0x71   :  { %679 = vmatpush1.bf16.msra.mxu0 %v448_v42  ;;  %720 = vmatpush1.bf16.msra.mxu1 %v576_v45  ;;  %v385_v42 = vld [vmem:[#allocation5 + $0x308] sm:$0xff]  ;;  %v616_v45 = vunpack.c.h.s8.bf16 %v384_v44 }
  0x72   :  { %680 = vmatprep.subr.bf16.mxu0 %v441_v43  ;;  %721 = vmatprep.subr.bf16.mxu1 %v569_v46  ;;  %v617_v43 = vunpack.c.h.s8.bf16 %v385_v42  ;;  %v481_v46 = vunpack.c.l.s8.bf16 %v321_v38  ;;  %v609_v48 = vunpack.c.l.s8.bf16 %v385_v42  ;;  %v579_v38 = vunpack.c.l.s8.bf16 %v371_v28  ;;  %v298_v42 = vld [vmem:[#allocation5 + $0x50] sm:$0xff] }
  0x75   :  { %681 = vmatpush1.bf16.msra.mxu0 %v440_v47  ;;  %722 = vmatpush1.bf16.msra.mxu1 %v568_v50  ;;  %v480_v47 = vunpack.c.l.s8.bf16 %v320_v40  ;;  %v315_v50 = vld [vmem:[#allocation5 + $0xd8] sm:$0xff] }
  0x76   :  { %682 = vmatprep.subr.bf16.mxu0 %v433_v49  ;;  %723 = vmatprep.subr.bf16.mxu1 %v561_v52  ;;  %v608_v49 = vunpack.c.l.s8.bf16 %v384_v44  ;;  %v475_v51 = vunpack.c.h.s8.bf16 %v315_v50  ;;  %v379_v52 = vld [vmem:[#allocation5 + $0x2d8] sm:$0xff]  ;;  %v467_v23 = vunpack.c.l.s8.bf16 %v315_v50 }
  0x77   :  { %v603_v53 = vunpack.c.h.s8.bf16 %v379_v52  ;;  %v595_v26 = vunpack.c.l.s8.bf16 %v379_v52  ;;  %v363_v40 = vld [vmem:[#allocation5 + $0x258] sm:$0xff] }
  0x78   :  { %v571_v44 = vunpack.c.h.s8.bf16 %v363_v40  ;;  %v563_v50 = vunpack.c.l.s8.bf16 %v363_v40  ;;  %v355_v52 = vld [vmem:[#allocation5 + $0x218] sm:$0xff] }
  0x79   :  { %683 = vmatpush1.bf16.msra.mxu0 %v432_v54  ;;  %724 = vmatpush1.bf16.msra.mxu1 %v560_v57  ;;  %v4220_v54 = vsub.s32 0, %v4206_v4  ;;  %v4226_v57 = vsub.s32 2, %v4206_v4 }
  0x7a   :  { %684 = vmatprep.subr.bf16.mxu0 %v425_v55  ;;  %725 = vmatprep.subr.bf16.mxu1 %v553_v58  ;;  %v141_v55 = vld [vmem:[#allocation2] sm:$0xf] }
  0x7b   :  { %v146_v58 = vrot.slane %v141_v55, %v4220_v54 }
  0x7d   :  { %685 = vmatpush1.bf16.msra.mxu0 %v424_v59  ;;  %726 = vmatpush1.bf16.msra.mxu1 %v552_v61  ;;  %v4230_v59 = vsub.s32 3, %v4206_v4  ;;  %v154_v61 = vrot.slane %v141_v55, %v4226_v57 }
  0x7e   :  { %686 = vmatprep.subr.bf16.mxu0 %v417_v60  ;;  %727 = vmatprep.subr.bf16.mxu1 %v545_v63  ;;  %v150_v60 = vrot.slane %v141_v55, %v4223_v56 }
  0x81   :  { %687 = vmatpush1.bf16.msra.mxu0 %v416_v0  ;;  %728 = vmatpush1.bf16.msra.mxu1 %v544_v5  ;;  %v158_v0 = vrot.slane %v141_v55, %v4230_v59  ;;  %v290_v55 = vld [vmem:[#allocation5 + $0x10] sm:$0xff] }
  0x82   :  { %688 = vmatprep.subr.bf16.mxu0 %v537_v2  ;;  %729 = vmatprep.subr.bf16.mxu1 %v665_v6 }
  0x85   :  { %689 = vmatpush2.bf16.msra.mxu0 %v536_v8  ;;  %730 = vmatpush2.bf16.msra.mxu1 %v664_v10 }
  0x86   :  { %690 = vmatprep.subr.bf16.mxu0 %v529_v9  ;;  %731 = vmatprep.subr.bf16.mxu1 %v657_v12  ;;  %v314_v9 = vld [vmem:[#allocation5 + $0xd0] sm:$0xff] }
  0x87   :  { %v474_v19 = vunpack.c.h.s8.bf16 %v314_v9 }
  0x89   :  { %691 = vmatpush2.bf16.msra.mxu0 %v528_v13  ;;  %732 = vmatpush2.bf16.msra.mxu1 %v656_v17 }
  0x8a   :  { %692 = vmatprep.subr.bf16.mxu0 %v521_v15  ;;  %733 = vmatprep.subr.bf16.mxu1 %v649_v18 }
  0x8d   :  { %693 = vmatpush2.bf16.msra.mxu0 %v520_v20  ;;  %734 = vmatpush2.bf16.msra.mxu1 %v648_v22  ;;  %v602_v22 = vunpack.c.h.s8.bf16 %v378_v16 }
  0x8e   :  { %694 = vmatprep.subr.bf16.mxu0 %v513_v21  ;;  %735 = vmatprep.subr.bf16.mxu1 %v641_v24  ;;  %v307_v24 = vld [vmem:[#allocation5 + $0x98] sm:$0xff] }
  0x91   :  { %695 = vmatpush2.bf16.msra.mxu0 %v512_v25  ;;  %736 = vmatpush2.bf16.msra.mxu1 %v640_v29  ;;  %v459_v29 = vunpack.c.h.s8.bf16 %v307_v24 }
  0x92   :  { %696 = vmatprep.subr.bf16.mxu0 %v505_v27  ;;  %737 = vmatprep.subr.bf16.mxu1 %v633_v30  ;;  %v466_v27 = vunpack.c.l.s8.bf16 %v314_v9  ;;  %v306_v30 = vld [vmem:[#allocation5 + $0x90] sm:$0xff] }
  0x95   :  { %697 = vmatpush2.bf16.msra.mxu0 %v504_v32  ;;  %738 = vmatpush2.bf16.msra.mxu1 %v632_v34  ;;  %v587_v32 = vunpack.c.h.s8.bf16 %v371_v28  ;;  %v458_v34 = vunpack.c.h.s8.bf16 %v306_v30 }
  0x96   :  { %698 = vmatprep.subr.bf16.mxu0 %v497_v33  ;;  %739 = vmatprep.subr.bf16.mxu1 %v625_v35  ;;  %v370_v33 = vld [vmem:[#allocation5 + $0x290] sm:$0xff]  ;;  %v451_v35 = vunpack.c.l.s8.bf16 %v307_v24 }
  0x99   :  { %699 = vmatpush2.bf16.msra.mxu0 %v496_v36  ;;  %740 = vmatpush2.bf16.msra.mxu1 %v624_v37  ;;  %v586_v36 = vunpack.c.h.s8.bf16 %v370_v33  ;;  %v299_v37 = vld [vmem:[#allocation5 + $0x58] sm:$0xff] }
  0x9a   :  { %700 = vmatprep.subr.bf16.mxu0 %v489_v39  ;;  %741 = vmatprep.subr.bf16.mxu1 %v617_v43  ;;  %v450_v39 = vunpack.c.l.s8.bf16 %v306_v30  ;;  %v578_v43 = vunpack.c.l.s8.bf16 %v370_v33  ;;  %v331_v30 = vld [vmem:[#allocation5 + $0x158] sm:$0xff] }
  0x9b   :  { %v395_v33 = vld [vmem:[#allocation5 + $0x358] sm:$0xff]  ;;  %v499_v40 = vunpack.c.l.s8.bf16 %v331_v30 }
  0x9d   :  { %701 = vmatpush2.bf16.msra.mxu0 %v488_v41  ;;  %742 = vmatpush2.bf16.msra.mxu1 %v616_v45  ;;  %v443_v41 = vunpack.c.h.s8.bf16 %v299_v37  ;;  %v362_v45 = vld [vmem:[#allocation5 + $0x250] sm:$0xff] }
  0x9e   :  { %702 = vmatprep.subr.bf16.mxu0 %v481_v46  ;;  %743 = vmatprep.subr.bf16.mxu1 %v609_v48  ;;  %v442_v46 = vunpack.c.h.s8.bf16 %v298_v42  ;;  %v570_v48 = vunpack.c.h.s8.bf16 %v362_v45 }
  0xa1   :  { %703 = vmatpush2.bf16.msra.mxu0 %v480_v47  ;;  %744 = vmatpush2.bf16.msra.mxu1 %v608_v49  ;;  %v435_v47 = vunpack.c.l.s8.bf16 %v299_v37  ;;  %v291_v49 = vld [vmem:[#allocation5 + $0x18] sm:$0xff]  ;;  %v635_v37 = vunpack.c.h.s8.bf16 %v395_v33 }
  0xa2   :  { %754 = vmatprep.subr.bf16.mxu0 %v475_v51  ;;  %795 = vmatprep.subr.bf16.mxu1 %v603_v53  ;;  %v434_v51 = vunpack.c.l.s8.bf16 %v298_v42  ;;  %v427_v53 = vunpack.c.h.s8.bf16 %v291_v49  ;;  %v323_v42 = vld [vmem:[#allocation5 + $0x118] sm:$0xff] }
 0x124   :  { %v232_v62 = vpop.f32.mrf.mxu0  ;;  %v273_v2 = vpop.f32.mrf.mxu1 }
 0x125   :  { %v233_v63 = vadd.f32 %v232_v62, %v146_v58  ;;  %v274_v6 = vadd.f32 %v273_v2, %v154_v61  ;;  %v562_v58 = vunpack.c.l.s8.bf16 %v362_v45  ;;  %v354_v61 = vld [vmem:[#allocation5 + $0x210] sm:$0xff]  ;;  %v426_v62 = vunpack.c.h.s8.bf16 %v290_v55  ;;  %v387_v45 = vld [vmem:[#allocation5 + $0x318] sm:$0xff] }
 0x126   :  { %v234_v1 = vpop.f32.mrf.mxu0  ;;  %v275_v8 = vpop.f32.mrf.mxu1  ;;  %v547_v2 = vunpack.c.l.s8.bf16 %v355_v52 }
 0x127   :  { %v280_v3 = vmax.f32 %v233_v63, 0.0  ;;  %v235_v5 = vadd.f32 %v234_v1, %v150_v60  ;;  %v276_v11 = vadd.f32 %v275_v8, %v158_v0  ;;  %v282_v13 = vmax.f32 %v274_v6, 0.0  ;;  %v347_v1 = vld [vmem:[#allocation5 + $0x1d8] sm:$0xff] }
 0x128   :  { %v236_v7 = vpop.f32.mrf.mxu0  ;;  %v277_v15 = vpop.f32.mrf.mxu1  ;;  %v555_v60 = vunpack.c.h.s8.bf16 %v355_v52  ;;  %v419_v63 = vunpack.c.l.s8.bf16 %v291_v49  ;;  %v554_v0 = vunpack.c.h.s8.bf16 %v354_v61  ;;  %v539_v6 = vunpack.c.h.s8.bf16 %v347_v1 }
 0x129   :  { %v281_v10 = vmax.f32 %v235_v5, 0.0  ;;  %v4235_v12 = vpack.c.bf16 %v280_v3, %v280_v3  ;;  %v283_v18 = vmax.f32 %v276_v11, 0.0  ;;  %v4242_v25 = vpack.c.bf16 %v282_v13, %v282_v13  ;;  %v411_v5 = vld [vmem:[#allocation5 + $0x3d8] sm:$0xff]  ;;  %v346_v7 = vld [vmem:[#allocation5 + $0x1d0] sm:$0xff] }
 0x12a   :  { %v237_v14 = vpop.f32.mrf.mxu0  ;;  %v278_v20 = vpop.f32.mrf.mxu1  ;;  %v418_v3 = vunpack.c.l.s8.bf16 %v290_v55  ;;  %v546_v8 = vunpack.c.l.s8.bf16 %v354_v61  ;;  %v667_v9 = vunpack.c.h.s8.bf16 %v411_v5  ;;  %v538_v11 = vunpack.c.h.s8.bf16 %v346_v7  ;;  %v339_v15 = vld [vmem:[#allocation5 + $0x198] sm:$0xff]  ;;  %v317_v55 = vld [vmem:[#allocation5 + $0xe8] sm:$0xff] }
 0x12b   :  { %v4237_v17 = vpack.c.bf16 %v281_v10, %v281_v10  ;;  %v4239_v21 = vpack.c.bf16 %v283_v18, %v283_v18  ;;  %v410_v10 = vld [vmem:[#allocation5 + $0x3d0] sm:$0xff]  ;;  %v531_v13 = vunpack.c.l.s8.bf16 %v347_v1  ;;  %v659_v16 = vunpack.c.l.s8.bf16 %v411_v5  ;;  %v381_v61 = vld [vmem:[#allocation5 + $0x2e8] sm:$0xff] }
 0x12c   :  { %v666_v14 = vunpack.c.h.s8.bf16 %v410_v10  ;;  %v530_v18 = vunpack.c.l.s8.bf16 %v346_v7  ;;  %v523_v20 = vunpack.c.h.s8.bf16 %v339_v15  ;;  %v515_v28 = vunpack.c.l.s8.bf16 %v339_v15  ;;  %v309_v7 = vld [vmem:[#allocation5 + $0xa8] sm:$0xff] }
 0x12d   :  { %704 = vmatprep.mubr.bf16.mxu0 %v4237_v17  ;;  %745 = vmatprep.mubr.bf16.mxu1 %v4239_v21  ;;  %v619_v49 = vunpack.c.h.s8.bf16 %v387_v45  ;;  %v483_v52 = vunpack.c.l.s8.bf16 %v323_v42  ;;  %v605_v1 = vunpack.c.h.s8.bf16 %v381_v61  ;;  %v469_v5 = vunpack.c.l.s8.bf16 %v317_v55 }
 0x12e   :  { %705 = vmatmul.mubr.bf16.vlgmr.msra.gmra.mxu0 %v4235_v12  ;;  %746 = vmatmul.mubr.bf16.vlgmr.msra.gmra.mxu1 %v4242_v25 }
 0x12f   :  { %755 = vmatpush1.bf16.msra.mxu0 %v474_v19  ;;  %786 = vmatprep.mubr.bf16.mxu0 %v4237_v17  ;;  %v403_v19 = vld [vmem:[#allocation5 + $0x398] sm:$0xff] }
 0x130   :  { %796 = vmatpush1.bf16.msra.mxu1 %v602_v22  ;;  %756 = vmatprep.subr.bf16.mxu0 %v467_v23  ;;  %v338_v22 = vld [vmem:[#allocation5 + $0x190] sm:$0xff]  ;;  %v658_v23 = vunpack.c.l.s8.bf16 %v410_v10  ;;  %v651_v24 = vunpack.c.h.s8.bf16 %v403_v19  ;;  %v373_v10 = vld [vmem:[#allocation5 + $0x2a8] sm:$0xff] }
 0x131   :  { %827 = vmatprep.mubr.bf16.mxu1 %v4239_v21  ;;  %797 = vmatprep.subr.bf16.mxu1 %v595_v26  ;;  %v402_v26 = vld [vmem:[#allocation5 + $0x390] sm:$0xff]  ;;  %v589_v15 = vunpack.c.h.s8.bf16 %v373_v10 }
 0x133   :  { %757 = vmatpush1.bf16.msra.mxu0 %v466_v27  ;;  %v522_v27 = vunpack.c.h.s8.bf16 %v338_v22 }
 0x134   :  { %758 = vmatprep.subr.bf16.mxu0 %v459_v29  ;;  %798 = vmatpush1.bf16.msra.mxu1 %v594_v31  ;;  %v650_v29 = vunpack.c.h.s8.bf16 %v402_v26  ;;  %v643_v31 = vunpack.c.l.s8.bf16 %v403_v19  ;;  %v453_v19 = vunpack.c.l.s8.bf16 %v309_v7 }
 0x135   :  { %799 = vmatprep.subr.bf16.mxu1 %v587_v32  ;;  %v514_v32 = vunpack.c.l.s8.bf16 %v338_v22  ;;  %v301_v22 = vld [vmem:[#allocation5 + $0x68] sm:$0xff] }
 0x137   :  { %759 = vmatpush1.bf16.msra.mxu0 %v458_v34  ;;  %v507_v34 = vunpack.c.h.s8.bf16 %v331_v30 }
 0x138   :  { %760 = vmatprep.subr.bf16.mxu0 %v451_v35  ;;  %800 = vmatpush1.bf16.msra.mxu1 %v586_v36  ;;  %v330_v35 = vld [vmem:[#allocation5 + $0x150] sm:$0xff]  ;;  %v642_v36 = vunpack.c.l.s8.bf16 %v402_v26  ;;  %v365_v26 = vld [vmem:[#allocation5 + $0x268] sm:$0xff] }
 0x139   :  { %801 = vmatprep.subr.bf16.mxu1 %v579_v38  ;;  %v394_v38 = vld [vmem:[#allocation5 + $0x350] sm:$0xff]  ;;  %v573_v30 = vunpack.c.h.s8.bf16 %v365_v26 }
 0x13b   :  { %761 = vmatpush1.bf16.msra.mxu0 %v450_v39  ;;  %v506_v39 = vunpack.c.h.s8.bf16 %v330_v35 }
 0x13c   :  { %762 = vmatprep.subr.bf16.mxu0 %v443_v41  ;;  %802 = vmatpush1.bf16.msra.mxu1 %v578_v43  ;;  %v634_v41 = vunpack.c.h.s8.bf16 %v394_v38  ;;  %v627_v43 = vunpack.c.l.s8.bf16 %v395_v33  ;;  %v437_v33 = vunpack.c.l.s8.bf16 %v301_v22 }
 0x13d   :  { %803 = vmatprep.subr.bf16.mxu1 %v571_v44  ;;  %v498_v44 = vunpack.c.l.s8.bf16 %v330_v35  ;;  %v293_v35 = vld [vmem:[#allocation5 + $0x28] sm:$0xff] }
 0x13f   :  { %763 = vmatpush1.bf16.msra.mxu0 %v442_v46  ;;  %v491_v46 = vunpack.c.h.s8.bf16 %v323_v42 }
 0x140   :  { %764 = vmatprep.subr.bf16.mxu0 %v435_v47  ;;  %804 = vmatpush1.bf16.msra.mxu1 %v570_v48  ;;  %v322_v47 = vld [vmem:[#allocation5 + $0x110] sm:$0xff]  ;;  %v626_v48 = vunpack.c.l.s8.bf16 %v394_v38  ;;  %v357_v38 = vld [vmem:[#allocation5 + $0x228] sm:$0xff] }
 0x141   :  { %805 = vmatprep.subr.bf16.mxu1 %v563_v50  ;;  %v386_v50 = vld [vmem:[#allocation5 + $0x310] sm:$0xff]  ;;  %v557_v42 = vunpack.c.h.s8.bf16 %v357_v38 }
 0x143   :  { %765 = vmatpush1.bf16.msra.mxu0 %v434_v51  ;;  %v490_v51 = vunpack.c.h.s8.bf16 %v322_v47 }
 0x144   :  { %766 = vmatprep.subr.bf16.mxu0 %v427_v53  ;;  %806 = vmatpush1.bf16.msra.mxu1 %v562_v58  ;;  %v618_v53 = vunpack.c.h.s8.bf16 %v386_v50  ;;  %v611_v58 = vunpack.c.l.s8.bf16 %v387_v45  ;;  %v421_v45 = vunpack.c.l.s8.bf16 %v293_v35 }
 0x145   :  { %807 = vmatprep.subr.bf16.mxu1 %v555_v60  ;;  %v482_v60 = vunpack.c.l.s8.bf16 %v322_v47  ;;  %v349_v47 = vld [vmem:[#allocation5 + $0x1e8] sm:$0xff] }
 0x147   :  { %767 = vmatpush1.bf16.msra.mxu0 %v426_v62  ;;  %v477_v62 = vunpack.c.h.s8.bf16 %v317_v55 }
 0x148   :  { %768 = vmatprep.subr.bf16.mxu0 %v419_v63  ;;  %808 = vmatpush1.bf16.msra.mxu1 %v554_v0  ;;  %v316_v63 = vld [vmem:[#allocation5 + $0xe0] sm:$0xff]  ;;  %v610_v0 = vunpack.c.l.s8.bf16 %v386_v50  ;;  %v413_v50 = vld [vmem:[#allocation5 + $0x3e8] sm:$0xff] }
 0x149   :  { %809 = vmatprep.subr.bf16.mxu1 %v547_v2  ;;  %v380_v2 = vld [vmem:[#allocation5 + $0x2e0] sm:$0xff]  ;;  %v669_v55 = vunpack.c.h.s8.bf16 %v413_v50 }
 0x14b   :  { %769 = vmatpush1.bf16.msra.mxu0 %v418_v3  ;;  %v476_v3 = vunpack.c.h.s8.bf16 %v316_v63 }
 0x14c   :  { %770 = vmatprep.subr.bf16.mxu0 %v539_v6  ;;  %810 = vmatpush1.bf16.msra.mxu1 %v546_v8  ;;  %v604_v6 = vunpack.c.h.s8.bf16 %v380_v2  ;;  %v597_v8 = vunpack.c.l.s8.bf16 %v381_v61  ;;  %v533_v61 = vunpack.c.l.s8.bf16 %v349_v47 }
 0x14d   :  { %811 = vmatprep.subr.bf16.mxu1 %v667_v9  ;;  %v468_v9 = vunpack.c.l.s8.bf16 %v316_v63  ;;  %v341_v63 = vld [vmem:[#allocation5 + $0x1a8] sm:$0xff] }
 0x14f   :  { %771 = vmatpush2.bf16.msra.mxu0 %v538_v11  ;;  %v461_v11 = vunpack.c.h.s8.bf16 %v309_v7 }
 0x150   :  { %772 = vmatprep.subr.bf16.mxu0 %v531_v13  ;;  %812 = vmatpush2.bf16.msra.mxu1 %v666_v14  ;;  %v308_v13 = vld [vmem:[#allocation5 + $0xa0] sm:$0xff]  ;;  %v596_v14 = vunpack.c.l.s8.bf16 %v380_v2  ;;  %v405_v2 = vld [vmem:[#allocation5 + $0x3a8] sm:$0xff] }
 0x151   :  { %813 = vmatprep.subr.bf16.mxu1 %v659_v16  ;;  %v372_v16 = vld [vmem:[#allocation5 + $0x2a0] sm:$0xff]  ;;  %v653_v7 = vunpack.c.h.s8.bf16 %v405_v2 }
 0x153   :  { %773 = vmatpush2.bf16.msra.mxu0 %v530_v18  ;;  %v460_v18 = vunpack.c.h.s8.bf16 %v308_v13 }
 0x154   :  { %774 = vmatprep.subr.bf16.mxu0 %v523_v20  ;;  %814 = vmatpush2.bf16.msra.mxu1 %v658_v23  ;;  %v588_v20 = vunpack.c.h.s8.bf16 %v372_v16  ;;  %v581_v23 = vunpack.c.l.s8.bf16 %v373_v10  ;;  %v517_v10 = vunpack.c.l.s8.bf16 %v341_v63 }
 0x155   :  { %815 = vmatprep.subr.bf16.mxu1 %v651_v24  ;;  %v452_v24 = vunpack.c.l.s8.bf16 %v308_v13  ;;  %v333_v13 = vld [vmem:[#allocation5 + $0x168] sm:$0xff] }
 0x157   :  { %775 = vmatpush2.bf16.msra.mxu0 %v522_v27  ;;  %v445_v27 = vunpack.c.h.s8.bf16 %v301_v22 }
 0x158   :  { %776 = vmatprep.subr.bf16.mxu0 %v515_v28  ;;  %816 = vmatpush2.bf16.msra.mxu1 %v650_v29  ;;  %v300_v28 = vld [vmem:[#allocation5 + $0x60] sm:$0xff]  ;;  %v580_v29 = vunpack.c.l.s8.bf16 %v372_v16  ;;  %v397_v16 = vld [vmem:[#allocation5 + $0x368] sm:$0xff] }
 0x159   :  { %817 = vmatprep.subr.bf16.mxu1 %v643_v31  ;;  %v364_v31 = vld [vmem:[#allocation5 + $0x260] sm:$0xff]  ;;  %v637_v22 = vunpack.c.h.s8.bf16 %v397_v16 }
 0x15b   :  { %777 = vmatpush2.bf16.msra.mxu0 %v514_v32  ;;  %v444_v32 = vunpack.c.h.s8.bf16 %v300_v28 }
 0x15c   :  { %778 = vmatprep.subr.bf16.mxu0 %v507_v34  ;;  %818 = vmatpush2.bf16.msra.mxu1 %v642_v36  ;;  %v572_v34 = vunpack.c.h.s8.bf16 %v364_v31  ;;  %v565_v36 = vunpack.c.l.s8.bf16 %v365_v26  ;;  %v501_v26 = vunpack.c.l.s8.bf16 %v333_v13 }
 0x15d   :  { %819 = vmatprep.subr.bf16.mxu1 %v635_v37  ;;  %v436_v37 = vunpack.c.l.s8.bf16 %v300_v28  ;;  %v325_v28 = vld [vmem:[#allocation5 + $0x128] sm:$0xff] }
 0x15f   :  { %779 = vmatpush2.bf16.msra.mxu0 %v506_v39  ;;  %v429_v39 = vunpack.c.h.s8.bf16 %v293_v35 }
 0x160   :  { %780 = vmatprep.subr.bf16.mxu0 %v499_v40  ;;  %820 = vmatpush2.bf16.msra.mxu1 %v634_v41  ;;  %v292_v40 = vld [vmem:[#allocation5 + $0x20] sm:$0xff]  ;;  %v564_v41 = vunpack.c.l.s8.bf16 %v364_v31  ;;  %v389_v31 = vld [vmem:[#allocation5 + $0x328] sm:$0xff] }
 0x161   :  { %821 = vmatprep.subr.bf16.mxu1 %v627_v43  ;;  %v356_v43 = vld [vmem:[#allocation5 + $0x220] sm:$0xff]  ;;  %v621_v35 = vunpack.c.h.s8.bf16 %v389_v31 }
 0x163   :  { %781 = vmatpush2.bf16.msra.mxu0 %v498_v44  ;;  %v428_v44 = vunpack.c.h.s8.bf16 %v292_v40 }
 0x164   :  { %782 = vmatprep.subr.bf16.mxu0 %v491_v46  ;;  %822 = vmatpush2.bf16.msra.mxu1 %v626_v48  ;;  %v556_v46 = vunpack.c.h.s8.bf16 %v356_v43  ;;  %v549_v48 = vunpack.c.l.s8.bf16 %v357_v38  ;;  %v485_v38 = vunpack.c.l.s8.bf16 %v325_v28 }
 0x165   :  { %823 = vmatprep.subr.bf16.mxu1 %v619_v49  ;;  %v420_v49 = vunpack.c.l.s8.bf16 %v292_v40  ;;  %v319_v40 = vld [vmem:[#allocation5 + $0xf8] sm:$0xff] }
 0x167   :  { %783 = vmatpush2.bf16.msra.mxu0 %v490_v51  ;;  %v541_v51 = vunpack.c.h.s8.bf16 %v349_v47 }
 0x168   :  { %784 = vmatprep.subr.bf16.mxu0 %v483_v52  ;;  %824 = vmatpush2.bf16.msra.mxu1 %v618_v53  ;;  %v348_v52 = vld [vmem:[#allocation5 + $0x1e0] sm:$0xff]  ;;  %v548_v53 = vunpack.c.l.s8.bf16 %v356_v43  ;;  %v383_v43 = vld [vmem:[#allocation5 + $0x2f8] sm:$0xff] }
 0x169   :  { %825 = vmatprep.subr.bf16.mxu1 %v611_v58  ;;  %v412_v58 = vld [vmem:[#allocation5 + $0x3e0] sm:$0xff]  ;;  %v607_v47 = vunpack.c.h.s8.bf16 %v383_v43 }
 0x16b   :  { %785 = vmatpush2.bf16.msra.mxu0 %v482_v60  ;;  %v540_v60 = vunpack.c.h.s8.bf16 %v348_v52 }
 0x16c   :  { %836 = vmatprep.subr.bf16.mxu0 %v477_v62  ;;  %826 = vmatpush2.bf16.msra.mxu1 %v610_v0  ;;  %v668_v62 = vunpack.c.h.s8.bf16 %v412_v58  ;;  %v661_v0 = vunpack.c.l.s8.bf16 %v413_v50  ;;  %v471_v50 = vunpack.c.l.s8.bf16 %v319_v40 }
 0x16d   :  { %877 = vmatprep.subr.bf16.mxu1 %v605_v1  ;;  %v532_v1 = vunpack.c.l.s8.bf16 %v348_v52  ;;  %v311_v52 = vld [vmem:[#allocation5 + $0xb8] sm:$0xff] }
 0x16e   :  { %787 = vmatmul.mubr.bf16.vlgmr.msra.gmra.mxu0 %v4235_v12 }
 0x16f   :  { %837 = vmatpush1.bf16.msra.mxu0 %v476_v3  ;;  %868 = vmatprep.mubr.bf16.mxu0 %v4237_v17  ;;  %v525_v3 = vunpack.c.h.s8.bf16 %v341_v63 }
 0x170   :  { %828 = vmatmul.mubr.bf16.vlgmr.msra.gmra.mxu1 %v4242_v25  ;;  %838 = vmatprep.subr.bf16.mxu0 %v469_v5  ;;  %v340_v5 = vld [vmem:[#allocation5 + $0x1a0] sm:$0xff] }
 0x171   :  { %878 = vmatpush1.bf16.msra.mxu1 %v604_v6  ;;  %909 = vmatprep.mubr.bf16.mxu1 %v4239_v21  ;;  %v660_v6 = vunpack.c.l.s8.bf16 %v412_v58  ;;  %v375_v58 = vld [vmem:[#allocation5 + $0x2b8] sm:$0xff] }
 0x172   :  { %879 = vmatprep.subr.bf16.mxu1 %v597_v8  ;;  %v404_v8 = vld [vmem:[#allocation5 + $0x3a0] sm:$0xff]  ;;  %v591_v63 = vunpack.c.h.s8.bf16 %v375_v58 }
 0x173   :  { %839 = vmatpush1.bf16.msra.mxu0 %v468_v9  ;;  %v524_v9 = vunpack.c.h.s8.bf16 %v340_v5 }
 0x174   :  { %840 = vmatprep.subr.bf16.mxu0 %v461_v11  ;;  %v652_v11 = vunpack.c.h.s8.bf16 %v404_v8 }
 0x175   :  { %880 = vmatpush1.bf16.msra.mxu1 %v596_v14  ;;  %v645_v14 = vunpack.c.l.s8.bf16 %v405_v2  ;;  %v455_v2 = vunpack.c.l.s8.bf16 %v311_v52 }
 0x176   :  { %881 = vmatprep.subr.bf16.mxu1 %v589_v15  ;;  %v516_v15 = vunpack.c.l.s8.bf16 %v340_v5  ;;  %v583_v5 = vunpack.c.l.s8.bf16 %v375_v58  ;;  %v335_v58 = vld [vmem:[#allocation5 + $0x178] sm:$0xff] }
 0x177   :  { %841 = vmatpush1.bf16.msra.mxu0 %v460_v18  ;;  %v509_v18 = vunpack.c.h.s8.bf16 %v333_v13 }
 0x178   :  { %842 = vmatprep.subr.bf16.mxu0 %v453_v19  ;;  %v332_v19 = vld [vmem:[#allocation5 + $0x160] sm:$0xff] }
 0x179   :  { %882 = vmatpush1.bf16.msra.mxu1 %v588_v20  ;;  %v644_v20 = vunpack.c.l.s8.bf16 %v404_v8 }
 0x17a   :  { %883 = vmatprep.subr.bf16.mxu1 %v581_v23  ;;  %v396_v23 = vld [vmem:[#allocation5 + $0x360] sm:$0xff] }
 0x17b   :  { %843 = vmatpush1.bf16.msra.mxu0 %v452_v24  ;;  %v508_v24 = vunpack.c.h.s8.bf16 %v332_v19 }
 0x17c   :  { %844 = vmatprep.subr.bf16.mxu0 %v445_v27  ;;  %v636_v27 = vunpack.c.h.s8.bf16 %v396_v23 }
 0x17d   :  { %884 = vmatpush1.bf16.msra.mxu1 %v580_v29  ;;  %v629_v29 = vunpack.c.l.s8.bf16 %v397_v16  ;;  %v295_v16 = vld [vmem:[#allocation5 + $0x38] sm:$0xff] }
 0x17e   :  { %885 = vmatprep.subr.bf16.mxu1 %v573_v30  ;;  %v500_v30 = vunpack.c.l.s8.bf16 %v332_v19 }
 0x17f   :  { %845 = vmatpush1.bf16.msra.mxu0 %v444_v32  ;;  %v493_v32 = vunpack.c.h.s8.bf16 %v325_v28 }
 0x180   :  { %846 = vmatprep.subr.bf16.mxu0 %v437_v33  ;;  %v324_v33 = vld [vmem:[#allocation5 + $0x120] sm:$0xff] }
 0x181   :  { %886 = vmatpush1.bf16.msra.mxu1 %v572_v34  ;;  %v628_v34 = vunpack.c.l.s8.bf16 %v396_v23  ;;  %v294_v23 = vld [vmem:[#allocation5 + $0x30] sm:$0xff] }
 0x182   :  { %887 = vmatprep.subr.bf16.mxu1 %v565_v36  ;;  %v388_v36 = vld [vmem:[#allocation5 + $0x320] sm:$0xff]  ;;  %v430_v28 = vunpack.c.h.s8.bf16 %v294_v23 }
 0x183   :  { %847 = vmatpush1.bf16.msra.mxu0 %v436_v37  ;;  %v492_v37 = vunpack.c.h.s8.bf16 %v324_v33 }
 0x184   :  { %848 = vmatprep.subr.bf16.mxu0 %v429_v39  ;;  %v620_v39 = vunpack.c.h.s8.bf16 %v388_v36 }
 0x185   :  { %888 = vmatpush1.bf16.msra.mxu1 %v564_v41  ;;  %v613_v41 = vunpack.c.l.s8.bf16 %v389_v31  ;;  %v351_v31 = vld [vmem:[#allocation5 + $0x1f8] sm:$0xff] }
 0x186   :  { %889 = vmatprep.subr.bf16.mxu1 %v557_v42  ;;  %v484_v42 = vunpack.c.l.s8.bf16 %v324_v33  ;;  %v422_v33 = vunpack.c.l.s8.bf16 %v294_v23 }
 0x187   :  { %849 = vmatpush1.bf16.msra.mxu0 %v428_v44  ;;  %v479_v44 = vunpack.c.h.s8.bf16 %v319_v40 }
 0x188   :  { %850 = vmatprep.subr.bf16.mxu0 %v421_v45  ;;  %v318_v45 = vld [vmem:[#allocation5 + $0xf0] sm:$0xff] }
 0x189   :  { %890 = vmatpush1.bf16.msra.mxu1 %v556_v46  ;;  %v612_v46 = vunpack.c.l.s8.bf16 %v388_v36  ;;  %v350_v36 = vld [vmem:[#allocation5 + $0x1f0] sm:$0xff] }
 0x18a   :  { %891 = vmatprep.subr.bf16.mxu1 %v549_v48  ;;  %v382_v48 = vld [vmem:[#allocation5 + $0x2f0] sm:$0xff]  ;;  %v542_v40 = vunpack.c.h.s8.bf16 %v350_v36 }
 0x18b   :  { %851 = vmatpush1.bf16.msra.mxu0 %v420_v49  ;;  %v478_v49 = vunpack.c.h.s8.bf16 %v318_v45 }
 0x18c   :  { %852 = vmatprep.subr.bf16.mxu0 %v541_v51  ;;  %v606_v51 = vunpack.c.h.s8.bf16 %v382_v48 }
 0x18d   :  { %892 = vmatpush1.bf16.msra.mxu1 %v548_v53  ;;  %v599_v53 = vunpack.c.l.s8.bf16 %v383_v43  ;;  %v343_v43 = vld [vmem:[#allocation5 + $0x1b8] sm:$0xff] }
 0x18e   :  { %893 = vmatprep.subr.bf16.mxu1 %v669_v55  ;;  %v470_v55 = vunpack.c.l.s8.bf16 %v318_v45  ;;  %v534_v45 = vunpack.c.l.s8.bf16 %v350_v36 }
 0x18f   :  { %853 = vmatpush2.bf16.msra.mxu0 %v540_v60  ;;  %v463_v60 = vunpack.c.h.s8.bf16 %v311_v52 }
 0x190   :  { %854 = vmatprep.subr.bf16.mxu0 %v533_v61  ;;  %v310_v61 = vld [vmem:[#allocation5 + $0xb0] sm:$0xff] }
 0x191   :  { %894 = vmatpush2.bf16.msra.mxu1 %v668_v62  ;;  %v598_v62 = vunpack.c.l.s8.bf16 %v382_v48  ;;  %v342_v48 = vld [vmem:[#allocation5 + $0x1b0] sm:$0xff] }
 0x192   :  { %895 = vmatprep.subr.bf16.mxu1 %v661_v0  ;;  %v374_v0 = vld [vmem:[#allocation5 + $0x2b0] sm:$0xff]  ;;  %v526_v52 = vunpack.c.h.s8.bf16 %v342_v48 }
 0x193   :  { %855 = vmatpush2.bf16.msra.mxu0 %v532_v1  ;;  %v462_v1 = vunpack.c.h.s8.bf16 %v310_v61 }
 0x194   :  { %856 = vmatprep.subr.bf16.mxu0 %v525_v3  ;;  %v303_v3 = vld [vmem:[#allocation5 + $0x78] sm:$0xff] }
 0x195   :  { %896 = vmatpush2.bf16.msra.mxu1 %v660_v6  ;;  %v454_v6 = vunpack.c.l.s8.bf16 %v310_v61  ;;  %v447_v8 = vunpack.c.h.s8.bf16 %v303_v3  ;;  %v518_v61 = vunpack.c.l.s8.bf16 %v342_v48  ;;  %v1196_v48 = vld [vmem:[#allocation8 + $0x280] sm:$0xff] }
 0x196   :  { %897 = vmatprep.subr.bf16.mxu1 %v653_v7  ;;  %v367_v7 = vld [vmem:[#allocation5 + $0x278] sm:$0xff] }
 0x197   :  { %857 = vmatpush2.bf16.msra.mxu0 %v524_v9  ;;  %v302_v9 = vld [vmem:[#allocation5 + $0x70] sm:$0xff] }
 0x198   :  { %858 = vmatprep.subr.bf16.mxu0 %v517_v10  ;;  %v575_v10 = vunpack.c.h.s8.bf16 %v367_v7  ;;  %v446_v13 = vunpack.c.h.s8.bf16 %v302_v9  ;;  %v438_v19 = vunpack.c.l.s8.bf16 %v302_v9 }
 0x199   :  { %898 = vmatpush2.bf16.msra.mxu1 %v652_v11  ;;  %v366_v11 = vld [vmem:[#allocation5 + $0x270] sm:$0xff] }
 0x19a   :  { %899 = vmatprep.subr.bf16.mxu1 %v645_v14  ;;  %v439_v14 = vunpack.c.l.s8.bf16 %v303_v3 }
 0x19b   :  { %859 = vmatpush2.bf16.msra.mxu0 %v516_v15  ;;  %v574_v15 = vunpack.c.h.s8.bf16 %v366_v11 }
 0x19c   :  { %860 = vmatprep.subr.bf16.mxu0 %v509_v18  ;;  %v567_v18 = vunpack.c.l.s8.bf16 %v367_v7  ;;  %v327_v7 = vld [vmem:[#allocation5 + $0x138] sm:$0xff] }
 0x19d   :  { %900 = vmatpush2.bf16.msra.mxu1 %v644_v20  ;;  %v359_v20 = vld [vmem:[#allocation5 + $0x238] sm:$0xff] }
 0x19e   :  { %901 = vmatprep.subr.bf16.mxu1 %v637_v22  ;;  %v431_v22 = vunpack.c.h.s8.bf16 %v295_v16 }
 0x19f   :  { %861 = vmatpush2.bf16.msra.mxu0 %v508_v24  ;;  %v566_v24 = vunpack.c.l.s8.bf16 %v366_v11  ;;  %v326_v11 = vld [vmem:[#allocation5 + $0x130] sm:$0xff] }
 0x1a0   :  { %862 = vmatprep.subr.bf16.mxu0 %v501_v26  ;;  %v559_v26 = vunpack.c.h.s8.bf16 %v359_v20  ;;  %v486_v23 = vunpack.c.l.s8.bf16 %v326_v11 }
 0x1a1   :  { %902 = vmatpush2.bf16.msra.mxu1 %v636_v27  ;;  %v358_v27 = vld [vmem:[#allocation5 + $0x230] sm:$0xff] }
 0x1a2   :  { %903 = vmatprep.subr.bf16.mxu1 %v629_v29  ;;  %v423_v29 = vunpack.c.l.s8.bf16 %v295_v16  ;;  %v494_v16 = vunpack.c.h.s8.bf16 %v326_v11  ;;  %v1117_v11 = vld [vmem:[#allocation8 + $0x8] sm:$0xff] }
 0x1a3   :  { %863 = vmatpush2.bf16.msra.mxu0 %v500_v30  ;;  %v558_v30 = vunpack.c.h.s8.bf16 %v358_v27 }
 0x1a4   :  { %864 = vmatprep.subr.bf16.mxu0 %v493_v32  ;;  %v551_v32 = vunpack.c.l.s8.bf16 %v359_v20  ;;  %v1141_v20 = vld [vmem:[#allocation8 + $0xc8] sm:$0xff] }
 0x1a5   :  { %904 = vmatpush2.bf16.msra.mxu1 %v628_v34  ;;  %v415_v34 = vld [vmem:[#allocation5 + $0x3f8] sm:$0xff] }
 0x1a6   :  { %905 = vmatprep.subr.bf16.mxu1 %v621_v35  ;;  %v543_v35 = vunpack.c.h.s8.bf16 %v351_v31 }
 0x1a7   :  { %865 = vmatpush2.bf16.msra.mxu0 %v492_v37  ;;  %v550_v37 = vunpack.c.l.s8.bf16 %v358_v27  ;;  %v1140_v27 = vld [vmem:[#allocation8 + $0xc0] sm:$0xff] }
 0x1a8   :  { %866 = vmatprep.subr.bf16.mxu0 %v485_v38  ;;  %v671_v38 = vunpack.c.h.s8.bf16 %v415_v34 }
 0x1a9   :  { %906 = vmatpush2.bf16.msra.mxu1 %v620_v39  ;;  %v414_v39 = vld [vmem:[#allocation5 + $0x3f0] sm:$0xff] }
 0x1aa   :  { %907 = vmatprep.subr.bf16.mxu1 %v613_v41  ;;  %v535_v41 = vunpack.c.l.s8.bf16 %v351_v31  ;;  %v1428_v31 = vunpack.c.h.s8.bf16 %v1140_v27 }
 0x1ab   :  { %867 = vmatpush2.bf16.msra.mxu0 %v484_v42  ;;  %v670_v42 = vunpack.c.h.s8.bf16 %v414_v39 }
 0x1ac   :  { %918 = vmatprep.subr.bf16.mxu0 %v479_v44  ;;  %v663_v44 = vunpack.c.l.s8.bf16 %v415_v34 }
 0x1ad   :  { %908 = vmatpush2.bf16.msra.mxu1 %v612_v46  ;;  %v407_v46 = vld [vmem:[#allocation5 + $0x3b8] sm:$0xff] }
 0x1ae   :  { %869 = vmatmul.mubr.bf16.vlgmr.msra.gmra.mxu0 %v4235_v12  ;;  %959 = vmatprep.subr.bf16.mxu1 %v607_v47  ;;  %v527_v47 = vunpack.c.h.s8.bf16 %v343_v43 }
 0x1af   :  { %919 = vmatpush1.bf16.msra.mxu0 %v478_v49  ;;  %950 = vmatprep.mubr.bf16.mxu0 %v4237_v17  ;;  %v590_v17 = vunpack.c.h.s8.bf16 %v374_v0  ;;  %v662_v49 = vunpack.c.l.s8.bf16 %v414_v39 }
 0x1b0   :  { %910 = vmatmul.mubr.bf16.vlgmr.msra.gmra.mxu1 %v4242_v25  ;;  %920 = vmatprep.subr.bf16.mxu0 %v471_v50  ;;  %v655_v50 = vunpack.c.h.s8.bf16 %v407_v46 }
 0x1b1   :  { %960 = vmatpush1.bf16.msra.mxu1 %v606_v51  ;;  %991 = vmatprep.mubr.bf16.mxu1 %v4239_v21  ;;  %v582_v21 = vunpack.c.l.s8.bf16 %v374_v0  ;;  %v406_v51 = vld [vmem:[#allocation5 + $0x3b0] sm:$0xff] }
 0x1b2   :  { %961 = vmatprep.subr.bf16.mxu1 %v599_v53  ;;  %v519_v53 = vunpack.c.l.s8.bf16 %v343_v43  ;;  %v334_v0 = vld [vmem:[#allocation5 + $0x170] sm:$0xff] }
 0x1b3   :  { %921 = vmatpush1.bf16.msra.mxu0 %v470_v55  ;;  %v654_v55 = vunpack.c.h.s8.bf16 %v406_v51  ;;  %v510_v3 = vunpack.c.h.s8.bf16 %v334_v0  ;;  %v502_v9 = vunpack.c.l.s8.bf16 %v334_v0 }
 0x1b4   :  { %922 = vmatprep.subr.bf16.mxu0 %v463_v60  ;;  %v647_v60 = vunpack.c.l.s8.bf16 %v407_v46 }
 0x1b5   :  { %962 = vmatpush1.bf16.msra.mxu1 %v598_v62  ;;  %v399_v62 = vld [vmem:[#allocation5 + $0x378] sm:$0xff] }
 0x1b6   :  { %963 = vmatprep.subr.bf16.mxu1 %v591_v63  ;;  %v511_v63 = vunpack.c.h.s8.bf16 %v335_v58 }
 0x1b7   :  { %923 = vmatpush1.bf16.msra.mxu0 %v462_v1  ;;  %v646_v1 = vunpack.c.l.s8.bf16 %v406_v51 }
 0x1b8   :  { %924 = vmatprep.subr.bf16.mxu0 %v455_v2  ;;  %v639_v2 = vunpack.c.h.s8.bf16 %v399_v62 }
 0x1b9   :  { %964 = vmatpush1.bf16.msra.mxu1 %v590_v17  ;;  %v398_v17 = vld [vmem:[#allocation5 + $0x370] sm:$0xff] }
 0x1ba   :  { %965 = vmatprep.subr.bf16.mxu1 %v583_v5  ;;  %v503_v5 = vunpack.c.l.s8.bf16 %v335_v58 }
 0x1bb   :  { %925 = vmatpush1.bf16.msra.mxu0 %v454_v6  ;;  %v638_v6 = vunpack.c.h.s8.bf16 %v398_v17 }
 0x1bc   :  { %926 = vmatprep.subr.bf16.mxu0 %v447_v8  ;;  %v631_v8 = vunpack.c.l.s8.bf16 %v399_v62 }
 0x1bd   :  { %966 = vmatpush1.bf16.msra.mxu1 %v582_v21  ;;  %v391_v21 = vld [vmem:[#allocation5 + $0x338] sm:$0xff] }
 0x1be   :  { %967 = vmatprep.subr.bf16.mxu1 %v575_v10  ;;  %v495_v10 = vunpack.c.h.s8.bf16 %v327_v7 }
 0x1bf   :  { %927 = vmatpush1.bf16.msra.mxu0 %v446_v13  ;;  %v630_v13 = vunpack.c.l.s8.bf16 %v398_v17 }
 0x1c0   :  { %928 = vmatprep.subr.bf16.mxu0 %v439_v14  ;;  %v623_v14 = vunpack.c.h.s8.bf16 %v391_v21 }
 0x1c1   :  { %968 = vmatpush1.bf16.msra.mxu1 %v574_v15  ;;  %v390_v15 = vld [vmem:[#allocation5 + $0x330] sm:$0xff] }
 0x1c2   :  { %969 = vmatprep.subr.bf16.mxu1 %v567_v18  ;;  %v487_v18 = vunpack.c.l.s8.bf16 %v327_v7 }
 0x1c3   :  { %929 = vmatpush1.bf16.msra.mxu0 %v438_v19  ;;  %v622_v19 = vunpack.c.h.s8.bf16 %v390_v15 }
 0x1c4   :  { %930 = vmatprep.subr.bf16.mxu0 %v431_v22  ;;  %v615_v22 = vunpack.c.l.s8.bf16 %v391_v21 }
 0x1c5   :  { %970 = vmatpush1.bf16.msra.mxu1 %v566_v24  ;;  %v1205_v24 = vld [vmem:[#allocation8 + $0x2c8] sm:$0xff] }
 0x1c6   :  { %971 = vmatprep.subr.bf16.mxu1 %v559_v26  ;;  %v1429_v26 = vunpack.c.h.s8.bf16 %v1141_v20  ;;  %v1549_v36 = vunpack.c.l.s8.bf16 %v1205_v24 }
 0x1c7   :  { %931 = vmatpush1.bf16.msra.mxu0 %v430_v28  ;;  %v614_v28 = vunpack.c.l.s8.bf16 %v390_v15 }
 0x1c8   :  { %932 = vmatprep.subr.bf16.mxu0 %v423_v29  ;;  %v1557_v29 = vunpack.c.h.s8.bf16 %v1205_v24 }
 0x1c9   :  { %972 = vmatpush1.bf16.msra.mxu1 %v558_v30  ;;  %v1204_v30 = vld [vmem:[#allocation8 + $0x2c0] sm:$0xff] }
 0x1ca   :  { %973 = vmatprep.subr.bf16.mxu1 %v551_v32  ;;  %v1421_v32 = vunpack.c.l.s8.bf16 %v1141_v20  ;;  %v1556_v34 = vunpack.c.h.s8.bf16 %v1204_v30 }
 0x1cb   :  { %933 = vmatpush1.bf16.msra.mxu0 %v422_v33  ;;  %v1133_v33 = vld [vmem:[#allocation8 + $0x88] sm:$0xff] }
 0x1cc   :  { %934 = vmatprep.subr.bf16.mxu0 %v543_v35 }
 0x1cd   :  { %974 = vmatpush1.bf16.msra.mxu1 %v550_v37  ;;  %v1420_v37 = vunpack.c.l.s8.bf16 %v1140_v27  ;;  %v1173_v27 = vld [vmem:[#allocation8 + $0x1c8] sm:$0xff] }
 0x1ce   :  { %975 = vmatprep.subr.bf16.mxu1 %v671_v38  ;;  %v1197_v38 = vld [vmem:[#allocation8 + $0x288] sm:$0xff] }
 0x1cf   :  { %935 = vmatpush2.bf16.msra.mxu0 %v542_v40 }
 0x1d0   :  { %936 = vmatprep.subr.bf16.mxu0 %v535_v41  ;;  %v4266_v41 = vld [vmem:[%s4562_s4] sm:$0xff] }
 0x1d1   :  { %976 = vmatpush2.bf16.msra.mxu1 %v670_v42  ;;  %v1413_v42 = vunpack.c.h.s8.bf16 %v1133_v33  ;;  %v1009_v43 = vrot.slane %v4266_v41, %v4223_v56 }
 0x1d2   :  { %977 = vmatprep.subr.bf16.mxu1 %v663_v44  ;;  %v1548_v44 = vunpack.c.l.s8.bf16 %v1204_v30 }
 0x1d3   :  { %937 = vmatpush2.bf16.msra.mxu0 %v534_v45  ;;  %v4270_v45 = vld [vmem:[#allocation7] sm:$0xff] }
 0x1d4   :  { %938 = vmatprep.subr.bf16.mxu0 %v527_v47  ;;  %v1541_v47 = vunpack.c.h.s8.bf16 %v1197_v38 }
 0x1d5   :  { %978 = vmatpush2.bf16.msra.mxu1 %v662_v49 }
 0x1d6   :  { %979 = vmatprep.subr.bf16.mxu1 %v655_v50  ;;  %v1059_v50 = vrot.slane %v4270_v45, %v4223_v56 }
 0x1d7   :  { %939 = vmatpush2.bf16.msra.mxu0 %v526_v52 }
 0x1d8   :  { %940 = vmatprep.subr.bf16.mxu0 %v519_v53 }
 0x1d9   :  { %980 = vmatpush2.bf16.msra.mxu1 %v654_v55  ;;  %v1405_v55 = vunpack.c.l.s8.bf16 %v1133_v33  ;;  %v1172_v33 = vld [vmem:[#allocation8 + $0x1c0] sm:$0xff] }
 0x1da   :  { %981 = vmatprep.subr.bf16.mxu1 %v647_v60  ;;  %v1125_v60 = vld [vmem:[#allocation8 + $0x48] sm:$0xff] }
 0x1db   :  { %941 = vmatpush2.bf16.msra.mxu0 %v518_v61  ;;  %v1540_v61 = vunpack.c.h.s8.bf16 %v1196_v48  ;;  %v1397_v17 = vunpack.c.h.s8.bf16 %v1125_v60 }
 0x1dc   :  { %942 = vmatprep.subr.bf16.mxu0 %v511_v63  ;;  %v1533_v63 = vunpack.c.l.s8.bf16 %v1197_v38  ;;  %v1492_v38 = vunpack.c.h.s8.bf16 %v1172_v33 }
 0x1dd   :  { %982 = vmatpush2.bf16.msra.mxu1 %v646_v1 }
 0x1de   :  { %983 = vmatprep.subr.bf16.mxu1 %v639_v2  ;;  %v1189_v2 = vld [vmem:[#allocation8 + $0x248] sm:$0xff] }
 0x1df   :  { %943 = vmatpush2.bf16.msra.mxu0 %v510_v3  ;;  %v1124_v3 = vld [vmem:[#allocation8 + $0x40] sm:$0xff]  ;;  %v1525_v7 = vunpack.c.h.s8.bf16 %v1189_v2 }
 0x1e0   :  { %944 = vmatprep.subr.bf16.mxu0 %v503_v5  ;;  %v1396_v21 = vunpack.c.h.s8.bf16 %v1124_v3  ;;  %v1388_v15 = vunpack.c.l.s8.bf16 %v1124_v3 }
 0x1e1   :  { %984 = vmatpush2.bf16.msra.mxu1 %v638_v6  ;;  %v1532_v6 = vunpack.c.l.s8.bf16 %v1196_v48 }
 0x1e2   :  { %985 = vmatprep.subr.bf16.mxu1 %v631_v8  ;;  %v1188_v8 = vld [vmem:[#allocation8 + $0x240] sm:$0xff] }
 0x1e3   :  { %945 = vmatpush2.bf16.msra.mxu0 %v502_v9  ;;  %v1516_v20 = vunpack.c.l.s8.bf16 %v1188_v8 }
 0x1e4   :  { %946 = vmatprep.subr.bf16.mxu0 %v495_v10  ;;  %v1389_v10 = vunpack.c.l.s8.bf16 %v1125_v60 }
 0x1e5   :  { %986 = vmatpush2.bf16.msra.mxu1 %v630_v13  ;;  %v1524_v13 = vunpack.c.h.s8.bf16 %v1188_v8 }
 0x1e6   :  { %987 = vmatprep.subr.bf16.mxu1 %v623_v14  ;;  %v1517_v14 = vunpack.c.l.s8.bf16 %v1189_v2  ;;  %v1220_v2 = vld [vmem:[#allocation8 + $0x340] sm:$0xff] }
 0x1e7   :  { %947 = vmatpush2.bf16.msra.mxu0 %v494_v16  ;;  %v1181_v16 = vld [vmem:[#allocation8 + $0x208] sm:$0xff]  ;;  %v1588_v8 = vunpack.c.h.s8.bf16 %v1220_v2 }
 0x1e8   :  { %948 = vmatprep.subr.bf16.mxu0 %v487_v18  ;;  %v1381_v18 = vunpack.c.h.s8.bf16 %v1117_v11 }
 0x1e9   :  { %988 = vmatpush2.bf16.msra.mxu1 %v622_v19  ;;  %v1116_v19 = vld [vmem:[#allocation8] sm:$0xff] }
 0x1ea   :  { %989 = vmatprep.subr.bf16.mxu1 %v615_v22  ;;  %v1509_v22 = vunpack.c.h.s8.bf16 %v1181_v16  ;;  %v1380_v24 = vunpack.c.h.s8.bf16 %v1116_v19  ;;  %v1372_v30 = vunpack.c.l.s8.bf16 %v1116_v19 }
 0x1eb   :  { %949 = vmatpush2.bf16.msra.mxu0 %v486_v23  ;;  %v1180_v23 = vld [vmem:[#allocation8 + $0x200] sm:$0xff] }
 0x1ec   :  { %1884 = vmatprep.subr.bf16.mxu0 %v1429_v26  ;;  %v1373_v26 = vunpack.c.l.s8.bf16 %v1117_v11  ;;  %v1213_v11 = vld [vmem:[#allocation8 + $0x308] sm:$0xff] }
 0x1ed   :  { %990 = vmatpush2.bf16.msra.mxu1 %v614_v28  ;;  %v1508_v28 = vunpack.c.h.s8.bf16 %v1180_v23 }
 0x1ee   :  { %951 = vmatmul.mubr.bf16.vlgmr.msra.gmra.mxu0 %v4235_v12  ;;  %v4258_v35 = vpop.f32.mrf.mxu0  ;;  %1925 = vmatprep.subr.bf16.mxu1 %v1557_v29  ;;  %v4261_v40 = vpop.f32.mrf.mxu1  ;;  %v1132_v12 = vld [vmem:[#allocation8 + $0x80] sm:$0xff]  ;;  %v1501_v29 = vunpack.c.l.s8.bf16 %v1181_v16  ;;  %v1573_v16 = vunpack.c.h.s8.bf16 %v1213_v11 }
 0x1ef   :  { %1885 = vmatpush1.bf16.msra.mxu0 %v1428_v31  ;;  %v1412_v51 = vunpack.c.h.s8.bf16 %v1132_v12  ;;  %v1404_v1 = vunpack.c.l.s8.bf16 %v1132_v12  ;;  %v1237_v31 = vld [vmem:[#allocation8 + $0x3c8] sm:$0xff]  ;;  %v748_v3 = vadd.f32 %v4261_v40, %v4258_v35  ;;  %v1148_v35 = vld [vmem:[#allocation8 + $0x100] sm:$0xff]  ;;  %v1580_v40 = vunpack.c.l.s8.bf16 %v1220_v2 }
 0x1f0   :  { %992 = vmatmul.mubr.bf16.vlgmr.msra.gmra.mxu1 %v4242_v25  ;;  %v708_v39 = vpop.f32.mrf.mxu0  ;;  %1886 = vmatprep.subr.bf16.mxu0 %v1421_v32  ;;  %v749_v25 = vpop.f32.mrf.mxu1  ;;  %v1493_v32 = vunpack.c.h.s8.bf16 %v1173_v27  ;;  %v1444_v19 = vunpack.c.h.s8.bf16 %v1148_v35 }
 0x1f1   :  { %1926 = vmatpush1.bf16.msra.mxu1 %v1556_v34  ;;  %v750_v49 = vadd.f32 %v749_v25, %v708_v39  ;;  %v1500_v34 = vunpack.c.l.s8.bf16 %v1180_v23  ;;  %v1485_v39 = vunpack.c.l.s8.bf16 %v1173_v27  ;;  %v1436_v27 = vunpack.c.l.s8.bf16 %v1148_v35 }
 0x1f2   :  { %v710_v46 = vpop.f32.mrf.mxu0  ;;  %1927 = vmatprep.subr.bf16.mxu1 %v1549_v36  ;;  %v751_v53 = vpop.f32.mrf.mxu1  ;;  %v1621_v36 = vunpack.c.h.s8.bf16 %v1237_v31 }
 0x1f3   :  { %1887 = vmatpush1.bf16.msra.mxu0 %v1420_v37  ;;  %v1043_v58 = vmul.f32 %v1009_v43, %v750_v49  ;;  %v1236_v37 = vld [vmem:[#allocation8 + $0x3c0] sm:$0xff]  ;;  %v1613_v43 = vunpack.c.l.s8.bf16 %v1237_v31  ;;  %v1229_v46 = vld [vmem:[#allocation8 + $0x388] sm:$0xff] }
 0x1f4   :  { %v711_v52 = vpop.f32.mrf.mxu0  ;;  %1888 = vmatprep.subr.bf16.mxu0 %v1413_v42  ;;  %v752_v62 = vpop.f32.mrf.mxu1  ;;  %v1165_v42 = vld [vmem:[#allocation8 + $0x188] sm:$0xff]  ;;  %v1620_v12 = vunpack.c.h.s8.bf16 %v1236_v37  ;;  %v1612_v48 = vunpack.c.l.s8.bf16 %v1236_v37  ;;  %v1605_v49 = vunpack.c.h.s8.bf16 %v1229_v46  ;;  %v1268_v31 = vld [vmem:[#allocation8 + $0x4c0] sm:$0xff] }
 0x1f5   :  { %1928 = vmatpush1.bf16.msra.mxu1 %v1548_v44  ;;  %v1093_v0 = vadd.f32 %v1059_v50, %v1043_v58  ;;  %v1484_v44 = vunpack.c.l.s8.bf16 %v1172_v33  ;;  %v1477_v25 = vunpack.c.h.s8.bf16 %v1165_v42  ;;  %v1228_v50 = vld [vmem:[#allocation8 + $0x380] sm:$0xff]  ;;  %v1469_v52 = vunpack.c.l.s8.bf16 %v1165_v42  ;;  %v1157_v53 = vld [vmem:[#allocation8 + $0x148] sm:$0xff] }
 0x1f6   :  { %1929 = vmatprep.subr.bf16.mxu1 %v1541_v47  ;;  %v1164_v47 = vld [vmem:[#allocation8 + $0x180] sm:$0xff]  ;;  %v1597_v58 = vunpack.c.l.s8.bf16 %v1229_v46  ;;  %v1461_v62 = vunpack.c.h.s8.bf16 %v1157_v53  ;;  %v1013_v42 = vrot.slane %v4266_v41, %v4226_v57 }
 0x1f7   :  { %1889 = vmatpush1.bf16.msra.mxu0 %v1412_v51  ;;  %v1101_v5 = vmax.f32 %v1093_v0, 0.0  ;;  %v1476_v51 = vunpack.c.h.s8.bf16 %v1164_v47  ;;  %v1468_v60 = vunpack.c.l.s8.bf16 %v1164_v47  ;;  %v1596_v0 = vunpack.c.l.s8.bf16 %v1228_v50 }
 0x1f8   :  { %1890 = vmatprep.subr.bf16.mxu0 %v1405_v55  ;;  %v1604_v55 = vunpack.c.h.s8.bf16 %v1228_v50 }
 0x1f9   :  { %1930 = vmatpush1.bf16.msra.mxu1 %v1540_v61  ;;  %v4274_v9 = vpack.c.bf16 %v1101_v5, %v1101_v5  ;;  %v1221_v61 = vld [vmem:[#allocation8 + $0x348] sm:$0xff]  ;;  %v1005_v5 = vrot.slane %v4266_v41, %v4220_v54 }
 0x1fa   :  { %1931 = vmatprep.subr.bf16.mxu1 %v1533_v63  ;;  %v1156_v63 = vld [vmem:[#allocation8 + $0x140] sm:$0xff] }
 0x1fb   :  { %1891 = vmatpush1.bf16.msra.mxu0 %v1404_v1  ;;  %1916 = vmatprep.mubr.bf16.mxu0 %v4274_v9  ;;  %v1589_v1 = vunpack.c.h.s8.bf16 %v1221_v61 }
 0x1fc   :  { %1892 = vmatprep.subr.bf16.mxu0 %v1397_v17  ;;  %v1460_v17 = vunpack.c.h.s8.bf16 %v1156_v63 }
 0x1fd   :  { %1932 = vmatpush1.bf16.msra.mxu1 %v1532_v6  ;;  %v1453_v6 = vunpack.c.l.s8.bf16 %v1157_v53 }
 0x1fe   :  { %1933 = vmatprep.subr.bf16.mxu1 %v1525_v7  ;;  %v1149_v7 = vld [vmem:[#allocation8 + $0x108] sm:$0xff] }
 0x1ff   :  { %1893 = vmatpush1.bf16.msra.mxu0 %v1396_v21  ;;  %v1581_v21 = vunpack.c.l.s8.bf16 %v1221_v61 }
 0x200   :  { %1894 = vmatprep.subr.bf16.mxu0 %v1389_v10  ;;  %v1452_v10 = vunpack.c.l.s8.bf16 %v1156_v63 }
 0x201   :  { %1934 = vmatpush1.bf16.msra.mxu1 %v1524_v13  ;;  %v1042_v13 = vmul.f32 %v1005_v5, %v748_v3 }
 0x202   :  { %1935 = vmatprep.subr.bf16.mxu1 %v1517_v14  ;;  %v1055_v14 = vrot.slane %v4270_v45, %v4220_v54 }
 0x203   :  { %1895 = vmatpush1.bf16.msra.mxu0 %v1388_v15  ;;  %v1445_v15 = vunpack.c.h.s8.bf16 %v1149_v7 }
 0x204   :  { %1896 = vmatprep.subr.bf16.mxu0 %v1381_v18  ;;  %v1212_v18 = vld [vmem:[#allocation8 + $0x300] sm:$0xff] }
 0x205   :  { %1936 = vmatpush1.bf16.msra.mxu1 %v1516_v20  ;;  %v1092_v20 = vadd.f32 %v1055_v14, %v1042_v13  ;;  %v1572_v23 = vunpack.c.h.s8.bf16 %v1212_v18 }
 0x206   :  { %1937 = vmatprep.subr.bf16.mxu1 %v1509_v22  ;;  %v1437_v22 = vunpack.c.l.s8.bf16 %v1149_v7  ;;  %v1252_v7 = vld [vmem:[#allocation8 + $0x440] sm:$0xff] }
 0x207   :  { %1897 = vmatpush1.bf16.msra.mxu0 %v1380_v24  ;;  %v1269_v24 = vld [vmem:[#allocation8 + $0x4c8] sm:$0xff] }
 0x208   :  { %1898 = vmatprep.subr.bf16.mxu0 %v1373_v26  ;;  %v1565_v26 = vunpack.c.l.s8.bf16 %v1213_v11  ;;  %v1677_v37 = vunpack.c.l.s8.bf16 %v1269_v24  ;;  %v1652_v11 = vunpack.c.h.s8.bf16 %v1252_v7 }
 0x209   :  { %1938 = vmatpush1.bf16.msra.mxu1 %v1508_v28  ;;  %v4283_v28 = vld [vmem:[#allocation8 + $0x6c8] sm:$0xff] }
 0x20a   :  { %1939 = vmatprep.subr.bf16.mxu1 %v1501_v29  ;;  %v1100_v29 = vmax.f32 %v1092_v20, 0.0  ;;  %v1813_v33 = vunpack.c.h.s8.bf16 %v4283_v28  ;;  %v1805_v35 = vunpack.c.l.s8.bf16 %v4283_v28 }
 0x20b   :  { %1899 = vmatpush1.bf16.msra.mxu0 %v1372_v30  ;;  %v1685_v30 = vunpack.c.h.s8.bf16 %v1269_v24  ;;  %v1324_v24 = vld [vmem:[#allocation8 + $0x680] sm:$0xff] }
 0x20c   :  { %1900 = vmatprep.subr.bf16.mxu0 %v1493_v32  ;;  %v1564_v32 = vunpack.c.l.s8.bf16 %v1212_v18  ;;  %v1644_v18 = vunpack.c.l.s8.bf16 %v1252_v7 }
 0x20d   :  { %1940 = vmatpush1.bf16.msra.mxu1 %v1500_v34  ;;  %v1684_v34 = vunpack.c.h.s8.bf16 %v1268_v31 }
 0x20e   :  { %1941 = vmatprep.subr.bf16.mxu1 %v1621_v36  ;;  %v4286_v36 = vpack.c.bf16 %v1100_v29, %v1100_v29 }
 0x20f   :  { %1901 = vmatpush2.bf16.msra.mxu0 %v1492_v38  ;;  %v1261_v38 = vld [vmem:[#allocation8 + $0x488] sm:$0xff] }
 0x210   :  { %1902 = vmatprep.subr.bf16.mxu0 %v1485_v39  ;;  %v1669_v46 = vunpack.c.h.s8.bf16 %v1261_v38 }
 0x211   :  { %1942 = vmatpush2.bf16.msra.mxu1 %v1620_v12  ;;  %v1676_v12 = vunpack.c.l.s8.bf16 %v1268_v31  ;;  %v1317_v31 = vld [vmem:[#allocation8 + $0x648] sm:$0xff] }
 0x212   :  { %1943 = vmatprep.subr.bf16.mxu1 %v1613_v43 }
 0x213   :  { %1903 = vmatpush2.bf16.msra.mxu0 %v1484_v44 }
 0x214   :  { %1904 = vmatprep.subr.bf16.mxu0 %v1477_v25  ;;  %v1260_v25 = vld [vmem:[#allocation8 + $0x480] sm:$0xff] }
 0x215   :  { %1944 = vmatpush2.bf16.msra.mxu1 %v1612_v48  ;;  %v1063_v48 = vrot.slane %v4270_v45, %v4226_v57  ;;  %v1660_v3 = vunpack.c.l.s8.bf16 %v1260_v25 }
 0x216   :  { %1945 = vmatprep.subr.bf16.mxu1 %v1605_v49  ;;  %v1017_v49 = vrot.slane %v4266_v41, %v4230_v59 }
 0x217   :  { %1905 = vmatpush2.bf16.msra.mxu0 %v1476_v51 }
 0x218   :  { %1906 = vmatprep.subr.bf16.mxu0 %v1469_v52 }
 0x219   :  { %1946 = vmatpush2.bf16.msra.mxu1 %v1604_v55  ;;  %v1067_v55 = vrot.slane %v4270_v45, %v4230_v59 }
 0x21a   :  { %1947 = vmatprep.subr.bf16.mxu1 %v1597_v58  ;;  %v1668_v58 = vunpack.c.h.s8.bf16 %v1260_v25  ;;  %v1309_v25 = vld [vmem:[#allocation8 + $0x608] sm:$0xff] }
 0x21b   :  { %1907 = vmatpush2.bf16.msra.mxu0 %v1468_v60 }
 0x21c   :  { %1908 = vmatprep.subr.bf16.mxu0 %v1461_v62  ;;  %v1661_v62 = vunpack.c.l.s8.bf16 %v1261_v38  ;;  %v1781_v38 = vunpack.c.h.s8.bf16 %v1317_v31 }
 0x21d   :  { %1948 = vmatpush2.bf16.msra.mxu1 %v1596_v0 }
 0x21e   :  { %1949 = vmatprep.subr.bf16.mxu1 %v1589_v1  ;;  %v1253_v1 = vld [vmem:[#allocation8 + $0x448] sm:$0xff] }
 0x21f   :  { %1909 = vmatpush2.bf16.msra.mxu0 %v1460_v17 }
 0x220   :  { %1910 = vmatprep.subr.bf16.mxu0 %v1453_v6  ;;  %v1653_v6 = vunpack.c.h.s8.bf16 %v1253_v1 }
 0x221   :  { %1950 = vmatpush2.bf16.msra.mxu1 %v1588_v8  ;;  %v1332_v8 = vld [vmem:[#allocation8 + $0x6c0] sm:$0xff] }
 0x222   :  { %1951 = vmatprep.subr.bf16.mxu1 %v1581_v21  ;;  %v1812_v13 = vunpack.c.h.s8.bf16 %v1332_v8 }
 0x223   :  { %1911 = vmatpush2.bf16.msra.mxu0 %v1452_v10 }
 0x224   :  { %1912 = vmatprep.subr.bf16.mxu0 %v1445_v15  ;;  %v1645_v15 = vunpack.c.l.s8.bf16 %v1253_v1 }
 0x225   :  { %1952 = vmatpush2.bf16.msra.mxu1 %v1580_v40  ;;  %v1245_v40 = vld [vmem:[#allocation8 + $0x408] sm:$0xff] }
 0x226   :  { %1953 = vmatprep.subr.bf16.mxu1 %v1573_v16  ;;  %v1325_v16 = vld [vmem:[#allocation8 + $0x688] sm:$0xff]  ;;  %v1637_v20 = vunpack.c.h.s8.bf16 %v1245_v40  ;;  %v1629_v28 = vunpack.c.l.s8.bf16 %v1245_v40  ;;  %v1276_v40 = vld [vmem:[#allocation8 + $0x500] sm:$0xff] }
 0x227   :  { %1913 = vmatpush2.bf16.msra.mxu0 %v1444_v19  ;;  %v1804_v19 = vunpack.c.l.s8.bf16 %v1332_v8  ;;  %v1789_v29 = vunpack.c.l.s8.bf16 %v1325_v16 }
 0x228   :  { %1914 = vmatprep.subr.bf16.mxu0 %v1437_v22  ;;  %v1244_v22 = vld [vmem:[#allocation8 + $0x400] sm:$0xff] }
 0x229   :  { %1954 = vmatpush2.bf16.msra.mxu1 %v1572_v23  ;;  %v1797_v23 = vunpack.c.h.s8.bf16 %v1325_v16 }
 0x22a   :  { %1955 = vmatprep.subr.bf16.mxu1 %v1565_v26  ;;  %v1636_v26 = vunpack.c.h.s8.bf16 %v1244_v22 }
 0x22b   :  { %1915 = vmatpush2.bf16.msra.mxu0 %v1436_v27  ;;  %v1796_v27 = vunpack.c.h.s8.bf16 %v1324_v24 }
 0x22c   :  { %1966 = vmatprep.subr.bf16.mxu0 %v1685_v30  ;;  %v1301_v30 = vld [vmem:[#allocation8 + $0x5c8] sm:$0xff] }
 0x22d   :  { %1956 = vmatpush2.bf16.msra.mxu1 %v1564_v32  ;;  %v1628_v32 = vunpack.c.l.s8.bf16 %v1244_v22 }
 0x22e   :  { %v788_v39 = vpop.f32.mrf.mxu0  ;;  %1917 = vmatmul.mubr.bf16.vlgmr.msra.gmra.mxu0 %v4286_v36  ;;  %2007 = vmatprep.subr.bf16.mxu1 %v1813_v33  ;;  %v1788_v33 = vunpack.c.l.s8.bf16 %v1324_v24  ;;  %v4304_v24 = vld [vmem:[#allocation8 + $0xd8] sm:$0xff] }
 0x22f   :  { %1967 = vmatpush1.bf16.msra.mxu0 %v1684_v34  ;;  %v1749_v34 = vunpack.c.h.s8.bf16 %v1301_v30 }
 0x230   :  { %v790_v43 = vpop.f32.mrf.mxu0  ;;  %v829_v44 = vpop.f32.mrf.mxu1  ;;  %1968 = vmatprep.subr.bf16.mxu0 %v1677_v37  ;;  %v1300_v37 = vld [vmem:[#allocation8 + $0x5c0] sm:$0xff] }
 0x231   :  { %v830_v47 = vadd.f32 %v829_v44, %v788_v39  ;;  %v1316_v39 = vld [vmem:[#allocation8 + $0x640] sm:$0xff]  ;;  %v1773_v44 = vunpack.c.l.s8.bf16 %v1317_v31 }
 0x232   :  { %v792_v50 = vpop.f32.mrf.mxu0  ;;  %v831_v51 = vpop.f32.mrf.mxu1  ;;  %v1348_v31 = vld [vmem:[#allocation8 + $0x740] sm:$0xff] }
 0x233   :  { %v1044_v52 = vmul.f32 %v1013_v42, %v830_v47  ;;  %v832_v53 = vadd.f32 %v831_v51, %v790_v43  ;;  %1969 = vmatpush1.bf16.msra.mxu0 %v1676_v12  ;;  %v1748_v42 = vunpack.c.h.s8.bf16 %v1300_v37  ;;  %v1780_v12 = vunpack.c.h.s8.bf16 %v1316_v39  ;;  %v1292_v50 = vld [vmem:[#allocation8 + $0x580] sm:$0xff] }
 0x234   :  { %v793_v60 = vpop.f32.mrf.mxu0  ;;  %v833_v61 = vpop.f32.mrf.mxu1  ;;  %1970 = vmatprep.subr.bf16.mxu0 %v1669_v46  ;;  %v1741_v43 = vunpack.c.l.s8.bf16 %v1301_v30  ;;  %v1293_v46 = vld [vmem:[#allocation8 + $0x588] sm:$0xff]  ;;  %v1740_v47 = vunpack.c.l.s8.bf16 %v1300_v37  ;;  %v1765_v51 = vunpack.c.h.s8.bf16 %v1309_v25  ;;  %v4311_v37 = vsub.s32 5, %v4206_v4 }
 0x235   :  { %v1094_v63 = vadd.f32 %v1063_v48, %v1044_v52  ;;  %v1045_v0 = vmul.f32 %v1017_v49, %v832_v53  ;;  %v1772_v48 = vunpack.c.l.s8.bf16 %v1316_v39  ;;  %v1733_v49 = vunpack.c.h.s8.bf16 %v1293_v46  ;;  %v1308_v52 = vld [vmem:[#allocation8 + $0x600] sm:$0xff]  ;;  %v1285_v61 = vld [vmem:[#allocation8 + $0x548] sm:$0xff] }
 0x236   :  { %v834_v2 = vpop.f32.mrf.mxu1  ;;  %v1732_v53 = vunpack.c.h.s8.bf16 %v1292_v50  ;;  %v1757_v60 = vunpack.c.l.s8.bf16 %v1309_v25  ;;  %v1717_v1 = vunpack.c.h.s8.bf16 %v1285_v61  ;;  %v1709_v7 = vunpack.c.l.s8.bf16 %v1285_v61  ;;  %v1340_v25 = vld [vmem:[#allocation8 + $0x700] sm:$0xff] }
 0x237   :  { %v1095_v17 = vadd.f32 %v1067_v55, %v1045_v0  ;;  %1971 = vmatpush1.bf16.msra.mxu0 %v1668_v58  ;;  %v1102_v5 = vmax.f32 %v1094_v63, 0.0  ;;  %v1764_v55 = vunpack.c.h.s8.bf16 %v1308_v52  ;;  %v1725_v58 = vunpack.c.l.s8.bf16 %v1293_v46  ;;  %v1284_v2 = vld [vmem:[#allocation8 + $0x540] sm:$0xff] }
 0x238   :  { %1972 = vmatprep.subr.bf16.mxu0 %v1661_v62  ;;  %v1365_v62 = vld [vmem:[#allocation8 + $0x7c8] sm:$0xff]  ;;  %v1724_v63 = vunpack.c.l.s8.bf16 %v1292_v50  ;;  %v1756_v0 = vunpack.c.l.s8.bf16 %v1308_v52 }
 0x239   :  { %v1103_v21 = vmax.f32 %v1095_v17, 0.0  ;;  %v4299_v14 = vpack.c.bf16 %v1102_v5, %v1102_v5  ;;  %v1877_v17 = vunpack.c.h.s8.bf16 %v1365_v62  ;;  %v1716_v5 = vunpack.c.h.s8.bf16 %v1284_v2 }
 0x23a   :  { %v1869_v8 = vunpack.c.l.s8.bf16 %v1365_v62 }
 0x23b   :  { %v4297_v10 = vpack.c.bf16 %v1103_v21, %v1103_v21  ;;  %1973 = vmatpush1.bf16.msra.mxu0 %v1660_v3  ;;  %v1364_v3 = vld [vmem:[#allocation8 + $0x7c0] sm:$0xff]  ;;  %v1277_v21 = vld [vmem:[#allocation8 + $0x508] sm:$0xff] }
 0x23c   :  { %1974 = vmatprep.subr.bf16.mxu0 %v1653_v6  ;;  %v1876_v6 = vunpack.c.h.s8.bf16 %v1364_v3  ;;  %v1693_v22 = vunpack.c.l.s8.bf16 %v1277_v21 }
 0x23d   :  { %1957 = vmatprep.mubr.bf16.mxu1 %v4297_v10 }
 0x23e   :  { %1958 = vmatmul.mubr.bf16.vlgmr.msra.gmra.mxu1 %v4299_v14 }
 0x23f   :  { %1975 = vmatpush1.bf16.msra.mxu0 %v1652_v11  ;;  %2008 = vmatpush1.bf16.msra.mxu1 %v1812_v13  ;;  %v1357_v11 = vld [vmem:[#allocation8 + $0x788] sm:$0xff]  ;;  %v1708_v13 = vunpack.c.l.s8.bf16 %v1284_v2 }
 0x240   :  { %1976 = vmatprep.subr.bf16.mxu0 %v1645_v15  ;;  %2009 = vmatprep.subr.bf16.mxu1 %v1805_v35  ;;  %v1868_v15 = vunpack.c.l.s8.bf16 %v1364_v3  ;;  %v1701_v35 = vunpack.c.h.s8.bf16 %v1277_v21  ;;  %v1861_v16 = vunpack.c.h.s8.bf16 %v1357_v11  ;;  %v1820_v3 = vunpack.c.l.s8.bf16 %v1340_v25 }
 0x243   :  { %1977 = vmatpush1.bf16.msra.mxu0 %v1644_v18  ;;  %2010 = vmatpush1.bf16.msra.mxu1 %v1804_v19  ;;  %v1356_v18 = vld [vmem:[#allocation8 + $0x780] sm:$0xff]  ;;  %v1700_v19 = vunpack.c.h.s8.bf16 %v1276_v40 }
 0x244   :  { %1978 = vmatprep.subr.bf16.mxu0 %v1637_v20  ;;  %2011 = vmatprep.subr.bf16.mxu1 %v1797_v23  ;;  %v1860_v20 = vunpack.c.h.s8.bf16 %v1356_v18  ;;  %v1853_v23 = vunpack.c.l.s8.bf16 %v1357_v11 }
 0x247   :  { %1979 = vmatpush1.bf16.msra.mxu0 %v1636_v26  ;;  %2012 = vmatpush1.bf16.msra.mxu1 %v1796_v27  ;;  %v1349_v26 = vld [vmem:[#allocation8 + $0x748] sm:$0xff]  ;;  %v1692_v27 = vunpack.c.l.s8.bf16 %v1276_v40 }
 0x248   :  { %1980 = vmatprep.subr.bf16.mxu0 %v1629_v28  ;;  %2013 = vmatprep.subr.bf16.mxu1 %v1789_v29  ;;  %v1852_v28 = vunpack.c.l.s8.bf16 %v1356_v18  ;;  %v1431_v29 = vunpack.c.h.s8.bf16 %v4304_v24  ;;  %v1845_v30 = vunpack.c.h.s8.bf16 %v1349_v26  ;;  %v1134_v18 = vld [vmem:[#allocation8 + $0x90] sm:$0xff] }
 0x24b   :  { %1981 = vmatpush1.bf16.msra.mxu0 %v1628_v32  ;;  %2014 = vmatpush1.bf16.msra.mxu1 %v1788_v33  ;;  %v4308_v32 = vsub.s32 4, %v4206_v4  ;;  %v1844_v33 = vunpack.c.h.s8.bf16 %v1348_v31 }
 0x24c   :  { %1982 = vmatprep.subr.bf16.mxu0 %v1749_v34  ;;  %2015 = vmatprep.subr.bf16.mxu1 %v1781_v38  ;;  %v1837_v34 = vunpack.c.l.s8.bf16 %v1349_v26  ;;  %v1341_v38 = vld [vmem:[#allocation8 + $0x708] sm:$0xff]  ;;  %v1126_v26 = vld [vmem:[#allocation8 + $0x50] sm:$0xff] }
 0x24d   :  { %v1829_v46 = vunpack.c.h.s8.bf16 %v1341_v38  ;;  %v1821_v62 = vunpack.c.l.s8.bf16 %v1341_v38 }
 0x24f   :  { %1983 = vmatpush2.bf16.msra.mxu0 %v1748_v42  ;;  %2016 = vmatpush1.bf16.msra.mxu1 %v1780_v12  ;;  %v1021_v42 = vrot.slane %v4266_v41, %v4308_v32  ;;  %v1836_v12 = vunpack.c.l.s8.bf16 %v1348_v31 }
 0x250   :  { %1984 = vmatprep.subr.bf16.mxu0 %v1741_v43  ;;  %2017 = vmatprep.subr.bf16.mxu1 %v1773_v44 }
 0x253   :  { %1985 = vmatpush2.bf16.msra.mxu0 %v1740_v47  ;;  %2018 = vmatpush1.bf16.msra.mxu1 %v1772_v48  ;;  %v1071_v48 = vrot.slane %v4270_v45, %v4308_v32 }
 0x254   :  { %1986 = vmatprep.subr.bf16.mxu0 %v1733_v49  ;;  %2019 = vmatprep.subr.bf16.mxu1 %v1765_v51  ;;  %v1025_v49 = vrot.slane %v4266_v41, %v4311_v37 }
 0x257   :  { %1987 = vmatpush2.bf16.msra.mxu0 %v1732_v53  ;;  %2020 = vmatpush1.bf16.msra.mxu1 %v1764_v55  ;;  %v1075_v55 = vrot.slane %v4270_v45, %v4311_v37 }
 0x258   :  { %1988 = vmatprep.subr.bf16.mxu0 %v1725_v58  ;;  %2021 = vmatprep.subr.bf16.mxu1 %v1757_v60  ;;  %v1828_v58 = vunpack.c.h.s8.bf16 %v1340_v25  ;;  %v1167_v25 = vld [vmem:[#allocation8 + $0x198] sm:$0xff] }
 0x25b   :  { %1989 = vmatpush2.bf16.msra.mxu0 %v1724_v63  ;;  %2022 = vmatpush1.bf16.msra.mxu1 %v1756_v0 }
 0x25c   :  { %1990 = vmatprep.subr.bf16.mxu0 %v1717_v1  ;;  %2023 = vmatprep.subr.bf16.mxu1 %v1877_v17  ;;  %v4321_v1 = vld [vmem:[#allocation8 + $0x2d8] sm:$0xff] }
 0x25f   :  { %1991 = vmatpush2.bf16.msra.mxu0 %v1716_v5  ;;  %2024 = vmatpush2.bf16.msra.mxu1 %v1876_v6  ;;  %v1142_v6 = vld [vmem:[#allocation8 + $0xd0] sm:$0xff] }
 0x260   :  { %1992 = vmatprep.subr.bf16.mxu0 %v1709_v7  ;;  %2025 = vmatprep.subr.bf16.mxu1 %v1869_v8  ;;  %v1559_v7 = vunpack.c.h.s8.bf16 %v4321_v1  ;;  %v1430_v11 = vunpack.c.h.s8.bf16 %v1142_v6  ;;  %v1422_v40 = vunpack.c.l.s8.bf16 %v1142_v6 }
 0x263   :  { %1993 = vmatpush2.bf16.msra.mxu0 %v1708_v13  ;;  %2026 = vmatpush2.bf16.msra.mxu1 %v1868_v15  ;;  %v1423_v15 = vunpack.c.l.s8.bf16 %v4304_v24 }
 0x264   :  { %1994 = vmatprep.subr.bf16.mxu0 %v1701_v35  ;;  %2027 = vmatprep.subr.bf16.mxu1 %v1861_v16  ;;  %v1135_v35 = vld [vmem:[#allocation8 + $0x98] sm:$0xff] }
 0x265   :  { %v1415_v16 = vunpack.c.h.s8.bf16 %v1135_v35 }
 0x267   :  { %1995 = vmatpush2.bf16.msra.mxu0 %v1700_v19  ;;  %2028 = vmatpush2.bf16.msra.mxu1 %v1860_v20  ;;  %v1414_v19 = vunpack.c.h.s8.bf16 %v1134_v18  ;;  %v1407_v20 = vunpack.c.l.s8.bf16 %v1135_v35 }
 0x268   :  { %1996 = vmatprep.subr.bf16.mxu0 %v1693_v22  ;;  %2029 = vmatprep.subr.bf16.mxu1 %v1853_v23  ;;  %v1127_v22 = vld [vmem:[#allocation8 + $0x58] sm:$0xff]  ;;  %v1406_v23 = vunpack.c.l.s8.bf16 %v1134_v18 }
 0x269   :  { %v1399_v24 = vunpack.c.h.s8.bf16 %v1127_v22 }
 0x26b   :  { %1997 = vmatpush2.bf16.msra.mxu0 %v1692_v27  ;;  %2030 = vmatpush2.bf16.msra.mxu1 %v1852_v28  ;;  %v1398_v27 = vunpack.c.h.s8.bf16 %v1126_v26  ;;  %v1391_v28 = vunpack.c.l.s8.bf16 %v1127_v22 }
 0x26c   :  { %2048 = vmatprep.subr.bf16.mxu0 %v1431_v29  ;;  %2031 = vmatprep.subr.bf16.mxu1 %v1845_v30  ;;  %v1119_v29 = vld [vmem:[#allocation8 + $0x18] sm:$0xff]  ;;  %v1390_v30 = vunpack.c.l.s8.bf16 %v1126_v26 }
 0x26d   :  { %v1383_v31 = vunpack.c.h.s8.bf16 %v1119_v29  ;;  %v1375_v38 = vunpack.c.l.s8.bf16 %v1119_v29 }
 0x26e   :  { %v870_v39 = vpop.f32.mrf.mxu0 }
 0x26f   :  { %2032 = vmatpush2.bf16.msra.mxu1 %v1844_v33  ;;  %v1118_v33 = vld [vmem:[#allocation8 + $0x10] sm:$0xff] }
 0x270   :  { %v872_v43 = vpop.f32.mrf.mxu0  ;;  %v911_v44 = vpop.f32.mrf.mxu1  ;;  %2033 = vmatprep.subr.bf16.mxu1 %v1837_v34  ;;  %v1382_v34 = vunpack.c.h.s8.bf16 %v1118_v33 }
 0x271   :  { %v912_v47 = vadd.f32 %v911_v44, %v870_v39  ;;  %v1175_v39 = vld [vmem:[#allocation8 + $0x1d8] sm:$0xff] }
 0x272   :  { %v874_v50 = vpop.f32.mrf.mxu0  ;;  %v913_v51 = vpop.f32.mrf.mxu1 }
 0x273   :  { %v1046_v52 = vmul.f32 %v1021_v42, %v912_v47  ;;  %v914_v53 = vadd.f32 %v913_v51, %v872_v43  ;;  %2034 = vmatpush2.bf16.msra.mxu1 %v1836_v12  ;;  %v1374_v42 = vunpack.c.l.s8.bf16 %v1118_v33  ;;  %v1495_v12 = vunpack.c.h.s8.bf16 %v1175_v39  ;;  %v1174_v43 = vld [vmem:[#allocation8 + $0x1d0] sm:$0xff] }
 0x274   :  { %v875_v60 = vpop.f32.mrf.mxu0  ;;  %v915_v61 = vpop.f32.mrf.mxu1  ;;  %2035 = vmatprep.subr.bf16.mxu1 %v1829_v46  ;;  %v1494_v44 = vunpack.c.h.s8.bf16 %v1174_v43  ;;  %v1487_v46 = vunpack.c.l.s8.bf16 %v1175_v39  ;;  %v1486_v47 = vunpack.c.l.s8.bf16 %v1174_v43  ;;  %v1471_v51 = vunpack.c.l.s8.bf16 %v1167_v25 }
 0x275   :  { %v1096_v63 = vadd.f32 %v1071_v48, %v1046_v52  ;;  %v1047_v0 = vmul.f32 %v1025_v49, %v914_v53  ;;  %v1479_v48 = vunpack.c.h.s8.bf16 %v1167_v25  ;;  %v1166_v49 = vld [vmem:[#allocation8 + $0x190] sm:$0xff]  ;;  %v1159_v52 = vld [vmem:[#allocation8 + $0x158] sm:$0xff]  ;;  %v4333_v61 = vsub.s32 6, %v4206_v4 }
 0x276   :  { %v916_v2 = vpop.f32.mrf.mxu1  ;;  %v1478_v50 = vunpack.c.h.s8.bf16 %v1166_v49  ;;  %v1470_v53 = vunpack.c.l.s8.bf16 %v1166_v49  ;;  %v1199_v25 = vld [vmem:[#allocation8 + $0x298] sm:$0xff] }
 0x277   :  { %v1097_v17 = vadd.f32 %v1075_v55, %v1047_v0  ;;  %2036 = vmatpush2.bf16.msra.mxu1 %v1828_v58  ;;  %v1104_v5 = vmax.f32 %v1096_v63, 0.0  ;;  %v1463_v55 = vunpack.c.h.s8.bf16 %v1159_v52  ;;  %v1158_v58 = vld [vmem:[#allocation8 + $0x150] sm:$0xff]  ;;  %v4336_v63 = vsub.s32 7, %v4206_v4  ;;  %v1151_v0 = vld [vmem:[#allocation8 + $0x118] sm:$0xff] }
 0x278   :  { %2037 = vmatprep.subr.bf16.mxu1 %v1821_v62  ;;  %v1462_v60 = vunpack.c.h.s8.bf16 %v1158_v58  ;;  %v1455_v62 = vunpack.c.l.s8.bf16 %v1159_v52  ;;  %v1198_v52 = vld [vmem:[#allocation8 + $0x290] sm:$0xff] }
 0x279   :  { %v1105_v8 = vmax.f32 %v1097_v17, 0.0  ;;  %v4326_v13 = vpack.c.bf16 %v1104_v5, %v1104_v5  ;;  %v1029_v17 = vrot.slane %v4266_v41, %v4333_v61  ;;  %v1033_v4 = vrot.slane %v4266_v41, %v4336_v63 }
 0x27b   :  { %v4324_v21 = vpack.c.bf16 %v1105_v8, %v1105_v8  ;;  %2038 = vmatpush2.bf16.msra.mxu1 %v1820_v3  ;;  %v1454_v3 = vunpack.c.l.s8.bf16 %v1158_v58  ;;  %v1150_v8 = vld [vmem:[#allocation8 + $0x110] sm:$0xff]  ;;  %v1535_v58 = vunpack.c.l.s8.bf16 %v1199_v25 }
 0x27c   :  { %2089 = vmatprep.subr.bf16.mxu1 %v1559_v7  ;;  %v1447_v7 = vunpack.c.h.s8.bf16 %v1151_v0  ;;  %v1438_v41 = vunpack.c.l.s8.bf16 %v1150_v8 }
 0x27d   :  { %1998 = vmatprep.mubr.bf16.mxu0 %v4324_v21 }
 0x27e   :  { %1999 = vmatmul.mubr.bf16.vlgmr.msra.gmra.mxu0 %v4326_v13 }
 0x27f   :  { %2049 = vmatpush1.bf16.msra.mxu0 %v1430_v11  ;;  %2080 = vmatprep.mubr.bf16.mxu0 %v4274_v9 }
 0x280   :  { %2050 = vmatprep.subr.bf16.mxu0 %v1423_v15  ;;  %v1079_v15 = vrot.slane %v4270_v45, %v4333_v61 }
 0x283   :  { %2051 = vmatpush1.bf16.msra.mxu0 %v1422_v40 }
 0x284   :  { %2052 = vmatprep.subr.bf16.mxu0 %v1415_v16 }
 0x287   :  { %2053 = vmatpush1.bf16.msra.mxu0 %v1414_v19  ;;  %v1083_v19 = vrot.slane %v4270_v45, %v4336_v63 }
 0x288   :  { %2054 = vmatprep.subr.bf16.mxu0 %v1407_v20  ;;  %v1446_v20 = vunpack.c.h.s8.bf16 %v1150_v8 }
 0x28b   :  { %2055 = vmatpush1.bf16.msra.mxu0 %v1406_v23 }
 0x28c   :  { %2056 = vmatprep.subr.bf16.mxu0 %v1399_v24  ;;  %v1439_v24 = vunpack.c.l.s8.bf16 %v1151_v0  ;;  %v1255_v0 = vld [vmem:[#allocation8 + $0x458] sm:$0xff] }
 0x28f   :  { %2057 = vmatpush1.bf16.msra.mxu0 %v1398_v27 }
 0x290   :  { %2058 = vmatprep.subr.bf16.mxu0 %v1391_v28  ;;  %v1271_v28 = vld [vmem:[#allocation8 + $0x4d8] sm:$0xff] }
 0x291   :  { %v1687_v33 = vunpack.c.h.s8.bf16 %v1271_v28 }
 0x293   :  { %2059 = vmatpush1.bf16.msra.mxu0 %v1390_v30 }
 0x294   :  { %2060 = vmatprep.subr.bf16.mxu0 %v1383_v31 }
 0x297   :  { %2061 = vmatpush1.bf16.msra.mxu0 %v1382_v34  ;;  %v1206_v34 = vld [vmem:[#allocation8 + $0x2d0] sm:$0xff] }
 0x298   :  { %2062 = vmatprep.subr.bf16.mxu0 %v1375_v38  ;;  %v1270_v38 = vld [vmem:[#allocation8 + $0x4d0] sm:$0xff] }
 0x299   :  { %v1678_v49 = vunpack.c.l.s8.bf16 %v1270_v38 }
 0x29b   :  { %2063 = vmatpush1.bf16.msra.mxu0 %v1374_v42  ;;  %v1558_v42 = vunpack.c.h.s8.bf16 %v1206_v34 }
 0x29c   :  { %2064 = vmatprep.subr.bf16.mxu0 %v1495_v12  ;;  %v1686_v12 = vunpack.c.h.s8.bf16 %v1270_v38  ;;  %v1238_v38 = vld [vmem:[#allocation8 + $0x3d0] sm:$0xff] }
 0x29f   :  { %2065 = vmatpush2.bf16.msra.mxu0 %v1494_v44  ;;  %v1551_v44 = vunpack.c.l.s8.bf16 %v4321_v1  ;;  %v1542_v1 = vunpack.c.h.s8.bf16 %v1198_v52 }
 0x2a0   :  { %2066 = vmatprep.subr.bf16.mxu0 %v1487_v46  ;;  %v1679_v46 = vunpack.c.l.s8.bf16 %v1271_v28 }
 0x2a3   :  { %2067 = vmatpush2.bf16.msra.mxu0 %v1486_v47  ;;  %v1263_v47 = vld [vmem:[#allocation8 + $0x498] sm:$0xff] }
 0x2a4   :  { %2068 = vmatprep.subr.bf16.mxu0 %v1479_v48  ;;  %v1550_v48 = vunpack.c.l.s8.bf16 %v1206_v34 }
 0x2a7   :  { %2069 = vmatpush2.bf16.msra.mxu0 %v1478_v50  ;;  %v1543_v50 = vunpack.c.h.s8.bf16 %v1199_v25  ;;  %v1231_v25 = vld [vmem:[#allocation8 + $0x398] sm:$0xff] }
 0x2a8   :  { %2070 = vmatprep.subr.bf16.mxu0 %v1471_v51  ;;  %v1671_v51 = vunpack.c.h.s8.bf16 %v1263_v47 }
 0x2ab   :  { %2071 = vmatpush2.bf16.msra.mxu0 %v1470_v53  ;;  %v1262_v53 = vld [vmem:[#allocation8 + $0x490] sm:$0xff] }
 0x2ac   :  { %2072 = vmatprep.subr.bf16.mxu0 %v1463_v55  ;;  %v1670_v55 = vunpack.c.h.s8.bf16 %v1262_v53 }
 0x2ae   :  { %v952_v2 = vpop.f32.mrf.mxu0 }
 0x2af   :  { %2073 = vmatpush2.bf16.msra.mxu0 %v1462_v60  ;;  %v1663_v60 = vunpack.c.l.s8.bf16 %v1263_v47  ;;  %v1295_v47 = vld [vmem:[#allocation8 + $0x598] sm:$0xff] }
 0x2b0   :  { %v954_v5 = vpop.f32.mrf.mxu0  ;;  %v993_v6 = vpop.f32.mrf.mxu1  ;;  %2074 = vmatprep.subr.bf16.mxu0 %v1455_v62  ;;  %v1191_v62 = vld [vmem:[#allocation8 + $0x258] sm:$0xff] }
 0x2b1   :  { %v994_v11 = vadd.f32 %v993_v6, %v952_v2  ;;  %v1534_v2 = vunpack.c.l.s8.bf16 %v1198_v52  ;;  %v1190_v6 = vld [vmem:[#allocation8 + $0x250] sm:$0xff] }
 0x2b2   :  { %v956_v35 = vpop.f32.mrf.mxu0  ;;  %v995_v40 = vpop.f32.mrf.mxu1  ;;  %v1526_v8 = vunpack.c.h.s8.bf16 %v1190_v6  ;;  %v1230_v52 = vld [vmem:[#allocation8 + $0x390] sm:$0xff] }
 0x2b3   :  { %v1048_v16 = vmul.f32 %v1029_v17, %v994_v11  ;;  %v996_v18 = vadd.f32 %v995_v40, %v954_v5  ;;  %2075 = vmatpush2.bf16.msra.mxu0 %v1454_v3  ;;  %v1662_v17 = vunpack.c.l.s8.bf16 %v1262_v53  ;;  %v1527_v3 = vunpack.c.h.s8.bf16 %v1191_v62  ;;  %v1183_v35 = vld [vmem:[#allocation8 + $0x218] sm:$0xff]  ;;  %v1294_v53 = vld [vmem:[#allocation8 + $0x590] sm:$0xff] }
 0x2b4   :  { %v957_v22 = vpop.f32.mrf.mxu0  ;;  %v997_v23 = vpop.f32.mrf.mxu1  ;;  %2076 = vmatprep.subr.bf16.mxu0 %v1447_v7  ;;  %v1655_v5 = vunpack.c.h.s8.bf16 %v1255_v0  ;;  %v1254_v7 = vld [vmem:[#allocation8 + $0x450] sm:$0xff]  ;;  %v1247_v40 = vld [vmem:[#allocation8 + $0x418] sm:$0xff] }
 0x2b5   :  { %v1098_v26 = vadd.f32 %v1079_v15, %v1048_v16  ;;  %v1049_v27 = vmul.f32 %v1033_v4, %v996_v18  ;;  %v1654_v11 = vunpack.c.h.s8.bf16 %v1254_v7  ;;  %v1519_v15 = vunpack.c.l.s8.bf16 %v1191_v62  ;;  %v1182_v22 = vld [vmem:[#allocation8 + $0x210] sm:$0xff]  ;;  %v1223_v62 = vld [vmem:[#allocation8 + $0x358] sm:$0xff] }
 0x2b6   :  { %v998_v29 = vpop.f32.mrf.mxu1  ;;  %v1647_v4 = vunpack.c.l.s8.bf16 %v1255_v0  ;;  %v1518_v16 = vunpack.c.l.s8.bf16 %v1190_v6  ;;  %v1646_v18 = vunpack.c.l.s8.bf16 %v1254_v7  ;;  %v1246_v23 = vld [vmem:[#allocation8 + $0x410] sm:$0xff]  ;;  %v1631_v28 = vunpack.c.l.s8.bf16 %v1247_v40  ;;  %v1287_v0 = vld [vmem:[#allocation8 + $0x558] sm:$0xff] }
 0x2b7   :  { %v1099_v30 = vadd.f32 %v1083_v19, %v1049_v27  ;;  %2077 = vmatpush2.bf16.msra.mxu0 %v1446_v20  ;;  %v1106_v31 = vmax.f32 %v1098_v26, 0.0  ;;  %v1511_v19 = vunpack.c.h.s8.bf16 %v1183_v35  ;;  %v1639_v20 = vunpack.c.h.s8.bf16 %v1247_v40  ;;  %v1239_v29 = vld [vmem:[#allocation8 + $0x3d8] sm:$0xff]  ;;  %v1222_v6 = vld [vmem:[#allocation8 + $0x350] sm:$0xff] }
 0x2b8   :  { %2078 = vmatprep.subr.bf16.mxu0 %v1439_v24  ;;  %v1510_v24 = vunpack.c.h.s8.bf16 %v1182_v22  ;;  %v1638_v26 = vunpack.c.h.s8.bf16 %v1246_v23  ;;  %v1503_v27 = vunpack.c.l.s8.bf16 %v1183_v35  ;;  %v1286_v7 = vld [vmem:[#allocation8 + $0x550] sm:$0xff]  ;;  %v1215_v35 = vld [vmem:[#allocation8 + $0x318] sm:$0xff] }
 0x2b9   :  { %v1107_v39 = vmax.f32 %v1099_v30, 0.0  ;;  %v4348_v43 = vpack.c.bf16 %v1106_v31, %v1106_v31  ;;  %v1303_v30 = vld [vmem:[#allocation8 + $0x5d8] sm:$0xff]  ;;  %v1630_v31 = vunpack.c.l.s8.bf16 %v1246_v23 }
 0x2ba   :  { %v1751_v34 = vunpack.c.h.s8.bf16 %v1303_v30  ;;  %v1279_v40 = vld [vmem:[#allocation8 + $0x518] sm:$0xff] }
 0x2bb   :  { %v4346_v45 = vpack.c.bf16 %v1107_v39, %v1107_v39  ;;  %2079 = vmatpush2.bf16.msra.mxu0 %v1438_v41  ;;  %v1502_v41 = vunpack.c.l.s8.bf16 %v1182_v22  ;;  %v1302_v39 = vld [vmem:[#allocation8 + $0x5d0] sm:$0xff]  ;;  %v1575_v22 = vunpack.c.h.s8.bf16 %v1215_v35  ;;  %v1703_v23 = vunpack.c.h.s8.bf16 %v1279_v40 }
 0x2bc   :  { %2130 = vmatprep.subr.bf16.mxu0 %v1687_v33  ;;  %v1623_v33 = vunpack.c.h.s8.bf16 %v1239_v29 }
 0x2bd   :  { %2039 = vmatprep.mubr.bf16.mxu1 %v4346_v45 }
 0x2be   :  { %2081 = vmatmul.mubr.bf16.vlgmr.msra.gmra.mxu0 %v4286_v36  ;;  %2040 = vmatmul.mubr.bf16.vlgmr.msra.gmra.mxu1 %v4348_v43 }
 0x2bf   :  { %2090 = vmatpush1.bf16.msra.mxu1 %v1558_v42  ;;  %2131 = vmatpush1.bf16.msra.mxu0 %v1686_v12  ;;  %v1622_v42 = vunpack.c.h.s8.bf16 %v1238_v38  ;;  %v1750_v12 = vunpack.c.h.s8.bf16 %v1302_v39 }
 0x2c0   :  { %2162 = vmatprep.mubr.bf16.mxu0 %v4324_v21  ;;  %2121 = vmatprep.mubr.bf16.mxu1 %v4297_v10 }
 0x2c1   :  { %2091 = vmatprep.subr.bf16.mxu1 %v1551_v44  ;;  %2132 = vmatprep.subr.bf16.mxu0 %v1679_v46  ;;  %v1615_v44 = vunpack.c.l.s8.bf16 %v1239_v29  ;;  %v1743_v46 = vunpack.c.l.s8.bf16 %v1303_v30 }
 0x2c3   :  { %2092 = vmatpush1.bf16.msra.mxu1 %v1550_v48  ;;  %2133 = vmatpush1.bf16.msra.mxu0 %v1678_v49  ;;  %v1614_v48 = vunpack.c.l.s8.bf16 %v1238_v38  ;;  %v1742_v49 = vunpack.c.l.s8.bf16 %v1302_v39 }
 0x2c4   :  { %2093 = vmatprep.subr.bf16.mxu1 %v1543_v50  ;;  %2134 = vmatprep.subr.bf16.mxu0 %v1671_v51  ;;  %v1607_v50 = vunpack.c.h.s8.bf16 %v1231_v25  ;;  %v1735_v51 = vunpack.c.h.s8.bf16 %v1295_v47 }
 0x2c7   :  { %2094 = vmatpush1.bf16.msra.mxu1 %v1542_v1  ;;  %2135 = vmatpush1.bf16.msra.mxu0 %v1670_v55  ;;  %v1606_v1 = vunpack.c.h.s8.bf16 %v1230_v52  ;;  %v1734_v55 = vunpack.c.h.s8.bf16 %v1294_v53 }
 0x2c8   :  { %2095 = vmatprep.subr.bf16.mxu1 %v1535_v58  ;;  %2136 = vmatprep.subr.bf16.mxu0 %v1663_v60  ;;  %v1599_v58 = vunpack.c.l.s8.bf16 %v1231_v25  ;;  %v1727_v60 = vunpack.c.l.s8.bf16 %v1295_v47 }
 0x2cb   :  { %2096 = vmatpush1.bf16.msra.mxu1 %v1534_v2  ;;  %2137 = vmatpush1.bf16.msra.mxu0 %v1662_v17  ;;  %v1598_v2 = vunpack.c.l.s8.bf16 %v1230_v52  ;;  %v1726_v17 = vunpack.c.l.s8.bf16 %v1294_v53  ;;  %v1137_v52 = vld [vmem:[#allocation8 + $0xa8] sm:$0xff] }
 0x2cc   :  { %2097 = vmatprep.subr.bf16.mxu1 %v1527_v3  ;;  %2138 = vmatprep.subr.bf16.mxu0 %v1655_v5  ;;  %v1591_v3 = vunpack.c.h.s8.bf16 %v1223_v62  ;;  %v1719_v5 = vunpack.c.h.s8.bf16 %v1287_v0 }
 0x2cf   :  { %2098 = vmatpush1.bf16.msra.mxu1 %v1526_v8  ;;  %2139 = vmatpush1.bf16.msra.mxu0 %v1654_v11  ;;  %v1590_v8 = vunpack.c.h.s8.bf16 %v1222_v6  ;;  %v1718_v11 = vunpack.c.h.s8.bf16 %v1286_v7 }
 0x2d0   :  { %2099 = vmatprep.subr.bf16.mxu1 %v1519_v15  ;;  %2140 = vmatprep.subr.bf16.mxu0 %v1647_v4  ;;  %v1583_v15 = vunpack.c.l.s8.bf16 %v1223_v62  ;;  %v1711_v4 = vunpack.c.l.s8.bf16 %v1287_v0  ;;  %v1326_v62 = vld [vmem:[#allocation8 + $0x690] sm:$0xff] }
 0x2d3   :  { %2100 = vmatpush1.bf16.msra.mxu1 %v1518_v16  ;;  %2141 = vmatpush1.bf16.msra.mxu0 %v1646_v18  ;;  %v1582_v18 = vunpack.c.l.s8.bf16 %v1222_v6 }
 0x2d4   :  { %2101 = vmatprep.subr.bf16.mxu1 %v1511_v19  ;;  %2142 = vmatprep.subr.bf16.mxu0 %v1639_v20  ;;  %v1710_v19 = vunpack.c.l.s8.bf16 %v1286_v7 }
 0x2d7   :  { %2102 = vmatpush1.bf16.msra.mxu1 %v1510_v24  ;;  %2143 = vmatpush1.bf16.msra.mxu0 %v1638_v26  ;;  %v1214_v24 = vld [vmem:[#allocation8 + $0x310] sm:$0xff] }
 0x2d8   :  { %2103 = vmatprep.subr.bf16.mxu1 %v1503_v27  ;;  %2144 = vmatprep.subr.bf16.mxu0 %v1631_v28  ;;  %v1278_v26 = vld [vmem:[#allocation8 + $0x510] sm:$0xff]  ;;  %v1574_v28 = vunpack.c.h.s8.bf16 %v1214_v24  ;;  %v1566_v38 = vunpack.c.l.s8.bf16 %v1214_v24 }
 0x2d9   :  { %v1702_v29 = vunpack.c.h.s8.bf16 %v1278_v26  ;;  %v1694_v39 = vunpack.c.l.s8.bf16 %v1278_v26 }
 0x2db   :  { %2104 = vmatpush1.bf16.msra.mxu1 %v1502_v41  ;;  %2145 = vmatpush1.bf16.msra.mxu0 %v1630_v31  ;;  %v1567_v41 = vunpack.c.l.s8.bf16 %v1215_v35  ;;  %v1695_v31 = vunpack.c.l.s8.bf16 %v1279_v40  ;;  %v1790_v35 = vunpack.c.l.s8.bf16 %v1326_v62 }
 0x2dc   :  { %2105 = vmatprep.subr.bf16.mxu1 %v1623_v33  ;;  %2146 = vmatprep.subr.bf16.mxu0 %v1751_v34  ;;  %v1335_v33 = vld [vmem:[#allocation8 + $0x6d8] sm:$0xff]  ;;  %v1145_v34 = vld [vmem:[#allocation8 + $0xe8] sm:$0xff] }
 0x2df   :  { %2106 = vmatpush2.bf16.msra.mxu1 %v1622_v42  ;;  %2147 = vmatpush2.bf16.msra.mxu0 %v1750_v12  ;;  %v1815_v42 = vunpack.c.h.s8.bf16 %v1335_v33  ;;  %v1433_v12 = vunpack.c.h.s8.bf16 %v1145_v34 }
 0x2e0   :  { %2107 = vmatprep.subr.bf16.mxu1 %v1615_v44  ;;  %2148 = vmatprep.subr.bf16.mxu0 %v1743_v46  ;;  %v1334_v44 = vld [vmem:[#allocation8 + $0x6d0] sm:$0xff]  ;;  %v1144_v46 = vld [vmem:[#allocation8 + $0xe0] sm:$0xff] }
 0x2e1   :  { %v1814_v25 = vunpack.c.h.s8.bf16 %v1334_v44  ;;  %v1432_v47 = vunpack.c.h.s8.bf16 %v1144_v46 }
 0x2e3   :  { %2108 = vmatpush2.bf16.msra.mxu1 %v1614_v48  ;;  %2149 = vmatpush2.bf16.msra.mxu0 %v1742_v49  ;;  %v1807_v48 = vunpack.c.l.s8.bf16 %v1335_v33  ;;  %v1425_v49 = vunpack.c.l.s8.bf16 %v1145_v34  ;;  %v1120_v34 = vld [vmem:[#allocation8 + $0x20] sm:$0xff] }
 0x2e4   :  { %2109 = vmatprep.subr.bf16.mxu1 %v1607_v50  ;;  %2150 = vmatprep.subr.bf16.mxu0 %v1735_v51  ;;  %v1327_v50 = vld [vmem:[#allocation8 + $0x698] sm:$0xff] }
 0x2e7   :  { %2110 = vmatpush2.bf16.msra.mxu1 %v1606_v1  ;;  %2151 = vmatpush2.bf16.msra.mxu0 %v1734_v55  ;;  %v1806_v1 = vunpack.c.l.s8.bf16 %v1334_v44  ;;  %v1367_v44 = vld [vmem:[#allocation8 + $0x7d8] sm:$0xff] }
 0x2e8   :  { %2111 = vmatprep.subr.bf16.mxu1 %v1599_v58  ;;  %2152 = vmatprep.subr.bf16.mxu0 %v1727_v60  ;;  %v1424_v58 = vunpack.c.l.s8.bf16 %v1144_v46  ;;  %v1799_v60 = vunpack.c.h.s8.bf16 %v1327_v50  ;;  %v1177_v46 = vld [vmem:[#allocation8 + $0x1e8] sm:$0xff] }
 0x2eb   :  { %2112 = vmatpush2.bf16.msra.mxu1 %v1598_v2  ;;  %2153 = vmatpush2.bf16.msra.mxu0 %v1726_v17  ;;  %v1417_v2 = vunpack.c.h.s8.bf16 %v1137_v52  ;;  %v1136_v17 = vld [vmem:[#allocation8 + $0xa0] sm:$0xff] }
 0x2ec   :  { %2113 = vmatprep.subr.bf16.mxu1 %v1591_v3  ;;  %2154 = vmatprep.subr.bf16.mxu0 %v1719_v5  ;;  %v1798_v5 = vunpack.c.h.s8.bf16 %v1326_v62  ;;  %v1416_v7 = vunpack.c.h.s8.bf16 %v1136_v17  ;;  %v1408_v40 = vunpack.c.l.s8.bf16 %v1136_v17  ;;  %v1169_v62 = vld [vmem:[#allocation8 + $0x1a8] sm:$0xff] }
 0x2ee   :  { %v1918_v16 = vpop.f32.mrf.mxu0 }
 0x2ef   :  { %2114 = vmatpush2.bf16.msra.mxu1 %v1590_v8  ;;  %2155 = vmatpush2.bf16.msra.mxu0 %v1718_v11  ;;  %v1791_v8 = vunpack.c.l.s8.bf16 %v1327_v50  ;;  %v1409_v11 = vunpack.c.l.s8.bf16 %v1137_v52  ;;  %v1497_v50 = vunpack.c.h.s8.bf16 %v1177_v46 }
 0x2f0   :  { %v1920_v20 = vpop.f32.mrf.mxu0  ;;  %2115 = vmatprep.subr.bf16.mxu1 %v1583_v15  ;;  %2156 = vmatprep.subr.bf16.mxu0 %v1711_v4  ;;  %v1319_v15 = vld [vmem:[#allocation8 + $0x658] sm:$0xff]  ;;  %v1129_v4 = vld [vmem:[#allocation8 + $0x68] sm:$0xff] }
 0x2f1   :  { %v1775_v24 = vunpack.c.l.s8.bf16 %v1319_v15  ;;  %v1393_v26 = vunpack.c.l.s8.bf16 %v1129_v4 }
 0x2f2   :  { %v1922_v27 = vpop.f32.mrf.mxu0 }
 0x2f3   :  { %2116 = vmatpush2.bf16.msra.mxu1 %v1582_v18  ;;  %2157 = vmatpush2.bf16.msra.mxu0 %v1710_v19  ;;  %v1318_v18 = vld [vmem:[#allocation8 + $0x650] sm:$0xff]  ;;  %v1401_v19 = vunpack.c.h.s8.bf16 %v1129_v4  ;;  %v1311_v27 = vld [vmem:[#allocation8 + $0x618] sm:$0xff]  ;;  %v1473_v4 = vunpack.c.l.s8.bf16 %v1169_v62 }
 0x2f4   :  { %v1923_v30 = vpop.f32.mrf.mxu0  ;;  %2117 = vmatprep.subr.bf16.mxu1 %v1575_v22  ;;  %2158 = vmatprep.subr.bf16.mxu0 %v1703_v23  ;;  %v1782_v22 = vunpack.c.h.s8.bf16 %v1318_v18 }
 0x2f7   :  { %2118 = vmatpush2.bf16.msra.mxu1 %v1574_v28  ;;  %2159 = vmatpush2.bf16.msra.mxu0 %v1702_v29  ;;  %v1121_v28 = vld [vmem:[#allocation8 + $0x28] sm:$0xff]  ;;  %v1774_v29 = vunpack.c.l.s8.bf16 %v1318_v18 }
 0x2f8   :  { %2119 = vmatprep.subr.bf16.mxu1 %v1567_v41  ;;  %2160 = vmatprep.subr.bf16.mxu0 %v1695_v31  ;;  %v1767_v41 = vunpack.c.h.s8.bf16 %v1311_v27  ;;  %v1310_v31 = vld [vmem:[#allocation8 + $0x610] sm:$0xff]  ;;  %v1385_v33 = vunpack.c.h.s8.bf16 %v1121_v28 }
 0x2fb   :  { %2120 = vmatpush2.bf16.msra.mxu1 %v1566_v38  ;;  %2161 = vmatpush2.bf16.msra.mxu0 %v1694_v39  ;;  %v1766_v38 = vunpack.c.h.s8.bf16 %v1310_v31  ;;  %v1384_v39 = vunpack.c.h.s8.bf16 %v1120_v34 }
 0x2fc   :  { %2171 = vmatprep.subr.bf16.mxu1 %v1815_v42  ;;  %2212 = vmatprep.subr.bf16.mxu0 %v1433_v12  ;;  %v1759_v42 = vunpack.c.l.s8.bf16 %v1311_v27  ;;  %v1377_v12 = vunpack.c.l.s8.bf16 %v1121_v28 }
 0x2fe   :  { %2122 = vmatmul.mubr.bf16.vlgmr.msra.gmra.mxu1 %v4299_v14  ;;  %2163 = vmatmul.mubr.bf16.vlgmr.msra.gmra.mxu0 %v4326_v13  ;;  %v1959_v51 = vpop.f32.mrf.mxu1 }
 0x2ff   :  { %v4358_v53 = vadd.f32 %v1959_v51, %v1918_v16  ;;  %2172 = vmatpush1.bf16.msra.mxu1 %v1814_v25  ;;  %2203 = vmatprep.mubr.bf16.mxu1 %v4346_v45  ;;  %v1783_v16 = vunpack.c.h.s8.bf16 %v1319_v15  ;;  %v1758_v25 = vunpack.c.l.s8.bf16 %v1310_v31  ;;  %v1176_v51 = vld [vmem:[#allocation8 + $0x1e0] sm:$0xff] }
 0x300   :  { %2213 = vmatpush1.bf16.msra.mxu0 %v1432_v47  ;;  %2244 = vmatprep.mubr.bf16.mxu0 %v4274_v9  ;;  %v1961_v55 = vpop.f32.mrf.mxu1  ;;  %v1376_v47 = vunpack.c.l.s8.bf16 %v1120_v34  ;;  %v1488_v17 = vunpack.c.l.s8.bf16 %v1176_v51  ;;  %v1342_v34 = vld [vmem:[#allocation8 + $0x710] sm:$0xff] }
 0x301   :  { %v4362_v0 = vadd.f32 %v1961_v55, %v1920_v20  ;;  %2173 = vmatprep.subr.bf16.mxu1 %v1807_v48  ;;  %2214 = vmatprep.subr.bf16.mxu0 %v1425_v49  ;;  %v1128_v20 = vld [vmem:[#allocation8 + $0x60] sm:$0xff]  ;;  %v1879_v48 = vunpack.c.h.s8.bf16 %v1367_v44  ;;  %v1366_v49 = vld [vmem:[#allocation8 + $0x7d0] sm:$0xff]  ;;  %v1871_v55 = vunpack.c.l.s8.bf16 %v1367_v44 }
 0x302   :  { %v1963_v3 = vpop.f32.mrf.mxu1  ;;  %v1400_v23 = vunpack.c.h.s8.bf16 %v1128_v20  ;;  %v1392_v30 = vunpack.c.l.s8.bf16 %v1128_v20  ;;  %v1878_v52 = vunpack.c.h.s8.bf16 %v1366_v49  ;;  %v1350_v20 = vld [vmem:[#allocation8 + $0x750] sm:$0xff] }
 0x303   :  { %2174 = vmatpush1.bf16.msra.mxu1 %v1806_v1  ;;  %v1496_v1 = vunpack.c.h.s8.bf16 %v1176_v51  ;;  %v1208_v51 = vld [vmem:[#allocation8 + $0x2e0] sm:$0xff] }
 0x304   :  { %2215 = vmatpush1.bf16.msra.mxu0 %v1424_v58  ;;  %v1964_v6 = vpop.f32.mrf.mxu1  ;;  %2175 = vmatprep.subr.bf16.mxu1 %v1799_v60  ;;  %v1489_v58 = vunpack.c.l.s8.bf16 %v1177_v46  ;;  %v1359_v60 = vld [vmem:[#allocation8 + $0x798] sm:$0xff] }
 0x305   :  { %2216 = vmatprep.subr.bf16.mxu0 %v1417_v2  ;;  %v1870_v2 = vunpack.c.l.s8.bf16 %v1366_v49  ;;  %v1863_v3 = vunpack.c.h.s8.bf16 %v1359_v60  ;;  %v1481_v6 = vunpack.c.h.s8.bf16 %v1169_v62  ;;  %v1855_v15 = vunpack.c.l.s8.bf16 %v1359_v60  ;;  %v1201_v62 = vld [vmem:[#allocation8 + $0x2a8] sm:$0xff] }
 0x307   :  { %2176 = vmatpush1.bf16.msra.mxu1 %v1798_v5  ;;  %v1358_v5 = vld [vmem:[#allocation8 + $0x790] sm:$0xff] }
 0x308   :  { %2217 = vmatpush1.bf16.msra.mxu0 %v1416_v7  ;;  %2177 = vmatprep.subr.bf16.mxu1 %v1791_v8  ;;  %v1168_v7 = vld [vmem:[#allocation8 + $0x1a0] sm:$0xff]  ;;  %v1862_v8 = vunpack.c.h.s8.bf16 %v1358_v5 }
 0x309   :  { %2218 = vmatprep.subr.bf16.mxu0 %v1409_v11  ;;  %v1480_v11 = vunpack.c.h.s8.bf16 %v1168_v7  ;;  %v1472_v18 = vunpack.c.l.s8.bf16 %v1168_v7 }
 0x30b   :  { %2178 = vmatpush1.bf16.msra.mxu1 %v1790_v35  ;;  %v1351_v35 = vld [vmem:[#allocation8 + $0x758] sm:$0xff] }
 0x30c   :  { %2219 = vmatpush1.bf16.msra.mxu0 %v1408_v40  ;;  %2179 = vmatprep.subr.bf16.mxu1 %v1783_v16  ;;  %v1161_v40 = vld [vmem:[#allocation8 + $0x168] sm:$0xff]  ;;  %v1854_v16 = vunpack.c.l.s8.bf16 %v1358_v5  ;;  %v1839_v27 = vunpack.c.l.s8.bf16 %v1351_v35 }
 0x30d   :  { %2220 = vmatprep.subr.bf16.mxu0 %v1401_v19  ;;  %v1847_v19 = vunpack.c.h.s8.bf16 %v1351_v35  ;;  %v1457_v28 = vunpack.c.l.s8.bf16 %v1161_v40 }
 0x30f   :  { %2180 = vmatpush1.bf16.msra.mxu1 %v1782_v22  ;;  %v1465_v22 = vunpack.c.h.s8.bf16 %v1161_v40  ;;  %v1264_v40 = vld [vmem:[#allocation8 + $0x4a0] sm:$0xff] }
 0x310   :  { %2221 = vmatpush1.bf16.msra.mxu0 %v1400_v23  ;;  %2181 = vmatprep.subr.bf16.mxu1 %v1775_v24  ;;  %v1160_v23 = vld [vmem:[#allocation8 + $0x160] sm:$0xff]  ;;  %v1846_v24 = vunpack.c.h.s8.bf16 %v1350_v20 }
 0x311   :  { %2222 = vmatprep.subr.bf16.mxu0 %v1393_v26  ;;  %v1464_v26 = vunpack.c.h.s8.bf16 %v1160_v23  ;;  %v1456_v31 = vunpack.c.l.s8.bf16 %v1160_v23  ;;  %v1193_v23 = vld [vmem:[#allocation8 + $0x268] sm:$0xff] }
 0x313   :  { %2182 = vmatpush1.bf16.msra.mxu1 %v1774_v29  ;;  %v1343_v29 = vld [vmem:[#allocation8 + $0x718] sm:$0xff] }
 0x314   :  { %2223 = vmatpush1.bf16.msra.mxu0 %v1392_v30  ;;  %2183 = vmatprep.subr.bf16.mxu1 %v1767_v41  ;;  %v1153_v30 = vld [vmem:[#allocation8 + $0x128] sm:$0xff]  ;;  %v1838_v41 = vunpack.c.l.s8.bf16 %v1350_v20  ;;  %v1823_v44 = vunpack.c.l.s8.bf16 %v1343_v29  ;;  %v1537_v20 = vunpack.c.l.s8.bf16 %v1201_v62 }
 0x315   :  { %2224 = vmatprep.subr.bf16.mxu0 %v1385_v33  ;;  %v1831_v33 = vunpack.c.h.s8.bf16 %v1343_v29  ;;  %v1441_v46 = vunpack.c.l.s8.bf16 %v1153_v30 }
 0x317   :  { %2184 = vmatpush1.bf16.msra.mxu1 %v1766_v38  ;;  %v1449_v38 = vunpack.c.h.s8.bf16 %v1153_v30  ;;  %v1256_v30 = vld [vmem:[#allocation8 + $0x460] sm:$0xff] }
 0x318   :  { %2225 = vmatpush1.bf16.msra.mxu0 %v1384_v39  ;;  %2185 = vmatprep.subr.bf16.mxu1 %v1759_v42  ;;  %v1152_v39 = vld [vmem:[#allocation8 + $0x120] sm:$0xff]  ;;  %v1830_v42 = vunpack.c.h.s8.bf16 %v1342_v34 }
 0x319   :  { %2226 = vmatprep.subr.bf16.mxu0 %v1377_v12  ;;  %v1448_v12 = vunpack.c.h.s8.bf16 %v1152_v39  ;;  %v1440_v49 = vunpack.c.l.s8.bf16 %v1152_v39  ;;  %v1249_v39 = vld [vmem:[#allocation8 + $0x428] sm:$0xff] }
 0x31b   :  { %2186 = vmatpush1.bf16.msra.mxu1 %v1758_v25  ;;  %v1209_v25 = vld [vmem:[#allocation8 + $0x2e8] sm:$0xff] }
 0x31c   :  { %2227 = vmatpush1.bf16.msra.mxu0 %v1376_v47  ;;  %2187 = vmatprep.subr.bf16.mxu1 %v1879_v48  ;;  %v1273_v47 = vld [vmem:[#allocation8 + $0x4e8] sm:$0xff]  ;;  %v1822_v48 = vunpack.c.l.s8.bf16 %v1342_v34  ;;  %v1553_v60 = vunpack.c.l.s8.bf16 %v1209_v25 }
 0x31d   :  { %2228 = vmatprep.subr.bf16.mxu0 %v1497_v50  ;;  %v1561_v50 = vunpack.c.h.s8.bf16 %v1209_v25  ;;  %v1641_v25 = vunpack.c.h.s8.bf16 %v1249_v39 }
 0x31f   :  { %2188 = vmatpush2.bf16.msra.mxu1 %v1878_v52  ;;  %v1689_v52 = vunpack.c.h.s8.bf16 %v1273_v47 }
 0x320   :  { %2229 = vmatpush2.bf16.msra.mxu0 %v1496_v1  ;;  %2189 = vmatprep.subr.bf16.mxu1 %v1871_v55  ;;  %v1272_v1 = vld [vmem:[#allocation8 + $0x4e0] sm:$0xff]  ;;  %v1560_v55 = vunpack.c.h.s8.bf16 %v1208_v51 }
 0x321   :  { %2230 = vmatprep.subr.bf16.mxu0 %v1489_v58  ;;  %v1688_v58 = vunpack.c.h.s8.bf16 %v1272_v1 }
 0x323   :  { %2190 = vmatpush2.bf16.msra.mxu1 %v1870_v2 }
 0x324   :  { %2231 = vmatpush2.bf16.msra.mxu0 %v1488_v17  ;;  %2191 = vmatprep.subr.bf16.mxu1 %v1863_v3  ;;  %v1681_v17 = vunpack.c.l.s8.bf16 %v1273_v47  ;;  %v1265_v3 = vld [vmem:[#allocation8 + $0x4a8] sm:$0xff]  ;;  %v1248_v47 = vld [vmem:[#allocation8 + $0x420] sm:$0xff] }
 0x325   :  { %2232 = vmatprep.subr.bf16.mxu0 %v1481_v6  ;;  %v1552_v6 = vunpack.c.l.s8.bf16 %v1208_v51  ;;  %v1673_v35 = vunpack.c.h.s8.bf16 %v1265_v3  ;;  %v1633_v51 = vunpack.c.l.s8.bf16 %v1249_v39 }
 0x327   :  { %2192 = vmatpush2.bf16.msra.mxu1 %v1862_v8  ;;  %v1680_v8 = vunpack.c.l.s8.bf16 %v1272_v1  ;;  %v1305_v1 = vld [vmem:[#allocation8 + $0x5e8] sm:$0xff] }
 0x328   :  { %2233 = vmatpush2.bf16.msra.mxu0 %v1480_v11  ;;  %2193 = vmatprep.subr.bf16.mxu1 %v1855_v15  ;;  %v1545_v11 = vunpack.c.h.s8.bf16 %v1201_v62  ;;  %v1200_v15 = vld [vmem:[#allocation8 + $0x2a0] sm:$0xff] }
 0x329   :  { %2234 = vmatprep.subr.bf16.mxu0 %v1473_v4  ;;  %v1240_v62 = vld [vmem:[#allocation8 + $0x3e0] sm:$0xff] }
 0x32b   :  { %2194 = vmatpush2.bf16.msra.mxu1 %v1854_v16  ;;  %v1544_v16 = vunpack.c.h.s8.bf16 %v1200_v15 }
 0x32c   :  { %2235 = vmatpush2.bf16.msra.mxu0 %v1472_v18  ;;  %2195 = vmatprep.subr.bf16.mxu1 %v1847_v19  ;;  %v1672_v19 = vunpack.c.h.s8.bf16 %v1264_v40 }
 0x32d   :  { %2236 = vmatprep.subr.bf16.mxu0 %v1465_v22  ;;  %v1665_v22 = vunpack.c.l.s8.bf16 %v1265_v3  ;;  %v1624_v3 = vunpack.c.h.s8.bf16 %v1240_v62 }
 0x32f   :  { %2196 = vmatpush2.bf16.msra.mxu1 %v1846_v24  ;;  %v1257_v24 = vld [vmem:[#allocation8 + $0x468] sm:$0xff] }
 0x330   :  { %2237 = vmatpush2.bf16.msra.mxu0 %v1464_v26  ;;  %2197 = vmatprep.subr.bf16.mxu1 %v1839_v27  ;;  %v1536_v26 = vunpack.c.l.s8.bf16 %v1200_v15  ;;  %v1529_v27 = vunpack.c.h.s8.bf16 %v1193_v23  ;;  %v1657_v29 = vunpack.c.h.s8.bf16 %v1257_v24  ;;  %v1649_v34 = vunpack.c.l.s8.bf16 %v1257_v24  ;;  %v1297_v15 = vld [vmem:[#allocation8 + $0x5a8] sm:$0xff] }
 0x331   :  { %2238 = vmatprep.subr.bf16.mxu0 %v1457_v28  ;;  %v1192_v28 = vld [vmem:[#allocation8 + $0x260] sm:$0xff]  ;;  %v1729_v24 = vunpack.c.l.s8.bf16 %v1297_v15 }
 0x333   :  { %2198 = vmatpush2.bf16.msra.mxu1 %v1838_v41  ;;  %v1528_v41 = vunpack.c.h.s8.bf16 %v1192_v28 }
 0x334   :  { %2239 = vmatpush2.bf16.msra.mxu0 %v1456_v31  ;;  %2199 = vmatprep.subr.bf16.mxu1 %v1831_v33  ;;  %v1656_v31 = vunpack.c.h.s8.bf16 %v1256_v30  ;;  %v1521_v33 = vunpack.c.l.s8.bf16 %v1193_v23 }
 0x335   :  { %2240 = vmatprep.subr.bf16.mxu0 %v1449_v38  ;;  %v1185_v38 = vld [vmem:[#allocation8 + $0x228] sm:$0xff] }
 0x337   :  { %2200 = vmatpush2.bf16.msra.mxu1 %v1830_v42  ;;  %v1520_v42 = vunpack.c.l.s8.bf16 %v1192_v28 }
 0x338   :  { %2241 = vmatpush2.bf16.msra.mxu0 %v1448_v12  ;;  %2201 = vmatprep.subr.bf16.mxu1 %v1823_v44  ;;  %v1648_v12 = vunpack.c.l.s8.bf16 %v1256_v30  ;;  %v1513_v44 = vunpack.c.h.s8.bf16 %v1185_v38  ;;  %v1224_v30 = vld [vmem:[#allocation8 + $0x360] sm:$0xff] }
 0x339   :  { %2242 = vmatprep.subr.bf16.mxu0 %v1441_v46  ;;  %v1184_v46 = vld [vmem:[#allocation8 + $0x220] sm:$0xff] }
 0x33b   :  { %2202 = vmatpush2.bf16.msra.mxu1 %v1822_v48  ;;  %v1512_v48 = vunpack.c.h.s8.bf16 %v1184_v46 }
 0x33c   :  { %2243 = vmatpush2.bf16.msra.mxu0 %v1440_v49  ;;  %2253 = vmatprep.subr.bf16.mxu1 %v1561_v50  ;;  %v1640_v49 = vunpack.c.h.s8.bf16 %v1248_v47  ;;  %v1505_v50 = vunpack.c.l.s8.bf16 %v1185_v38 }
 0x33d   :  { %2294 = vmatprep.subr.bf16.mxu0 %v1689_v52  ;;  %v1241_v52 = vld [vmem:[#allocation8 + $0x3e8] sm:$0xff] }
 0x33e   :  { %2204 = vmatmul.mubr.bf16.vlgmr.msra.gmra.mxu1 %v4348_v43  ;;  %v2000_v2 = vpop.f32.mrf.mxu0 }
 0x33f   :  { %2245 = vmatmul.mubr.bf16.vlgmr.msra.gmra.mxu0 %v4286_v36  ;;  %v4367_v5 = vadd.f32 %v2000_v2, %v4358_v53  ;;  %2254 = vmatpush1.bf16.msra.mxu1 %v1560_v55  ;;  %v1504_v55 = vunpack.c.l.s8.bf16 %v1184_v46  ;;  %v1753_v2 = vunpack.c.h.s8.bf16 %v1305_v1 }
 0x340   :  { %2285 = vmatprep.mubr.bf16.mxu1 %v4297_v10  ;;  %2295 = vmatpush1.bf16.msra.mxu0 %v1688_v58  ;;  %v2002_v7 = vpop.f32.mrf.mxu0  ;;  %v1632_v58 = vunpack.c.l.s8.bf16 %v1248_v47  ;;  %v1216_v47 = vld [vmem:[#allocation8 + $0x320] sm:$0xff] }
 0x341   :  { %2326 = vmatprep.mubr.bf16.mxu0 %v4324_v21  ;;  %v4372_v4 = vadd.f32 %v2002_v7, %v4362_v0  ;;  %2255 = vmatprep.subr.bf16.mxu1 %v1553_v60  ;;  %v1664_v0 = vunpack.c.l.s8.bf16 %v1264_v40  ;;  %v1625_v60 = vunpack.c.h.s8.bf16 %v1241_v52  ;;  %v1617_v7 = vunpack.c.l.s8.bf16 %v1241_v52 }
 0x342   :  { %2296 = vmatprep.subr.bf16.mxu0 %v1681_v17  ;;  %v2004_v53 = vpop.f32.mrf.mxu0  ;;  %v1304_v17 = vld [vmem:[#allocation8 + $0x5e0] sm:$0xff] }
 0x343   :  { %2256 = vmatpush1.bf16.msra.mxu1 %v1552_v6  ;;  %v1752_v6 = vunpack.c.h.s8.bf16 %v1304_v17  ;;  %v1744_v40 = vunpack.c.l.s8.bf16 %v1304_v17  ;;  %v1336_v17 = vld [vmem:[#allocation8 + $0x6e0] sm:$0xff] }
 0x344   :  { %2297 = vmatpush1.bf16.msra.mxu0 %v1680_v8  ;;  %v2005_v18 = vpop.f32.mrf.mxu0  ;;  %2257 = vmatprep.subr.bf16.mxu1 %v1545_v11  ;;  %v1745_v8 = vunpack.c.l.s8.bf16 %v1305_v1  ;;  %v1233_v11 = vld [vmem:[#allocation8 + $0x3a8] sm:$0xff] }
 0x345   :  { %2298 = vmatprep.subr.bf16.mxu0 %v1673_v35  ;;  %v1616_v35 = vunpack.c.l.s8.bf16 %v1240_v62  ;;  %v1609_v53 = vunpack.c.h.s8.bf16 %v1233_v11  ;;  %v1737_v18 = vunpack.c.h.s8.bf16 %v1297_v15  ;;  %v1601_v23 = vunpack.c.l.s8.bf16 %v1233_v11  ;;  %v1329_v15 = vld [vmem:[#allocation8 + $0x6a8] sm:$0xff] }
 0x347   :  { %2258 = vmatpush1.bf16.msra.mxu1 %v1544_v16  ;;  %v1232_v16 = vld [vmem:[#allocation8 + $0x3a0] sm:$0xff] }
 0x348   :  { %2299 = vmatpush1.bf16.msra.mxu0 %v1672_v19  ;;  %2259 = vmatprep.subr.bf16.mxu1 %v1537_v20  ;;  %v1296_v19 = vld [vmem:[#allocation8 + $0x5a0] sm:$0xff]  ;;  %v1608_v20 = vunpack.c.h.s8.bf16 %v1232_v16 }
 0x349   :  { %2300 = vmatprep.subr.bf16.mxu0 %v1665_v22  ;;  %v1736_v22 = vunpack.c.h.s8.bf16 %v1296_v19  ;;  %v1728_v28 = vunpack.c.l.s8.bf16 %v1296_v19  ;;  %v1808_v19 = vunpack.c.l.s8.bf16 %v1336_v17 }
 0x34b   :  { %2260 = vmatpush1.bf16.msra.mxu1 %v1536_v26  ;;  %v1225_v26 = vld [vmem:[#allocation8 + $0x368] sm:$0xff] }
 0x34c   :  { %2301 = vmatpush1.bf16.msra.mxu0 %v1664_v0  ;;  %2261 = vmatprep.subr.bf16.mxu1 %v1529_v27  ;;  %v1289_v0 = vld [vmem:[#allocation8 + $0x568] sm:$0xff]  ;;  %v1600_v27 = vunpack.c.l.s8.bf16 %v1232_v16  ;;  %v1585_v38 = vunpack.c.l.s8.bf16 %v1225_v26  ;;  %v1139_v16 = vld [vmem:[#allocation8 + $0xb8] sm:$0xff] }
 0x34d   :  { %2302 = vmatprep.subr.bf16.mxu0 %v1657_v29  ;;  %v1593_v29 = vunpack.c.h.s8.bf16 %v1225_v26  ;;  %v1713_v39 = vunpack.c.l.s8.bf16 %v1289_v0  ;;  %v1328_v26 = vld [vmem:[#allocation8 + $0x6a0] sm:$0xff] }
 0x34f   :  { %2262 = vmatpush1.bf16.msra.mxu1 %v1528_v41  ;;  %v1721_v41 = vunpack.c.h.s8.bf16 %v1289_v0 }
 0x350   :  { %2303 = vmatpush1.bf16.msra.mxu0 %v1656_v31  ;;  %2263 = vmatprep.subr.bf16.mxu1 %v1521_v33  ;;  %v1288_v31 = vld [vmem:[#allocation8 + $0x560] sm:$0xff]  ;;  %v1592_v33 = vunpack.c.h.s8.bf16 %v1224_v30 }
 0x351   :  { %2304 = vmatprep.subr.bf16.mxu0 %v1649_v34  ;;  %v1720_v34 = vunpack.c.h.s8.bf16 %v1288_v31  ;;  %v1712_v46 = vunpack.c.l.s8.bf16 %v1288_v31 }
 0x353   :  { %2264 = vmatpush1.bf16.msra.mxu1 %v1520_v42  ;;  %v1217_v42 = vld [vmem:[#allocation8 + $0x328] sm:$0xff] }
 0x354   :  { %2305 = vmatpush1.bf16.msra.mxu0 %v1648_v12  ;;  %2265 = vmatprep.subr.bf16.mxu1 %v1513_v44  ;;  %v1281_v12 = vld [vmem:[#allocation8 + $0x528] sm:$0xff]  ;;  %v1584_v44 = vunpack.c.l.s8.bf16 %v1224_v30  ;;  %v1569_v52 = vunpack.c.l.s8.bf16 %v1217_v42  ;;  %v1800_v30 = vunpack.c.h.s8.bf16 %v1328_v26 }
 0x355   :  { %2306 = vmatprep.subr.bf16.mxu0 %v1641_v25  ;;  %v1577_v25 = vunpack.c.h.s8.bf16 %v1217_v42  ;;  %v1697_v1 = vunpack.c.l.s8.bf16 %v1281_v12 }
 0x357   :  { %2266 = vmatpush1.bf16.msra.mxu1 %v1512_v48  ;;  %v1705_v48 = vunpack.c.h.s8.bf16 %v1281_v12 }
 0x358   :  { %2307 = vmatpush1.bf16.msra.mxu0 %v1640_v49  ;;  %2267 = vmatprep.subr.bf16.mxu1 %v1505_v50  ;;  %v1280_v49 = vld [vmem:[#allocation8 + $0x520] sm:$0xff]  ;;  %v1576_v50 = vunpack.c.h.s8.bf16 %v1216_v47 }
 0x359   :  { %2308 = vmatprep.subr.bf16.mxu0 %v1633_v51  ;;  %v1704_v51 = vunpack.c.h.s8.bf16 %v1280_v49  ;;  %v1696_v62 = vunpack.c.l.s8.bf16 %v1280_v49 }
 0x35b   :  { %2268 = vmatpush1.bf16.msra.mxu1 %v1504_v55  ;;  %v1337_v55 = vld [vmem:[#allocation8 + $0x6e8] sm:$0xff] }
 0x35c   :  { %2309 = vmatpush1.bf16.msra.mxu0 %v1632_v58  ;;  %2269 = vmatprep.subr.bf16.mxu1 %v1625_v60  ;;  %v1147_v58 = vld [vmem:[#allocation8 + $0xf8] sm:$0xff]  ;;  %v1568_v60 = vunpack.c.l.s8.bf16 %v1216_v47  ;;  %v1809_v11 = vunpack.c.l.s8.bf16 %v1337_v55 }
 0x35d   :  { %2310 = vmatprep.subr.bf16.mxu0 %v1753_v2  ;;  %v1817_v2 = vunpack.c.h.s8.bf16 %v1337_v55 }
 0x35f   :  { %2270 = vmatpush2.bf16.msra.mxu1 %v1624_v3  ;;  %v1435_v3 = vunpack.c.h.s8.bf16 %v1147_v58 }
 0x360   :  { %2311 = vmatpush2.bf16.msra.mxu0 %v1752_v6  ;;  %2271 = vmatprep.subr.bf16.mxu1 %v1617_v7  ;;  %v1146_v6 = vld [vmem:[#allocation8 + $0xf0] sm:$0xff]  ;;  %v1816_v7 = vunpack.c.h.s8.bf16 %v1336_v17 }
 0x361   :  { %2312 = vmatprep.subr.bf16.mxu0 %v1745_v8  ;;  %v1434_v8 = vunpack.c.h.s8.bf16 %v1146_v6 }
 0x363   :  { %2272 = vmatpush2.bf16.msra.mxu1 %v1616_v35 }
 0x364   :  { %2313 = vmatpush2.bf16.msra.mxu0 %v1744_v40  ;;  %2273 = vmatprep.subr.bf16.mxu1 %v1609_v53  ;;  %v1427_v53 = vunpack.c.l.s8.bf16 %v1147_v58 }
 0x365   :  { %2314 = vmatprep.subr.bf16.mxu0 %v1737_v18 }
 0x367   :  { %2274 = vmatpush2.bf16.msra.mxu1 %v1608_v20 }
 0x368   :  { %2315 = vmatpush2.bf16.msra.mxu0 %v1736_v22  ;;  %2275 = vmatprep.subr.bf16.mxu1 %v1601_v23  ;;  %v1426_v23 = vunpack.c.l.s8.bf16 %v1146_v6 }
 0x369   :  { %2316 = vmatprep.subr.bf16.mxu0 %v1729_v24  ;;  %v1801_v24 = vunpack.c.h.s8.bf16 %v1329_v15 }
 0x36b   :  { %2276 = vmatpush2.bf16.msra.mxu1 %v1600_v27  ;;  %v1419_v27 = vunpack.c.h.s8.bf16 %v1139_v16 }
 0x36c   :  { %2317 = vmatpush2.bf16.msra.mxu0 %v1728_v28  ;;  %2277 = vmatprep.subr.bf16.mxu1 %v1593_v29 }
 0x36d   :  { %2318 = vmatprep.subr.bf16.mxu0 %v1721_v41 }
 0x36f   :  { %2278 = vmatpush2.bf16.msra.mxu1 %v1592_v33 }
 0x370   :  { %2319 = vmatpush2.bf16.msra.mxu0 %v1720_v34  ;;  %2279 = vmatprep.subr.bf16.mxu1 %v1585_v38  ;;  %v1793_v34 = vunpack.c.l.s8.bf16 %v1329_v15  ;;  %v1411_v38 = vunpack.c.l.s8.bf16 %v1139_v16  ;;  %v1368_v16 = vld [vmem:[#allocation8 + $0x7e0] sm:$0xff] }
 0x371   :  { %2320 = vmatprep.subr.bf16.mxu0 %v1713_v39  ;;  %v1131_v39 = vld [vmem:[#allocation8 + $0x78] sm:$0xff] }
 0x373   :  { %2280 = vmatpush2.bf16.msra.mxu1 %v1584_v44  ;;  %v1320_v44 = vld [vmem:[#allocation8 + $0x660] sm:$0xff] }
 0x374   :  { %2321 = vmatpush2.bf16.msra.mxu0 %v1712_v46  ;;  %2281 = vmatprep.subr.bf16.mxu1 %v1577_v25  ;;  %v1403_v46 = vunpack.c.h.s8.bf16 %v1131_v39  ;;  %v1130_v25 = vld [vmem:[#allocation8 + $0x70] sm:$0xff]  ;;  %v1784_v47 = vunpack.c.h.s8.bf16 %v1320_v44 }
 0x375   :  { %2322 = vmatprep.subr.bf16.mxu0 %v1705_v48  ;;  %v1402_v48 = vunpack.c.h.s8.bf16 %v1130_v25  ;;  %v1394_v55 = vunpack.c.l.s8.bf16 %v1130_v25 }
 0x377   :  { %2282 = vmatpush2.bf16.msra.mxu1 %v1576_v50  ;;  %v1395_v50 = vunpack.c.l.s8.bf16 %v1131_v39 }
 0x378   :  { %2323 = vmatpush2.bf16.msra.mxu0 %v1704_v51  ;;  %2283 = vmatprep.subr.bf16.mxu1 %v1569_v52  ;;  %v1313_v51 = vld [vmem:[#allocation8 + $0x628] sm:$0xff]  ;;  %v1123_v52 = vld [vmem:[#allocation8 + $0x38] sm:$0xff] }
 0x379   :  { %2324 = vmatprep.subr.bf16.mxu0 %v1697_v1  ;;  %v1776_v1 = vunpack.c.l.s8.bf16 %v1320_v44  ;;  %v1769_v58 = vunpack.c.h.s8.bf16 %v1313_v51  ;;  %v1761_v6 = vunpack.c.l.s8.bf16 %v1313_v51 }
 0x37b   :  { %2284 = vmatpush2.bf16.msra.mxu1 %v1568_v60  ;;  %v1312_v60 = vld [vmem:[#allocation8 + $0x620] sm:$0xff] }
 0x37c   :  { %2325 = vmatpush2.bf16.msra.mxu0 %v1696_v62  ;;  %2335 = vmatprep.subr.bf16.mxu1 %v1817_v2  ;;  %v1387_v62 = vunpack.c.h.s8.bf16 %v1123_v52  ;;  %v1122_v2 = vld [vmem:[#allocation8 + $0x30] sm:$0xff]  ;;  %v1768_v17 = vunpack.c.h.s8.bf16 %v1312_v60  ;;  %v1760_v15 = vunpack.c.l.s8.bf16 %v1312_v60 }
 0x37d   :  { %2376 = vmatprep.subr.bf16.mxu0 %v1435_v3  ;;  %v1386_v3 = vunpack.c.h.s8.bf16 %v1122_v2 }
 0x37e   :  { %v4374_v35 = vpop.f32.mrf.mxu0  ;;  %2286 = vmatmul.mubr.bf16.vlgmr.msra.gmra.mxu1 %v4299_v14  ;;  %v2041_v40 = vpop.f32.mrf.mxu1 }
 0x37f   :  { %2327 = vmatmul.mubr.bf16.vlgmr.msra.gmra.mxu0 %v4326_v13  ;;  %v4379_v18 = vadd.f32 %v2041_v40, %v4367_v5  ;;  %2336 = vmatpush1.bf16.msra.mxu1 %v1816_v7  ;;  %v1138_v5 = vld [vmem:[#allocation8 + $0xb0] sm:$0xff]  ;;  %v1379_v7 = vunpack.c.l.s8.bf16 %v1123_v52  ;;  %v1378_v40 = vunpack.c.l.s8.bf16 %v1122_v2 }
 0x380   :  { %2367 = vmatprep.mubr.bf16.mxu1 %v4346_v45  ;;  %2377 = vmatpush1.bf16.msra.mxu0 %v1434_v8  ;;  %v4382_v20 = vpop.f32.mrf.mxu0  ;;  %v2043_v22 = vpop.f32.mrf.mxu1  ;;  %v1418_v33 = vunpack.c.h.s8.bf16 %v1138_v5  ;;  %v1410_v42 = vunpack.c.l.s8.bf16 %v1138_v5  ;;  %v1369_v8 = vld [vmem:[#allocation8 + $0x7e8] sm:$0xff] }
 0x381   :  { %2408 = vmatprep.mubr.bf16.mxu0 %v4274_v9  ;;  %v4386_v0 = vadd.f32 %v2043_v22, %v4372_v4  ;;  %2337 = vmatprep.subr.bf16.mxu1 %v1809_v11  ;;  %v1321_v9 = vld [vmem:[#allocation8 + $0x668] sm:$0xff]  ;;  %v1792_v4 = vunpack.c.l.s8.bf16 %v1328_v26  ;;  %v1179_v11 = vld [vmem:[#allocation8 + $0x1f8] sm:$0xff]  ;;  %v1178_v22 = vld [vmem:[#allocation8 + $0x1f0] sm:$0xff]  ;;  %v1873_v26 = vunpack.c.l.s8.bf16 %v1369_v8 }
 0x382   :  { %v2086_v28 = vpop.f32.mrf.mxu0  ;;  %2378 = vmatprep.subr.bf16.mxu0 %v1427_v53  ;;  %v2045_v29 = vpop.f32.mrf.mxu1  ;;  %v1785_v12 = vunpack.c.h.s8.bf16 %v1321_v9  ;;  %v1777_v49 = vunpack.c.l.s8.bf16 %v1321_v9  ;;  %v1881_v53 = vunpack.c.h.s8.bf16 %v1369_v8  ;;  %v1361_v5 = vld [vmem:[#allocation8 + $0x7a8] sm:$0xff] }
 0x383   :  { %2338 = vmatpush1.bf16.msra.mxu1 %v1808_v19  ;;  %v1499_v19 = vunpack.c.h.s8.bf16 %v1179_v11  ;;  %v1171_v28 = vld [vmem:[#allocation8 + $0x1b8] sm:$0xff]  ;;  %v1872_v29 = vunpack.c.l.s8.bf16 %v1368_v16  ;;  %v1857_v39 = vunpack.c.l.s8.bf16 %v1361_v5 }
 0x384   :  { %2379 = vmatpush1.bf16.msra.mxu0 %v1426_v23  ;;  %v2087_v41 = vpop.f32.mrf.mxu0  ;;  %v2046_v31 = vpop.f32.mrf.mxu1  ;;  %2339 = vmatprep.subr.bf16.mxu1 %v1801_v24  ;;  %v1880_v23 = vunpack.c.h.s8.bf16 %v1368_v16  ;;  %v1498_v24 = vunpack.c.h.s8.bf16 %v1178_v22 }
 0x385   :  { %2380 = vmatprep.subr.bf16.mxu0 %v1419_v27  ;;  %v1491_v27 = vunpack.c.l.s8.bf16 %v1179_v11  ;;  %v1865_v41 = vunpack.c.h.s8.bf16 %v1361_v5  ;;  %v1360_v31 = vld [vmem:[#allocation8 + $0x7a0] sm:$0xff] }
 0x386   :  { %v1856_v44 = vunpack.c.l.s8.bf16 %v1360_v31 }
 0x387   :  { %2340 = vmatpush1.bf16.msra.mxu1 %v1800_v30  ;;  %v1490_v30 = vunpack.c.l.s8.bf16 %v1178_v22 }
 0x388   :  { %2381 = vmatpush1.bf16.msra.mxu0 %v1418_v33  ;;  %2341 = vmatprep.subr.bf16.mxu1 %v1793_v34  ;;  %v1483_v33 = vunpack.c.h.s8.bf16 %v1171_v28  ;;  %v1170_v34 = vld [vmem:[#allocation8 + $0x1b0] sm:$0xff] }
 0x389   :  { %2382 = vmatprep.subr.bf16.mxu0 %v1411_v38  ;;  %v1864_v38 = vunpack.c.h.s8.bf16 %v1360_v31  ;;  %v1482_v9 = vunpack.c.h.s8.bf16 %v1170_v34 }
 0x38b   :  { %2342 = vmatpush1.bf16.msra.mxu1 %v1792_v4  ;;  %v1475_v4 = vunpack.c.l.s8.bf16 %v1171_v28 }
 0x38c   :  { %2383 = vmatpush1.bf16.msra.mxu0 %v1410_v42  ;;  %2343 = vmatprep.subr.bf16.mxu1 %v1785_v12  ;;  %v1353_v42 = vld [vmem:[#allocation8 + $0x768] sm:$0xff]  ;;  %v1163_v12 = vld [vmem:[#allocation8 + $0x178] sm:$0xff] }
 0x38d   :  { %2384 = vmatprep.subr.bf16.mxu0 %v1403_v46  ;;  %v1474_v46 = vunpack.c.l.s8.bf16 %v1170_v34  ;;  %v1849_v25 = vunpack.c.h.s8.bf16 %v1353_v42  ;;  %v1841_v52 = vunpack.c.l.s8.bf16 %v1353_v42 }
 0x38f   :  { %2344 = vmatpush1.bf16.msra.mxu1 %v1784_v47  ;;  %v1352_v47 = vld [vmem:[#allocation8 + $0x760] sm:$0xff] }
 0x390   :  { %2385 = vmatpush1.bf16.msra.mxu0 %v1402_v48  ;;  %2345 = vmatprep.subr.bf16.mxu1 %v1777_v49  ;;  %v1467_v48 = vunpack.c.h.s8.bf16 %v1163_v12  ;;  %v1162_v49 = vld [vmem:[#allocation8 + $0x170] sm:$0xff]  ;;  %v1840_v60 = vunpack.c.l.s8.bf16 %v1352_v47 }
 0x391   :  { %2386 = vmatprep.subr.bf16.mxu0 %v1395_v50  ;;  %v1848_v50 = vunpack.c.h.s8.bf16 %v1352_v47  ;;  %v1466_v51 = vunpack.c.h.s8.bf16 %v1162_v49 }
 0x393   :  { %2346 = vmatpush1.bf16.msra.mxu1 %v1776_v1  ;;  %v1459_v1 = vunpack.c.l.s8.bf16 %v1163_v12  ;;  %v1202_v12 = vld [vmem:[#allocation8 + $0x2b0] sm:$0xff] }
 0x394   :  { %2387 = vmatpush1.bf16.msra.mxu0 %v1394_v55  ;;  %2347 = vmatprep.subr.bf16.mxu1 %v1769_v58  ;;  %v1345_v55 = vld [vmem:[#allocation8 + $0x728] sm:$0xff]  ;;  %v1155_v58 = vld [vmem:[#allocation8 + $0x138] sm:$0xff] }
 0x395   :  { %2388 = vmatprep.subr.bf16.mxu0 %v1387_v62  ;;  %v1458_v62 = vunpack.c.l.s8.bf16 %v1162_v49  ;;  %v1833_v2 = vunpack.c.h.s8.bf16 %v1345_v55  ;;  %v1825_v11 = vunpack.c.l.s8.bf16 %v1345_v55  ;;  %v1538_v55 = vunpack.c.l.s8.bf16 %v1202_v12 }
 0x397   :  { %2348 = vmatpush1.bf16.msra.mxu1 %v1768_v17  ;;  %v1344_v17 = vld [vmem:[#allocation8 + $0x720] sm:$0xff] }
 0x398   :  { %2389 = vmatpush1.bf16.msra.mxu0 %v1386_v3  ;;  %2349 = vmatprep.subr.bf16.mxu1 %v1761_v6  ;;  %v1451_v3 = vunpack.c.h.s8.bf16 %v1155_v58  ;;  %v1154_v6 = vld [vmem:[#allocation8 + $0x130] sm:$0xff]  ;;  %v1824_v16 = vunpack.c.l.s8.bf16 %v1344_v17 }
 0x399   :  { %2390 = vmatprep.subr.bf16.mxu0 %v1379_v7  ;;  %v1832_v7 = vunpack.c.h.s8.bf16 %v1344_v17  ;;  %v1450_v8 = vunpack.c.h.s8.bf16 %v1154_v6  ;;  %v1258_v17 = vld [vmem:[#allocation8 + $0x470] sm:$0xff] }
 0x39b   :  { %2350 = vmatpush1.bf16.msra.mxu1 %v1760_v15  ;;  %v1443_v15 = vunpack.c.l.s8.bf16 %v1155_v58 }
 0x39c   :  { %2391 = vmatpush1.bf16.msra.mxu0 %v1378_v40  ;;  %2351 = vmatprep.subr.bf16.mxu1 %v1881_v53  ;;  %v1211_v40 = vld [vmem:[#allocation8 + $0x2f8] sm:$0xff] }
 0x39d   :  { %2392 = vmatprep.subr.bf16.mxu0 %v1499_v19  ;;  %v1275_v53 = vld [vmem:[#allocation8 + $0x4f8] sm:$0xff]  ;;  %v1442_v19 = vunpack.c.l.s8.bf16 %v1154_v6  ;;  %v1563_v22 = vunpack.c.h.s8.bf16 %v1211_v40  ;;  %v1555_v28 = vunpack.c.l.s8.bf16 %v1211_v40  ;;  %v1658_v6 = vunpack.c.h.s8.bf16 %v1258_v17 }
 0x39e   :  { %v1683_v31 = vunpack.c.l.s8.bf16 %v1275_v53 }
 0x39f   :  { %2352 = vmatpush2.bf16.msra.mxu1 %v1880_v23  ;;  %v1210_v23 = vld [vmem:[#allocation8 + $0x2f0] sm:$0xff] }
 0x3a0   :  { %2393 = vmatpush2.bf16.msra.mxu0 %v1498_v24  ;;  %2353 = vmatprep.subr.bf16.mxu1 %v1873_v26  ;;  %v1691_v24 = vunpack.c.h.s8.bf16 %v1275_v53  ;;  %v1274_v26 = vld [vmem:[#allocation8 + $0x4f0] sm:$0xff]  ;;  %v1650_v53 = vunpack.c.l.s8.bf16 %v1258_v17 }
 0x3a1   :  { %2394 = vmatprep.subr.bf16.mxu0 %v1491_v27  ;;  %v1562_v27 = vunpack.c.h.s8.bf16 %v1210_v23  ;;  %v1690_v5 = vunpack.c.h.s8.bf16 %v1274_v26  ;;  %v1290_v17 = vld [vmem:[#allocation8 + $0x570] sm:$0xff] }
 0x3a3   :  { %2354 = vmatpush2.bf16.msra.mxu1 %v1872_v29  ;;  %v1203_v29 = vld [vmem:[#allocation8 + $0x2b8] sm:$0xff] }
 0x3a4   :  { %2395 = vmatpush2.bf16.msra.mxu0 %v1490_v30  ;;  %2355 = vmatprep.subr.bf16.mxu1 %v1865_v41  ;;  %v1547_v42 = vunpack.c.h.s8.bf16 %v1203_v29 }
 0x3a5   :  { %2396 = vmatprep.subr.bf16.mxu0 %v1483_v33  ;;  %v1267_v33 = vld [vmem:[#allocation8 + $0x4b8] sm:$0xff] }
 0x3a7   :  { %2356 = vmatpush2.bf16.msra.mxu1 %v1864_v38  ;;  %v1554_v38 = vunpack.c.l.s8.bf16 %v1210_v23  ;;  %v1250_v23 = vld [vmem:[#allocation8 + $0x430] sm:$0xff] }
 0x3a8   :  { %2397 = vmatpush2.bf16.msra.mxu0 %v1482_v9  ;;  %2357 = vmatprep.subr.bf16.mxu1 %v1857_v39 }
 0x3a9   :  { %2398 = vmatprep.subr.bf16.mxu0 %v1475_v4  ;;  %v1682_v4 = vunpack.c.l.s8.bf16 %v1274_v26  ;;  %v1642_v26 = vunpack.c.h.s8.bf16 %v1250_v23 }
 0x3ab   :  { %2358 = vmatpush2.bf16.msra.mxu1 %v1856_v44 }
 0x3ac   :  { %2399 = vmatpush2.bf16.msra.mxu0 %v1474_v46  ;;  %2359 = vmatprep.subr.bf16.mxu1 %v1849_v25  ;;  %v1266_v25 = vld [vmem:[#allocation8 + $0x4b0] sm:$0xff] }
 0x3ad   :  { %2400 = vmatprep.subr.bf16.mxu0 %v1467_v48  ;;  %v1666_v58 = vunpack.c.l.s8.bf16 %v1266_v25 }
 0x3af   :  { %2360 = vmatpush2.bf16.msra.mxu1 %v1848_v50 }
 0x3b0   :  { %2401 = vmatpush2.bf16.msra.mxu0 %v1466_v51  ;;  %2361 = vmatprep.subr.bf16.mxu1 %v1841_v52  ;;  %v1674_v51 = vunpack.c.h.s8.bf16 %v1266_v25  ;;  %v1539_v52 = vunpack.c.l.s8.bf16 %v1203_v29  ;;  %v1307_v29 = vld [vmem:[#allocation8 + $0x5f8] sm:$0xff] }
 0x3b1   :  { %2402 = vmatprep.subr.bf16.mxu0 %v1459_v1  ;;  %v1195_v1 = vld [vmem:[#allocation8 + $0x278] sm:$0xff] }
 0x3b3   :  { %2362 = vmatpush2.bf16.msra.mxu1 %v1840_v60  ;;  %v1531_v60 = vunpack.c.h.s8.bf16 %v1195_v1 }
 0x3b4   :  { %2403 = vmatpush2.bf16.msra.mxu0 %v1458_v62  ;;  %2363 = vmatprep.subr.bf16.mxu1 %v1833_v2  ;;  %v1194_v62 = vld [vmem:[#allocation8 + $0x270] sm:$0xff] }
 0x3b5   :  { %2404 = vmatprep.subr.bf16.mxu0 %v1451_v3  ;;  %v1530_v3 = vunpack.c.h.s8.bf16 %v1194_v62  ;;  %v1522_v40 = vunpack.c.l.s8.bf16 %v1194_v62  ;;  %v1226_v62 = vld [vmem:[#allocation8 + $0x370] sm:$0xff] }
 0x3b7   :  { %2364 = vmatpush2.bf16.msra.mxu1 %v1832_v7  ;;  %v1523_v7 = vunpack.c.l.s8.bf16 %v1195_v1  ;;  %v1227_v1 = vld [vmem:[#allocation8 + $0x378] sm:$0xff] }
 0x3b8   :  { %2405 = vmatpush2.bf16.msra.mxu0 %v1450_v8  ;;  %2365 = vmatprep.subr.bf16.mxu1 %v1825_v11  ;;  %v1187_v11 = vld [vmem:[#allocation8 + $0x238] sm:$0xff] }
 0x3b9   :  { %2406 = vmatprep.subr.bf16.mxu0 %v1443_v15  ;;  %v1251_v15 = vld [vmem:[#allocation8 + $0x438] sm:$0xff] }
 0x3bb   :  { %2366 = vmatpush2.bf16.msra.mxu1 %v1824_v16  ;;  %v1515_v16 = vunpack.c.h.s8.bf16 %v1187_v11 }
 0x3bc   :  { %2407 = vmatpush2.bf16.msra.mxu0 %v1442_v19  ;;  %2417 = vmatprep.subr.bf16.mxu1 %v1563_v22  ;;  %v1186_v19 = vld [vmem:[#allocation8 + $0x230] sm:$0xff]  ;;  %v1643_v22 = vunpack.c.h.s8.bf16 %v1251_v15 }
 0x3bd   :  { %2458 = vmatprep.subr.bf16.mxu0 %v1691_v24  ;;  %v1514_v24 = vunpack.c.h.s8.bf16 %v1186_v19 }
 0x3be   :  { %v2123_v30 = vpop.f32.mrf.mxu1  ;;  %v2164_v41 = vpop.f32.mrf.mxu0  ;;  %2368 = vmatmul.mubr.bf16.vlgmr.msra.gmra.mxu1 %v4348_v43 }
 0x3bf   :  { %v2124_v34 = vadd.f32 %v2123_v30, %v4374_v35  ;;  %2409 = vmatmul.mubr.bf16.vlgmr.msra.gmra.mxu0 %v4286_v36  ;;  %2418 = vmatpush1.bf16.msra.mxu1 %v1562_v27  ;;  %v1675_v35 = vunpack.c.h.s8.bf16 %v1267_v33  ;;  %v1507_v27 = vunpack.c.l.s8.bf16 %v1187_v11  ;;  %v1506_v30 = vunpack.c.l.s8.bf16 %v1186_v19  ;;  %v1219_v11 = vld [vmem:[#allocation8 + $0x338] sm:$0xff] }
 0x3c0   :  { %2449 = vmatprep.mubr.bf16.mxu1 %v4297_v10  ;;  %2459 = vmatpush1.bf16.msra.mxu0 %v1690_v5  ;;  %v2125_v9 = vpop.f32.mrf.mxu1  ;;  %v2166_v39 = vpop.f32.mrf.mxu0  ;;  %v1546_v10 = vunpack.c.h.s8.bf16 %v1202_v12  ;;  %v1635_v5 = vunpack.c.l.s8.bf16 %v1251_v15  ;;  %v1235_v12 = vld [vmem:[#allocation8 + $0x3b8] sm:$0xff]  ;;  %v1714_v19 = vunpack.c.l.s8.bf16 %v1290_v17 }
 0x3c1   :  { %v4392_v44 = vadd.f32 %v2164_v41, %v2124_v34  ;;  %2490 = vmatprep.mubr.bf16.mxu0 %v4324_v21  ;;  %v2126_v46 = vadd.f32 %v2125_v9, %v4382_v20  ;;  %2419 = vmatprep.subr.bf16.mxu1 %v1555_v28  ;;  %v1667_v21 = vunpack.c.l.s8.bf16 %v1267_v33  ;;  %v1259_v20 = vld [vmem:[#allocation8 + $0x478] sm:$0xff]  ;;  %v1634_v41 = vunpack.c.l.s8.bf16 %v1250_v23  ;;  %v1242_v33 = vld [vmem:[#allocation8 + $0x3f0] sm:$0xff] }
 0x3c2   :  { %v2127_v36 = vpop.f32.mrf.mxu1  ;;  %v2168_v47 = vpop.f32.mrf.mxu0  ;;  %2460 = vmatprep.subr.bf16.mxu0 %v1683_v31  ;;  %v1659_v2 = vunpack.c.h.s8.bf16 %v1259_v20  ;;  %v1651_v8 = vunpack.c.l.s8.bf16 %v1259_v20  ;;  %v1243_v28 = vld [vmem:[#allocation8 + $0x3f8] sm:$0xff]  ;;  %v1755_v34 = vunpack.c.h.s8.bf16 %v1307_v29  ;;  %v1626_v9 = vunpack.c.h.s8.bf16 %v1242_v33  ;;  %v1218_v23 = vld [vmem:[#allocation8 + $0x330] sm:$0xff] }
 0x3c3   :  { %v4396_v48 = vadd.f32 %v2166_v39, %v2126_v46  ;;  %2420 = vmatpush1.bf16.msra.mxu1 %v1554_v38  ;;  %v1627_v31 = vunpack.c.h.s8.bf16 %v1243_v28  ;;  %v1306_v38 = vld [vmem:[#allocation8 + $0x5f0] sm:$0xff]  ;;  %v1299_v46 = vld [vmem:[#allocation8 + $0x5b8] sm:$0xff]  ;;  %v1611_v36 = vunpack.c.h.s8.bf16 %v1235_v12 }
 0x3c4   :  { %2461 = vmatpush1.bf16.msra.mxu0 %v1682_v4  ;;  %v2128_v49 = vpop.f32.mrf.mxu1  ;;  %v2169_v50 = vpop.f32.mrf.mxu0  ;;  %2421 = vmatprep.subr.bf16.mxu1 %v1547_v42  ;;  %v1754_v39 = vunpack.c.h.s8.bf16 %v1306_v38  ;;  %v1619_v4 = vunpack.c.l.s8.bf16 %v1243_v28  ;;  %v1747_v42 = vunpack.c.l.s8.bf16 %v1307_v29  ;;  %v1746_v25 = vunpack.c.l.s8.bf16 %v1306_v38  ;;  %v1234_v47 = vld [vmem:[#allocation8 + $0x3b0] sm:$0xff]  ;;  %v1291_v20 = vld [vmem:[#allocation8 + $0x578] sm:$0xff] }
 0x3c5   :  { %2462 = vmatprep.subr.bf16.mxu0 %v1675_v35  ;;  %v1618_v35 = vunpack.c.l.s8.bf16 %v1242_v33  ;;  %v1298_v49 = vld [vmem:[#allocation8 + $0x5b0] sm:$0xff]  ;;  %v1610_v50 = vunpack.c.h.s8.bf16 %v1234_v47  ;;  %v4401_v15 = vld [vmem:[%s4565_s7] sm:$0xff]  ;;  %v1578_v29 = vunpack.c.h.s8.bf16 %v1218_v23 }
 0x3c6   :  { %v1339_v33 = vld [vmem:[#allocation8 + $0x6f8] sm:$0xff] }
 0x3c7   :  { %2422 = vmatpush1.bf16.msra.mxu1 %v1546_v10  ;;  %v1739_v10 = vunpack.c.h.s8.bf16 %v1299_v46 }
 0x3c8   :  { %2463 = vmatpush1.bf16.msra.mxu0 %v1674_v51  ;;  %2423 = vmatprep.subr.bf16.mxu1 %v1539_v52  ;;  %v1738_v51 = vunpack.c.h.s8.bf16 %v1298_v49  ;;  %v1603_v52 = vunpack.c.l.s8.bf16 %v1235_v12  ;;  %v2668_v12 = vld [vmem:[#allocation11 + $0x60] sm:$0xff] }
 0x3c9   :  { %2464 = vmatprep.subr.bf16.mxu0 %v1667_v21  ;;  %v1731_v21 = vunpack.c.l.s8.bf16 %v1299_v46 }
 0x3cb   :  { %2424 = vmatpush1.bf16.msra.mxu1 %v1538_v55  ;;  %v1602_v55 = vunpack.c.l.s8.bf16 %v1234_v47  ;;  %v1331_v47 = vld [vmem:[#allocation8 + $0x6b8] sm:$0xff] }
 0x3cc   :  { %2465 = vmatpush1.bf16.msra.mxu0 %v1666_v58  ;;  %2425 = vmatprep.subr.bf16.mxu1 %v1531_v60  ;;  %v1730_v58 = vunpack.c.l.s8.bf16 %v1298_v49  ;;  %v1595_v60 = vunpack.c.h.s8.bf16 %v1227_v1 }
 0x3cd   :  { %2466 = vmatprep.subr.bf16.mxu0 %v1659_v2  ;;  %v1723_v2 = vunpack.c.h.s8.bf16 %v1291_v20 }
 0x3cf   :  { %2426 = vmatpush1.bf16.msra.mxu1 %v1530_v3  ;;  %v1594_v3 = vunpack.c.h.s8.bf16 %v1226_v62 }
 0x3d0   :  { %2467 = vmatpush1.bf16.msra.mxu0 %v1658_v6  ;;  %2427 = vmatprep.subr.bf16.mxu1 %v1523_v7  ;;  %v1722_v6 = vunpack.c.h.s8.bf16 %v1290_v17  ;;  %v1587_v7 = vunpack.c.l.s8.bf16 %v1227_v1 }
 0x3d1   :  { %2468 = vmatprep.subr.bf16.mxu0 %v1651_v8  ;;  %v1715_v8 = vunpack.c.l.s8.bf16 %v1291_v20 }
 0x3d3   :  { %2428 = vmatpush1.bf16.msra.mxu1 %v1522_v40  ;;  %v1283_v40 = vld [vmem:[#allocation8 + $0x538] sm:$0xff] }
 0x3d4   :  { %2469 = vmatpush1.bf16.msra.mxu0 %v1650_v53  ;;  %2429 = vmatprep.subr.bf16.mxu1 %v1515_v16  ;;  %v2549_v53 = vrot.slane %v4401_v15, %v4223_v56  ;;  %v1586_v16 = vunpack.c.l.s8.bf16 %v1226_v62  ;;  %v2664_v62 = vld [vmem:[#allocation11 + $0x40] sm:$0xff] }
 0x3d5   :  { %2470 = vmatprep.subr.bf16.mxu0 %v1643_v22  ;;  %v1579_v22 = vunpack.c.h.s8.bf16 %v1219_v11 }
 0x3d7   :  { %2430 = vmatpush1.bf16.msra.mxu1 %v1514_v24  ;;  %v1707_v24 = vunpack.c.h.s8.bf16 %v1283_v40 }
 0x3d8   :  { %2471 = vmatpush1.bf16.msra.mxu0 %v1642_v26  ;;  %2431 = vmatprep.subr.bf16.mxu1 %v1507_v27  ;;  %v1282_v26 = vld [vmem:[#allocation8 + $0x530] sm:$0xff]  ;;  %v4405_v27 = vld [vmem:[#allocation10] sm:$0xff] }
 0x3d9   :  { %2472 = vmatprep.subr.bf16.mxu0 %v1635_v5  ;;  %v2583_v5 = vmul.f32 %v2549_v53, %v4386_v0  ;;  %v2599_v28 = vrot.slane %v4405_v27, %v4223_v56  ;;  %v1819_v0 = vunpack.c.h.s8.bf16 %v1339_v33 }
 0x3db   :  { %2432 = vmatpush1.bf16.msra.mxu1 %v1506_v30  ;;  %v1706_v30 = vunpack.c.h.s8.bf16 %v1282_v26  ;;  %v2633_v38 = vadd.f32 %v2599_v28, %v2583_v5 }
 0x3dc   :  { %2473 = vmatpush1.bf16.msra.mxu0 %v1634_v41  ;;  %2433 = vmatprep.subr.bf16.mxu1 %v1627_v31  ;;  %v1571_v41 = vunpack.c.l.s8.bf16 %v1219_v11  ;;  %v1699_v31 = vunpack.c.l.s8.bf16 %v1283_v40  ;;  %v1323_v11 = vld [vmem:[#allocation8 + $0x678] sm:$0xff]  ;;  %v2661_v40 = vld [vmem:[#allocation11 + $0x28] sm:$0xff] }
 0x3dd   :  { %2474 = vmatprep.subr.bf16.mxu0 %v1755_v34  ;;  %v2669_v34 = vld [vmem:[#allocation11 + $0x68] sm:$0xff]  ;;  %v1779_v28 = vunpack.c.l.s8.bf16 %v1323_v11 }
 0x3de   :  { %v2809_v49 = vunpack.c.l.s8.bf16 %v2669_v34 }
 0x3df   :  { %2434 = vmatpush2.bf16.msra.mxu1 %v1626_v9  ;;  %v1570_v9 = vunpack.c.l.s8.bf16 %v1218_v23  ;;  %v2797_v23 = vunpack.c.h.s8.bf16 %v2661_v40 }
 0x3e0   :  { %2475 = vmatpush2.bf16.msra.mxu0 %v1754_v39  ;;  %2435 = vmatprep.subr.bf16.mxu1 %v1619_v4  ;;  %v1698_v39 = vunpack.c.l.s8.bf16 %v1282_v26  ;;  %v1338_v4 = vld [vmem:[#allocation8 + $0x6f0] sm:$0xff] }
 0x3e1   :  { %2476 = vmatprep.subr.bf16.mxu0 %v1747_v42  ;;  %v2813_v42 = vunpack.c.h.s8.bf16 %v2669_v34  ;;  %v1818_v46 = vunpack.c.h.s8.bf16 %v1338_v4  ;;  %v1810_v1 = vunpack.c.l.s8.bf16 %v1338_v4 }
 0x3e3   :  { %2436 = vmatpush2.bf16.msra.mxu1 %v1618_v35  ;;  %v2641_v35 = vmax.f32 %v2633_v38, 0.0  ;;  %v1314_v38 = vld [vmem:[#allocation8 + $0x630] sm:$0xff] }
 0x3e4   :  { %2477 = vmatpush2.bf16.msra.mxu0 %v1746_v25  ;;  %2437 = vmatprep.subr.bf16.mxu1 %v1611_v36  ;;  %v2812_v25 = vunpack.c.h.s8.bf16 %v2668_v12  ;;  %v1811_v36 = vunpack.c.l.s8.bf16 %v1339_v33 }
 0x3e5   :  { %2478 = vmatprep.subr.bf16.mxu0 %v1739_v10 }
 0x3e7   :  { %2438 = vmatpush2.bf16.msra.mxu1 %v1610_v50  ;;  %v2665_v50 = vld [vmem:[#allocation11 + $0x48] sm:$0xff] }
 0x3e8   :  { %2479 = vmatpush2.bf16.msra.mxu0 %v1738_v51  ;;  %2439 = vmatprep.subr.bf16.mxu1 %v1603_v52 }
 0x3e9   :  { %2480 = vmatprep.subr.bf16.mxu0 %v1731_v21  ;;  %v4417_v21 = vpack.c.bf16 %v2641_v35, %v2641_v35  ;;  %v2685_v35 = vld [vmem:[#allocation11 + $0xe8] sm:$0xff] }
 0x3eb   :  { %2440 = vmatpush2.bf16.msra.mxu1 %v1602_v55  ;;  %v2808_v55 = vunpack.c.l.s8.bf16 %v2668_v12 }
 0x3ec   :  { %2481 = vmatpush2.bf16.msra.mxu0 %v1730_v58  ;;  %2441 = vmatprep.subr.bf16.mxu1 %v1595_v60  ;;  %v1330_v58 = vld [vmem:[#allocation8 + $0x6b0] sm:$0xff]  ;;  %v2805_v60 = vunpack.c.h.s8.bf16 %v2665_v50 }
 0x3ed   :  { %2482 = vmatprep.subr.bf16.mxu0 %v1723_v2  ;;  %v1802_v17 = vunpack.c.h.s8.bf16 %v1330_v58  ;;  %v1794_v53 = vunpack.c.l.s8.bf16 %v1330_v58  ;;  %v2841_v58 = vunpack.c.l.s8.bf16 %v2685_v35 }
 0x3ef   :  { %2442 = vmatpush2.bf16.msra.mxu1 %v1594_v3  ;;  %v2804_v3 = vunpack.c.h.s8.bf16 %v2664_v62 }
 0x3f0   :  { %2483 = vmatpush2.bf16.msra.mxu0 %v1722_v6  ;;  %2443 = vmatprep.subr.bf16.mxu1 %v1587_v7  ;;  %v1795_v6 = vunpack.c.l.s8.bf16 %v1331_v47 }
 0x3f1   :  { %2484 = vmatprep.subr.bf16.mxu0 %v1715_v8  ;;  %v2801_v8 = vunpack.c.l.s8.bf16 %v2665_v50  ;;  %v2684_v50 = vld [vmem:[#allocation11 + $0xe0] sm:$0xff] }
 0x3f3   :  { %2444 = vmatpush2.bf16.msra.mxu1 %v1586_v16  ;;  %v2800_v16 = vunpack.c.l.s8.bf16 %v2664_v62  ;;  %v2681_v62 = vld [vmem:[#allocation11 + $0xc8] sm:$0xff] }
 0x3f4   :  { %2485 = vmatpush2.bf16.msra.mxu0 %v1714_v19  ;;  %2445 = vmatprep.subr.bf16.mxu1 %v1579_v22  ;;  %v1787_v19 = vunpack.c.h.s8.bf16 %v1323_v11  ;;  %v1322_v22 = vld [vmem:[#allocation8 + $0x670] sm:$0xff] }
 0x3f5   :  { %2486 = vmatprep.subr.bf16.mxu0 %v1707_v24  ;;  %v2660_v24 = vld [vmem:[#allocation11 + $0x20] sm:$0xff]  ;;  %v1786_v26 = vunpack.c.h.s8.bf16 %v1322_v22 }
 0x3f6   :  { %v2796_v5 = vunpack.c.h.s8.bf16 %v2660_v24  ;;  %v2792_v33 = vunpack.c.l.s8.bf16 %v2660_v24  ;;  %v1354_v24 = vld [vmem:[#allocation8 + $0x770] sm:$0xff] }
 0x3f7   :  { %2446 = vmatpush2.bf16.msra.mxu1 %v1578_v29  ;;  %v2793_v29 = vunpack.c.l.s8.bf16 %v2661_v40  ;;  %v2833_v40 = vunpack.c.l.s8.bf16 %v2681_v62 }
 0x3f8   :  { %2487 = vmatpush2.bf16.msra.mxu0 %v1706_v30  ;;  %2447 = vmatprep.subr.bf16.mxu1 %v1571_v41  ;;  %v1315_v30 = vld [vmem:[#allocation8 + $0x638] sm:$0xff]  ;;  %v2657_v41 = vld [vmem:[#allocation11 + $0x8] sm:$0xff] }
 0x3f9   :  { %2488 = vmatprep.subr.bf16.mxu0 %v1699_v31  ;;  %v1778_v31 = vunpack.c.l.s8.bf16 %v1322_v22  ;;  %v1771_v34 = vunpack.c.h.s8.bf16 %v1315_v30  ;;  %v2785_v12 = vunpack.c.l.s8.bf16 %v2657_v41 }
 0x3fb   :  { %2448 = vmatpush2.bf16.msra.mxu1 %v1570_v9  ;;  %v2789_v9 = vunpack.c.h.s8.bf16 %v2657_v41  ;;  %v2545_v41 = vrot.slane %v4401_v15, %v4220_v54 }
 0x3fc   :  { %2489 = vmatpush2.bf16.msra.mxu0 %v1698_v39  ;;  %2499 = vmatprep.subr.bf16.mxu1 %v1819_v0  ;;  %v2656_v39 = vld [vmem:[#allocation11] sm:$0xff]  ;;  %v1770_v0 = vunpack.c.h.s8.bf16 %v1314_v38 }
 0x3fd   :  { %3040 = vmatprep.subr.bf16.mxu0 %v2813_v42  ;;  %v2788_v4 = vunpack.c.h.s8.bf16 %v2656_v39  ;;  %v1763_v42 = vunpack.c.l.s8.bf16 %v1315_v30 }
 0x3fe   :  { %v2205_v10 = vpop.f32.mrf.mxu1  ;;  %2450 = vmatmul.mubr.bf16.vlgmr.msra.gmra.mxu1 %v4299_v14  ;;  %v1803_v14 = vunpack.c.h.s8.bf16 %v1331_v47 }
 0x3ff   :  { %v4412_v51 = vadd.f32 %v2205_v10, %v4392_v44  ;;  %v4414_v52 = vpop.f32.mrf.mxu0  ;;  %2491 = vmatmul.mubr.bf16.vlgmr.msra.gmra.mxu0 %v4326_v13  ;;  %2500 = vmatpush1.bf16.msra.mxu1 %v1818_v46  ;;  %v1371_v46 = vld [vmem:[#allocation8 + $0x7f8] sm:$0xff]  ;;  %v1370_v10 = vld [vmem:[#allocation8 + $0x7f0] sm:$0xff] }
 0x400   :  { %2531 = vmatprep.mubr.bf16.mxu1 %v4346_v45  ;;  %3041 = vmatpush1.bf16.msra.mxu0 %v2812_v25  ;;  %v4420_v20 = vpop.f32.mrf.mxu1  ;;  %v1762_v25 = vunpack.c.l.s8.bf16 %v1314_v38  ;;  %v1883_v47 = vunpack.c.h.s8.bf16 %v1371_v46  ;;  %v2557_v38 = vrot.slane %v4401_v15, %v4230_v59 }
 0x401   :  { %3072 = vmatprep.mubr.bf16.mxu0 %v4417_v21  ;;  %v4423_v44 = vpop.f32.mrf.mxu0  ;;  %2501 = vmatprep.subr.bf16.mxu1 %v1811_v36  ;;  %v2784_v36 = vunpack.c.l.s8.bf16 %v2656_v39  ;;  %v1842_v39 = vunpack.c.l.s8.bf16 %v1354_v24 }
 0x402   :  { %v2209_v13 = vpop.f32.mrf.mxu1  ;;  %3042 = vmatprep.subr.bf16.mxu0 %v2809_v49  ;;  %v2845_v49 = vunpack.c.h.s8.bf16 %v2685_v35 }
 0x403   :  { %v2250_v2 = vpop.f32.mrf.mxu0  ;;  %2502 = vmatpush1.bf16.msra.mxu1 %v1810_v1  ;;  %v1882_v1 = vunpack.c.h.s8.bf16 %v1370_v10  ;;  %v1874_v13 = vunpack.c.l.s8.bf16 %v1370_v10 }
 0x404   :  { %3043 = vmatpush1.bf16.msra.mxu0 %v2808_v55  ;;  %v2210_v45 = vpop.f32.mrf.mxu1  ;;  %2503 = vmatprep.subr.bf16.mxu1 %v1803_v14  ;;  %v2844_v55 = vunpack.c.h.s8.bf16 %v2684_v50  ;;  %v1875_v14 = vunpack.c.l.s8.bf16 %v1371_v46  ;;  %v2840_v2 = vunpack.c.l.s8.bf16 %v2684_v50  ;;  %v2595_v46 = vrot.slane %v4405_v27, %v4220_v54 }
 0x405   :  { %v2251_v7 = vpop.f32.mrf.mxu0  ;;  %3044 = vmatprep.subr.bf16.mxu0 %v2805_v60  ;;  %v1363_v60 = vld [vmem:[#allocation8 + $0x7b8] sm:$0xff]  ;;  %v1362_v45 = vld [vmem:[#allocation8 + $0x7b0] sm:$0xff] }
 0x406   :  { %v1866_v7 = vunpack.c.h.s8.bf16 %v1362_v45  ;;  %v1859_v11 = vunpack.c.l.s8.bf16 %v1363_v60 }
 0x407   :  { %2504 = vmatpush1.bf16.msra.mxu1 %v1802_v17  ;;  %v1867_v17 = vunpack.c.h.s8.bf16 %v1363_v60 }
 0x408   :  { %3045 = vmatpush1.bf16.msra.mxu0 %v2804_v3  ;;  %2505 = vmatprep.subr.bf16.mxu1 %v1795_v6  ;;  %v2837_v3 = vunpack.c.h.s8.bf16 %v2681_v62  ;;  %v2680_v6 = vld [vmem:[#allocation11 + $0xc0] sm:$0xff] }
 0x409   :  { %3046 = vmatprep.subr.bf16.mxu0 %v2801_v8  ;;  %v2836_v8 = vunpack.c.h.s8.bf16 %v2680_v6  ;;  %v2832_v22 = vunpack.c.l.s8.bf16 %v2680_v6  ;;  %v2700_v62 = vld [vmem:[#allocation11 + $0x160] sm:$0xff] }
 0x40b   :  { %2506 = vmatpush1.bf16.msra.mxu1 %v1794_v53  ;;  %v1355_v53 = vld [vmem:[#allocation8 + $0x778] sm:$0xff] }
 0x40c   :  { %3047 = vmatpush1.bf16.msra.mxu0 %v2800_v16  ;;  %2507 = vmatprep.subr.bf16.mxu1 %v1787_v19  ;;  %v2677_v16 = vld [vmem:[#allocation11 + $0xa8] sm:$0xff]  ;;  %v1858_v19 = vunpack.c.l.s8.bf16 %v1362_v45  ;;  %v1843_v30 = vunpack.c.l.s8.bf16 %v1355_v53  ;;  %v2732_v45 = vld [vmem:[#allocation11 + $0x260] sm:$0xff] }
 0x40d   :  { %3048 = vmatprep.subr.bf16.mxu0 %v2797_v23  ;;  %v1851_v23 = vunpack.c.h.s8.bf16 %v1355_v53 }
 0x40f   :  { %2508 = vmatpush1.bf16.msra.mxu1 %v1786_v26  ;;  %v2829_v26 = vunpack.c.h.s8.bf16 %v2677_v16 }
 0x410   :  { %3049 = vmatpush1.bf16.msra.mxu0 %v2796_v5  ;;  %2509 = vmatprep.subr.bf16.mxu1 %v1779_v28  ;;  %v2676_v5 = vld [vmem:[#allocation11 + $0xa0] sm:$0xff]  ;;  %v1850_v28 = vunpack.c.h.s8.bf16 %v1354_v24  ;;  %v2729_v24 = vld [vmem:[#allocation11 + $0x248] sm:$0xff] }
 0x411   :  { %3050 = vmatprep.subr.bf16.mxu0 %v2793_v29  ;;  %v2828_v29 = vunpack.c.h.s8.bf16 %v2676_v5 }
 0x413   :  { %2510 = vmatpush1.bf16.msra.mxu1 %v1778_v31  ;;  %v2825_v31 = vunpack.c.l.s8.bf16 %v2677_v16 }
 0x414   :  { %3051 = vmatpush1.bf16.msra.mxu0 %v2792_v33  ;;  %2511 = vmatprep.subr.bf16.mxu1 %v1771_v34  ;;  %v1347_v33 = vld [vmem:[#allocation8 + $0x738] sm:$0xff]  ;;  %v2208_v34 = vadd.f32 %v4420_v20, %v4396_v48  ;;  %v2607_v20 = vrot.slane %v4405_v27, %v4230_v59 }
 0x415   :  { %3052 = vmatprep.subr.bf16.mxu0 %v2789_v9  ;;  %v2673_v9 = vld [vmem:[#allocation11 + $0x88] sm:$0xff]  ;;  %v1827_v10 = vunpack.c.l.s8.bf16 %v1347_v33 }
 0x416   :  { %v2821_v35 = vunpack.c.h.s8.bf16 %v2673_v9  ;;  %v2585_v48 = vmul.f32 %v2557_v38, %v2208_v34  ;;  %v2817_v50 = vunpack.c.l.s8.bf16 %v2673_v9 }
 0x417   :  { %2512 = vmatpush1.bf16.msra.mxu1 %v1770_v0  ;;  %v2824_v0 = vunpack.c.l.s8.bf16 %v2676_v5 }
 0x418   :  { %3053 = vmatpush1.bf16.msra.mxu0 %v2788_v4  ;;  %2513 = vmatprep.subr.bf16.mxu1 %v1763_v42  ;;  %v1835_v4 = vunpack.c.h.s8.bf16 %v1347_v33  ;;  %v1346_v42 = vld [vmem:[#allocation8 + $0x730] sm:$0xff] }
 0x419   :  { %3054 = vmatprep.subr.bf16.mxu0 %v2785_v12  ;;  %v2582_v12 = vmul.f32 %v2545_v41, %v4379_v18  ;;  %v2701_v18 = vld [vmem:[#allocation11 + $0x168] sm:$0xff]  ;;  %v2933_v41 = vunpack.c.h.s8.bf16 %v2729_v24 }
 0x41a   :  { %v2877_v60 = vunpack.c.h.s8.bf16 %v2701_v18  ;;  %v2873_v6 = vunpack.c.l.s8.bf16 %v2701_v18 }
 0x41b   :  { %2514 = vmatpush1.bf16.msra.mxu1 %v1762_v25  ;;  %v2672_v25 = vld [vmem:[#allocation11 + $0x80] sm:$0xff] }
 0x41c   :  { %3055 = vmatpush1.bf16.msra.mxu0 %v2784_v36  ;;  %2515 = vmatprep.subr.bf16.mxu1 %v1883_v47  ;;  %v1834_v36 = vunpack.c.h.s8.bf16 %v1346_v42  ;;  %v2820_v47 = vunpack.c.h.s8.bf16 %v2672_v25 }
 0x41d   :  { %3056 = vmatprep.subr.bf16.mxu0 %v2845_v49  ;;  %v2632_v49 = vadd.f32 %v2595_v46, %v2582_v12  ;;  %v2725_v46 = vld [vmem:[#allocation11 + $0x228] sm:$0xff] }
 0x41e   :  { %v2921_v18 = vunpack.c.l.s8.bf16 %v2725_v46 }
 0x41f   :  { %2516 = vmatpush2.bf16.msra.mxu1 %v1882_v1  ;;  %v2635_v1 = vadd.f32 %v2607_v20, %v2585_v48  ;;  %v2925_v20 = vunpack.c.h.s8.bf16 %v2725_v46 }
 0x420   :  { %3057 = vmatpush2.bf16.msra.mxu0 %v2844_v55  ;;  %2517 = vmatprep.subr.bf16.mxu1 %v1875_v14  ;;  %v2733_v55 = vld [vmem:[#allocation11 + $0x268] sm:$0xff]  ;;  %v1826_v14 = vunpack.c.l.s8.bf16 %v1346_v42  ;;  %v2929_v42 = vunpack.c.l.s8.bf16 %v2729_v24 }
 0x421   :  { %3058 = vmatprep.subr.bf16.mxu0 %v2841_v58  ;;  %v2816_v58 = vunpack.c.l.s8.bf16 %v2672_v25  ;;  %v2937_v16 = vunpack.c.l.s8.bf16 %v2733_v55  ;;  %v2692_v25 = vld [vmem:[#allocation11 + $0x120] sm:$0xff] }
 0x423   :  { %2518 = vmatpush2.bf16.msra.mxu1 %v1874_v13  ;;  %v2640_v13 = vmax.f32 %v2632_v49, 0.0  ;;  %v2689_v49 = vld [vmem:[#allocation11 + $0x108] sm:$0xff] }
 0x424   :  { %3059 = vmatpush2.bf16.msra.mxu0 %v2840_v2  ;;  %2519 = vmatprep.subr.bf16.mxu1 %v1867_v17  ;;  %v2941_v2 = vunpack.c.h.s8.bf16 %v2733_v55  ;;  %v2643_v17 = vmax.f32 %v2635_v1, 0.0  ;;  %v2856_v1 = vunpack.c.l.s8.bf16 %v2692_v25  ;;  %v2721_v55 = vld [vmem:[#allocation11 + $0x208] sm:$0xff] }
 0x425   :  { %3060 = vmatprep.subr.bf16.mxu0 %v2837_v3  ;;  %v2876_v3 = vunpack.c.h.s8.bf16 %v2700_v62 }
 0x426   :  { %v4439_v53 = vpack.c.bf16 %v2643_v17, %v2643_v17  ;;  %v2849_v17 = vunpack.c.l.s8.bf16 %v2689_v49 }
 0x427   :  { %2520 = vmatpush2.bf16.msra.mxu1 %v1866_v7  ;;  %v4436_v7 = vpack.c.bf16 %v2640_v13, %v2640_v13  ;;  %v2720_v13 = vld [vmem:[#allocation11 + $0x200] sm:$0xff] }
 0x428   :  { %3061 = vmatpush2.bf16.msra.mxu0 %v2836_v8  ;;  %2521 = vmatprep.subr.bf16.mxu1 %v1859_v11  ;;  %v2697_v8 = vld [vmem:[#allocation11 + $0x148] sm:$0xff]  ;;  %v2940_v11 = vunpack.c.h.s8.bf16 %v2732_v45 }
 0x429   :  { %3062 = vmatprep.subr.bf16.mxu0 %v2833_v40  ;;  %v2869_v5 = vunpack.c.h.s8.bf16 %v2697_v8  ;;  %v2865_v9 = vunpack.c.l.s8.bf16 %v2697_v8 }
 0x42b   :  { %2522 = vmatpush2.bf16.msra.mxu1 %v1858_v19 }
 0x42c   :  { %3063 = vmatpush2.bf16.msra.mxu0 %v2832_v22  ;;  %2523 = vmatprep.subr.bf16.mxu1 %v1851_v23  ;;  %v2872_v23 = vunpack.c.l.s8.bf16 %v2700_v62  ;;  %v2917_v62 = vunpack.c.h.s8.bf16 %v2721_v55 }
 0x42d   :  { %3064 = vmatprep.subr.bf16.mxu0 %v2829_v26 }
 0x42f   :  { %2524 = vmatpush2.bf16.msra.mxu1 %v1850_v28  ;;  %v2696_v28 = vld [vmem:[#allocation11 + $0x140] sm:$0xff] }
 0x430   :  { %3065 = vmatpush2.bf16.msra.mxu0 %v2828_v29  ;;  %2525 = vmatprep.subr.bf16.mxu1 %v1843_v30  ;;  %v2936_v30 = vunpack.c.l.s8.bf16 %v2732_v45  ;;  %v2868_v34 = vunpack.c.h.s8.bf16 %v2696_v28  ;;  %v2864_v12 = vunpack.c.l.s8.bf16 %v2696_v28  ;;  %v2717_v45 = vld [vmem:[#allocation11 + $0x1e8] sm:$0xff] }
 0x431   :  { %3066 = vmatprep.subr.bf16.mxu0 %v2825_v31  ;;  %v2728_v31 = vld [vmem:[#allocation11 + $0x240] sm:$0xff]  ;;  %v2713_v28 = vld [vmem:[#allocation11 + $0x1c8] sm:$0xff] }
 0x432   :  { %v2928_v48 = vunpack.c.l.s8.bf16 %v2728_v31 }
 0x433   :  { %2526 = vmatpush2.bf16.msra.mxu1 %v1842_v39 }
 0x434   :  { %3067 = vmatpush2.bf16.msra.mxu0 %v2824_v0  ;;  %2527 = vmatprep.subr.bf16.mxu1 %v1835_v4  ;;  %v2693_v0 = vld [vmem:[#allocation11 + $0x128] sm:$0xff]  ;;  %v2932_v4 = vunpack.c.h.s8.bf16 %v2728_v31 }
 0x435   :  { %3068 = vmatprep.subr.bf16.mxu0 %v2821_v35  ;;  %v2861_v35 = vunpack.c.h.s8.bf16 %v2693_v0  ;;  %v2745_v31 = vld [vmem:[#allocation11 + $0x2c8] sm:$0xff] }
 0x436   :  { %v2961_v46 = vunpack.c.l.s8.bf16 %v2745_v31 }
 0x437   :  { %2528 = vmatpush2.bf16.msra.mxu1 %v1834_v36  ;;  %v2724_v36 = vld [vmem:[#allocation11 + $0x220] sm:$0xff] }
 0x438   :  { %3069 = vmatpush2.bf16.msra.mxu0 %v2820_v47  ;;  %2529 = vmatprep.subr.bf16.mxu1 %v1827_v10  ;;  %v2860_v47 = vunpack.c.h.s8.bf16 %v2692_v25  ;;  %v2857_v10 = vunpack.c.l.s8.bf16 %v2693_v0  ;;  %v2741_v25 = vld [vmem:[#allocation11 + $0x2a8] sm:$0xff] }
 0x439   :  { %3070 = vmatprep.subr.bf16.mxu0 %v2817_v50  ;;  %v2924_v50 = vunpack.c.h.s8.bf16 %v2724_v36 }
 0x43b   :  { %2530 = vmatpush2.bf16.msra.mxu1 %v1826_v14  ;;  %v2853_v14 = vunpack.c.h.s8.bf16 %v2689_v49 }
 0x43c   :  { %3071 = vmatpush2.bf16.msra.mxu0 %v2816_v58  ;;  %3081 = vmatprep.subr.bf16.mxu1 %v2877_v60  ;;  %v2688_v58 = vld [vmem:[#allocation11 + $0x100] sm:$0xff]  ;;  %v2920_v60 = vunpack.c.l.s8.bf16 %v2724_v36 }
 0x43d   :  { %3122 = vmatprep.subr.bf16.mxu0 %v2941_v2  ;;  %v2852_v2 = vunpack.c.h.s8.bf16 %v2688_v58  ;;  %v2848_v8 = vunpack.c.l.s8.bf16 %v2688_v58 }
 0x43e   :  { %v2287_v40 = vpop.f32.mrf.mxu1  ;;  %2532 = vmatmul.mubr.bf16.vlgmr.msra.gmra.mxu1 %v4348_v43 }
 0x43f   :  { %v2288_v19 = vadd.f32 %v2287_v40, %v4414_v52  ;;  %v2328_v22 = vpop.f32.mrf.mxu0  ;;  %3073 = vmatmul.mubr.bf16.vlgmr.msra.gmra.mxu0 %v4436_v7  ;;  %3082 = vmatpush1.bf16.msra.mxu1 %v2876_v3  ;;  %v2916_v3 = vunpack.c.h.s8.bf16 %v2720_v13  ;;  %v2909_v40 = vunpack.c.h.s8.bf16 %v2717_v45 }
 0x440   :  { %3113 = vmatprep.mubr.bf16.mxu1 %v4439_v53  ;;  %v4444_v26 = vpop.f32.mrf.mxu1  ;;  %3083 = vmatprep.subr.bf16.mxu1 %v2873_v6  ;;  %v2913_v6 = vunpack.c.l.s8.bf16 %v2721_v55 }
 0x441   :  { %v4446_v29 = vadd.f32 %v2328_v22, %v2288_v19  ;;  %v4448_v43 = vpop.f32.mrf.mxu0  ;;  %3123 = vmatpush1.bf16.msra.mxu0 %v2940_v11  ;;  %v2749_v11 = vld [vmem:[#allocation11 + $0x2e8] sm:$0xff]  ;;  %v2912_v19 = vunpack.c.l.s8.bf16 %v2720_v13  ;;  %v2603_v13 = vrot.slane %v4405_v27, %v4226_v57 }
 0x442   :  { %v2291_v52 = vpop.f32.mrf.mxu1  ;;  %3124 = vmatprep.subr.bf16.mxu0 %v2937_v16  ;;  %v2716_v16 = vld [vmem:[#allocation11 + $0x1e0] sm:$0xff]  ;;  %v2973_v22 = vunpack.c.h.s8.bf16 %v2749_v11 }
 0x443   :  { %v2332_v33 = vpop.f32.mrf.mxu0  ;;  %3084 = vmatpush1.bf16.msra.mxu1 %v2872_v23  ;;  %v2748_v23 = vld [vmem:[#allocation11 + $0x2e0] sm:$0xff]  ;;  %v2908_v24 = vunpack.c.h.s8.bf16 %v2716_v16  ;;  %v2969_v52 = vunpack.c.l.s8.bf16 %v2749_v11 }
 0x444   :  { %v2292_v38 = vpop.f32.mrf.mxu1  ;;  %3085 = vmatprep.subr.bf16.mxu1 %v2869_v5  ;;  %v2905_v5 = vunpack.c.l.s8.bf16 %v2717_v45  ;;  %v2901_v33 = vunpack.c.h.s8.bf16 %v2713_v28 }
 0x445   :  { %v2333_v39 = vpop.f32.mrf.mxu0  ;;  %3125 = vmatpush1.bf16.msra.mxu0 %v2936_v30  ;;  %v2972_v30 = vunpack.c.h.s8.bf16 %v2748_v23  ;;  %v2968_v38 = vunpack.c.l.s8.bf16 %v2748_v23  ;;  %v4455_v23 = vld [vmem:[#allocation11 + $0x78] sm:$0xff] }
 0x446   :  { %3126 = vmatprep.subr.bf16.mxu0 %v2933_v41  ;;  %v2904_v41 = vunpack.c.l.s8.bf16 %v2716_v16  ;;  %v2744_v39 = vld [vmem:[#allocation11 + $0x2c0] sm:$0xff] }
 0x447   :  { %3086 = vmatpush1.bf16.msra.mxu1 %v2868_v34  ;;  %v2712_v34 = vld [vmem:[#allocation11 + $0x1c0] sm:$0xff]  ;;  %v2960_v36 = vunpack.c.l.s8.bf16 %v2744_v39 }
 0x448   :  { %3087 = vmatprep.subr.bf16.mxu1 %v2865_v9  ;;  %v2965_v9 = vunpack.c.h.s8.bf16 %v2745_v31  ;;  %v2900_v0 = vunpack.c.h.s8.bf16 %v2712_v34 }
 0x449   :  { %3127 = vmatpush1.bf16.msra.mxu0 %v2932_v4  ;;  %v2897_v4 = vunpack.c.l.s8.bf16 %v2713_v28  ;;  %v2764_v28 = vld [vmem:[#allocation11 + $0x360] sm:$0xff] }
 0x44a   :  { %3128 = vmatprep.subr.bf16.mxu0 %v2929_v42  ;;  %v2709_v42 = vld [vmem:[#allocation11 + $0x1a8] sm:$0xff]  ;;  %v3004_v31 = vunpack.c.h.s8.bf16 %v2764_v28 }
 0x44b   :  { %3088 = vmatpush1.bf16.msra.mxu1 %v2864_v12  ;;  %v2964_v12 = vunpack.c.h.s8.bf16 %v2744_v39 }
 0x44c   :  { %3089 = vmatprep.subr.bf16.mxu1 %v2861_v35  ;;  %v2896_v35 = vunpack.c.l.s8.bf16 %v2712_v34 }
 0x44d   :  { %3129 = vmatpush1.bf16.msra.mxu0 %v2928_v48  ;;  %v2893_v48 = vunpack.c.h.s8.bf16 %v2709_v42 }
 0x44e   :  { %3130 = vmatprep.subr.bf16.mxu0 %v2925_v20  ;;  %v2708_v20 = vld [vmem:[#allocation11 + $0x1a0] sm:$0xff] }
 0x44f   :  { %3090 = vmatpush1.bf16.msra.mxu1 %v2860_v47  ;;  %v2957_v47 = vunpack.c.h.s8.bf16 %v2741_v25  ;;  %v2892_v49 = vunpack.c.h.s8.bf16 %v2708_v20  ;;  %v2888_v58 = vunpack.c.l.s8.bf16 %v2708_v20  ;;  %v2615_v20 = vrot.slane %v4405_v27, %v4311_v37 }
 0x450   :  { %3091 = vmatprep.subr.bf16.mxu1 %v2857_v10  ;;  %v2740_v10 = vld [vmem:[#allocation11 + $0x2a0] sm:$0xff] }
 0x451   :  { %3131 = vmatpush1.bf16.msra.mxu0 %v2924_v50  ;;  %v2553_v50 = vrot.slane %v4401_v15, %v4226_v57  ;;  %v2956_v55 = vunpack.c.h.s8.bf16 %v2740_v10  ;;  %v2952_v45 = vunpack.c.l.s8.bf16 %v2740_v10 }
 0x452   :  { %3132 = vmatprep.subr.bf16.mxu0 %v2921_v18  ;;  %v2889_v18 = vunpack.c.l.s8.bf16 %v2709_v42  ;;  %v2565_v42 = vrot.slane %v4401_v15, %v4311_v37 }
 0x453   :  { %3092 = vmatpush1.bf16.msra.mxu1 %v2856_v1  ;;  %v2705_v1 = vld [vmem:[#allocation11 + $0x188] sm:$0xff] }
 0x454   :  { %3093 = vmatprep.subr.bf16.mxu1 %v2853_v14  ;;  %v2953_v14 = vunpack.c.l.s8.bf16 %v2741_v25  ;;  %v2760_v25 = vld [vmem:[#allocation11 + $0x340] sm:$0xff] }
 0x455   :  { %3133 = vmatpush1.bf16.msra.mxu0 %v2920_v60  ;;  %v2737_v60 = vld [vmem:[#allocation11 + $0x288] sm:$0xff] }
 0x456   :  { %3134 = vmatprep.subr.bf16.mxu0 %v2917_v62  ;;  %v2584_v62 = vmul.f32 %v2553_v50, %v4412_v51  ;;  %v2945_v51 = vunpack.c.l.s8.bf16 %v2737_v60 }
 0x457   :  { %3094 = vmatpush1.bf16.msra.mxu1 %v2852_v2  ;;  %v2885_v2 = vunpack.c.h.s8.bf16 %v2705_v1 }
 0x458   :  { %3095 = vmatprep.subr.bf16.mxu1 %v2849_v17  ;;  %v2704_v17 = vld [vmem:[#allocation11 + $0x180] sm:$0xff]  ;;  %v2634_v11 = vadd.f32 %v2603_v13, %v2584_v62  ;;  %v2992_v62 = vunpack.c.l.s8.bf16 %v2760_v25 }
 0x459   :  { %3135 = vmatpush1.bf16.msra.mxu0 %v2916_v3  ;;  %v2949_v3 = vunpack.c.h.s8.bf16 %v2737_v60 }
 0x45a   :  { %3136 = vmatprep.subr.bf16.mxu0 %v2913_v6  ;;  %v2736_v6 = vld [vmem:[#allocation11 + $0x280] sm:$0xff] }
 0x45b   :  { %3096 = vmatpush1.bf16.msra.mxu1 %v2848_v8  ;;  %v2884_v8 = vunpack.c.h.s8.bf16 %v2704_v17  ;;  %v2948_v16 = vunpack.c.h.s8.bf16 %v2736_v6 }
 0x45c   :  { %3097 = vmatprep.subr.bf16.mxu1 %v2909_v40  ;;  %v2881_v40 = vunpack.c.l.s8.bf16 %v2705_v1 }
 0x45d   :  { %3137 = vmatpush1.bf16.msra.mxu0 %v2912_v19  ;;  %v2765_v19 = vld [vmem:[#allocation11 + $0x368] sm:$0xff] }
 0x45e   :  { %3138 = vmatprep.subr.bf16.mxu0 %v2973_v22  ;;  %v2880_v22 = vunpack.c.l.s8.bf16 %v2704_v17  ;;  %v3001_v34 = vunpack.c.l.s8.bf16 %v2765_v19 }
 0x45f   :  { %3098 = vmatpush2.bf16.msra.mxu1 %v2908_v24  ;;  %v2642_v24 = vmax.f32 %v2634_v11, 0.0 }
 0x460   :  { %3099 = vmatprep.subr.bf16.mxu1 %v2905_v5  ;;  %v3005_v5 = vunpack.c.h.s8.bf16 %v2765_v19  ;;  %v2666_v19 = vld [vmem:[#allocation11 + $0x50] sm:$0xff] }
 0x461   :  { %3139 = vmatpush2.bf16.msra.mxu0 %v2972_v30  ;;  %v2944_v30 = vunpack.c.l.s8.bf16 %v2736_v6 }
 0x462   :  { %3140 = vmatprep.subr.bf16.mxu0 %v2969_v52  ;;  %v2815_v52 = vunpack.c.h.s8.bf16 %v4455_v23 }
 0x463   :  { %3100 = vmatpush2.bf16.msra.mxu1 %v2904_v41  ;;  %v2290_v41 = vadd.f32 %v4444_v26, %v4423_v44 }
 0x464   :  { %3101 = vmatprep.subr.bf16.mxu1 %v2901_v33  ;;  %v4460_v33 = vpack.c.bf16 %v2642_v24, %v2642_v24  ;;  %v2806_v24 = vunpack.c.h.s8.bf16 %v2666_v19 }
 0x465   :  { %3141 = vmatpush2.bf16.msra.mxu0 %v2968_v38  ;;  %v2561_v38 = vrot.slane %v4401_v15, %v4308_v32  ;;  %v2331_v44 = vadd.f32 %v4448_v43, %v2290_v41  ;;  %v2781_v41 = vld [vmem:[#allocation11 + $0x3e8] sm:$0xff] }
 0x466   :  { %3142 = vmatprep.subr.bf16.mxu0 %v2965_v9  ;;  %v2761_v9 = vld [vmem:[#allocation11 + $0x348] sm:$0xff] }
 0x467   :  { %3102 = vmatpush2.bf16.msra.mxu1 %v2900_v0  ;;  %v2611_v0 = vrot.slane %v4405_v27, %v4308_v32  ;;  %v2993_v50 = vunpack.c.l.s8.bf16 %v2761_v9  ;;  %v2756_v27 = vld [vmem:[#allocation11 + $0x320] sm:$0xff] }
 0x468   :  { %3103 = vmatprep.subr.bf16.mxu1 %v2897_v4  ;;  %v2988_v6 = vunpack.c.h.s8.bf16 %v2756_v27 }
 0x469   :  { %3143 = vmatpush2.bf16.msra.mxu0 %v2964_v12  ;;  %v3000_v12 = vunpack.c.l.s8.bf16 %v2764_v28  ;;  %v2663_v28 = vld [vmem:[#allocation11 + $0x38] sm:$0xff] }
 0x46a   :  { %3144 = vmatprep.subr.bf16.mxu0 %v2961_v46 }
 0x46b   :  { %3104 = vmatpush2.bf16.msra.mxu1 %v2896_v35  ;;  %v2997_v35 = vunpack.c.h.s8.bf16 %v2761_v9  ;;  %v3037_v9 = vunpack.c.h.s8.bf16 %v2781_v41 }
 0x46c   :  { %3105 = vmatprep.subr.bf16.mxu1 %v2893_v48 }
 0x46d   :  { %3145 = vmatpush2.bf16.msra.mxu0 %v2960_v36 }
 0x46e   :  { %3146 = vmatprep.subr.bf16.mxu0 %v2957_v47 }
 0x46f   :  { %3106 = vmatpush2.bf16.msra.mxu1 %v2892_v49  ;;  %v2996_v49 = vunpack.c.h.s8.bf16 %v2760_v25 }
 0x470   :  { %3107 = vmatprep.subr.bf16.mxu1 %v2889_v18 }
 0x471   :  { %3147 = vmatpush2.bf16.msra.mxu0 %v2956_v55  ;;  %v2757_v55 = vld [vmem:[#allocation11 + $0x328] sm:$0xff] }
 0x472   :  { %3148 = vmatprep.subr.bf16.mxu0 %v2953_v14  ;;  %v2989_v37 = vunpack.c.h.s8.bf16 %v2757_v55 }
 0x473   :  { %3108 = vmatpush2.bf16.msra.mxu1 %v2888_v58  ;;  %v2670_v58 = vld [vmem:[#allocation11 + $0x70] sm:$0xff] }
 0x474   :  { %3109 = vmatprep.subr.bf16.mxu1 %v2885_v2  ;;  %v2814_v2 = vunpack.c.h.s8.bf16 %v2670_v58  ;;  %v2810_v11 = vunpack.c.l.s8.bf16 %v2670_v58 }
 0x475   :  { %3149 = vmatpush2.bf16.msra.mxu0 %v2952_v45  ;;  %v2811_v45 = vunpack.c.l.s8.bf16 %v4455_v23  ;;  %v2752_v23 = vld [vmem:[#allocation11 + $0x300] sm:$0xff] }
 0x476   :  { %3150 = vmatprep.subr.bf16.mxu0 %v2949_v3  ;;  %v2667_v3 = vld [vmem:[#allocation11 + $0x58] sm:$0xff] }
 0x477   :  { %3110 = vmatpush2.bf16.msra.mxu1 %v2884_v8  ;;  %v2985_v8 = vunpack.c.l.s8.bf16 %v2757_v55  ;;  %v2686_v55 = vld [vmem:[#allocation11 + $0xf0] sm:$0xff] }
 0x478   :  { %3111 = vmatprep.subr.bf16.mxu1 %v2881_v40  ;;  %v2753_v40 = vld [vmem:[#allocation11 + $0x308] sm:$0xff] }
 0x479   :  { %3151 = vmatpush2.bf16.msra.mxu0 %v2948_v16  ;;  %v2807_v16 = vunpack.c.h.s8.bf16 %v2667_v3 }
 0x47a   :  { %3152 = vmatprep.subr.bf16.mxu0 %v2945_v51  ;;  %v2984_v51 = vunpack.c.l.s8.bf16 %v2756_v27  ;;  %v2683_v27 = vld [vmem:[#allocation11 + $0xd8] sm:$0xff] }
 0x47b   :  { %3112 = vmatpush2.bf16.msra.mxu1 %v2880_v22  ;;  %v2981_v22 = vunpack.c.h.s8.bf16 %v2753_v40 }
 0x47c   :  { %3163 = vmatprep.subr.bf16.mxu1 %v3005_v5  ;;  %v2803_v5 = vunpack.c.l.s8.bf16 %v2667_v3  ;;  %v2842_v3 = vunpack.c.l.s8.bf16 %v2686_v55 }
 0x47d   :  { %3153 = vmatpush2.bf16.msra.mxu0 %v2944_v30  ;;  %v2980_v30 = vunpack.c.h.s8.bf16 %v2752_v23 }
 0x47e   :  { %v2369_v39 = vpop.f32.mrf.mxu1  ;;  %3114 = vmatmul.mubr.bf16.vlgmr.msra.gmra.mxu1 %v4460_v33  ;;  %3204 = vmatprep.subr.bf16.mxu0 %v2815_v52  ;;  %v2977_v52 = vunpack.c.l.s8.bf16 %v2753_v40 }
 0x47f   :  { %v2370_v26 = vadd.f32 %v2369_v39, %v4446_v29  ;;  %v4469_v4 = vpop.f32.mrf.mxu0  ;;  %3164 = vmatpush1.bf16.msra.mxu1 %v3004_v31  ;;  %v2799_v31 = vunpack.c.h.s8.bf16 %v2663_v28  ;;  %v2780_v39 = vld [vmem:[#allocation11 + $0x3e0] sm:$0xff] }
 0x480   :  { %v2371_v46 = vpop.f32.mrf.mxu1  ;;  %3165 = vmatprep.subr.bf16.mxu1 %v3001_v34  ;;  %v2662_v34 = vld [vmem:[#allocation11 + $0x30] sm:$0xff] }
 0x481   :  { %v2586_v48 = vmul.f32 %v2561_v38, %v2370_v26  ;;  %v2372_v32 = vadd.f32 %v2371_v46, %v2331_v44  ;;  %v4475_v36 = vpop.f32.mrf.mxu0  ;;  %v2976_v38 = vunpack.c.l.s8.bf16 %v2752_v23  ;;  %v2795_v44 = vunpack.c.l.s8.bf16 %v2663_v28  ;;  %v2659_v26 = vld [vmem:[#allocation11 + $0x18] sm:$0xff] }
 0x482   :  { %v2373_v43 = vpop.f32.mrf.mxu1  ;;  %v2794_v46 = vunpack.c.l.s8.bf16 %v2662_v34  ;;  %v2791_v25 = vunpack.c.h.s8.bf16 %v2659_v26  ;;  %v2679_v23 = vld [vmem:[#allocation11 + $0xb8] sm:$0xff] }
 0x483   :  { %v2636_v29 = vadd.f32 %v2611_v0, %v2586_v48  ;;  %v2587_v47 = vmul.f32 %v2565_v42, %v2372_v32  ;;  %v2414_v10 = vpop.f32.mrf.mxu0  ;;  %3166 = vmatpush1.bf16.msra.mxu1 %v3000_v12  ;;  %v2798_v0 = vunpack.c.h.s8.bf16 %v2662_v34  ;;  %v3036_v42 = vunpack.c.h.s8.bf16 %v2780_v39  ;;  %v2658_v48 = vld [vmem:[#allocation11 + $0x10] sm:$0xff]  ;;  %v2776_v43 = vld [vmem:[#allocation11 + $0x3c0] sm:$0xff] }
 0x484   :  { %v2374_v15 = vpop.f32.mrf.mxu1  ;;  %3167 = vmatprep.subr.bf16.mxu1 %v2997_v35  ;;  %v3033_v12 = vunpack.c.l.s8.bf16 %v2781_v41  ;;  %v2777_v35 = vld [vmem:[#allocation11 + $0x3c8] sm:$0xff]  ;;  %v3032_v32 = vunpack.c.l.s8.bf16 %v2780_v39  ;;  %v2687_v10 = vld [vmem:[#allocation11 + $0xf8] sm:$0xff] }
 0x485   :  { %v2637_v18 = vadd.f32 %v2615_v20, %v2587_v47  ;;  %v2415_v1 = vpop.f32.mrf.mxu0  ;;  %v2644_v14 = vmax.f32 %v2636_v29, 0.0  ;;  %v3029_v20 = vunpack.c.h.s8.bf16 %v2777_v35  ;;  %v2790_v29 = vunpack.c.h.s8.bf16 %v2658_v48 }
 0x486   :  { %v2787_v47 = vunpack.c.l.s8.bf16 %v2659_v26  ;;  %v3025_v15 = vunpack.c.l.s8.bf16 %v2777_v35  ;;  %v2847_v1 = vunpack.c.h.s8.bf16 %v2687_v10  ;;  %v2674_v26 = vld [vmem:[#allocation11 + $0x90] sm:$0xff] }
 0x487   :  { %v2645_v60 = vmax.f32 %v2637_v18, 0.0  ;;  %3168 = vmatpush1.bf16.msra.mxu1 %v2996_v49  ;;  %v4479_v17 = vpack.c.bf16 %v2644_v14, %v2644_v14  ;;  %v3028_v49 = vunpack.c.h.s8.bf16 %v2776_v43  ;;  %v2773_v18 = vld [vmem:[#allocation11 + $0x3a8] sm:$0xff]  ;;  %v3024_v14 = vunpack.c.l.s8.bf16 %v2776_v43 }
 0x488   :  { %3169 = vmatprep.subr.bf16.mxu1 %v2993_v50  ;;  %v2786_v50 = vunpack.c.l.s8.bf16 %v2658_v48  ;;  %v3021_v58 = vunpack.c.h.s8.bf16 %v2773_v18  ;;  %v2822_v48 = vunpack.c.h.s8.bf16 %v2674_v26 }
 0x489   :  { %v4477_v13 = vpack.c.bf16 %v2645_v60, %v2645_v60  ;;  %v2772_v60 = vld [vmem:[#allocation11 + $0x3a0] sm:$0xff] }
 0x48a   :  { %v3016_v40 = vunpack.c.l.s8.bf16 %v2772_v60 }
 0x48b   :  { %3154 = vmatprep.mubr.bf16.mxu0 %v4477_v13  ;;  %3170 = vmatpush1.bf16.msra.mxu1 %v2992_v62  ;;  %v2846_v62 = vunpack.c.h.s8.bf16 %v2686_v55 }
 0x48c   :  { %3155 = vmatmul.mubr.bf16.vlgmr.msra.gmra.mxu0 %v4479_v17  ;;  %3171 = vmatprep.subr.bf16.mxu1 %v2989_v37  ;;  %v2843_v37 = vunpack.c.l.s8.bf16 %v2687_v10 }
 0x48d   :  { %3205 = vmatpush1.bf16.msra.mxu0 %v2814_v2  ;;  %3236 = vmatprep.mubr.bf16.mxu0 %v4417_v21  ;;  %v2802_v21 = vunpack.c.l.s8.bf16 %v2666_v19  ;;  %v3020_v2 = vunpack.c.h.s8.bf16 %v2772_v60  ;;  %v2768_v19 = vld [vmem:[#allocation11 + $0x380] sm:$0xff] }
 0x48e   :  { %3206 = vmatprep.subr.bf16.mxu0 %v2811_v45  ;;  %v3017_v45 = vunpack.c.l.s8.bf16 %v2773_v18  ;;  %v3008_v41 = vunpack.c.l.s8.bf16 %v2768_v19 }
 0x48f   :  { %3172 = vmatpush1.bf16.msra.mxu1 %v2988_v6  ;;  %v2769_v6 = vld [vmem:[#allocation11 + $0x388] sm:$0xff] }
 0x490   :  { %3173 = vmatprep.subr.bf16.mxu1 %v2985_v8  ;;  %v2839_v8 = vunpack.c.h.s8.bf16 %v2683_v27 }
 0x491   :  { %3207 = vmatpush1.bf16.msra.mxu0 %v2810_v11  ;;  %v2682_v11 = vld [vmem:[#allocation11 + $0xd0] sm:$0xff] }
 0x492   :  { %3208 = vmatprep.subr.bf16.mxu0 %v2807_v16  ;;  %v3013_v16 = vunpack.c.h.s8.bf16 %v2769_v6  ;;  %v2834_v28 = vunpack.c.l.s8.bf16 %v2682_v11 }
 0x493   :  { %3174 = vmatpush1.bf16.msra.mxu1 %v2984_v51  ;;  %v2838_v51 = vunpack.c.h.s8.bf16 %v2682_v11  ;;  %v2722_v11 = vld [vmem:[#allocation11 + $0x210] sm:$0xff] }
 0x494   :  { %3175 = vmatprep.subr.bf16.mxu1 %v2981_v22  ;;  %v2835_v22 = vunpack.c.l.s8.bf16 %v2683_v27 }
 0x495   :  { %3209 = vmatpush1.bf16.msra.mxu0 %v2806_v24  ;;  %v3012_v24 = vunpack.c.h.s8.bf16 %v2768_v19  ;;  %v2751_v19 = vld [vmem:[#allocation11 + $0x2f8] sm:$0xff] }
 0x496   :  { %3210 = vmatprep.subr.bf16.mxu0 %v2803_v5  ;;  %v3009_v5 = vunpack.c.l.s8.bf16 %v2769_v6  ;;  %v2723_v6 = vld [vmem:[#allocation11 + $0x218] sm:$0xff] }
 0x497   :  { %3176 = vmatpush1.bf16.msra.mxu1 %v2980_v30  ;;  %v4485_v30 = vld [vmem:[#allocation11 + $0x178] sm:$0xff] }
 0x498   :  { %3177 = vmatprep.subr.bf16.mxu1 %v2977_v52  ;;  %v2831_v52 = vunpack.c.h.s8.bf16 %v2679_v23 }
 0x499   :  { %3211 = vmatpush1.bf16.msra.mxu0 %v2802_v21  ;;  %v2678_v21 = vld [vmem:[#allocation11 + $0xb0] sm:$0xff] }
 0x49a   :  { %3212 = vmatprep.subr.bf16.mxu0 %v2799_v31  ;;  %v2879_v31 = vunpack.c.h.s8.bf16 %v4485_v30  ;;  %v2830_v34 = vunpack.c.h.s8.bf16 %v2678_v21  ;;  %v2826_v39 = vunpack.c.l.s8.bf16 %v2678_v21 }
 0x49b   :  { %3178 = vmatpush1.bf16.msra.mxu1 %v2976_v38  ;;  %v2827_v38 = vunpack.c.l.s8.bf16 %v2679_v23  ;;  %v2750_v23 = vld [vmem:[#allocation11 + $0x2f0] sm:$0xff] }
 0x49c   :  { %3179 = vmatprep.subr.bf16.mxu1 %v3037_v9  ;;  %v2675_v9 = vld [vmem:[#allocation11 + $0x98] sm:$0xff] }
 0x49d   :  { %3213 = vmatpush1.bf16.msra.mxu0 %v2798_v0 }
 0x49e   :  { %3214 = vmatprep.subr.bf16.mxu0 %v2795_v44  ;;  %v2823_v44 = vunpack.c.h.s8.bf16 %v2675_v9 }
 0x49f   :  { %3180 = vmatpush2.bf16.msra.mxu1 %v3036_v42 }
 0x4a0   :  { %3181 = vmatprep.subr.bf16.mxu1 %v3033_v12 }
 0x4a1   :  { %3215 = vmatpush1.bf16.msra.mxu0 %v2794_v46 }
 0x4a2   :  { %3216 = vmatprep.subr.bf16.mxu0 %v2791_v25 }
 0x4a3   :  { %3182 = vmatpush2.bf16.msra.mxu1 %v3032_v32 }
 0x4a4   :  { %3183 = vmatprep.subr.bf16.mxu1 %v3029_v20  ;;  %v2819_v20 = vunpack.c.l.s8.bf16 %v2675_v9 }
 0x4a5   :  { %3217 = vmatpush1.bf16.msra.mxu0 %v2790_v29  ;;  %v2735_v29 = vld [vmem:[#allocation11 + $0x278] sm:$0xff] }
 0x4a6   :  { %3218 = vmatprep.subr.bf16.mxu0 %v2787_v47  ;;  %v2939_v18 = vunpack.c.l.s8.bf16 %v2735_v29 }
 0x4a7   :  { %3184 = vmatpush2.bf16.msra.mxu1 %v3028_v49  ;;  %v2818_v49 = vunpack.c.l.s8.bf16 %v2674_v26 }
 0x4a8   :  { %3185 = vmatprep.subr.bf16.mxu1 %v3025_v15  ;;  %v2734_v15 = vld [vmem:[#allocation11 + $0x270] sm:$0xff] }
 0x4a9   :  { %3219 = vmatpush1.bf16.msra.mxu0 %v2786_v50  ;;  %v2942_v50 = vunpack.c.h.s8.bf16 %v2734_v15  ;;  %v2938_v55 = vunpack.c.l.s8.bf16 %v2734_v15 }
 0x4aa   :  { %3220 = vmatprep.subr.bf16.mxu0 %v2847_v1  ;;  %v2731_v1 = vld [vmem:[#allocation11 + $0x258] sm:$0xff] }
 0x4ab   :  { %3186 = vmatpush2.bf16.msra.mxu1 %v3024_v14  ;;  %v2935_v14 = vunpack.c.h.s8.bf16 %v2731_v1 }
 0x4ac   :  { %3187 = vmatprep.subr.bf16.mxu1 %v3021_v58  ;;  %v2730_v58 = vld [vmem:[#allocation11 + $0x250] sm:$0xff] }
 0x4ad   :  { %3221 = vmatpush2.bf16.msra.mxu0 %v2846_v62  ;;  %v2934_v60 = vunpack.c.h.s8.bf16 %v2730_v58  ;;  %v2931_v62 = vunpack.c.l.s8.bf16 %v2731_v1  ;;  %v2930_v27 = vunpack.c.l.s8.bf16 %v2730_v58 }
 0x4ae   :  { %3222 = vmatprep.subr.bf16.mxu0 %v2843_v37  ;;  %v2727_v37 = vld [vmem:[#allocation11 + $0x238] sm:$0xff] }
 0x4af   :  { %3188 = vmatpush2.bf16.msra.mxu1 %v3020_v2  ;;  %v2927_v2 = vunpack.c.h.s8.bf16 %v2727_v37 }
 0x4b0   :  { %3189 = vmatprep.subr.bf16.mxu1 %v3017_v45  ;;  %v2726_v45 = vld [vmem:[#allocation11 + $0x230] sm:$0xff] }
 0x4b1   :  { %3223 = vmatpush2.bf16.msra.mxu0 %v2842_v3  ;;  %v2926_v3 = vunpack.c.h.s8.bf16 %v2726_v45 }
 0x4b2   :  { %3224 = vmatprep.subr.bf16.mxu0 %v2839_v8  ;;  %v2919_v8 = vunpack.c.h.s8.bf16 %v2723_v6 }
 0x4b3   :  { %3190 = vmatpush2.bf16.msra.mxu1 %v3016_v40  ;;  %v2918_v40 = vunpack.c.h.s8.bf16 %v2722_v11 }
 0x4b4   :  { %3191 = vmatprep.subr.bf16.mxu1 %v3013_v16  ;;  %v2915_v16 = vunpack.c.l.s8.bf16 %v2723_v6 }
 0x4b5   :  { %3225 = vmatpush2.bf16.msra.mxu0 %v2838_v51  ;;  %v2914_v51 = vunpack.c.l.s8.bf16 %v2722_v11  ;;  %v2875_v11 = vunpack.c.l.s8.bf16 %v4485_v30  ;;  %v3888_v30 = vld [vmem:[#allocation13 + $0x38] sm:$0xff]  }
 0x4b6   :  { %3226 = vmatprep.subr.bf16.mxu0 %v2835_v22  ;;  %v2975_v22 = vunpack.c.h.s8.bf16 %v2751_v19 }
 0x4b7   :  { %3192 = vmatpush2.bf16.msra.mxu1 %v3012_v24  ;;  %v2974_v24 = vunpack.c.h.s8.bf16 %v2750_v23 }
 0x4b8   :  { %3193 = vmatprep.subr.bf16.mxu1 %v3009_v5  ;;  %v2971_v5 = vunpack.c.l.s8.bf16 %v2751_v19 }
 0x4b9   :  { %3227 = vmatpush2.bf16.msra.mxu0 %v2834_v28  ;;  %v2747_v28 = vld [vmem:[#allocation11 + $0x2d8] sm:$0xff] }
 0x4ba   :  { %3228 = vmatprep.subr.bf16.mxu0 %v2831_v52  ;;  %v2970_v52 = vunpack.c.l.s8.bf16 %v2750_v23  ;;  %v2967_v21 = vunpack.c.h.s8.bf16 %v2747_v28 }
 0x4bb   :  { %3194 = vmatpush2.bf16.msra.mxu1 %v3008_v41  ;;  %v2746_v41 = vld [vmem:[#allocation11 + $0x2d0] sm:$0xff] }
 0x4bc   :  { %3245 = vmatprep.subr.bf16.mxu1 %v2879_v31  ;;  %v2966_v31 = vunpack.c.h.s8.bf16 %v2746_v41  ;;  %v2962_v9 = vunpack.c.l.s8.bf16 %v2746_v41  ;;  %v3891_v41 = vld [vmem:[#allocation13 + $0x68] sm:$0xff]  }
 0x4bd   :  { %3229 = vmatpush2.bf16.msra.mxu0 %v2830_v34  ;;  %v2963_v34 = vunpack.c.l.s8.bf16 %v2747_v28  ;;  %v2695_v28 = vld [vmem:[#allocation11 + $0x138] sm:$0xff] }
 0x4be   :  { %v2451_v0 = vpop.f32.mrf.mxu1  ;;  %3230 = vmatprep.subr.bf16.mxu0 %v2827_v38  ;;  %v2743_v38 = vld [vmem:[#allocation11 + $0x2b8] sm:$0xff] }
 0x4bf   :  { %v2452_v42 = vadd.f32 %v2451_v0, %v4469_v4  ;;  %v2492_v12 = vpop.f32.mrf.mxu0  ;;  %v2943_v4 = vunpack.c.h.s8.bf16 %v2735_v29  ;;  %v2742_v0 = vld [vmem:[#allocation11 + $0x2b0] sm:$0xff]  ;;  %v2955_v26 = vunpack.c.l.s8.bf16 %v2743_v38 }
 0x4c0   :  { %v4489_v46 = vpop.f32.mrf.mxu1 }
 0x4c1   :  { %v4491_v35 = vadd.f32 %v2492_v12, %v2452_v42  ;;  %v4493_v25 = vpop.f32.mrf.mxu0  ;;  %3231 = vmatpush2.bf16.msra.mxu0 %v2826_v39  ;;  %v2959_v39 = vunpack.c.h.s8.bf16 %v2743_v38  ;;  %v2454_v42 = vadd.f32 %v4489_v46, %v4475_v36  ;;  %v2739_v12 = vld [vmem:[#allocation11 + $0x298] sm:$0xff]  ;;  %v2859_v38 = vunpack.c.l.s8.bf16 %v2695_v28 }
 0x4c2   :  { %v2455_v32 = vpop.f32.mrf.mxu1  ;;  %3232 = vmatprep.subr.bf16.mxu0 %v2823_v44  ;;  %v2958_v44 = vunpack.c.h.s8.bf16 %v2742_v0  ;;  %v2951_v29 = vunpack.c.h.s8.bf16 %v2739_v12 }
 0x4c3   :  { %v2496_v43 = vpop.f32.mrf.mxu0 }
 0x4c4   :  { %v2456_v47 = vpop.f32.mrf.mxu1 }
 0x4c5   :  { %v2497_v10 = vpop.f32.mrf.mxu0  ;;  %3233 = vmatpush2.bf16.msra.mxu0 %v2822_v48  ;;  %v3919_v48 = vld [vmem:[%s4565_s7] sm:$0xff] }
 0x4c6   :  { %3234 = vmatprep.subr.bf16.mxu0 %v2819_v20  ;;  %v2569_v32 = vrot.slane %v3919_v48, %v4333_v61  ;;  %v2954_v20 = vunpack.c.l.s8.bf16 %v2742_v0  ;;  %v2738_v47 = vld [vmem:[#allocation11 + $0x290] sm:$0xff]  ;;  %v2495_v10 = vadd.f32 %v4493_v25, %v2454_v42  ;;  %v2573_v15 = vrot.slane %v3919_v48, %v4336_v63 }
 0x4c7   :  { %v2950_v58 = vunpack.c.h.s8.bf16 %v2738_v47  ;;  %v2947_v25 = vunpack.c.l.s8.bf16 %v2739_v12  ;;  %v2690_v42 = vld [vmem:[#allocation11 + $0x110] sm:$0xff]  ;;  %v3895_v12 = vld [vmem:[#allocation13 + $0x58] sm:$0xff]  }
 0x4c8   :  { %v2854_v48 = vunpack.c.h.s8.bf16 %v2690_v42 }
 0x4c9   :  { %3235 = vmatpush2.bf16.msra.mxu0 %v2818_v49 }
 0x4ca   :  { %3286 = vmatprep.subr.bf16.mxu0 %v2943_v4  ;;  %v3920_v4 = vld [vmem:[#allocation10] sm:$0xff] }
 0x4cb   :  { %v2619_v36 = vrot.slane %v3920_v4, %v4333_v61 }
 0x4cc   :  { %3237 = vmatmul.mubr.bf16.vlgmr.msra.gmra.mxu0 %v4436_v7  ;;  %v2923_v7 = vunpack.c.l.s8.bf16 %v2727_v37 }
 0x4cd   :  { %3287 = vmatpush1.bf16.msra.mxu0 %v2942_v50  ;;  %3318 = vmatprep.mubr.bf16.mxu0 %v4477_v13  ;;  %v2922_v13 = vunpack.c.l.s8.bf16 %v2726_v45  ;;  %v2946_v45 = vunpack.c.l.s8.bf16 %v2738_v47  ;;  %v2718_v47 = vld [vmem:[#allocation11 + $0x1f0] sm:$0xff] }
 0x4ce   :  { %3288 = vmatprep.subr.bf16.mxu0 %v2939_v18 }
 0x4d1   :  { %3289 = vmatpush1.bf16.msra.mxu0 %v2938_v55  ;;  %v2623_v55 = vrot.slane %v3920_v4, %v4336_v63  ;;  %v2715_v4 = vld [vmem:[#allocation11 + $0x1d8] sm:$0xff] }
 0x4d2   :  { %3290 = vmatprep.subr.bf16.mxu0 %v2935_v14 }
 0x4d5   :  { %3291 = vmatpush1.bf16.msra.mxu0 %v2934_v60 }
 0x4d6   :  { %3292 = vmatprep.subr.bf16.mxu0 %v2931_v62 }
 0x4d9   :  { %3293 = vmatpush1.bf16.msra.mxu0 %v2930_v27 }
 0x4da   :  { %3294 = vmatprep.subr.bf16.mxu0 %v2927_v2 }
 0x4dd   :  { %3295 = vmatpush1.bf16.msra.mxu0 %v2926_v3 }
 0x4de   :  { %3296 = vmatprep.subr.bf16.mxu0 %v2923_v7  ;;  %v2702_v7 = vld [vmem:[#allocation11 + $0x170] sm:$0xff] }
 0x4e1   :  { %3297 = vmatpush1.bf16.msra.mxu0 %v2922_v13  ;;  %v2878_v13 = vunpack.c.h.s8.bf16 %v2702_v7 }
 0x4e2   :  { %3298 = vmatprep.subr.bf16.mxu0 %v2919_v8 }
 0x4e5   :  { %3299 = vmatpush1.bf16.msra.mxu0 %v2918_v40  ;;  %v2699_v40 = vld [vmem:[#allocation11 + $0x158] sm:$0xff] }
 0x4e6   :  { %3300 = vmatprep.subr.bf16.mxu0 %v2915_v16  ;;  %v2874_v16 = vunpack.c.l.s8.bf16 %v2702_v7  ;;  %v2871_v19 = vunpack.c.h.s8.bf16 %v2699_v40  ;;  %v2867_v23 = vunpack.c.l.s8.bf16 %v2699_v40 }
 0x4e9   :  { %3301 = vmatpush1.bf16.msra.mxu0 %v2914_v51  ;;  %v2698_v51 = vld [vmem:[#allocation11 + $0x150] sm:$0xff] }
 0x4ea   :  { %3302 = vmatprep.subr.bf16.mxu0 %v2975_v22  ;;  %v2870_v22 = vunpack.c.h.s8.bf16 %v2698_v51 }
 0x4ed   :  { %3303 = vmatpush2.bf16.msra.mxu0 %v2974_v24  ;;  %v3887_v24 = vld [vmem:[#allocation13 + $0x78] sm:$0xff]  }
 0x4ee   :  { %3304 = vmatprep.subr.bf16.mxu0 %v2971_v5  ;;  %v3889_v5 = vld [vmem:[#allocation13 + $0x70] sm:$0xff]  }
 0x4f1   :  { %3305 = vmatpush2.bf16.msra.mxu0 %v2970_v52  ;;  %v3890_v52 = vld [vmem:[#allocation13 + $0x30] sm:$0xff]  }
 0x4f2   :  { %3306 = vmatprep.subr.bf16.mxu0 %v2967_v21  ;;  %v2863_v21 = vunpack.c.h.s8.bf16 %v2695_v28 }
 0x4f5   :  { %3307 = vmatpush2.bf16.msra.mxu0 %v2966_v31 }
 0x4f6   :  { %3308 = vmatprep.subr.bf16.mxu0 %v2963_v34  ;;  %v3892_v34 = vld [vmem:[#allocation13 + $0x28] sm:$0xff]  }
 0x4f9   :  { %3309 = vmatpush2.bf16.msra.mxu0 %v2962_v9  ;;  %v3893_v9 = vld [vmem:[#allocation13 + $0x60] sm:$0xff]  }
 0x4fa   :  { %3310 = vmatprep.subr.bf16.mxu0 %v2959_v39  ;;  %v2691_v39 = vld [vmem:[#allocation11 + $0x118] sm:$0xff] }
 0x4fd   :  { %3311 = vmatpush2.bf16.msra.mxu0 %v2958_v44  ;;  %v3894_v44 = vld [vmem:[#allocation13 + $0x20] sm:$0xff]  }
 0x4fe   :  { %v2533_v43 = vpop.f32.mrf.mxu1  ;;  %3312 = vmatprep.subr.bf16.mxu0 %v2955_v26  ;;  %v2855_v26 = vunpack.c.h.s8.bf16 %v2691_v39 }
 0x4ff   :  { %v2534_v49 = vadd.f32 %v2533_v43, %v4491_v35  ;;  %v4506_v46 = vpop.f32.mrf.mxu0  ;;  %v2850_v43 = vunpack.c.l.s8.bf16 %v2690_v42  ;;  %v3901_v42 = vld [vmem:[#allocation13 + $0x40] sm:$0xff]  }
 0x500   :  { %v2535_v50 = vpop.f32.mrf.mxu1 }
 0x501   :  { %v2588_v18 = vmul.f32 %v2569_v32, %v2534_v49  ;;  %v2536_v1 = vadd.f32 %v2535_v50, %v2495_v10  ;;  %v4510_v14 = vpop.f32.mrf.mxu0  ;;  %3313 = vmatpush2.bf16.msra.mxu0 %v2954_v20  ;;  %v2851_v32 = vunpack.c.l.s8.bf16 %v2691_v39  ;;  %v2719_v20 = vld [vmem:[#allocation11 + $0x1f8] sm:$0xff]  ;;  %v2910_v10 = vunpack.c.h.s8.bf16 %v2718_v47  ;;  %v2714_v50 = vld [vmem:[#allocation11 + $0x1d0] sm:$0xff] }
 0x502   :  { %v2537_v60 = vpop.f32.mrf.mxu1  ;;  %3314 = vmatprep.subr.bf16.mxu0 %v2951_v29  ;;  %v2911_v29 = vunpack.c.h.s8.bf16 %v2719_v20  ;;  %v2907_v49 = vunpack.c.l.s8.bf16 %v2719_v20 }
 0x503   :  { %v2638_v35 = vadd.f32 %v2619_v36, %v2588_v18  ;;  %v2589_v62 = vmul.f32 %v2573_v15, %v2536_v1  ;;  %v3078_v37 = vpop.f32.mrf.mxu0  ;;  %v2906_v36 = vunpack.c.l.s8.bf16 %v2718_v47  ;;  %v2903_v15 = vunpack.c.h.s8.bf16 %v2715_v4 }
 0x504   :  { %v2538_v61 = vpop.f32.mrf.mxu1  ;;  %v2902_v18 = vunpack.c.h.s8.bf16 %v2714_v50  ;;  %v2899_v1 = vunpack.c.l.s8.bf16 %v2715_v4  ;;  %v2707_v37 = vld [vmem:[#allocation11 + $0x198] sm:$0xff] }
 0x505   :  { %v2639_v27 = vadd.f32 %v2623_v55, %v2589_v62  ;;  %v3079_v2 = vpop.f32.mrf.mxu0  ;;  %3315 = vmatpush2.bf16.msra.mxu0 %v2950_v58  ;;  %v2646_v3 = vmax.f32 %v2638_v35, 0.0  ;;  %v2711_v55 = vld [vmem:[#allocation11 + $0x1b8] sm:$0xff]  ;;  %v2898_v58 = vunpack.c.l.s8.bf16 %v2714_v50  ;;  %v2883_v40 = vunpack.c.l.s8.bf16 %v2707_v37 }
 0x506   :  { %3316 = vmatprep.subr.bf16.mxu0 %v2947_v25  ;;  %v2895_v60 = vunpack.c.h.s8.bf16 %v2711_v55  ;;  %v2710_v25 = vld [vmem:[#allocation11 + $0x1b0] sm:$0xff]  ;;  %v2891_v62 = vunpack.c.l.s8.bf16 %v2711_v55  ;;  %v2887_v2 = vunpack.c.h.s8.bf16 %v2707_v37 }
 0x507   :  { %v2647_v6 = vmax.f32 %v2639_v27, 0.0  ;;  %v4514_v8 = vpack.c.bf16 %v2646_v3, %v2646_v3  ;;  %v2894_v35 = vunpack.c.h.s8.bf16 %v2710_v25  ;;  %v2890_v61 = vunpack.c.l.s8.bf16 %v2710_v25 }
 0x509   :  { %3317 = vmatpush2.bf16.msra.mxu0 %v2946_v45  ;;  %v4512_v63 = vpack.c.bf16 %v2647_v6, %v2647_v6  ;;  %v2706_v45 = vld [vmem:[#allocation11 + $0x190] sm:$0xff] }
 0x50a   :  { %3827 = vmatprep.subr.bf16.mxu0 %v3887_v24 }
 0x50b   :  { %3195 = vmatprep.mubr.bf16.mxu1 %v4512_v63 }
 0x50c   :  { %3319 = vmatmul.mubr.bf16.vlgmr.msra.gmra.mxu0 %v4479_v17  ;;  %3196 = vmatmul.mubr.bf16.vlgmr.msra.gmra.mxu1 %v4514_v8  ;;  %v2866_v17 = vunpack.c.l.s8.bf16 %v2698_v51  ;;  %v2882_v51 = vunpack.c.l.s8.bf16 %v2706_v45 }
 0x50d   :  { %3246 = vmatpush1.bf16.msra.mxu1 %v2878_v13  ;;  %3277 = vmatprep.mubr.bf16.mxu1 %v4439_v53  ;;  %v2694_v53 = vld [vmem:[#allocation11 + $0x130] sm:$0xff]  ;;  %v2886_v13 = vunpack.c.h.s8.bf16 %v2706_v45 }
 0x50e   :  { %3247 = vmatprep.subr.bf16.mxu1 %v2875_v11  ;;  %3828 = vmatpush3.bf16.msra.mxu0 %v3888_v30  ;;  %v2862_v31 = vunpack.c.h.s8.bf16 %v2694_v53  ;;  %v2858_v0 = vunpack.c.l.s8.bf16 %v2694_v53  ;;  %v2762_v53 = vld [vmem:[#allocation11 + $0x350] sm:$0xff] }
 0x50f   :  { %3829 = vmatprep.subr.bf16.mxu0 %v3889_v5  ;;  %v3896_v5 = vld [vmem:[#allocation13 + $0x18] sm:$0xff]  }
 0x511   :  { %3248 = vmatpush1.bf16.msra.mxu1 %v2874_v16  ;;  %v2767_v16 = vld [vmem:[#allocation11 + $0x378] sm:$0xff] }
 0x512   :  { %3249 = vmatprep.subr.bf16.mxu1 %v2871_v19  ;;  %3830 = vmatpush3.bf16.msra.mxu0 %v3890_v52  ;;  %v3003_v30 = vunpack.c.l.s8.bf16 %v2767_v16 }
 0x513   :  { %3831 = vmatprep.subr.bf16.mxu0 %v3891_v41  ;;  %v3897_v41 = vld [vmem:[#allocation13 + $0x50] sm:$0xff]  }
 0x515   :  { %3250 = vmatpush1.bf16.msra.mxu1 %v2870_v22  ;;  %v3007_v22 = vunpack.c.h.s8.bf16 %v2767_v16  ;;  %v2770_v16 = vld [vmem:[#allocation11 + $0x390] sm:$0xff] }
 0x516   :  { %3251 = vmatprep.subr.bf16.mxu1 %v2867_v23  ;;  %3832 = vmatpush3.bf16.msra.mxu0 %v3892_v34  ;;  %v2766_v23 = vld [vmem:[#allocation11 + $0x370] sm:$0xff] }
 0x517   :  { %3833 = vmatprep.subr.bf16.mxu0 %v3893_v9  ;;  %v3006_v24 = vunpack.c.h.s8.bf16 %v2766_v23  ;;  %v3898_v34 = vld [vmem:[#allocation13 + $0x10] sm:$0xff]  }
 0x519   :  { %3252 = vmatpush1.bf16.msra.mxu1 %v2866_v17  ;;  %v3002_v17 = vunpack.c.l.s8.bf16 %v2766_v23 }
 0x51a   :  { %3253 = vmatprep.subr.bf16.mxu1 %v2863_v21  ;;  %3834 = vmatpush3.bf16.msra.mxu0 %v3894_v44  ;;  %v3900_v44 = vld [vmem:[#allocation13 + $0x8] sm:$0xff]  }
 0x51b   :  { %3835 = vmatprep.subr.bf16.mxu0 %v3895_v12 }
 0x51d   :  { %3254 = vmatpush1.bf16.msra.mxu1 %v2862_v31 }
 0x51e   :  { %3255 = vmatprep.subr.bf16.mxu1 %v2859_v38  ;;  %3836 = vmatpush3.bf16.msra.mxu0 %v3896_v5  ;;  %v3903_v5 = vld [vmem:[#allocation13 + $0xf8] sm:$0xff]  }
 0x51f   :  { %3837 = vmatprep.subr.bf16.mxu0 %v3897_v41  ;;  %v3909_v41 = vld [vmem:[#allocation13 + $0xe0] sm:$0xff]  }
 0x521   :  { %3256 = vmatpush1.bf16.msra.mxu1 %v2858_v0  ;;  %v3899_v0 = vld [vmem:[#allocation13 + $0x48] sm:$0xff]  }
 0x522   :  { %3257 = vmatprep.subr.bf16.mxu1 %v2855_v26  ;;  %3838 = vmatpush3.bf16.msra.mxu0 %v3898_v34  ;;  %v2994_v26 = vunpack.c.l.s8.bf16 %v2762_v53  ;;  %v3910_v34 = vld [vmem:[#allocation13 + $0xa0] sm:$0xff]  }
 0x523   :  { %3839 = vmatprep.subr.bf16.mxu0 %v3899_v0 }
 0x525   :  { %3258 = vmatpush1.bf16.msra.mxu1 %v2854_v48  ;;  %v2758_v48 = vld [vmem:[#allocation11 + $0x330] sm:$0xff] }
 0x526   :  { %3259 = vmatprep.subr.bf16.mxu1 %v2851_v32  ;;  %3840 = vmatpush3.bf16.msra.mxu0 %v3900_v44  ;;  %v3902_v32 = vld [vmem:[#allocation13] sm:$0xff]   ;;  %v2990_v20 = vunpack.c.h.s8.bf16 %v2758_v48  ;;  %v2986_v47 = vunpack.c.l.s8.bf16 %v2758_v48 }
 0x527   :  { %3841 = vmatprep.subr.bf16.mxu0 %v3901_v42 }
 0x529   :  { %3260 = vmatpush1.bf16.msra.mxu1 %v2850_v43 }
 0x52a   :  { %3261 = vmatprep.subr.bf16.mxu1 %v2911_v29  ;;  %3842 = vmatpush3.bf16.msra.mxu0 %v3902_v32  ;;  %v2755_v29 = vld [vmem:[#allocation11 + $0x318] sm:$0xff] }
 0x52d   :  { %3262 = vmatpush2.bf16.msra.mxu1 %v2910_v10  ;;  %v2983_v10 = vunpack.c.h.s8.bf16 %v2755_v29 }
 0x52e   :  { %3263 = vmatprep.subr.bf16.mxu1 %v2907_v49  ;;  %v2754_v49 = vld [vmem:[#allocation11 + $0x310] sm:$0xff] }
 0x52f   :  { %v2982_v4 = vunpack.c.h.s8.bf16 %v2754_v49  ;;  %v2978_v50 = vunpack.c.l.s8.bf16 %v2754_v49 }
 0x531   :  { %3264 = vmatpush2.bf16.msra.mxu1 %v2906_v36  ;;  %v2979_v36 = vunpack.c.l.s8.bf16 %v2755_v29 }
 0x532   :  { %3265 = vmatprep.subr.bf16.mxu1 %v2903_v15  ;;  %v2783_v15 = vld [vmem:[#allocation11 + $0x3f8] sm:$0xff] }
 0x535   :  { %3266 = vmatpush2.bf16.msra.mxu1 %v2902_v18  ;;  %v3039_v18 = vunpack.c.h.s8.bf16 %v2783_v15 }
 0x536   :  { %3267 = vmatprep.subr.bf16.mxu1 %v2899_v1  ;;  %v2782_v1 = vld [vmem:[#allocation11 + $0x3f0] sm:$0xff] }
 0x537   :  { %v3038_v55 = vunpack.c.h.s8.bf16 %v2782_v1  ;;  %v3034_v25 = vunpack.c.l.s8.bf16 %v2782_v1 }
 0x539   :  { %3268 = vmatpush2.bf16.msra.mxu1 %v2898_v58  ;;  %v3035_v58 = vunpack.c.l.s8.bf16 %v2783_v15 }
 0x53a   :  { %3269 = vmatprep.subr.bf16.mxu1 %v2895_v60  ;;  %v2779_v60 = vld [vmem:[#allocation11 + $0x3d8] sm:$0xff] }
 0x53d   :  { %3270 = vmatpush2.bf16.msra.mxu1 %v2894_v35  ;;  %v3031_v35 = vunpack.c.h.s8.bf16 %v2779_v60 }
 0x53e   :  { %v3115_v27 = vpop.f32.mrf.mxu1  ;;  %3271 = vmatprep.subr.bf16.mxu1 %v2891_v62  ;;  %v2778_v62 = vld [vmem:[#allocation11 + $0x3d0] sm:$0xff] }
 0x53f   :  { %v3116_v3 = vadd.f32 %v3115_v27, %v4506_v46  ;;  %v2763_v46 = vld [vmem:[#allocation11 + $0x358] sm:$0xff]  ;;  %v3030_v37 = vunpack.c.h.s8.bf16 %v2778_v62 }
 0x540   :  { %v3117_v7 = vpop.f32.mrf.mxu1  ;;  %v2999_v21 = vunpack.c.h.s8.bf16 %v2763_v46  ;;  %v2995_v39 = vunpack.c.l.s8.bf16 %v2763_v46  ;;  %v2775_v27 = vld [vmem:[#allocation11 + $0x3b8] sm:$0xff] }
 0x541   :  { %v3118_v6 = vadd.f32 %v3117_v7, %v4510_v14  ;;  %3272 = vmatpush2.bf16.msra.mxu1 %v2890_v61  ;;  %v3027_v61 = vunpack.c.l.s8.bf16 %v2779_v60  ;;  %v3023_v45 = vunpack.c.h.s8.bf16 %v2775_v27  ;;  %v3918_v60 = vld [vmem:[#allocation13 + $0x80] sm:$0xff]  }
 0x542   :  { %v3119_v11 = vpop.f32.mrf.mxu1  ;;  %3273 = vmatprep.subr.bf16.mxu1 %v2887_v2  ;;  %v3026_v2 = vunpack.c.l.s8.bf16 %v2778_v62 }
 0x544   :  { %v3120_v19 = vpop.f32.mrf.mxu1 }
 0x545   :  { %3274 = vmatpush2.bf16.msra.mxu1 %v2886_v13  ;;  %v2771_v13 = vld [vmem:[#allocation11 + $0x398] sm:$0xff]  ;;  %v3014_v19 = vunpack.c.h.s8.bf16 %v2770_v16 }
 0x546   :  { %3275 = vmatprep.subr.bf16.mxu1 %v2883_v40  ;;  %v3015_v40 = vunpack.c.h.s8.bf16 %v2771_v13 }
 0x549   :  { %3276 = vmatpush2.bf16.msra.mxu1 %v2882_v51  ;;  %v3011_v51 = vunpack.c.l.s8.bf16 %v2771_v13 }
 0x54a   :  { %3327 = vmatprep.subr.bf16.mxu1 %v3007_v22  ;;  %v3010_v22 = vunpack.c.l.s8.bf16 %v2770_v16 }
 0x54c   :  { %3278 = vmatmul.mubr.bf16.vlgmr.msra.gmra.mxu1 %v4460_v33  ;;  %v3156_v14 = vpop.f32.mrf.mxu0  ;;  %v2998_v33 = vunpack.c.h.s8.bf16 %v2762_v53  ;;  %v3908_v53 = vld [vmem:[#allocation13 + $0xa8] sm:$0xff]  }
 0x54d   :  { %v4524_v28 = vadd.f32 %v3156_v14, %v3116_v3  ;;  %3328 = vmatpush1.bf16.msra.mxu1 %v3006_v24  ;;  %3359 = vmatprep.mubr.bf16.mxu1 %v4512_v63  ;;  %v2759_v63 = vld [vmem:[#allocation11 + $0x338] sm:$0xff]  ;;  %v2774_v3 = vld [vmem:[#allocation11 + $0x3b0] sm:$0xff] }
 0x54e   :  { %v3158_v52 = vpop.f32.mrf.mxu0  ;;  %3329 = vmatprep.subr.bf16.mxu1 %v3003_v30  ;;  %v2991_v12 = vunpack.c.h.s8.bf16 %v2759_v63  ;;  %v2987_v43 = vunpack.c.l.s8.bf16 %v2759_v63  ;;  %v3022_v7 = vunpack.c.h.s8.bf16 %v2774_v3  ;;  %v3018_v11 = vunpack.c.l.s8.bf16 %v2774_v3  ;;  %v3904_v14 = vld [vmem:[#allocation13 + $0xb8] sm:$0xff]  }
 0x54f   :  { %v4527_v31 = vadd.f32 %v3158_v52, %v3118_v6  ;;  %v3019_v6 = vunpack.c.l.s8.bf16 %v2775_v27  ;;  %v3906_v52 = vld [vmem:[#allocation13 + $0xb0] sm:$0xff]  }
 0x550   :  { %v3160_v38 = vpop.f32.mrf.mxu0 }
 0x551   :  { %3330 = vmatpush1.bf16.msra.mxu1 %v3002_v17  ;;  %v3905_v17 = vld [vmem:[#allocation13 + $0xf0] sm:$0xff]   ;;  %v3912_v38 = vld [vmem:[#allocation13 + $0x98] sm:$0xff]  }
 0x552   :  { %v3161_v9 = vpop.f32.mrf.mxu0  ;;  %3331 = vmatprep.subr.bf16.mxu1 %v2999_v21  ;;  %v3907_v21 = vld [vmem:[#allocation13 + $0xe8] sm:$0xff]  }
 0x553   :  { %v3394_v9 = vld [vmem:[%s4569_s11] sm:$0xf] }
 0x555   :  { %3332 = vmatpush1.bf16.msra.mxu1 %v2998_v33  ;;  %v3368_v33 = vld [vmem:[%s4568_s10] sm:$0xf] }
 0x556   :  { %3333 = vmatprep.subr.bf16.mxu1 %v2995_v39  ;;  %v3373_v39 = vrot.slane %v3368_v33, %v4220_v54  ;;  %v3377_v42 = vrot.slane %v3368_v33, %v4223_v56 }
 0x559   :  { %3334 = vmatpush1.bf16.msra.mxu1 %v2994_v26  ;;  %v3399_v26 = vrot.slane %v3394_v9, %v4220_v54 }
 0x55a   :  { %3335 = vmatprep.subr.bf16.mxu1 %v2991_v12  ;;  %v3913_v12 = vld [vmem:[#allocation13 + $0xd0] sm:$0xff]  }
 0x55d   :  { %3336 = vmatpush1.bf16.msra.mxu1 %v2990_v20  ;;  %v3914_v20 = vld [vmem:[#allocation13 + $0x90] sm:$0xff]  }
 0x55e   :  { %3337 = vmatprep.subr.bf16.mxu1 %v2987_v43 }
 0x561   :  { %3338 = vmatpush1.bf16.msra.mxu1 %v2986_v47  ;;  %v3403_v47 = vrot.slane %v3394_v9, %v4223_v56 }
 0x562   :  { %3339 = vmatprep.subr.bf16.mxu1 %v2983_v10 }
 0x565   :  { %3340 = vmatpush1.bf16.msra.mxu1 %v2982_v4 }
 0x566   :  { %3341 = vmatprep.subr.bf16.mxu1 %v2979_v36 }
 0x569   :  { %3342 = vmatpush1.bf16.msra.mxu1 %v2978_v50  ;;  %v3916_v50 = vld [vmem:[#allocation13 + $0x88] sm:$0xff]  }
 0x56a   :  { %3343 = vmatprep.subr.bf16.mxu1 %v3039_v18 }
 0x56d   :  { %3344 = vmatpush2.bf16.msra.mxu1 %v3038_v55 }
 0x56e   :  { %3345 = vmatprep.subr.bf16.mxu1 %v3035_v58  ;;  %v3917_v58 = vld [vmem:[#allocation13 + $0xc0] sm:$0xff]  }
 0x571   :  { %3346 = vmatpush2.bf16.msra.mxu1 %v3034_v25 }
 0x572   :  { %3347 = vmatprep.subr.bf16.mxu1 %v3031_v35 }
 0x575   :  { %3348 = vmatpush2.bf16.msra.mxu1 %v3030_v37 }
 0x576   :  { %3349 = vmatprep.subr.bf16.mxu1 %v3027_v61 }
 0x579   :  { %3350 = vmatpush2.bf16.msra.mxu1 %v3026_v2 }
 0x57a   :  { %3351 = vmatprep.subr.bf16.mxu1 %v3023_v45  ;;  %v3381_v45 = vrot.slane %v3368_v33, %v4226_v57 }
 0x57d   :  { %3352 = vmatpush2.bf16.msra.mxu1 %v3022_v7 }
 0x57e   :  { %3353 = vmatprep.subr.bf16.mxu1 %v3019_v6  ;;  %v3407_v6 = vrot.slane %v3394_v9, %v4226_v57 }
 0x581   :  { %3354 = vmatpush2.bf16.msra.mxu1 %v3018_v11  ;;  %v3385_v11 = vrot.slane %v3368_v33, %v4230_v59 }
 0x582   :  { %3355 = vmatprep.subr.bf16.mxu1 %v3015_v40 }
 0x585   :  { %3356 = vmatpush2.bf16.msra.mxu1 %v3014_v19 }
 0x586   :  { %3357 = vmatprep.subr.bf16.mxu1 %v3011_v51  ;;  %v3411_v51 = vrot.slane %v3394_v9, %v4230_v59  ;;  %v3794_v59 = vld [vmem:[%s4571_s13] ss:$0 sm:$0xff] }
 0x589   :  { %3358 = vmatpush2.bf16.msra.mxu1 %v3010_v22 }
 0x58a   :  { %3849 = vmatprep.subr.bf16.mxu1 %v3903_v5 }
 0x58c   :  { %v4529_v23 = vpop.f32.mrf.mxu0  ;;  %3360 = vmatmul.mubr.bf16.vlgmr.msra.gmra.mxu1 %v4514_v8  ;;  %v3911_v8 = vld [vmem:[#allocation13 + $0xd8] sm:$0xff]  }
 0x58d   :  { %3850 = vmatpush3.bf16.msra.mxu1 %v3904_v14 }
 0x58e   :  { %v4532_v24 = vpop.f32.mrf.mxu0  ;;  %3851 = vmatprep.subr.bf16.mxu1 %v3905_v17 }
 0x590   :  { %v3242_v30 = vpop.f32.mrf.mxu0 }
 0x591   :  { %3852 = vmatpush3.bf16.msra.mxu1 %v3906_v52 }
 0x592   :  { %v3243_v46 = vpop.f32.mrf.mxu0  ;;  %3853 = vmatprep.subr.bf16.mxu1 %v3907_v21 }
 0x595   :  { %3854 = vmatpush3.bf16.msra.mxu1 %v3908_v53 }
 0x596   :  { %3855 = vmatprep.subr.bf16.mxu1 %v3909_v41 }
 0x599   :  { %3856 = vmatpush3.bf16.msra.mxu1 %v3910_v34 }
 0x59a   :  { %3857 = vmatprep.subr.bf16.mxu1 %v3911_v8 }
 0x59d   :  { %3858 = vmatpush3.bf16.msra.mxu1 %v3912_v38 }
 0x59e   :  { %3859 = vmatprep.subr.bf16.mxu1 %v3913_v12 }
 0x5a1   :  { %3860 = vmatpush3.bf16.msra.mxu1 %v3914_v20 }
 0x5cc   :  { %v3320_v0 = vpop.f32.mrf.mxu0  ;;  %v3197_v63 = vpop.f32.mrf.mxu1 }
 0x5cd   :  { %v3198_v44 = vadd.f32 %v3197_v63, %v4524_v28  ;;  %v3915_v28 = vld [vmem:[#allocation13 + $0xc8] sm:$0xff]  }
 0x5ce   :  { %v3322_v48 = vpop.f32.mrf.mxu0  ;;  %v3199_v32 = vpop.f32.mrf.mxu1  ;;  %3861 = vmatprep.subr.bf16.mxu1 %v3915_v28 }
 0x5cf   :  { %v3390_v43 = vmul.f32 %v3373_v39, %v3198_v44  ;;  %v3200_v29 = vadd.f32 %v3199_v32, %v4527_v31  ;;  %3862 = vmatpush3.bf16.msra.mxu1 %v3916_v50 }
 0x5d0   :  { %v3324_v10 = vpop.f32.mrf.mxu0  ;;  %v3201_v49 = vpop.f32.mrf.mxu1  ;;  %3863 = vmatprep.subr.bf16.mxu1 %v3917_v58 }
 0x5d1   :  { %v3416_v4 = vadd.f32 %v3399_v26, %v3390_v43  ;;  %v3391_v36 = vmul.f32 %v3377_v42, %v3200_v29 }
 0x5d2   :  { %v3325_v15 = vpop.f32.mrf.mxu0  ;;  %v3202_v54 = vpop.f32.mrf.mxu1 }
 0x5d3   :  { %v3417_v18 = vadd.f32 %v3403_v47, %v3391_v36  ;;  %v3420_v1 = vmax.f32 %v3416_v4, 0.0  ;;  %3864 = vmatpush3.bf16.msra.mxu1 %v3918_v60 }
 0x5d5   :  { %v3421_v55 = vmax.f32 %v3417_v18, 0.0  ;;  %v3424_v56 = vpack.c.bf16 %v3420_v1, %v3420_v1 }
 0x5d7   :  { %v3425_v31 = vpack.c.bf16 %v3421_v55, %v3421_v55 }
 0x5d9   :  { %3723 = vmatprep.mubr.bf16.mxu0 %v3425_v31 }
 0x5da   :  { %3724 = vmatmul.mubr.bf16.vlgmr.msra.gmra.mxu0 %v3424_v56 }
 0x60c   :  { %v3279_v25 = vpop.f32.mrf.mxu1 }
 0x60d   :  { %v3280_v61 = vadd.f32 %v3279_v25, %v4529_v23 }
 0x60e   :  { %v3281_v35 = vpop.f32.mrf.mxu1 }
 0x60f   :  { %v3282_v27 = vadd.f32 %v3281_v35, %v4532_v24  ;;  %v3321_v2 = vadd.f32 %v3320_v0, %v3280_v61 }
 0x610   :  { %v3283_v62 = vpop.f32.mrf.mxu1 }
 0x611   :  { %v3323_v13 = vadd.f32 %v3322_v48, %v3282_v27 }
 0x612   :  { %v3284_v37 = vpop.f32.mrf.mxu1 }
 0x64c   :  { %v3361_v3 = vpop.f32.mrf.mxu1 }
 0x64d   :  { %v3362_v7 = vadd.f32 %v3361_v3, %v3321_v2 }
 0x64e   :  { %v3363_v40 = vpop.f32.mrf.mxu1 }
 0x64f   :  { %v3392_v16 = vmul.f32 %v3381_v45, %v3362_v7  ;;  %v3364_v19 = vadd.f32 %v3363_v40, %v3323_v13 }
 0x650   :  { %v3365_v22 = vpop.f32.mrf.mxu1 }
 0x651   :  { %v3418_v30 = vadd.f32 %v3407_v6, %v3392_v16  ;;  %v3393_v23 = vmul.f32 %v3385_v11, %v3364_v19 }
 0x652   :  { %v3366_v46 = vpop.f32.mrf.mxu1 }
 0x653   :  { %v3419_v24 = vadd.f32 %v3411_v51, %v3393_v23  ;;  %v3422_v5 = vmax.f32 %v3418_v30, 0.0 }
 0x655   :  { %v3423_v14 = vmax.f32 %v3419_v24, 0.0  ;;  %v3426_v52 = vpack.c.bf16 %v3422_v5, %v3422_v5 }
 0x657   :  { %v3427_v17 = vpack.c.bf16 %v3423_v14, %v3423_v14 }
 0x659   :  { %3763 = vmatprep.mubr.bf16.mxu1 %v3427_v17 }
 0x65a   :  { %3764 = vmatmul.mubr.bf16.vlgmr.msra.gmra.mxu1 %v3426_v52 }
 0x69a   :  { %v3843_v57 = vpop.f32.mrf.mxu0 }
 0x69c   :  { %v3844_v21 = vpop.f32.mrf.mxu0 }
 0x69d   :  { %v3845_v53 = vadd.f32 %v3844_v21, %v3843_v57 }
 0x69e   :  { %v3846_v41 = vpop.f32.mrf.mxu0 }
 0x69f   :  { %v3726_v33 = vadd.f32 %v3845_v53, %v3794_v59 }
 0x6a0   :  { %v3847_v34 = vpop.f32.mrf.mxu0 }
 0x71a   :  { %v3865_v8 = vpop.f32.mrf.mxu1 }
 0x71c   :  { %v3866_v38 = vpop.f32.mrf.mxu1 }
 0x71d   :  { %v3867_v9 = vadd.f32 %v3866_v38, %v3865_v8 }
 0x71e   :  { %v3868_v39 = vpop.f32.mrf.mxu1 }
 0x71f   :  { %v3766_v0 = vadd.f32 %v3867_v9, %v3726_v33 }
 0x720   :  { %v3869_v63 = vpop.f32.mrf.mxu1 }
 0x721   :  { %3771 = vst [vmem:[#allocation14] sm:$0xff] %v3766_v0 }
 0x722   :  { %4072 = shalt.err (!%p4069_p11)
}
 0x723   :  { %3781 = dma.vmem_to_hbm [thread:$0]  %s3779_s23, 128, %s4572_s14, [#allocation4]  }
 0x724   :  { %4089 = dma.done.wait [#allocation4], 128  }
 0x725   :  { %4090 = vsyncadd [#allocation4], 4294967168 }
 0x726   :  { %3785 = vsyncpa [#allocation3], 1 }
 0x727   :  { %3786 = vsyncpa [#allocation6], 1 }
 0x728   :  { %3787 = vsyncpa [#allocation9], 1 }
 0x729   :  { %3788 = vsyncpa [#allocation12], 1 }
 0x72a   :  { %3789 = vsyncpa [#allocation4], 1 }

// kernel: tpu_custom_call.1
= control target key start
LH: loop header
LB: loop body
LE: loop exit
PB: predicated region body
PF: predicated region fallthrough
CT: control target
= control target key end

     0   :  { %19 = vsyncpa [#allocation3], 0  ;;  %s4558_s0 = inlined_call_operand.vmem [shape: f32[8,4], index: 0, kind: input, shape index: {}]   ;;  %s4559_s1 = inlined_call_operand.vmem [shape: bf16[4,512], index: 1, kind: input, shape index: {}]   ;;  %s4560_s2 = inlined_call_operand.hbm [shape: f32[1,512], index: 2, kind: input, shape index: {}]   ;;  %s4561_s3 = inlined_call_operand.hbm [shape: s8[512,1024], index: 3, kind: input, shape index: {}]   ;;  %s4562_s4 = inlined_call_operand.vmem [shape: f32[1,1024], index: 4, kind: input, shape index: {}]   ;;  %s4563_s5 = inlined_call_operand.hbm [shape: f32[1,1024], index: 5, kind: input, shape index: {}]   ;;  %s4564_s6 = inlined_call_operand.hbm [shape: s8[1024,1024], index: 6, kind: input, shape index: {}]   ;;  %s4565_s7 = inlined_call_operand.vmem [shape: f32[1,1024], index: 7, kind: input, shape index: {}]   ;;  %s4566_s8 = inlined_call_operand.hbm [shape: f32[1,1024], index: 8, kind: input, shape index: {}]   ;;  %s4567_s9 = inlined_call_operand.hbm [shape: s8[1024,512], index: 9, kind: input, shape index: {}]   ;;  %s4568_s10 = inlined_call_operand.vmem [shape: f32[1,512], index: 10, kind: input, shape index: {}]   ;;  %s4569_s11 = inlined_call_operand.vmem [shape: f32[1,512], index: 11, kind: input, shape index: {}]   ;;  %s4570_s12 = inlined_call_operand.hbm [shape: bf16[512,128], index: 12, kind: input, shape index: {}]   ;;  %s4571_s13 = inlined_call_operand.vmem [shape: f32[1,128], index: 13, kind: input, shape index: {}]   ;;  %s4572_s14 = inlined_call_operand.hbm [shape: f32[8,128], index: 14, kind: output, shape index: {}]  }
   0x1   :  { %20 = vsyncpa [#allocation6], 0 }
   0x2   :  { %21 = vsyncpa [#allocation9], 0 }
   0x3   :  { %22 = vsyncpa [#allocation12], 0 }
   0x4   :  { %23 = vsyncpa [#allocation4], 0  ;;  %s4091_s29 = smov [#allocation5]  }
   0x5   :  { %s43_s30 = sshll.u32 %s4091_s29, 4  ;;  %s44_s30 = int_to_ptr.vmem [resolvable:$true] %s43_s30 }
   0x6   :  { %s3929_s15 = scalar_lea.vmem %s44_s30, 16384  ;;  %p3934_p1 = scmp.lt.s32.totalorder %s44_s30, %s44_s30 }
   0x7   :  { %p3930_p0 = scmp.ne.s32.totalorder %s44_s30, %s3929_s15  ;;  %p3935_p2 = scmp.lt.s32.totalorder %s3929_s15, %s3929_s15 }
   0x9   :  { %p3936_p3 = por %p3935_p2, %p3934_p1 }
   0xb   :  { %p3937_p4 = pnand %p3936_p3, %p3930_p0 }
   0xd   :  { %3940 = shalt.err (!%p3937_p4)
}
   0xe   :  { %s4092_s16 = smov 1024   ;;  %s4093_s17 = smov 64  }
   0xf   :  { %49 = dma.hbm_to_vmem [thread:$0]  %s4561_s3, 16384, %s44_s30, [#allocation6], %s4092_s16, %s4092_s16, %s4093_s17  }
  0x10   :  { %s4094_s20 = smov [#allocation8]   ;;  %s4095_s22 = smov [#allocation11]  }
  0x11   :  { %s67_s21 = sshll.u32 %s4094_s20, 4  ;;  %s91_s23 = sshll.u32 %s4095_s22, 4  ;;  %s68_s21 = int_to_ptr.vmem [resolvable:$true] %s67_s21  ;;  %s92_s23 = int_to_ptr.vmem [resolvable:$true] %s91_s23 }
  0x12   :  { %s3949_s24 = scalar_lea.vmem %s68_s21, 32768  ;;  %p3954_p6 = scmp.lt.s32.totalorder %s68_s21, %s68_s21 }
  0x13   :  { %p3950_p5 = scmp.ne.s32.totalorder %s68_s21, %s3949_s24  ;;  %p3955_p7 = scmp.lt.s32.totalorder %s3949_s24, %s3949_s24 }
  0x15   :  { %p3956_p8 = por %p3955_p7, %p3954_p6 }
  0x17   :  { %p3957_p9 = pnand %p3956_p8, %p3950_p5 }
  0x19   :  { %3960 = shalt.err (!%p3957_p9)
}
  0x1a   :  { %73 = dma.hbm_to_vmem [thread:$0]  %s4564_s6, 32768, %s68_s21, [#allocation9], %s4092_s16, %s4092_s16, %s4093_s17  }
  0x1b   :  { %s3969_s27 = scalar_lea.vmem %s92_s23, 16384  ;;  %p3974_p11 = scmp.lt.s32.totalorder %s92_s23, %s92_s23 }
  0x1c   :  { %p3970_p10 = scmp.ne.s32.totalorder %s92_s23, %s3969_s27  ;;  %p3975_p12 = scmp.lt.s32.totalorder %s3969_s27, %s3969_s27 }
  0x1e   :  { %p3976_p13 = por %p3975_p12, %p3974_p11 }
  0x20   :  { %p3977_p0 = pnand %p3976_p13, %p3970_p10 }
  0x22   :  { %3980 = shalt.err (!%p3977_p0)
}
  0x23   :  { %s4096_s3 = smov 512   ;;  %s4097_s28 = smov 32  }
  0x24   :  { %97 = dma.hbm_to_vmem [thread:$0]  %s4567_s9, 16384, %s92_s23, [#allocation12], %s4096_s3, %s4096_s3, %s4097_s28  }
  0x25   :  { %s4098_s15 = smov [#allocation2]   ;;  %s4099_s19 = smov [#allocation7]  }
  0x26   :  { %s34_s18 = sshll.u32 %s4098_s15, 4  ;;  %s58_s20 = sshll.u32 %s4099_s19, 4  ;;  %s35_s18 = int_to_ptr.vmem [resolvable:$true] %s34_s18  ;;  %s59_s20 = int_to_ptr.vmem [resolvable:$true] %s58_s20 }
  0x27   :  { %s3989_s6 = scalar_lea.vmem %s35_s18, 64  ;;  %p3994_p2 = scmp.lt.s32.totalorder %s35_s18, %s35_s18 }
  0x28   :  { %p3990_p1 = scmp.ne.s32.totalorder %s35_s18, %s3989_s6  ;;  %p3995_p3 = scmp.lt.s32.totalorder %s3989_s6, %s3989_s6 }
  0x2a   :  { %p3996_p4 = por %p3995_p3, %p3994_p2 }
  0x2c   :  { %p3997_p5 = pnand %p3996_p4, %p3990_p1 }
  0x2e   :  { %4000 = shalt.err (!%p3997_p5)
}
  0x2f   :  { %37 = dma.hbm_to_vmem [thread:$0]  %s4560_s2, 64, %s35_s18, [#allocation3]  }
  0x30   :  { %s4009_s22 = scalar_lea.vmem %s59_s20, 128  ;;  %p4014_p7 = scmp.lt.s32.totalorder %s59_s20, %s59_s20 }
  0x31   :  { %p4010_p6 = scmp.ne.s32.totalorder %s59_s20, %s4009_s22  ;;  %p4015_p8 = scmp.lt.s32.totalorder %s4009_s22, %s4009_s22 }
  0x33   :  { %p4016_p9 = por %p4015_p8, %p4014_p7 }
  0x35   :  { %p4017_p10 = pnand %p4016_p9, %p4010_p6 }
  0x37   :  { %4020 = shalt.err (!%p4017_p10)
}
  0x38   :  { %61 = dma.hbm_to_vmem [thread:$0]  %s4563_s5, 128, %s59_s20, [#allocation6]  }
  0x39   :  { %s4100_s24 = smov [#allocation10]   ;;  %s4101_s26 = smov [#allocation13]  }
  0x3a   :  { %s82_s25 = sshll.u32 %s4100_s24, 4  ;;  %s107_s27 = sshll.u32 %s4101_s26, 4  ;;  %s83_s25 = int_to_ptr.vmem [resolvable:$true] %s82_s25  ;;  %s108_s27 = int_to_ptr.vmem [resolvable:$true] %s107_s27 }
  0x3b   :  { %s4029_s3 = scalar_lea.vmem %s83_s25, 128  ;;  %p4034_p12 = scmp.lt.s32.totalorder %s83_s25, %s83_s25 }
  0x3c   :  { %p4030_p11 = scmp.ne.s32.totalorder %s83_s25, %s4029_s3  ;;  %p4035_p13 = scmp.lt.s32.totalorder %s4029_s3, %s4029_s3 }
  0x3e   :  { %p4036_p0 = por %p4035_p13, %p4034_p12 }
  0x40   :  { %p4037_p1 = pnand %p4036_p0, %p4030_p11 }
  0x42   :  { %4040 = shalt.err (!%p4037_p1)
}
  0x43   :  { %85 = dma.hbm_to_vmem [thread:$0]  %s4566_s8, 128, %s83_s25, [#allocation9]  }
  0x44   :  { %s4049_s29 = scalar_lea.vmem %s108_s27, 4096  ;;  %p4054_p3 = scmp.lt.s32.totalorder %s108_s27, %s108_s27 }
  0x45   :  { %p4050_p2 = scmp.ne.s32.totalorder %s108_s27, %s4049_s29  ;;  %p4055_p4 = scmp.lt.s32.totalorder %s4049_s29, %s4049_s29 }
  0x47   :  { %p4056_p5 = por %p4055_p4, %p4054_p3 }
  0x49   :  { %p4057_p6 = pnand %p4056_p5, %p4050_p2 }
  0x4b   :  { %4060 = shalt.err (!%p4057_p6)
}
  0x4c   :  { %s4102_s5 = smov 4  }
  0x4d   :  { %113 = dma.hbm_to_vmem [thread:$0]  %s4570_s12, 4096, %s108_s27, [#allocation12], %s4093_s17, %s4093_s17, %s4102_s5  }
  0x4e   :  { %4081 = dma.done.wait [#allocation3], 64  }
  0x4f   :  { %4082 = vsyncadd [#allocation3], 4294967232 }
  0x50   :  { %4083 = dma.done.wait [#allocation6], 16512  }
  0x51   :  { %4084 = vsyncadd [#allocation6], 4294950784 }
  0x52   :  { %4085 = dma.done.wait [#allocation9], 32896  }
  0x53   :  { %4086 = vsyncadd [#allocation9], 4294934400 }
  0x54   :  { %4087 = dma.done.wait [#allocation12], 20480  }
  0x55   :  { %4088 = vsyncadd [#allocation12], 4294946816  ;;  %v143_v0 = vlaneseq  ;;  %v4103_v1 = vmov 1983009808   ;;  %v4104_v3 = vmov 0   ;;  %v140_v7 = vld [vmem:[%s4559_s1] sm:$0xff] }
  0x56   :  { %v166_v2 = vunpack.c.l.s4 %v4103_v1  ;;  %230 = vmatprep.mubr.bf16.mxu0 %v4104_v3  ;;  %271 = vmatprep.mubr.bf16.mxu1 %v4104_v3  ;;  %vm185_vm0 = vcmask 1041408   ;;  %v313_v8 = vld [vmem:[#allocation5 + $0xc8] sm:$0xff]  ;;  %v164_v10 = vcombine.high %v140_v7, %v140_v7  ;;  %v312_v17 = vld [vmem:[#allocation5 + $0xc0] sm:$0xff]  ;;  %vm181_vm1 = vcmask 31744   ;;  %s4105_s9 = smov [#allocation14]  }
  0x57   :  { %v4206_v4 = vshrl.u32 %v143_v0, 7  ;;  %v138_v11 = vld [vmem:[%s4558_s0] sm:$0xff]  ;;  %v473_v16 = vunpack.c.h.s8.bf16 %v313_v8  ;;  %v472_v23 = vunpack.c.h.s8.bf16 %v312_v17  ;;  %v465_v24 = vunpack.c.l.s8.bf16 %v313_v8  ;;  %s3778_s23 = sshll.u32 %s4105_s9, 4  ;;  %s3779_s23 = int_to_ptr.vmem [resolvable:$true] %s3778_s23 }
  0x58   :  { %v167_v5 = vunpack.c.0.s8 %v166_v2  ;;  %v377_v12 = vld [vmem:[#allocation5 + $0x2c8] sm:$0xff]  ;;  %v139_v20 = vpack.c.bf16 %v138_v11, %v138_v11  ;;  %v376_v22 = vld [vmem:[#allocation5 + $0x2c0] sm:$0xff]  ;;  %v464_v29 = vunpack.c.l.s8.bf16 %v312_v17  ;;  %s4061_s24 = scalar_lea.vmem %s3779_s23, 128  ;;  %p4066_p8 = scmp.lt.s32.totalorder %s3779_s23, %s3779_s23 }
  0x59   :  { %v601_v21 = vunpack.c.h.s8.bf16 %v377_v12  ;;  %v600_v25 = vunpack.c.h.s8.bf16 %v376_v22  ;;  %v305_v26 = vld [vmem:[#allocation5 + $0x88] sm:$0xff]  ;;  %v593_v27 = vunpack.c.l.s8.bf16 %v377_v12  ;;  %v304_v28 = vld [vmem:[#allocation5 + $0x80] sm:$0xff]  ;;  %v592_v33 = vunpack.c.l.s8.bf16 %v376_v22  ;;  %p4062_p7 = scmp.ne.s32.totalorder %s3779_s23, %s4061_s24  ;;  %p4067_p9 = scmp.lt.s32.totalorder %s4061_s24, %s4061_s24 }
  0x5a   :  { %v170_v6 = vsub.s32 %v167_v5, %v4206_v4  ;;  %v369_v30 = vld [vmem:[#allocation5 + $0x288] sm:$0xff]  ;;  %v457_v31 = vunpack.c.h.s8.bf16 %v305_v26  ;;  %v368_v32 = vld [vmem:[#allocation5 + $0x280] sm:$0xff]  ;;  %v456_v35 = vunpack.c.h.s8.bf16 %v304_v28  ;;  %v449_v37 = vunpack.c.l.s8.bf16 %v305_v26 }
  0x5b   :  { %v585_v34 = vunpack.c.h.s8.bf16 %v369_v30  ;;  %v297_v36 = vld [vmem:[#allocation5 + $0x48] sm:$0xff]  ;;  %v584_v38 = vunpack.c.h.s8.bf16 %v368_v32  ;;  %v577_v40 = vunpack.c.l.s8.bf16 %v369_v30  ;;  %v296_v41 = vld [vmem:[#allocation5 + $0x40] sm:$0xff]  ;;  %v448_v42 = vunpack.c.l.s8.bf16 %v304_v28  ;;  %p4068_p10 = por %p4067_p9, %p4066_p8 }
  0x5c   :  { %v171_v9 = vrot.slane %v140_v7, %v170_v6  ;;  %v178_v15 = vrot.slane %v164_v10, %v170_v6  ;;  %v361_v39 = vld [vmem:[#allocation5 + $0x248] sm:$0xff]  ;;  %v441_v43 = vunpack.c.h.s8.bf16 %v297_v36  ;;  %v360_v44 = vld [vmem:[#allocation5 + $0x240] sm:$0xff]  ;;  %v576_v45 = vunpack.c.l.s8.bf16 %v368_v32 }
  0x5d   :  { %v569_v46 = vunpack.c.h.s8.bf16 %v361_v39  ;;  %v440_v47 = vunpack.c.h.s8.bf16 %v296_v41  ;;  %v289_v48 = vld [vmem:[#allocation5 + $0x8] sm:$0xff]  ;;  %v433_v49 = vunpack.c.l.s8.bf16 %v297_v36  ;;  %v568_v50 = vunpack.c.h.s8.bf16 %v360_v44  ;;  %v288_v53 = vld [vmem:[#allocation5] sm:$0xff]  ;;  %p4069_p11 = pnand %p4068_p10, %p4062_p7 }
  0x5e   :  { %v179_v13 = vcombine.high %v171_v9, %v171_v9  ;;  %v187_v14 = vsel %vm185_vm0, %v171_v9, 0  ;;  %v180_v18 = vcombine.high %v178_v15, %v178_v15  ;;  %v193_v19 = vsel %vm185_vm0, %v178_v15, 0  ;;  %v353_v51 = vld [vmem:[#allocation5 + $0x208] sm:$0xff]  ;;  %v352_v56 = vld [vmem:[#allocation5 + $0x200] sm:$0xff] }
  0x5f   :  { %v561_v52 = vunpack.c.l.s8.bf16 %v361_v39  ;;  %v432_v54 = vunpack.c.l.s8.bf16 %v296_v41  ;;  %v425_v55 = vunpack.c.h.s8.bf16 %v289_v48  ;;  %v560_v57 = vunpack.c.l.s8.bf16 %v360_v44  ;;  %v345_v62 = vld [vmem:[#allocation5 + $0x1c8] sm:$0xff]  ;;  %v344_v3 = vld [vmem:[#allocation5 + $0x1c0] sm:$0xff] }
  0x60   :  { %3790 = vmatprep.subr.msk.bf16.mxu0 %vm185_vm0, %v179_v13  ;;  %3792 = vmatprep.subr.msk.bf16.mxu1 %vm185_vm0, %v180_v18  ;;  %v553_v58 = vunpack.c.h.s8.bf16 %v353_v51  ;;  %v424_v59 = vunpack.c.h.s8.bf16 %v288_v53  ;;  %v417_v60 = vunpack.c.l.s8.bf16 %v289_v48  ;;  %v552_v61 = vunpack.c.h.s8.bf16 %v352_v56  ;;  %v409_v1 = vld [vmem:[#allocation5 + $0x3c8] sm:$0xff]  ;;  %v408_v7 = vld [vmem:[#allocation5 + $0x3c0] sm:$0xff] }
  0x61   :  { %213 = vmatpush1.bf16.msra.mxu0 %v187_v14  ;;  %254 = vmatpush1.bf16.msra.mxu1 %v193_v19  ;;  %v545_v63 = vunpack.c.l.s8.bf16 %v353_v51  ;;  %v416_v0 = vunpack.c.l.s8.bf16 %v288_v53  ;;  %v537_v2 = vunpack.c.h.s8.bf16 %v345_v62  ;;  %v544_v5 = vunpack.c.l.s8.bf16 %v352_v56  ;;  %v337_v11 = vld [vmem:[#allocation5 + $0x188] sm:$0xff]  ;;  %v400_v19 = vld [vmem:[#allocation5 + $0x380] sm:$0xff] }
  0x62   :  { %672 = vmatprep.subr.bf16.mxu0 %v473_v16  ;;  %713 = vmatprep.subr.bf16.mxu1 %v601_v21  ;;  %v665_v6 = vunpack.c.h.s8.bf16 %v409_v1  ;;  %v536_v8 = vunpack.c.h.s8.bf16 %v344_v3  ;;  %v529_v9 = vunpack.c.l.s8.bf16 %v345_v62  ;;  %v664_v10 = vunpack.c.h.s8.bf16 %v408_v7  ;;  %v401_v14 = vld [vmem:[#allocation5 + $0x388] sm:$0xff]  ;;  %v336_v16 = vld [vmem:[#allocation5 + $0x180] sm:$0xff] }
  0x63   :  { %v657_v12 = vunpack.c.l.s8.bf16 %v409_v1  ;;  %v528_v13 = vunpack.c.l.s8.bf16 %v344_v3  ;;  %v521_v15 = vunpack.c.h.s8.bf16 %v337_v11  ;;  %v656_v17 = vunpack.c.l.s8.bf16 %v408_v7  ;;  %v393_v26 = vld [vmem:[#allocation5 + $0x348] sm:$0xff]  ;;  %v328_v28 = vld [vmem:[#allocation5 + $0x140] sm:$0xff] }
  0x64   :  { %3791 = vmatmul.mubr.msk.bf16.vlgmr.msra.gmra.mxu0 %vm181_vm1, %v139_v20  ;;  %3793 = vmatmul.mubr.msk.bf16.vlgmr.msra.gmra.mxu1 %vm181_vm1, %v139_v20  ;;  %v649_v18 = vunpack.c.h.s8.bf16 %v401_v14  ;;  %v520_v20 = vunpack.c.h.s8.bf16 %v336_v16  ;;  %v513_v21 = vunpack.c.l.s8.bf16 %v337_v11  ;;  %v648_v22 = vunpack.c.h.s8.bf16 %v400_v19  ;;  %v384_v44 = vld [vmem:[#allocation5 + $0x300] sm:$0xff] }
  0x65   :  { %673 = vmatpush1.bf16.msra.mxu0 %v472_v23  ;;  %714 = vmatpush1.bf16.msra.mxu1 %v600_v25  ;;  %v329_v23 = vld [vmem:[#allocation5 + $0x148] sm:$0xff]  ;;  %v512_v25 = vunpack.c.l.s8.bf16 %v336_v16  ;;  %v633_v30 = vunpack.c.h.s8.bf16 %v393_v26  ;;  %v504_v32 = vunpack.c.h.s8.bf16 %v328_v28  ;;  %v496_v36 = vunpack.c.l.s8.bf16 %v328_v28  ;;  %v378_v16 = vld [vmem:[#allocation5 + $0x2d0] sm:$0xff]  ;;  %v371_v28 = vld [vmem:[#allocation5 + $0x298] sm:$0xff] }
  0x66   :  { %674 = vmatprep.subr.bf16.mxu0 %v465_v24  ;;  %715 = vmatprep.subr.bf16.mxu1 %v593_v27  ;;  %v641_v24 = vunpack.c.l.s8.bf16 %v401_v14  ;;  %v505_v27 = vunpack.c.h.s8.bf16 %v329_v23  ;;  %v4223_v56 = vsub.s32 1, %v4206_v4 }
  0x69   :  { %675 = vmatpush1.bf16.msra.mxu0 %v464_v29  ;;  %716 = vmatpush1.bf16.msra.mxu1 %v592_v33  ;;  %v640_v29 = vunpack.c.l.s8.bf16 %v400_v19  ;;  %v497_v33 = vunpack.c.l.s8.bf16 %v329_v23 }
  0x6a   :  { %676 = vmatprep.subr.bf16.mxu0 %v457_v31  ;;  %717 = vmatprep.subr.bf16.mxu1 %v585_v34  ;;  %v392_v31 = vld [vmem:[#allocation5 + $0x340] sm:$0xff] }
  0x6b   :  { %v632_v34 = vunpack.c.h.s8.bf16 %v392_v31 }
  0x6d   :  { %677 = vmatpush1.bf16.msra.mxu0 %v456_v35  ;;  %718 = vmatpush1.bf16.msra.mxu1 %v584_v38  ;;  %v625_v35 = vunpack.c.l.s8.bf16 %v393_v26  ;;  %v321_v38 = vld [vmem:[#allocation5 + $0x108] sm:$0xff] }
  0x6e   :  { %678 = vmatprep.subr.bf16.mxu0 %v449_v37  ;;  %719 = vmatprep.subr.bf16.mxu1 %v577_v40  ;;  %v624_v37 = vunpack.c.l.s8.bf16 %v392_v31  ;;  %v489_v39 = vunpack.c.h.s8.bf16 %v321_v38  ;;  %v320_v40 = vld [vmem:[#allocation5 + $0x100] sm:$0xff]  ;;  %v594_v31 = vunpack.c.l.s8.bf16 %v378_v16 }
  0x6f   :  { %v488_v41 = vunpack.c.h.s8.bf16 %v320_v40 }
  0x71   :  { %679 = vmatpush1.bf16.msra.mxu0 %v448_v42  ;;  %720 = vmatpush1.bf16.msra.mxu1 %v576_v45  ;;  %v385_v42 = vld [vmem:[#allocation5 + $0x308] sm:$0xff]  ;;  %v616_v45 = vunpack.c.h.s8.bf16 %v384_v44 }
  0x72   :  { %680 = vmatprep.subr.bf16.mxu0 %v441_v43  ;;  %721 = vmatprep.subr.bf16.mxu1 %v569_v46  ;;  %v617_v43 = vunpack.c.h.s8.bf16 %v385_v42  ;;  %v481_v46 = vunpack.c.l.s8.bf16 %v321_v38  ;;  %v609_v48 = vunpack.c.l.s8.bf16 %v385_v42  ;;  %v579_v38 = vunpack.c.l.s8.bf16 %v371_v28  ;;  %v298_v42 = vld [vmem:[#allocation5 + $0x50] sm:$0xff] }
  0x75   :  { %681 = vmatpush1.bf16.msra.mxu0 %v440_v47  ;;  %722 = vmatpush1.bf16.msra.mxu1 %v568_v50  ;;  %v480_v47 = vunpack.c.l.s8.bf16 %v320_v40  ;;  %v315_v50 = vld [vmem:[#allocation5 + $0xd8] sm:$0xff] }
  0x76   :  { %682 = vmatprep.subr.bf16.mxu0 %v433_v49  ;;  %723 = vmatprep.subr.bf16.mxu1 %v561_v52  ;;  %v608_v49 = vunpack.c.l.s8.bf16 %v384_v44  ;;  %v475_v51 = vunpack.c.h.s8.bf16 %v315_v50  ;;  %v379_v52 = vld [vmem:[#allocation5 + $0x2d8] sm:$0xff]  ;;  %v467_v23 = vunpack.c.l.s8.bf16 %v315_v50 }
  0x77   :  { %v603_v53 = vunpack.c.h.s8.bf16 %v379_v52  ;;  %v595_v26 = vunpack.c.l.s8.bf16 %v379_v52  ;;  %v363_v40 = vld [vmem:[#allocation5 + $0x258] sm:$0xff] }
  0x78   :  { %v571_v44 = vunpack.c.h.s8.bf16 %v363_v40  ;;  %v563_v50 = vunpack.c.l.s8.bf16 %v363_v40  ;;  %v355_v52 = vld [vmem:[#allocation5 + $0x218] sm:$0xff] }
  0x79   :  { %683 = vmatpush1.bf16.msra.mxu0 %v432_v54  ;;  %724 = vmatpush1.bf16.msra.mxu1 %v560_v57  ;;  %v4220_v54 = vsub.s32 0, %v4206_v4  ;;  %v4226_v57 = vsub.s32 2, %v4206_v4 }
  0x7a   :  { %684 = vmatprep.subr.bf16.mxu0 %v425_v55  ;;  %725 = vmatprep.subr.bf16.mxu1 %v553_v58  ;;  %v141_v55 = vld [vmem:[#allocation2] sm:$0xf] }
  0x7b   :  { %v146_v58 = vrot.slane %v141_v55, %v4220_v54 }
  0x7d   :  { %685 = vmatpush1.bf16.msra.mxu0 %v424_v59  ;;  %726 = vmatpush1.bf16.msra.mxu1 %v552_v61  ;;  %v4230_v59 = vsub.s32 3, %v4206_v4  ;;  %v154_v61 = vrot.slane %v141_v55, %v4226_v57 }
  0x7e   :  { %686 = vmatprep.subr.bf16.mxu0 %v417_v60  ;;  %727 = vmatprep.subr.bf16.mxu1 %v545_v63  ;;  %v150_v60 = vrot.slane %v141_v55, %v4223_v56 }
  0x81   :  { %687 = vmatpush1.bf16.msra.mxu0 %v416_v0  ;;  %728 = vmatpush1.bf16.msra.mxu1 %v544_v5  ;;  %v158_v0 = vrot.slane %v141_v55, %v4230_v59  ;;  %v290_v55 = vld [vmem:[#allocation5 + $0x10] sm:$0xff] }
  0x82   :  { %688 = vmatprep.subr.bf16.mxu0 %v537_v2  ;;  %729 = vmatprep.subr.bf16.mxu1 %v665_v6 }
  0x85   :  { %689 = vmatpush2.bf16.msra.mxu0 %v536_v8  ;;  %730 = vmatpush2.bf16.msra.mxu1 %v664_v10 }
  0x86   :  { %690 = vmatprep.subr.bf16.mxu0 %v529_v9  ;;  %731 = vmatprep.subr.bf16.mxu1 %v657_v12  ;;  %v314_v9 = vld [vmem:[#allocation5 + $0xd0] sm:$0xff] }
  0x87   :  { %v474_v19 = vunpack.c.h.s8.bf16 %v314_v9 }
  0x89   :  { %691 = vmatpush2.bf16.msra.mxu0 %v528_v13  ;;  %732 = vmatpush2.bf16.msra.mxu1 %v656_v17 }
  0x8a   :  { %692 = vmatprep.subr.bf16.mxu0 %v521_v15  ;;  %733 = vmatprep.subr.bf16.mxu1 %v649_v18 }
  0x8d   :  { %693 = vmatpush2.bf16.msra.mxu0 %v520_v20  ;;  %734 = vmatpush2.bf16.msra.mxu1 %v648_v22  ;;  %v602_v22 = vunpack.c.h.s8.bf16 %v378_v16 }
  0x8e   :  { %694 = vmatprep.subr.bf16.mxu0 %v513_v21  ;;  %735 = vmatprep.subr.bf16.mxu1 %v641_v24  ;;  %v307_v24 = vld [vmem:[#allocation5 + $0x98] sm:$0xff] }
  0x91   :  { %695 = vmatpush2.bf16.msra.mxu0 %v512_v25  ;;  %736 = vmatpush2.bf16.msra.mxu1 %v640_v29  ;;  %v459_v29 = vunpack.c.h.s8.bf16 %v307_v24 }
  0x92   :  { %696 = vmatprep.subr.bf16.mxu0 %v505_v27  ;;  %737 = vmatprep.subr.bf16.mxu1 %v633_v30  ;;  %v466_v27 = vunpack.c.l.s8.bf16 %v314_v9  ;;  %v306_v30 = vld [vmem:[#allocation5 + $0x90] sm:$0xff] }
  0x95   :  { %697 = vmatpush2.bf16.msra.mxu0 %v504_v32  ;;  %738 = vmatpush2.bf16.msra.mxu1 %v632_v34  ;;  %v587_v32 = vunpack.c.h.s8.bf16 %v371_v28  ;;  %v458_v34 = vunpack.c.h.s8.bf16 %v306_v30 }
  0x96   :  { %698 = vmatprep.subr.bf16.mxu0 %v497_v33  ;;  %739 = vmatprep.subr.bf16.mxu1 %v625_v35  ;;  %v370_v33 = vld [vmem:[#allocation5 + $0x290] sm:$0xff]  ;;  %v451_v35 = vunpack.c.l.s8.bf16 %v307_v24 }
  0x99   :  { %699 = vmatpush2.bf16.msra.mxu0 %v496_v36  ;;  %740 = vmatpush2.bf16.msra.mxu1 %v624_v37  ;;  %v586_v36 = vunpack.c.h.s8.bf16 %v370_v33  ;;  %v299_v37 = vld [vmem:[#allocation5 + $0x58] sm:$0xff] }
  0x9a   :  { %700 = vmatprep.subr.bf16.mxu0 %v489_v39  ;;  %741 = vmatprep.subr.bf16.mxu1 %v617_v43  ;;  %v450_v39 = vunpack.c.l.s8.bf16 %v306_v30  ;;  %v578_v43 = vunpack.c.l.s8.bf16 %v370_v33  ;;  %v331_v30 = vld [vmem:[#allocation5 + $0x158] sm:$0xff] }
  0x9b   :  { %v395_v33 = vld [vmem:[#allocation5 + $0x358] sm:$0xff]  ;;  %v499_v40 = vunpack.c.l.s8.bf16 %v331_v30 }
  0x9d   :  { %701 = vmatpush2.bf16.msra.mxu0 %v488_v41  ;;  %742 = vmatpush2.bf16.msra.mxu1 %v616_v45  ;;  %v443_v41 = vunpack.c.h.s8.bf16 %v299_v37  ;;  %v362_v45 = vld [vmem:[#allocation5 + $0x250] sm:$0xff] }
  0x9e   :  { %702 = vmatprep.subr.bf16.mxu0 %v481_v46  ;;  %743 = vmatprep.subr.bf16.mxu1 %v609_v48  ;;  %v442_v46 = vunpack.c.h.s8.bf16 %v298_v42  ;;  %v570_v48 = vunpack.c.h.s8.bf16 %v362_v45 }
  0xa1   :  { %703 = vmatpush2.bf16.msra.mxu0 %v480_v47  ;;  %744 = vmatpush2.bf16.msra.mxu1 %v608_v49  ;;  %v435_v47 = vunpack.c.l.s8.bf16 %v299_v37  ;;  %v291_v49 = vld [vmem:[#allocation5 + $0x18] sm:$0xff]  ;;  %v635_v37 = vunpack.c.h.s8.bf16 %v395_v33 }
  0xa2   :  { %754 = vmatprep.subr.bf16.mxu0 %v475_v51  ;;  %795 = vmatprep.subr.bf16.mxu1 %v603_v53  ;;  %v434_v51 = vunpack.c.l.s8.bf16 %v298_v42  ;;  %v427_v53 = vunpack.c.h.s8.bf16 %v291_v49  ;;  %v323_v42 = vld [vmem:[#allocation5 + $0x118] sm:$0xff] }
 0x124   :  { %v232_v62 = vpop.f32.mrf.mxu0  ;;  %v273_v2 = vpop.f32.mrf.mxu1 }
 0x125   :  { %v233_v63 = vadd.f32 %v232_v62, %v146_v58  ;;  %v274_v6 = vadd.f32 %v273_v2, %v154_v61  ;;  %v562_v58 = vunpack.c.l.s8.bf16 %v362_v45  ;;  %v354_v61 = vld [vmem:[#allocation5 + $0x210] sm:$0xff]  ;;  %v426_v62 = vunpack.c.h.s8.bf16 %v290_v55  ;;  %v387_v45 = vld [vmem:[#allocation5 + $0x318] sm:$0xff] }
 0x126   :  { %v234_v1 = vpop.f32.mrf.mxu0  ;;  %v275_v8 = vpop.f32.mrf.mxu1  ;;  %v547_v2 = vunpack.c.l.s8.bf16 %v355_v52 }
 0x127   :  { %v280_v3 = vmax.f32 %v233_v63, 0.0  ;;  %v235_v5 = vadd.f32 %v234_v1, %v150_v60  ;;  %v276_v11 = vadd.f32 %v275_v8, %v158_v0  ;;  %v282_v13 = vmax.f32 %v274_v6, 0.0  ;;  %v347_v1 = vld [vmem:[#allocation5 + $0x1d8] sm:$0xff] }
 0x128   :  { %v236_v7 = vpop.f32.mrf.mxu0  ;;  %v277_v15 = vpop.f32.mrf.mxu1  ;;  %v555_v60 = vunpack.c.h.s8.bf16 %v355_v52  ;;  %v419_v63 = vunpack.c.l.s8.bf16 %v291_v49  ;;  %v554_v0 = vunpack.c.h.s8.bf16 %v354_v61  ;;  %v539_v6 = vunpack.c.h.s8.bf16 %v347_v1 }
 0x129   :  { %v281_v10 = vmax.f32 %v235_v5, 0.0  ;;  %v4235_v12 = vpack.c.bf16 %v280_v3, %v280_v3  ;;  %v283_v18 = vmax.f32 %v276_v11, 0.0  ;;  %v4242_v25 = vpack.c.bf16 %v282_v13, %v282_v13  ;;  %v411_v5 = vld [vmem:[#allocation5 + $0x3d8] sm:$0xff]  ;;  %v346_v7 = vld [vmem:[#allocation5 + $0x1d0] sm:$0xff] }
 0x12a   :  { %v237_v14 = vpop.f32.mrf.mxu0  ;;  %v278_v20 = vpop.f32.mrf.mxu1  ;;  %v418_v3 = vunpack.c.l.s8.bf16 %v290_v55  ;;  %v546_v8 = vunpack.c.l.s8.bf16 %v354_v61  ;;  %v667_v9 = vunpack.c.h.s8.bf16 %v411_v5  ;;  %v538_v11 = vunpack.c.h.s8.bf16 %v346_v7  ;;  %v339_v15 = vld [vmem:[#allocation5 + $0x198] sm:$0xff]  ;;  %v317_v55 = vld [vmem:[#allocation5 + $0xe8] sm:$0xff] }
 0x12b   :  { %v4237_v17 = vpack.c.bf16 %v281_v10, %v281_v10  ;;  %v4239_v21 = vpack.c.bf16 %v283_v18, %v283_v18  ;;  %v410_v10 = vld [vmem:[#allocation5 + $0x3d0] sm:$0xff]  ;;  %v531_v13 = vunpack.c.l.s8.bf16 %v347_v1  ;;  %v659_v16 = vunpack.c.l.s8.bf16 %v411_v5  ;;  %v381_v61 = vld [vmem:[#allocation5 + $0x2e8] sm:$0xff] }
 0x12c   :  { %v666_v14 = vunpack.c.h.s8.bf16 %v410_v10  ;;  %v530_v18 = vunpack.c.l.s8.bf16 %v346_v7  ;;  %v523_v20 = vunpack.c.h.s8.bf16 %v339_v15  ;;  %v515_v28 = vunpack.c.l.s8.bf16 %v339_v15  ;;  %v309_v7 = vld [vmem:[#allocation5 + $0xa8] sm:$0xff] }
 0x12d   :  { %704 = vmatprep.mubr.bf16.mxu0 %v4237_v17  ;;  %745 = vmatprep.mubr.bf16.mxu1 %v4239_v21  ;;  %v619_v49 = vunpack.c.h.s8.bf16 %v387_v45  ;;  %v483_v52 = vunpack.c.l.s8.bf16 %v323_v42  ;;  %v605_v1 = vunpack.c.h.s8.bf16 %v381_v61  ;;  %v469_v5 = vunpack.c.l.s8.bf16 %v317_v55 }
 0x12e   :  { %705 = vmatmul.mubr.bf16.vlgmr.msra.gmra.mxu0 %v4235_v12  ;;  %746 = vmatmul.mubr.bf16.vlgmr.msra.gmra.mxu1 %v4242_v25 }
 0x12f   :  { %755 = vmatpush1.bf16.msra.mxu0 %v474_v19  ;;  %786 = vmatprep.mubr.bf16.mxu0 %v4237_v17  ;;  %v403_v19 = vld [vmem:[#allocation5 + $0x398] sm:$0xff] }
 0x130   :  { %796 = vmatpush1.bf16.msra.mxu1 %v602_v22  ;;  %756 = vmatprep.subr.bf16.mxu0 %v467_v23  ;;  %v338_v22 = vld [vmem:[#allocation5 + $0x190] sm:$0xff]  ;;  %v658_v23 = vunpack.c.l.s8.bf16 %v410_v10  ;;  %v651_v24 = vunpack.c.h.s8.bf16 %v403_v19  ;;  %v373_v10 = vld [vmem:[#allocation5 + $0x2a8] sm:$0xff] }
 0x131   :  { %827 = vmatprep.mubr.bf16.mxu1 %v4239_v21  ;;  %797 = vmatprep.subr.bf16.mxu1 %v595_v26  ;;  %v402_v26 = vld [vmem:[#allocation5 + $0x390] sm:$0xff]  ;;  %v589_v15 = vunpack.c.h.s8.bf16 %v373_v10 }
 0x133   :  { %757 = vmatpush1.bf16.msra.mxu0 %v466_v27  ;;  %v522_v27 = vunpack.c.h.s8.bf16 %v338_v22 }
 0x134   :  { %758 = vmatprep.subr.bf16.mxu0 %v459_v29  ;;  %798 = vmatpush1.bf16.msra.mxu1 %v594_v31  ;;  %v650_v29 = vunpack.c.h.s8.bf16 %v402_v26  ;;  %v643_v31 = vunpack.c.l.s8.bf16 %v403_v19  ;;  %v453_v19 = vunpack.c.l.s8.bf16 %v309_v7 }
 0x135   :  { %799 = vmatprep.subr.bf16.mxu1 %v587_v32  ;;  %v514_v32 = vunpack.c.l.s8.bf16 %v338_v22  ;;  %v301_v22 = vld [vmem:[#allocation5 + $0x68] sm:$0xff] }
 0x137   :  { %759 = vmatpush1.bf16.msra.mxu0 %v458_v34  ;;  %v507_v34 = vunpack.c.h.s8.bf16 %v331_v30 }
 0x138   :  { %760 = vmatprep.subr.bf16.mxu0 %v451_v35  ;;  %800 = vmatpush1.bf16.msra.mxu1 %v586_v36  ;;  %v330_v35 = vld [vmem:[#allocation5 + $0x150] sm:$0xff]  ;;  %v642_v36 = vunpack.c.l.s8.bf16 %v402_v26  ;;  %v365_v26 = vld [vmem:[#allocation5 + $0x268] sm:$0xff] }
 0x139   :  { %801 = vmatprep.subr.bf16.mxu1 %v579_v38  ;;  %v394_v38 = vld [vmem:[#allocation5 + $0x350] sm:$0xff]  ;;  %v573_v30 = vunpack.c.h.s8.bf16 %v365_v26 }
 0x13b   :  { %761 = vmatpush1.bf16.msra.mxu0 %v450_v39  ;;  %v506_v39 = vunpack.c.h.s8.bf16 %v330_v35 }
 0x13c   :  { %762 = vmatprep.subr.bf16.mxu0 %v443_v41  ;;  %802 = vmatpush1.bf16.msra.mxu1 %v578_v43  ;;  %v634_v41 = vunpack.c.h.s8.bf16 %v394_v38  ;;  %v627_v43 = vunpack.c.l.s8.bf16 %v395_v33  ;;  %v437_v33 = vunpack.c.l.s8.bf16 %v301_v22 }
 0x13d   :  { %803 = vmatprep.subr.bf16.mxu1 %v571_v44  ;;  %v498_v44 = vunpack.c.l.s8.bf16 %v330_v35  ;;  %v293_v35 = vld [vmem:[#allocation5 + $0x28] sm:$0xff] }
 0x13f   :  { %763 = vmatpush1.bf16.msra.mxu0 %v442_v46  ;;  %v491_v46 = vunpack.c.h.s8.bf16 %v323_v42 }
 0x140   :  { %764 = vmatprep.subr.bf16.mxu0 %v435_v47  ;;  %804 = vmatpush1.bf16.msra.mxu1 %v570_v48  ;;  %v322_v47 = vld [vmem:[#allocation5 + $0x110] sm:$0xff]  ;;  %v626_v48 = vunpack.c.l.s8.bf16 %v394_v38  ;;  %v357_v38 = vld [vmem:[#allocation5 + $0x228] sm:$0xff] }
 0x141   :  { %805 = vmatprep.subr.bf16.mxu1 %v563_v50  ;;  %v386_v50 = vld [vmem:[#allocation5 + $0x310] sm:$0xff]  ;;  %v557_v42 = vunpack.c.h.s8.bf16 %v357_v38 }
 0x143   :  { %765 = vmatpush1.bf16.msra.mxu0 %v434_v51  ;;  %v490_v51 = vunpack.c.h.s8.bf16 %v322_v47 }
 0x144   :  { %766 = vmatprep.subr.bf16.mxu0 %v427_v53  ;;  %806 = vmatpush1.bf16.msra.mxu1 %v562_v58  ;;  %v618_v53 = vunpack.c.h.s8.bf16 %v386_v50  ;;  %v611_v58 = vunpack.c.l.s8.bf16 %v387_v45  ;;  %v421_v45 = vunpack.c.l.s8.bf16 %v293_v35 }
 0x145   :  { %807 = vmatprep.subr.bf16.mxu1 %v555_v60  ;;  %v482_v60 = vunpack.c.l.s8.bf16 %v322_v47  ;;  %v349_v47 = vld [vmem:[#allocation5 + $0x1e8] sm:$0xff] }
 0x147   :  { %767 = vmatpush1.bf16.msra.mxu0 %v426_v62  ;;  %v477_v62 = vunpack.c.h.s8.bf16 %v317_v55 }
 0x148   :  { %768 = vmatprep.subr.bf16.mxu0 %v419_v63  ;;  %808 = vmatpush1.bf16.msra.mxu1 %v554_v0  ;;  %v316_v63 = vld [vmem:[#allocation5 + $0xe0] sm:$0xff]  ;;  %v610_v0 = vunpack.c.l.s8.bf16 %v386_v50  ;;  %v413_v50 = vld [vmem:[#allocation5 + $0x3e8] sm:$0xff] }
 0x149   :  { %809 = vmatprep.subr.bf16.mxu1 %v547_v2  ;;  %v380_v2 = vld [vmem:[#allocation5 + $0x2e0] sm:$0xff]  ;;  %v669_v55 = vunpack.c.h.s8.bf16 %v413_v50 }
 0x14b   :  { %769 = vmatpush1.bf16.msra.mxu0 %v418_v3  ;;  %v476_v3 = vunpack.c.h.s8.bf16 %v316_v63 }
 0x14c   :  { %770 = vmatprep.subr.bf16.mxu0 %v539_v6  ;;  %810 = vmatpush1.bf16.msra.mxu1 %v546_v8  ;;  %v604_v6 = vunpack.c.h.s8.bf16 %v380_v2  ;;  %v597_v8 = vunpack.c.l.s8.bf16 %v381_v61  ;;  %v533_v61 = vunpack.c.l.s8.bf16 %v349_v47 }
 0x14d   :  { %811 = vmatprep.subr.bf16.mxu1 %v667_v9  ;;  %v468_v9 = vunpack.c.l.s8.bf16 %v316_v63  ;;  %v341_v63 = vld [vmem:[#allocation5 + $0x1a8] sm:$0xff] }
 0x14f   :  { %771 = vmatpush2.bf16.msra.mxu0 %v538_v11  ;;  %v461_v11 = vunpack.c.h.s8.bf16 %v309_v7 }
 0x150   :  { %772 = vmatprep.subr.bf16.mxu0 %v531_v13  ;;  %812 = vmatpush2.bf16.msra.mxu1 %v666_v14  ;;  %v308_v13 = vld [vmem:[#allocation5 + $0xa0] sm:$0xff]  ;;  %v596_v14 = vunpack.c.l.s8.bf16 %v380_v2  ;;  %v405_v2 = vld [vmem:[#allocation5 + $0x3a8] sm:$0xff] }
 0x151   :  { %813 = vmatprep.subr.bf16.mxu1 %v659_v16  ;;  %v372_v16 = vld [vmem:[#allocation5 + $0x2a0] sm:$0xff]  ;;  %v653_v7 = vunpack.c.h.s8.bf16 %v405_v2 }
 0x153   :  { %773 = vmatpush2.bf16.msra.mxu0 %v530_v18  ;;  %v460_v18 = vunpack.c.h.s8.bf16 %v308_v13 }
 0x154   :  { %774 = vmatprep.subr.bf16.mxu0 %v523_v20  ;;  %814 = vmatpush2.bf16.msra.mxu1 %v658_v23  ;;  %v588_v20 = vunpack.c.h.s8.bf16 %v372_v16  ;;  %v581_v23 = vunpack.c.l.s8.bf16 %v373_v10  ;;  %v517_v10 = vunpack.c.l.s8.bf16 %v341_v63 }
 0x155   :  { %815 = vmatprep.subr.bf16.mxu1 %v651_v24  ;;  %v452_v24 = vunpack.c.l.s8.bf16 %v308_v13  ;;  %v333_v13 = vld [vmem:[#allocation5 + $0x168] sm:$0xff] }
 0x157   :  { %775 = vmatpush2.bf16.msra.mxu0 %v522_v27  ;;  %v445_v27 = vunpack.c.h.s8.bf16 %v301_v22 }
 0x158   :  { %776 = vmatprep.subr.bf16.mxu0 %v515_v28  ;;  %816 = vmatpush2.bf16.msra.mxu1 %v650_v29  ;;  %v300_v28 = vld [vmem:[#allocation5 + $0x60] sm:$0xff]  ;;  %v580_v29 = vunpack.c.l.s8.bf16 %v372_v16  ;;  %v397_v16 = vld [vmem:[#allocation5 + $0x368] sm:$0xff] }
 0x159   :  { %817 = vmatprep.subr.bf16.mxu1 %v643_v31  ;;  %v364_v31 = vld [vmem:[#allocation5 + $0x260] sm:$0xff]  ;;  %v637_v22 = vunpack.c.h.s8.bf16 %v397_v16 }
 0x15b   :  { %777 = vmatpush2.bf16.msra.mxu0 %v514_v32  ;;  %v444_v32 = vunpack.c.h.s8.bf16 %v300_v28 }
 0x15c   :  { %778 = vmatprep.subr.bf16.mxu0 %v507_v34  ;;  %818 = vmatpush2.bf16.msra.mxu1 %v642_v36  ;;  %v572_v34 = vunpack.c.h.s8.bf16 %v364_v31  ;;  %v565_v36 = vunpack.c.l.s8.bf16 %v365_v26  ;;  %v501_v26 = vunpack.c.l.s8.bf16 %v333_v13 }
 0x15d   :  { %819 = vmatprep.subr.bf16.mxu1 %v635_v37  ;;  %v436_v37 = vunpack.c.l.s8.bf16 %v300_v28  ;;  %v325_v28 = vld [vmem:[#allocation5 + $0x128] sm:$0xff] }
 0x15f   :  { %779 = vmatpush2.bf16.msra.mxu0 %v506_v39  ;;  %v429_v39 = vunpack.c.h.s8.bf16 %v293_v35 }
 0x160   :  { %780 = vmatprep.subr.bf16.mxu0 %v499_v40  ;;  %820 = vmatpush2.bf16.msra.mxu1 %v634_v41  ;;  %v292_v40 = vld [vmem:[#allocation5 + $0x20] sm:$0xff]  ;;  %v564_v41 = vunpack.c.l.s8.bf16 %v364_v31  ;;  %v389_v31 = vld [vmem:[#allocation5 + $0x328] sm:$0xff] }
 0x161   :  { %821 = vmatprep.subr.bf16.mxu1 %v627_v43  ;;  %v356_v43 = vld [vmem:[#allocation5 + $0x220] sm:$0xff]  ;;  %v621_v35 = vunpack.c.h.s8.bf16 %v389_v31 }
 0x163   :  { %781 = vmatpush2.bf16.msra.mxu0 %v498_v44  ;;  %v428_v44 = vunpack.c.h.s8.bf16 %v292_v40 }
 0x164   :  { %782 = vmatprep.subr.bf16.mxu0 %v491_v46  ;;  %822 = vmatpush2.bf16.msra.mxu1 %v626_v48  ;;  %v556_v46 = vunpack.c.h.s8.bf16 %v356_v43  ;;  %v549_v48 = vunpack.c.l.s8.bf16 %v357_v38  ;;  %v485_v38 = vunpack.c.l.s8.bf16 %v325_v28 }
 0x165   :  { %823 = vmatprep.subr.bf16.mxu1 %v619_v49  ;;  %v420_v49 = vunpack.c.l.s8.bf16 %v292_v40  ;;  %v319_v40 = vld [vmem:[#allocation5 + $0xf8] sm:$0xff] }
 0x167   :  { %783 = vmatpush2.bf16.msra.mxu0 %v490_v51  ;;  %v541_v51 = vunpack.c.h.s8.bf16 %v349_v47 }
 0x168   :  { %784 = vmatprep.subr.bf16.mxu0 %v483_v52  ;;  %824 = vmatpush2.bf16.msra.mxu1 %v618_v53  ;;  %v348_v52 = vld [vmem:[#allocation5 + $0x1e0] sm:$0xff]  ;;  %v548_v53 = vunpack.c.l.s8.bf16 %v356_v43  ;;  %v383_v43 = vld [vmem:[#allocation5 + $0x2f8] sm:$0xff] }
 0x169   :  { %825 = vmatprep.subr.bf16.mxu1 %v611_v58  ;;  %v412_v58 = vld [vmem:[#allocation5 + $0x3e0] sm:$0xff]  ;;  %v607_v47 = vunpack.c.h.s8.bf16 %v383_v43 }
 0x16b   :  { %785 = vmatpush2.bf16.msra.mxu0 %v482_v60  ;;  %v540_v60 = vunpack.c.h.s8.bf16 %v348_v52 }
 0x16c   :  { %836 = vmatprep.subr.bf16.mxu0 %v477_v62  ;;  %826 = vmatpush2.bf16.msra.mxu1 %v610_v0  ;;  %v668_v62 = vunpack.c.h.s8.bf16 %v412_v58  ;;  %v661_v0 = vunpack.c.l.s8.bf16 %v413_v50  ;;  %v471_v50 = vunpack.c.l.s8.bf16 %v319_v40 }
 0x16d   :  { %877 = vmatprep.subr.bf16.mxu1 %v605_v1  ;;  %v532_v1 = vunpack.c.l.s8.bf16 %v348_v52  ;;  %v311_v52 = vld [vmem:[#allocation5 + $0xb8] sm:$0xff] }
 0x16e   :  { %787 = vmatmul.mubr.bf16.vlgmr.msra.gmra.mxu0 %v4235_v12 }
 0x16f   :  { %837 = vmatpush1.bf16.msra.mxu0 %v476_v3  ;;  %868 = vmatprep.mubr.bf16.mxu0 %v4237_v17  ;;  %v525_v3 = vunpack.c.h.s8.bf16 %v341_v63 }
 0x170   :  { %828 = vmatmul.mubr.bf16.vlgmr.msra.gmra.mxu1 %v4242_v25  ;;  %838 = vmatprep.subr.bf16.mxu0 %v469_v5  ;;  %v340_v5 = vld [vmem:[#allocation5 + $0x1a0] sm:$0xff] }
 0x171   :  { %878 = vmatpush1.bf16.msra.mxu1 %v604_v6  ;;  %909 = vmatprep.mubr.bf16.mxu1 %v4239_v21  ;;  %v660_v6 = vunpack.c.l.s8.bf16 %v412_v58  ;;  %v375_v58 = vld [vmem:[#allocation5 + $0x2b8] sm:$0xff] }
 0x172   :  { %879 = vmatprep.subr.bf16.mxu1 %v597_v8  ;;  %v404_v8 = vld [vmem:[#allocation5 + $0x3a0] sm:$0xff]  ;;  %v591_v63 = vunpack.c.h.s8.bf16 %v375_v58 }
 0x173   :  { %839 = vmatpush1.bf16.msra.mxu0 %v468_v9  ;;  %v524_v9 = vunpack.c.h.s8.bf16 %v340_v5 }
 0x174   :  { %840 = vmatprep.subr.bf16.mxu0 %v461_v11  ;;  %v652_v11 = vunpack.c.h.s8.bf16 %v404_v8 }
 0x175   :  { %880 = vmatpush1.bf16.msra.mxu1 %v596_v14  ;;  %v645_v14 = vunpack.c.l.s8.bf16 %v405_v2  ;;  %v455_v2 = vunpack.c.l.s8.bf16 %v311_v52 }
 0x176   :  { %881 = vmatprep.subr.bf16.mxu1 %v589_v15  ;;  %v516_v15 = vunpack.c.l.s8.bf16 %v340_v5  ;;  %v583_v5 = vunpack.c.l.s8.bf16 %v375_v58  ;;  %v335_v58 = vld [vmem:[#allocation5 + $0x178] sm:$0xff] }
 0x177   :  { %841 = vmatpush1.bf16.msra.mxu0 %v460_v18  ;;  %v509_v18 = vunpack.c.h.s8.bf16 %v333_v13 }
 0x178   :  { %842 = vmatprep.subr.bf16.mxu0 %v453_v19  ;;  %v332_v19 = vld [vmem:[#allocation5 + $0x160] sm:$0xff] }
 0x179   :  { %882 = vmatpush1.bf16.msra.mxu1 %v588_v20  ;;  %v644_v20 = vunpack.c.l.s8.bf16 %v404_v8 }
 0x17a   :  { %883 = vmatprep.subr.bf16.mxu1 %v581_v23  ;;  %v396_v23 = vld [vmem:[#allocation5 + $0x360] sm:$0xff] }
 0x17b   :  { %843 = vmatpush1.bf16.msra.mxu0 %v452_v24  ;;  %v508_v24 = vunpack.c.h.s8.bf16 %v332_v19 }
 0x17c   :  { %844 = vmatprep.subr.bf16.mxu0 %v445_v27  ;;  %v636_v27 = vunpack.c.h.s8.bf16 %v396_v23 }
 0x17d   :  { %884 = vmatpush1.bf16.msra.mxu1 %v580_v29  ;;  %v629_v29 = vunpack.c.l.s8.bf16 %v397_v16  ;;  %v295_v16 = vld [vmem:[#allocation5 + $0x38] sm:$0xff] }
 0x17e   :  { %885 = vmatprep.subr.bf16.mxu1 %v573_v30  ;;  %v500_v30 = vunpack.c.l.s8.bf16 %v332_v19 }
 0x17f   :  { %845 = vmatpush1.bf16.msra.mxu0 %v444_v32  ;;  %v493_v32 = vunpack.c.h.s8.bf16 %v325_v28 }
 0x180   :  { %846 = vmatprep.subr.bf16.mxu0 %v437_v33  ;;  %v324_v33 = vld [vmem:[#allocation5 + $0x120] sm:$0xff] }
 0x181   :  { %886 = vmatpush1.bf16.msra.mxu1 %v572_v34  ;;  %v628_v34 = vunpack.c.l.s8.bf16 %v396_v23  ;;  %v294_v23 = vld [vmem:[#allocation5 + $0x30] sm:$0xff] }
 0x182   :  { %887 = vmatprep.subr.bf16.mxu1 %v565_v36  ;;  %v388_v36 = vld [vmem:[#allocation5 + $0x320] sm:$0xff]  ;;  %v430_v28 = vunpack.c.h.s8.bf16 %v294_v23 }
 0x183   :  { %847 = vmatpush1.bf16.msra.mxu0 %v436_v37  ;;  %v492_v37 = vunpack.c.h.s8.bf16 %v324_v33 }
 0x184   :  { %848 = vmatprep.subr.bf16.mxu0 %v429_v39  ;;  %v620_v39 = vunpack.c.h.s8.bf16 %v388_v36 }
 0x185   :  { %888 = vmatpush1.bf16.msra.mxu1 %v564_v41  ;;  %v613_v41 = vunpack.c.l.s8.bf16 %v389_v31  ;;  %v351_v31 = vld [vmem:[#allocation5 + $0x1f8] sm:$0xff] }
 0x186   :  { %889 = vmatprep.subr.bf16.mxu1 %v557_v42  ;;  %v484_v42 = vunpack.c.l.s8.bf16 %v324_v33  ;;  %v422_v33 = vunpack.c.l.s8.bf16 %v294_v23 }
 0x187   :  { %849 = vmatpush1.bf16.msra.mxu0 %v428_v44  ;;  %v479_v44 = vunpack.c.h.s8.bf16 %v319_v40 }
 0x188   :  { %850 = vmatprep.subr.bf16.mxu0 %v421_v45  ;;  %v318_v45 = vld [vmem:[#allocation5 + $0xf0] sm:$0xff] }
 0x189   :  { %890 = vmatpush1.bf16.msra.mxu1 %v556_v46  ;;  %v612_v46 = vunpack.c.l.s8.bf16 %v388_v36  ;;  %v350_v36 = vld [vmem:[#allocation5 + $0x1f0] sm:$0xff] }
 0x18a   :  { %891 = vmatprep.subr.bf16.mxu1 %v549_v48  ;;  %v382_v48 = vld [vmem:[#allocation5 + $0x2f0] sm:$0xff]  ;;  %v542_v40 = vunpack.c.h.s8.bf16 %v350_v36 }
 0x18b   :  { %851 = vmatpush1.bf16.msra.mxu0 %v420_v49  ;;  %v478_v49 = vunpack.c.h.s8.bf16 %v318_v45 }
 0x18c   :  { %852 = vmatprep.subr.bf16.mxu0 %v541_v51  ;;  %v606_v51 = vunpack.c.h.s8.bf16 %v382_v48 }
 0x18d   :  { %892 = vmatpush1.bf16.msra.mxu1 %v548_v53  ;;  %v599_v53 = vunpack.c.l.s8.bf16 %v383_v43  ;;  %v343_v43 = vld [vmem:[#allocation5 + $0x1b8] sm:$0xff] }
 0x18e   :  { %893 = vmatprep.subr.bf16.mxu1 %v669_v55  ;;  %v470_v55 = vunpack.c.l.s8.bf16 %v318_v45  ;;  %v534_v45 = vunpack.c.l.s8.bf16 %v350_v36 }
 0x18f   :  { %853 = vmatpush2.bf16.msra.mxu0 %v540_v60  ;;  %v463_v60 = vunpack.c.h.s8.bf16 %v311_v52 }
 0x190   :  { %854 = vmatprep.subr.bf16.mxu0 %v533_v61  ;;  %v310_v61 = vld [vmem:[#allocation5 + $0xb0] sm:$0xff] }
 0x191   :  { %894 = vmatpush2.bf16.msra.mxu1 %v668_v62  ;;  %v598_v62 = vunpack.c.l.s8.bf16 %v382_v48  ;;  %v342_v48 = vld [vmem:[#allocation5 + $0x1b0] sm:$0xff] }
 0x192   :  { %895 = vmatprep.subr.bf16.mxu1 %v661_v0  ;;  %v374_v0 = vld [vmem:[#allocation5 + $0x2b0] sm:$0xff]  ;;  %v526_v52 = vunpack.c.h.s8.bf16 %v342_v48 }
 0x193   :  { %855 = vmatpush2.bf16.msra.mxu0 %v532_v1  ;;  %v462_v1 = vunpack.c.h.s8.bf16 %v310_v61 }
 0x194   :  { %856 = vmatprep.subr.bf16.mxu0 %v525_v3  ;;  %v303_v3 = vld [vmem:[#allocation5 + $0x78] sm:$0xff] }
 0x195   :  { %896 = vmatpush2.bf16.msra.mxu1 %v660_v6  ;;  %v454_v6 = vunpack.c.l.s8.bf16 %v310_v61  ;;  %v447_v8 = vunpack.c.h.s8.bf16 %v303_v3  ;;  %v518_v61 = vunpack.c.l.s8.bf16 %v342_v48  ;;  %v1196_v48 = vld [vmem:[#allocation8 + $0x280] sm:$0xff] }
 0x196   :  { %897 = vmatprep.subr.bf16.mxu1 %v653_v7  ;;  %v367_v7 = vld [vmem:[#allocation5 + $0x278] sm:$0xff] }
 0x197   :  { %857 = vmatpush2.bf16.msra.mxu0 %v524_v9  ;;  %v302_v9 = vld [vmem:[#allocation5 + $0x70] sm:$0xff] }
 0x198   :  { %858 = vmatprep.subr.bf16.mxu0 %v517_v10  ;;  %v575_v10 = vunpack.c.h.s8.bf16 %v367_v7  ;;  %v446_v13 = vunpack.c.h.s8.bf16 %v302_v9  ;;  %v438_v19 = vunpack.c.l.s8.bf16 %v302_v9 }
 0x199   :  { %898 = vmatpush2.bf16.msra.mxu1 %v652_v11  ;;  %v366_v11 = vld [vmem:[#allocation5 + $0x270] sm:$0xff] }
 0x19a   :  { %899 = vmatprep.subr.bf16.mxu1 %v645_v14  ;;  %v439_v14 = vunpack.c.l.s8.bf16 %v303_v3 }
 0x19b   :  { %859 = vmatpush2.bf16.msra.mxu0 %v516_v15  ;;  %v574_v15 = vunpack.c.h.s8.bf16 %v366_v11 }
 0x19c   :  { %860 = vmatprep.subr.bf16.mxu0 %v509_v18  ;;  %v567_v18 = vunpack.c.l.s8.bf16 %v367_v7  ;;  %v327_v7 = vld [vmem:[#allocation5 + $0x138] sm:$0xff] }
 0x19d   :  { %900 = vmatpush2.bf16.msra.mxu1 %v644_v20  ;;  %v359_v20 = vld [vmem:[#allocation5 + $0x238] sm:$0xff] }
 0x19e   :  { %901 = vmatprep.subr.bf16.mxu1 %v637_v22  ;;  %v431_v22 = vunpack.c.h.s8.bf16 %v295_v16 }
 0x19f   :  { %861 = vmatpush2.bf16.msra.mxu0 %v508_v24  ;;  %v566_v24 = vunpack.c.l.s8.bf16 %v366_v11  ;;  %v326_v11 = vld [vmem:[#allocation5 + $0x130] sm:$0xff] }
 0x1a0   :  { %862 = vmatprep.subr.bf16.mxu0 %v501_v26  ;;  %v559_v26 = vunpack.c.h.s8.bf16 %v359_v20  ;;  %v486_v23 = vunpack.c.l.s8.bf16 %v326_v11 }
 0x1a1   :  { %902 = vmatpush2.bf16.msra.mxu1 %v636_v27  ;;  %v358_v27 = vld [vmem:[#allocation5 + $0x230] sm:$0xff] }
 0x1a2   :  { %903 = vmatprep.subr.bf16.mxu1 %v629_v29  ;;  %v423_v29 = vunpack.c.l.s8.bf16 %v295_v16  ;;  %v494_v16 = vunpack.c.h.s8.bf16 %v326_v11  ;;  %v1117_v11 = vld [vmem:[#allocation8 + $0x8] sm:$0xff] }
 0x1a3   :  { %863 = vmatpush2.bf16.msra.mxu0 %v500_v30  ;;  %v558_v30 = vunpack.c.h.s8.bf16 %v358_v27 }
 0x1a4   :  { %864 = vmatprep.subr.bf16.mxu0 %v493_v32  ;;  %v551_v32 = vunpack.c.l.s8.bf16 %v359_v20  ;;  %v1141_v20 = vld [vmem:[#allocation8 + $0xc8] sm:$0xff] }
 0x1a5   :  { %904 = vmatpush2.bf16.msra.mxu1 %v628_v34  ;;  %v415_v34 = vld [vmem:[#allocation5 + $0x3f8] sm:$0xff] }
 0x1a6   :  { %905 = vmatprep.subr.bf16.mxu1 %v621_v35  ;;  %v543_v35 = vunpack.c.h.s8.bf16 %v351_v31 }
 0x1a7   :  { %865 = vmatpush2.bf16.msra.mxu0 %v492_v37  ;;  %v550_v37 = vunpack.c.l.s8.bf16 %v358_v27  ;;  %v1140_v27 = vld [vmem:[#allocation8 + $0xc0] sm:$0xff] }
 0x1a8   :  { %866 = vmatprep.subr.bf16.mxu0 %v485_v38  ;;  %v671_v38 = vunpack.c.h.s8.bf16 %v415_v34 }
 0x1a9   :  { %906 = vmatpush2.bf16.msra.mxu1 %v620_v39  ;;  %v414_v39 = vld [vmem:[#allocation5 + $0x3f0] sm:$0xff] }
 0x1aa   :  { %907 = vmatprep.subr.bf16.mxu1 %v613_v41  ;;  %v535_v41 = vunpack.c.l.s8.bf16 %v351_v31  ;;  %v1428_v31 = vunpack.c.h.s8.bf16 %v1140_v27 }
 0x1ab   :  { %867 = vmatpush2.bf16.msra.mxu0 %v484_v42  ;;  %v670_v42 = vunpack.c.h.s8.bf16 %v414_v39 }
 0x1ac   :  { %918 = vmatprep.subr.bf16.mxu0 %v479_v44  ;;  %v663_v44 = vunpack.c.l.s8.bf16 %v415_v34 }
 0x1ad   :  { %908 = vmatpush2.bf16.msra.mxu1 %v612_v46  ;;  %v407_v46 = vld [vmem:[#allocation5 + $0x3b8] sm:$0xff] }
 0x1ae   :  { %869 = vmatmul.mubr.bf16.vlgmr.msra.gmra.mxu0 %v4235_v12  ;;  %959 = vmatprep.subr.bf16.mxu1 %v607_v47  ;;  %v527_v47 = vunpack.c.h.s8.bf16 %v343_v43 }
 0x1af   :  { %919 = vmatpush1.bf16.msra.mxu0 %v478_v49  ;;  %950 = vmatprep.mubr.bf16.mxu0 %v4237_v17  ;;  %v590_v17 = vunpack.c.h.s8.bf16 %v374_v0  ;;  %v662_v49 = vunpack.c.l.s8.bf16 %v414_v39 }
 0x1b0   :  { %910 = vmatmul.mubr.bf16.vlgmr.msra.gmra.mxu1 %v4242_v25  ;;  %920 = vmatprep.subr.bf16.mxu0 %v471_v50  ;;  %v655_v50 = vunpack.c.h.s8.bf16 %v407_v46 }
 0x1b1   :  { %960 = vmatpush1.bf16.msra.mxu1 %v606_v51  ;;  %991 = vmatprep.mubr.bf16.mxu1 %v4239_v21  ;;  %v582_v21 = vunpack.c.l.s8.bf16 %v374_v0  ;;  %v406_v51 = vld [vmem:[#allocation5 + $0x3b0] sm:$0xff] }
 0x1b2   :  { %961 = vmatprep.subr.bf16.mxu1 %v599_v53  ;;  %v519_v53 = vunpack.c.l.s8.bf16 %v343_v43  ;;  %v334_v0 = vld [vmem:[#allocation5 + $0x170] sm:$0xff] }
 0x1b3   :  { %921 = vmatpush1.bf16.msra.mxu0 %v470_v55  ;;  %v654_v55 = vunpack.c.h.s8.bf16 %v406_v51  ;;  %v510_v3 = vunpack.c.h.s8.bf16 %v334_v0  ;;  %v502_v9 = vunpack.c.l.s8.bf16 %v334_v0 }
 0x1b4   :  { %922 = vmatprep.subr.bf16.mxu0 %v463_v60  ;;  %v647_v60 = vunpack.c.l.s8.bf16 %v407_v46 }
 0x1b5   :  { %962 = vmatpush1.bf16.msra.mxu1 %v598_v62  ;;  %v399_v62 = vld [vmem:[#allocation5 + $0x378] sm:$0xff] }
 0x1b6   :  { %963 = vmatprep.subr.bf16.mxu1 %v591_v63  ;;  %v511_v63 = vunpack.c.h.s8.bf16 %v335_v58 }
 0x1b7   :  { %923 = vmatpush1.bf16.msra.mxu0 %v462_v1  ;;  %v646_v1 = vunpack.c.l.s8.bf16 %v406_v51 }
 0x1b8   :  { %924 = vmatprep.subr.bf16.mxu0 %v455_v2  ;;  %v639_v2 = vunpack.c.h.s8.bf16 %v399_v62 }
 0x1b9   :  { %964 = vmatpush1.bf16.msra.mxu1 %v590_v17  ;;  %v398_v17 = vld [vmem:[#allocation5 + $0x370] sm:$0xff] }
 0x1ba   :  { %965 = vmatprep.subr.bf16.mxu1 %v583_v5  ;;  %v503_v5 = vunpack.c.l.s8.bf16 %v335_v58 }
 0x1bb   :  { %925 = vmatpush1.bf16.msra.mxu0 %v454_v6  ;;  %v638_v6 = vunpack.c.h.s8.bf16 %v398_v17 }
 0x1bc   :  { %926 = vmatprep.subr.bf16.mxu0 %v447_v8  ;;  %v631_v8 = vunpack.c.l.s8.bf16 %v399_v62 }
 0x1bd   :  { %966 = vmatpush1.bf16.msra.mxu1 %v582_v21  ;;  %v391_v21 = vld [vmem:[#allocation5 + $0x338] sm:$0xff] }
 0x1be   :  { %967 = vmatprep.subr.bf16.mxu1 %v575_v10  ;;  %v495_v10 = vunpack.c.h.s8.bf16 %v327_v7 }
 0x1bf   :  { %927 = vmatpush1.bf16.msra.mxu0 %v446_v13  ;;  %v630_v13 = vunpack.c.l.s8.bf16 %v398_v17 }
 0x1c0   :  { %928 = vmatprep.subr.bf16.mxu0 %v439_v14  ;;  %v623_v14 = vunpack.c.h.s8.bf16 %v391_v21 }
 0x1c1   :  { %968 = vmatpush1.bf16.msra.mxu1 %v574_v15  ;;  %v390_v15 = vld [vmem:[#allocation5 + $0x330] sm:$0xff] }
 0x1c2   :  { %969 = vmatprep.subr.bf16.mxu1 %v567_v18  ;;  %v487_v18 = vunpack.c.l.s8.bf16 %v327_v7 }
 0x1c3   :  { %929 = vmatpush1.bf16.msra.mxu0 %v438_v19  ;;  %v622_v19 = vunpack.c.h.s8.bf16 %v390_v15 }
 0x1c4   :  { %930 = vmatprep.subr.bf16.mxu0 %v431_v22  ;;  %v615_v22 = vunpack.c.l.s8.bf16 %v391_v21 }
 0x1c5   :  { %970 = vmatpush1.bf16.msra.mxu1 %v566_v24  ;;  %v1205_v24 = vld [vmem:[#allocation8 + $0x2c8] sm:$0xff] }
 0x1c6   :  { %971 = vmatprep.subr.bf16.mxu1 %v559_v26  ;;  %v1429_v26 = vunpack.c.h.s8.bf16 %v1141_v20  ;;  %v1549_v36 = vunpack.c.l.s8.bf16 %v1205_v24 }
 0x1c7   :  { %931 = vmatpush1.bf16.msra.mxu0 %v430_v28  ;;  %v614_v28 = vunpack.c.l.s8.bf16 %v390_v15 }
 0x1c8   :  { %932 = vmatprep.subr.bf16.mxu0 %v423_v29  ;;  %v1557_v29 = vunpack.c.h.s8.bf16 %v1205_v24 }
 0x1c9   :  { %972 = vmatpush1.bf16.msra.mxu1 %v558_v30  ;;  %v1204_v30 = vld [vmem:[#allocation8 + $0x2c0] sm:$0xff] }
 0x1ca   :  { %973 = vmatprep.subr.bf16.mxu1 %v551_v32  ;;  %v1421_v32 = vunpack.c.l.s8.bf16 %v1141_v20  ;;  %v1556_v34 = vunpack.c.h.s8.bf16 %v1204_v30 }
 0x1cb   :  { %933 = vmatpush1.bf16.msra.mxu0 %v422_v33  ;;  %v1133_v33 = vld [vmem:[#allocation8 + $0x88] sm:$0xff] }
 0x1cc   :  { %934 = vmatprep.subr.bf16.mxu0 %v543_v35 }
 0x1cd   :  { %974 = vmatpush1.bf16.msra.mxu1 %v550_v37  ;;  %v1420_v37 = vunpack.c.l.s8.bf16 %v1140_v27  ;;  %v1173_v27 = vld [vmem:[#allocation8 + $0x1c8] sm:$0xff] }
 0x1ce   :  { %975 = vmatprep.subr.bf16.mxu1 %v671_v38  ;;  %v1197_v38 = vld [vmem:[#allocation8 + $0x288] sm:$0xff] }
 0x1cf   :  { %935 = vmatpush2.bf16.msra.mxu0 %v542_v40 }
 0x1d0   :  { %936 = vmatprep.subr.bf16.mxu0 %v535_v41  ;;  %v4266_v41 = vld [vmem:[%s4562_s4] sm:$0xff] }
 0x1d1   :  { %976 = vmatpush2.bf16.msra.mxu1 %v670_v42  ;;  %v1413_v42 = vunpack.c.h.s8.bf16 %v1133_v33  ;;  %v1009_v43 = vrot.slane %v4266_v41, %v4223_v56 }
 0x1d2   :  { %977 = vmatprep.subr.bf16.mxu1 %v663_v44  ;;  %v1548_v44 = vunpack.c.l.s8.bf16 %v1204_v30 }
 0x1d3   :  { %937 = vmatpush2.bf16.msra.mxu0 %v534_v45  ;;  %v4270_v45 = vld [vmem:[#allocation7] sm:$0xff] }
 0x1d4   :  { %938 = vmatprep.subr.bf16.mxu0 %v527_v47  ;;  %v1541_v47 = vunpack.c.h.s8.bf16 %v1197_v38 }
 0x1d5   :  { %978 = vmatpush2.bf16.msra.mxu1 %v662_v49 }
 0x1d6   :  { %979 = vmatprep.subr.bf16.mxu1 %v655_v50  ;;  %v1059_v50 = vrot.slane %v4270_v45, %v4223_v56 }
 0x1d7   :  { %939 = vmatpush2.bf16.msra.mxu0 %v526_v52 }
 0x1d8   :  { %940 = vmatprep.subr.bf16.mxu0 %v519_v53 }
 0x1d9   :  { %980 = vmatpush2.bf16.msra.mxu1 %v654_v55  ;;  %v1405_v55 = vunpack.c.l.s8.bf16 %v1133_v33  ;;  %v1172_v33 = vld [vmem:[#allocation8 + $0x1c0] sm:$0xff] }
 0x1da   :  { %981 = vmatprep.subr.bf16.mxu1 %v647_v60  ;;  %v1125_v60 = vld [vmem:[#allocation8 + $0x48] sm:$0xff] }
 0x1db   :  { %941 = vmatpush2.bf16.msra.mxu0 %v518_v61  ;;  %v1540_v61 = vunpack.c.h.s8.bf16 %v1196_v48  ;;  %v1397_v17 = vunpack.c.h.s8.bf16 %v1125_v60 }
 0x1dc   :  { %942 = vmatprep.subr.bf16.mxu0 %v511_v63  ;;  %v1533_v63 = vunpack.c.l.s8.bf16 %v1197_v38  ;;  %v1492_v38 = vunpack.c.h.s8.bf16 %v1172_v33 }
 0x1dd   :  { %982 = vmatpush2.bf16.msra.mxu1 %v646_v1 }
 0x1de   :  { %983 = vmatprep.subr.bf16.mxu1 %v639_v2  ;;  %v1189_v2 = vld [vmem:[#allocation8 + $0x248] sm:$0xff] }
 0x1df   :  { %943 = vmatpush2.bf16.msra.mxu0 %v510_v3  ;;  %v1124_v3 = vld [vmem:[#allocation8 + $0x40] sm:$0xff]  ;;  %v1525_v7 = vunpack.c.h.s8.bf16 %v1189_v2 }
 0x1e0   :  { %944 = vmatprep.subr.bf16.mxu0 %v503_v5  ;;  %v1396_v21 = vunpack.c.h.s8.bf16 %v1124_v3  ;;  %v1388_v15 = vunpack.c.l.s8.bf16 %v1124_v3 }
 0x1e1   :  { %984 = vmatpush2.bf16.msra.mxu1 %v638_v6  ;;  %v1532_v6 = vunpack.c.l.s8.bf16 %v1196_v48 }
 0x1e2   :  { %985 = vmatprep.subr.bf16.mxu1 %v631_v8  ;;  %v1188_v8 = vld [vmem:[#allocation8 + $0x240] sm:$0xff] }
 0x1e3   :  { %945 = vmatpush2.bf16.msra.mxu0 %v502_v9  ;;  %v1516_v20 = vunpack.c.l.s8.bf16 %v1188_v8 }
 0x1e4   :  { %946 = vmatprep.subr.bf16.mxu0 %v495_v10  ;;  %v1389_v10 = vunpack.c.l.s8.bf16 %v1125_v60 }
 0x1e5   :  { %986 = vmatpush2.bf16.msra.mxu1 %v630_v13  ;;  %v1524_v13 = vunpack.c.h.s8.bf16 %v1188_v8 }
 0x1e6   :  { %987 = vmatprep.subr.bf16.mxu1 %v623_v14  ;;  %v1517_v14 = vunpack.c.l.s8.bf16 %v1189_v2  ;;  %v1220_v2 = vld [vmem:[#allocation8 + $0x340] sm:$0xff] }
 0x1e7   :  { %947 = vmatpush2.bf16.msra.mxu0 %v494_v16  ;;  %v1181_v16 = vld [vmem:[#allocation8 + $0x208] sm:$0xff]  ;;  %v1588_v8 = vunpack.c.h.s8.bf16 %v1220_v2 }
 0x1e8   :  { %948 = vmatprep.subr.bf16.mxu0 %v487_v18  ;;  %v1381_v18 = vunpack.c.h.s8.bf16 %v1117_v11 }
 0x1e9   :  { %988 = vmatpush2.bf16.msra.mxu1 %v622_v19  ;;  %v1116_v19 = vld [vmem:[#allocation8] sm:$0xff] }
 0x1ea   :  { %989 = vmatprep.subr.bf16.mxu1 %v615_v22  ;;  %v1509_v22 = vunpack.c.h.s8.bf16 %v1181_v16  ;;  %v1380_v24 = vunpack.c.h.s8.bf16 %v1116_v19  ;;  %v1372_v30 = vunpack.c.l.s8.bf16 %v1116_v19 }
 0x1eb   :  { %949 = vmatpush2.bf16.msra.mxu0 %v486_v23  ;;  %v1180_v23 = vld [vmem:[#allocation8 + $0x200] sm:$0xff] }
 0x1ec   :  { %1884 = vmatprep.subr.bf16.mxu0 %v1429_v26  ;;  %v1373_v26 = vunpack.c.l.s8.bf16 %v1117_v11  ;;  %v1213_v11 = vld [vmem:[#allocation8 + $0x308] sm:$0xff] }
 0x1ed   :  { %990 = vmatpush2.bf16.msra.mxu1 %v614_v28  ;;  %v1508_v28 = vunpack.c.h.s8.bf16 %v1180_v23 }
 0x1ee   :  { %951 = vmatmul.mubr.bf16.vlgmr.msra.gmra.mxu0 %v4235_v12  ;;  %v4258_v35 = vpop.f32.mrf.mxu0  ;;  %1925 = vmatprep.subr.bf16.mxu1 %v1557_v29  ;;  %v4261_v40 = vpop.f32.mrf.mxu1  ;;  %v1132_v12 = vld [vmem:[#allocation8 + $0x80] sm:$0xff]  ;;  %v1501_v29 = vunpack.c.l.s8.bf16 %v1181_v16  ;;  %v1573_v16 = vunpack.c.h.s8.bf16 %v1213_v11 }
 0x1ef   :  { %1885 = vmatpush1.bf16.msra.mxu0 %v1428_v31  ;;  %v1412_v51 = vunpack.c.h.s8.bf16 %v1132_v12  ;;  %v1404_v1 = vunpack.c.l.s8.bf16 %v1132_v12  ;;  %v1237_v31 = vld [vmem:[#allocation8 + $0x3c8] sm:$0xff]  ;;  %v748_v3 = vadd.f32 %v4261_v40, %v4258_v35  ;;  %v1148_v35 = vld [vmem:[#allocation8 + $0x100] sm:$0xff]  ;;  %v1580_v40 = vunpack.c.l.s8.bf16 %v1220_v2 }
 0x1f0   :  { %992 = vmatmul.mubr.bf16.vlgmr.msra.gmra.mxu1 %v4242_v25  ;;  %v708_v39 = vpop.f32.mrf.mxu0  ;;  %1886 = vmatprep.subr.bf16.mxu0 %v1421_v32  ;;  %v749_v25 = vpop.f32.mrf.mxu1  ;;  %v1493_v32 = vunpack.c.h.s8.bf16 %v1173_v27  ;;  %v1444_v19 = vunpack.c.h.s8.bf16 %v1148_v35 }
 0x1f1   :  { %1926 = vmatpush1.bf16.msra.mxu1 %v1556_v34  ;;  %v750_v49 = vadd.f32 %v749_v25, %v708_v39  ;;  %v1500_v34 = vunpack.c.l.s8.bf16 %v1180_v23  ;;  %v1485_v39 = vunpack.c.l.s8.bf16 %v1173_v27  ;;  %v1436_v27 = vunpack.c.l.s8.bf16 %v1148_v35 }
 0x1f2   :  { %v710_v46 = vpop.f32.mrf.mxu0  ;;  %1927 = vmatprep.subr.bf16.mxu1 %v1549_v36  ;;  %v751_v53 = vpop.f32.mrf.mxu1  ;;  %v1621_v36 = vunpack.c.h.s8.bf16 %v1237_v31 }
 0x1f3   :  { %1887 = vmatpush1.bf16.msra.mxu0 %v1420_v37  ;;  %v1043_v58 = vmul.f32 %v1009_v43, %v750_v49  ;;  %v1236_v37 = vld [vmem:[#allocation8 + $0x3c0] sm:$0xff]  ;;  %v1613_v43 = vunpack.c.l.s8.bf16 %v1237_v31  ;;  %v1229_v46 = vld [vmem:[#allocation8 + $0x388] sm:$0xff] }
 0x1f4   :  { %v711_v52 = vpop.f32.mrf.mxu0  ;;  %1888 = vmatprep.subr.bf16.mxu0 %v1413_v42  ;;  %v752_v62 = vpop.f32.mrf.mxu1  ;;  %v1165_v42 = vld [vmem:[#allocation8 + $0x188] sm:$0xff]  ;;  %v1620_v12 = vunpack.c.h.s8.bf16 %v1236_v37  ;;  %v1612_v48 = vunpack.c.l.s8.bf16 %v1236_v37  ;;  %v1605_v49 = vunpack.c.h.s8.bf16 %v1229_v46  ;;  %v1268_v31 = vld [vmem:[#allocation8 + $0x4c0] sm:$0xff] }
 0x1f5   :  { %1928 = vmatpush1.bf16.msra.mxu1 %v1548_v44  ;;  %v1093_v0 = vadd.f32 %v1059_v50, %v1043_v58  ;;  %v1484_v44 = vunpack.c.l.s8.bf16 %v1172_v33  ;;  %v1477_v25 = vunpack.c.h.s8.bf16 %v1165_v42  ;;  %v1228_v50 = vld [vmem:[#allocation8 + $0x380] sm:$0xff]  ;;  %v1469_v52 = vunpack.c.l.s8.bf16 %v1165_v42  ;;  %v1157_v53 = vld [vmem:[#allocation8 + $0x148] sm:$0xff] }
 0x1f6   :  { %1929 = vmatprep.subr.bf16.mxu1 %v1541_v47  ;;  %v1164_v47 = vld [vmem:[#allocation8 + $0x180] sm:$0xff]  ;;  %v1597_v58 = vunpack.c.l.s8.bf16 %v1229_v46  ;;  %v1461_v62 = vunpack.c.h.s8.bf16 %v1157_v53  ;;  %v1013_v42 = vrot.slane %v4266_v41, %v4226_v57 }
 0x1f7   :  { %1889 = vmatpush1.bf16.msra.mxu0 %v1412_v51  ;;  %v1101_v5 = vmax.f32 %v1093_v0, 0.0  ;;  %v1476_v51 = vunpack.c.h.s8.bf16 %v1164_v47  ;;  %v1468_v60 = vunpack.c.l.s8.bf16 %v1164_v47  ;;  %v1596_v0 = vunpack.c.l.s8.bf16 %v1228_v50 }
 0x1f8   :  { %1890 = vmatprep.subr.bf16.mxu0 %v1405_v55  ;;  %v1604_v55 = vunpack.c.h.s8.bf16 %v1228_v50 }
 0x1f9   :  { %1930 = vmatpush1.bf16.msra.mxu1 %v1540_v61  ;;  %v4274_v9 = vpack.c.bf16 %v1101_v5, %v1101_v5  ;;  %v1221_v61 = vld [vmem:[#allocation8 + $0x348] sm:$0xff]  ;;  %v1005_v5 = vrot.slane %v4266_v41, %v4220_v54 }
 0x1fa   :  { %1931 = vmatprep.subr.bf16.mxu1 %v1533_v63  ;;  %v1156_v63 = vld [vmem:[#allocation8 + $0x140] sm:$0xff] }
 0x1fb   :  { %1891 = vmatpush1.bf16.msra.mxu0 %v1404_v1  ;;  %1916 = vmatprep.mubr.bf16.mxu0 %v4274_v9  ;;  %v1589_v1 = vunpack.c.h.s8.bf16 %v1221_v61 }
 0x1fc   :  { %1892 = vmatprep.subr.bf16.mxu0 %v1397_v17  ;;  %v1460_v17 = vunpack.c.h.s8.bf16 %v1156_v63 }
 0x1fd   :  { %1932 = vmatpush1.bf16.msra.mxu1 %v1532_v6  ;;  %v1453_v6 = vunpack.c.l.s8.bf16 %v1157_v53 }
 0x1fe   :  { %1933 = vmatprep.subr.bf16.mxu1 %v1525_v7  ;;  %v1149_v7 = vld [vmem:[#allocation8 + $0x108] sm:$0xff] }
 0x1ff   :  { %1893 = vmatpush1.bf16.msra.mxu0 %v1396_v21  ;;  %v1581_v21 = vunpack.c.l.s8.bf16 %v1221_v61 }
 0x200   :  { %1894 = vmatprep.subr.bf16.mxu0 %v1389_v10  ;;  %v1452_v10 = vunpack.c.l.s8.bf16 %v1156_v63 }
 0x201   :  { %1934 = vmatpush1.bf16.msra.mxu1 %v1524_v13  ;;  %v1042_v13 = vmul.f32 %v1005_v5, %v748_v3 }
 0x202   :  { %1935 = vmatprep.subr.bf16.mxu1 %v1517_v14  ;;  %v1055_v14 = vrot.slane %v4270_v45, %v4220_v54 }
 0x203   :  { %1895 = vmatpush1.bf16.msra.mxu0 %v1388_v15  ;;  %v1445_v15 = vunpack.c.h.s8.bf16 %v1149_v7 }
 0x204   :  { %1896 = vmatprep.subr.bf16.mxu0 %v1381_v18  ;;  %v1212_v18 = vld [vmem:[#allocation8 + $0x300] sm:$0xff] }
 0x205   :  { %1936 = vmatpush1.bf16.msra.mxu1 %v1516_v20  ;;  %v1092_v20 = vadd.f32 %v1055_v14, %v1042_v13  ;;  %v1572_v23 = vunpack.c.h.s8.bf16 %v1212_v18 }
 0x206   :  { %1937 = vmatprep.subr.bf16.mxu1 %v1509_v22  ;;  %v1437_v22 = vunpack.c.l.s8.bf16 %v1149_v7  ;;  %v1252_v7 = vld [vmem:[#allocation8 + $0x440] sm:$0xff] }
 0x207   :  { %1897 = vmatpush1.bf16.msra.mxu0 %v1380_v24  ;;  %v1269_v24 = vld [vmem:[#allocation8 + $0x4c8] sm:$0xff] }
 0x208   :  { %1898 = vmatprep.subr.bf16.mxu0 %v1373_v26  ;;  %v1565_v26 = vunpack.c.l.s8.bf16 %v1213_v11  ;;  %v1677_v37 = vunpack.c.l.s8.bf16 %v1269_v24  ;;  %v1652_v11 = vunpack.c.h.s8.bf16 %v1252_v7 }
 0x209   :  { %1938 = vmatpush1.bf16.msra.mxu1 %v1508_v28  ;;  %v4283_v28 = vld [vmem:[#allocation8 + $0x6c8] sm:$0xff] }
 0x20a   :  { %1939 = vmatprep.subr.bf16.mxu1 %v1501_v29  ;;  %v1100_v29 = vmax.f32 %v1092_v20, 0.0  ;;  %v1813_v33 = vunpack.c.h.s8.bf16 %v4283_v28  ;;  %v1805_v35 = vunpack.c.l.s8.bf16 %v4283_v28 }
 0x20b   :  { %1899 = vmatpush1.bf16.msra.mxu0 %v1372_v30  ;;  %v1685_v30 = vunpack.c.h.s8.bf16 %v1269_v24  ;;  %v1324_v24 = vld [vmem:[#allocation8 + $0x680] sm:$0xff] }
 0x20c   :  { %1900 = vmatprep.subr.bf16.mxu0 %v1493_v32  ;;  %v1564_v32 = vunpack.c.l.s8.bf16 %v1212_v18  ;;  %v1644_v18 = vunpack.c.l.s8.bf16 %v1252_v7 }
 0x20d   :  { %1940 = vmatpush1.bf16.msra.mxu1 %v1500_v34  ;;  %v1684_v34 = vunpack.c.h.s8.bf16 %v1268_v31 }
 0x20e   :  { %1941 = vmatprep.subr.bf16.mxu1 %v1621_v36  ;;  %v4286_v36 = vpack.c.bf16 %v1100_v29, %v1100_v29 }
 0x20f   :  { %1901 = vmatpush2.bf16.msra.mxu0 %v1492_v38  ;;  %v1261_v38 = vld [vmem:[#allocation8 + $0x488] sm:$0xff] }
 0x210   :  { %1902 = vmatprep.subr.bf16.mxu0 %v1485_v39  ;;  %v1669_v46 = vunpack.c.h.s8.bf16 %v1261_v38 }
 0x211   :  { %1942 = vmatpush2.bf16.msra.mxu1 %v1620_v12  ;;  %v1676_v12 = vunpack.c.l.s8.bf16 %v1268_v31  ;;  %v1317_v31 = vld [vmem:[#allocation8 + $0x648] sm:$0xff] }
 0x212   :  { %1943 = vmatprep.subr.bf16.mxu1 %v1613_v43 }
 0x213   :  { %1903 = vmatpush2.bf16.msra.mxu0 %v1484_v44 }
 0x214   :  { %1904 = vmatprep.subr.bf16.mxu0 %v1477_v25  ;;  %v1260_v25 = vld [vmem:[#allocation8 + $0x480] sm:$0xff] }
 0x215   :  { %1944 = vmatpush2.bf16.msra.mxu1 %v1612_v48  ;;  %v1063_v48 = vrot.slane %v4270_v45, %v4226_v57  ;;  %v1660_v3 = vunpack.c.l.s8.bf16 %v1260_v25 }
 0x216   :  { %1945 = vmatprep.subr.bf16.mxu1 %v1605_v49  ;;  %v1017_v49 = vrot.slane %v4266_v41, %v4230_v59 }
 0x217   :  { %1905 = vmatpush2.bf16.msra.mxu0 %v1476_v51 }
 0x218   :  { %1906 = vmatprep.subr.bf16.mxu0 %v1469_v52 }
 0x219   :  { %1946 = vmatpush2.bf16.msra.mxu1 %v1604_v55  ;;  %v1067_v55 = vrot.slane %v4270_v45, %v4230_v59 }
 0x21a   :  { %1947 = vmatprep.subr.bf16.mxu1 %v1597_v58  ;;  %v1668_v58 = vunpack.c.h.s8.bf16 %v1260_v25  ;;  %v1309_v25 = vld [vmem:[#allocation8 + $0x608] sm:$0xff] }
 0x21b   :  { %1907 = vmatpush2.bf16.msra.mxu0 %v1468_v60 }
 0x21c   :  { %1908 = vmatprep.subr.bf16.mxu0 %v1461_v62  ;;  %v1661_v62 = vunpack.c.l.s8.bf16 %v1261_v38  ;;  %v1781_v38 = vunpack.c.h.s8.bf16 %v1317_v31 }
 0x21d   :  { %1948 = vmatpush2.bf16.msra.mxu1 %v1596_v0 }
 0x21e   :  { %1949 = vmatprep.subr.bf16.mxu1 %v1589_v1  ;;  %v1253_v1 = vld [vmem:[#allocation8 + $0x448] sm:$0xff] }
 0x21f   :  { %1909 = vmatpush2.bf16.msra.mxu0 %v1460_v17 }
 0x220   :  { %1910 = vmatprep.subr.bf16.mxu0 %v1453_v6  ;;  %v1653_v6 = vunpack.c.h.s8.bf16 %v1253_v1 }
 0x221   :  { %1950 = vmatpush2.bf16.msra.mxu1 %v1588_v8  ;;  %v1332_v8 = vld [vmem:[#allocation8 + $0x6c0] sm:$0xff] }
 0x222   :  { %1951 = vmatprep.subr.bf16.mxu1 %v1581_v21  ;;  %v1812_v13 = vunpack.c.h.s8.bf16 %v1332_v8 }
 0x223   :  { %1911 = vmatpush2.bf16.msra.mxu0 %v1452_v10 }
 0x224   :  { %1912 = vmatprep.subr.bf16.mxu0 %v1445_v15  ;;  %v1645_v15 = vunpack.c.l.s8.bf16 %v1253_v1 }
 0x225   :  { %1952 = vmatpush2.bf16.msra.mxu1 %v1580_v40  ;;  %v1245_v40 = vld [vmem:[#allocation8 + $0x408] sm:$0xff] }
 0x226   :  { %1953 = vmatprep.subr.bf16.mxu1 %v1573_v16  ;;  %v1325_v16 = vld [vmem:[#allocation8 + $0x688] sm:$0xff]  ;;  %v1637_v20 = vunpack.c.h.s8.bf16 %v1245_v40  ;;  %v1629_v28 = vunpack.c.l.s8.bf16 %v1245_v40  ;;  %v1276_v40 = vld [vmem:[#allocation8 + $0x500] sm:$0xff] }
 0x227   :  { %1913 = vmatpush2.bf16.msra.mxu0 %v1444_v19  ;;  %v1804_v19 = vunpack.c.l.s8.bf16 %v1332_v8  ;;  %v1789_v29 = vunpack.c.l.s8.bf16 %v1325_v16 }
 0x228   :  { %1914 = vmatprep.subr.bf16.mxu0 %v1437_v22  ;;  %v1244_v22 = vld [vmem:[#allocation8 + $0x400] sm:$0xff] }
 0x229   :  { %1954 = vmatpush2.bf16.msra.mxu1 %v1572_v23  ;;  %v1797_v23 = vunpack.c.h.s8.bf16 %v1325_v16 }
 0x22a   :  { %1955 = vmatprep.subr.bf16.mxu1 %v1565_v26  ;;  %v1636_v26 = vunpack.c.h.s8.bf16 %v1244_v22 }
 0x22b   :  { %1915 = vmatpush2.bf16.msra.mxu0 %v1436_v27  ;;  %v1796_v27 = vunpack.c.h.s8.bf16 %v1324_v24 }
 0x22c   :  { %1966 = vmatprep.subr.bf16.mxu0 %v1685_v30  ;;  %v1301_v30 = vld [vmem:[#allocation8 + $0x5c8] sm:$0xff] }
 0x22d   :  { %1956 = vmatpush2.bf16.msra.mxu1 %v1564_v32  ;;  %v1628_v32 = vunpack.c.l.s8.bf16 %v1244_v22 }
 0x22e   :  { %v788_v39 = vpop.f32.mrf.mxu0  ;;  %1917 = vmatmul.mubr.bf16.vlgmr.msra.gmra.mxu0 %v4286_v36  ;;  %2007 = vmatprep.subr.bf16.mxu1 %v1813_v33  ;;  %v1788_v33 = vunpack.c.l.s8.bf16 %v1324_v24  ;;  %v4304_v24 = vld [vmem:[#allocation8 + $0xd8] sm:$0xff] }
 0x22f   :  { %1967 = vmatpush1.bf16.msra.mxu0 %v1684_v34  ;;  %v1749_v34 = vunpack.c.h.s8.bf16 %v1301_v30 }
 0x230   :  { %v790_v43 = vpop.f32.mrf.mxu0  ;;  %v829_v44 = vpop.f32.mrf.mxu1  ;;  %1968 = vmatprep.subr.bf16.mxu0 %v1677_v37  ;;  %v1300_v37 = vld [vmem:[#allocation8 + $0x5c0] sm:$0xff] }
 0x231   :  { %v830_v47 = vadd.f32 %v829_v44, %v788_v39  ;;  %v1316_v39 = vld [vmem:[#allocation8 + $0x640] sm:$0xff]  ;;  %v1773_v44 = vunpack.c.l.s8.bf16 %v1317_v31 }
 0x232   :  { %v792_v50 = vpop.f32.mrf.mxu0  ;;  %v831_v51 = vpop.f32.mrf.mxu1  ;;  %v1348_v31 = vld [vmem:[#allocation8 + $0x740] sm:$0xff] }
 0x233   :  { %v1044_v52 = vmul.f32 %v1013_v42, %v830_v47  ;;  %v832_v53 = vadd.f32 %v831_v51, %v790_v43  ;;  %1969 = vmatpush1.bf16.msra.mxu0 %v1676_v12  ;;  %v1748_v42 = vunpack.c.h.s8.bf16 %v1300_v37  ;;  %v1780_v12 = vunpack.c.h.s8.bf16 %v1316_v39  ;;  %v1292_v50 = vld [vmem:[#allocation8 + $0x580] sm:$0xff] }
 0x234   :  { %v793_v60 = vpop.f32.mrf.mxu0  ;;  %v833_v61 = vpop.f32.mrf.mxu1  ;;  %1970 = vmatprep.subr.bf16.mxu0 %v1669_v46  ;;  %v1741_v43 = vunpack.c.l.s8.bf16 %v1301_v30  ;;  %v1293_v46 = vld [vmem:[#allocation8 + $0x588] sm:$0xff]  ;;  %v1740_v47 = vunpack.c.l.s8.bf16 %v1300_v37  ;;  %v1765_v51 = vunpack.c.h.s8.bf16 %v1309_v25  ;;  %v4311_v37 = vsub.s32 5, %v4206_v4 }
 0x235   :  { %v1094_v63 = vadd.f32 %v1063_v48, %v1044_v52  ;;  %v1045_v0 = vmul.f32 %v1017_v49, %v832_v53  ;;  %v1772_v48 = vunpack.c.l.s8.bf16 %v1316_v39  ;;  %v1733_v49 = vunpack.c.h.s8.bf16 %v1293_v46  ;;  %v1308_v52 = vld [vmem:[#allocation8 + $0x600] sm:$0xff]  ;;  %v1285_v61 = vld [vmem:[#allocation8 + $0x548] sm:$0xff] }
 0x236   :  { %v834_v2 = vpop.f32.mrf.mxu1  ;;  %v1732_v53 = vunpack.c.h.s8.bf16 %v1292_v50  ;;  %v1757_v60 = vunpack.c.l.s8.bf16 %v1309_v25  ;;  %v1717_v1 = vunpack.c.h.s8.bf16 %v1285_v61  ;;  %v1709_v7 = vunpack.c.l.s8.bf16 %v1285_v61  ;;  %v1340_v25 = vld [vmem:[#allocation8 + $0x700] sm:$0xff] }
 0x237   :  { %v1095_v17 = vadd.f32 %v1067_v55, %v1045_v0  ;;  %1971 = vmatpush1.bf16.msra.mxu0 %v1668_v58  ;;  %v1102_v5 = vmax.f32 %v1094_v63, 0.0  ;;  %v1764_v55 = vunpack.c.h.s8.bf16 %v1308_v52  ;;  %v1725_v58 = vunpack.c.l.s8.bf16 %v1293_v46  ;;  %v1284_v2 = vld [vmem:[#allocation8 + $0x540] sm:$0xff] }
 0x238   :  { %1972 = vmatprep.subr.bf16.mxu0 %v1661_v62  ;;  %v1365_v62 = vld [vmem:[#allocation8 + $0x7c8] sm:$0xff]  ;;  %v1724_v63 = vunpack.c.l.s8.bf16 %v1292_v50  ;;  %v1756_v0 = vunpack.c.l.s8.bf16 %v1308_v52 }
 0x239   :  { %v1103_v21 = vmax.f32 %v1095_v17, 0.0  ;;  %v4299_v14 = vpack.c.bf16 %v1102_v5, %v1102_v5  ;;  %v1877_v17 = vunpack.c.h.s8.bf16 %v1365_v62  ;;  %v1716_v5 = vunpack.c.h.s8.bf16 %v1284_v2 }
 0x23a   :  { %v1869_v8 = vunpack.c.l.s8.bf16 %v1365_v62 }
 0x23b   :  { %v4297_v10 = vpack.c.bf16 %v1103_v21, %v1103_v21  ;;  %1973 = vmatpush1.bf16.msra.mxu0 %v1660_v3  ;;  %v1364_v3 = vld [vmem:[#allocation8 + $0x7c0] sm:$0xff]  ;;  %v1277_v21 = vld [vmem:[#allocation8 + $0x508] sm:$0xff] }
 0x23c   :  { %1974 = vmatprep.subr.bf16.mxu0 %v1653_v6  ;;  %v1876_v6 = vunpack.c.h.s8.bf16 %v1364_v3  ;;  %v1693_v22 = vunpack.c.l.s8.bf16 %v1277_v21 }
 0x23d   :  { %1957 = vmatprep.mubr.bf16.mxu1 %v4297_v10 }
 0x23e   :  { %1958 = vmatmul.mubr.bf16.vlgmr.msra.gmra.mxu1 %v4299_v14 }
 0x23f   :  { %1975 = vmatpush1.bf16.msra.mxu0 %v1652_v11  ;;  %2008 = vmatpush1.bf16.msra.mxu1 %v1812_v13  ;;  %v1357_v11 = vld [vmem:[#allocation8 + $0x788] sm:$0xff]  ;;  %v1708_v13 = vunpack.c.l.s8.bf16 %v1284_v2 }
 0x240   :  { %1976 = vmatprep.subr.bf16.mxu0 %v1645_v15  ;;  %2009 = vmatprep.subr.bf16.mxu1 %v1805_v35  ;;  %v1868_v15 = vunpack.c.l.s8.bf16 %v1364_v3  ;;  %v1701_v35 = vunpack.c.h.s8.bf16 %v1277_v21  ;;  %v1861_v16 = vunpack.c.h.s8.bf16 %v1357_v11  ;;  %v1820_v3 = vunpack.c.l.s8.bf16 %v1340_v25 }
 0x243   :  { %1977 = vmatpush1.bf16.msra.mxu0 %v1644_v18  ;;  %2010 = vmatpush1.bf16.msra.mxu1 %v1804_v19  ;;  %v1356_v18 = vld [vmem:[#allocation8 + $0x780] sm:$0xff]  ;;  %v1700_v19 = vunpack.c.h.s8.bf16 %v1276_v40 }
 0x244   :  { %1978 = vmatprep.subr.bf16.mxu0 %v1637_v20  ;;  %2011 = vmatprep.subr.bf16.mxu1 %v1797_v23  ;;  %v1860_v20 = vunpack.c.h.s8.bf16 %v1356_v18  ;;  %v1853_v23 = vunpack.c.l.s8.bf16 %v1357_v11 }
 0x247   :  { %1979 = vmatpush1.bf16.msra.mxu0 %v1636_v26  ;;  %2012 = vmatpush1.bf16.msra.mxu1 %v1796_v27  ;;  %v1349_v26 = vld [vmem:[#allocation8 + $0x748] sm:$0xff]  ;;  %v1692_v27 = vunpack.c.l.s8.bf16 %v1276_v40 }
 0x248   :  { %1980 = vmatprep.subr.bf16.mxu0 %v1629_v28  ;;  %2013 = vmatprep.subr.bf16.mxu1 %v1789_v29  ;;  %v1852_v28 = vunpack.c.l.s8.bf16 %v1356_v18  ;;  %v1431_v29 = vunpack.c.h.s8.bf16 %v4304_v24  ;;  %v1845_v30 = vunpack.c.h.s8.bf16 %v1349_v26  ;;  %v1134_v18 = vld [vmem:[#allocation8 + $0x90] sm:$0xff] }
 0x24b   :  { %1981 = vmatpush1.bf16.msra.mxu0 %v1628_v32  ;;  %2014 = vmatpush1.bf16.msra.mxu1 %v1788_v33  ;;  %v4308_v32 = vsub.s32 4, %v4206_v4  ;;  %v1844_v33 = vunpack.c.h.s8.bf16 %v1348_v31 }
 0x24c   :  { %1982 = vmatprep.subr.bf16.mxu0 %v1749_v34  ;;  %2015 = vmatprep.subr.bf16.mxu1 %v1781_v38  ;;  %v1837_v34 = vunpack.c.l.s8.bf16 %v1349_v26  ;;  %v1341_v38 = vld [vmem:[#allocation8 + $0x708] sm:$0xff]  ;;  %v1126_v26 = vld [vmem:[#allocation8 + $0x50] sm:$0xff] }
 0x24d   :  { %v1829_v46 = vunpack.c.h.s8.bf16 %v1341_v38  ;;  %v1821_v62 = vunpack.c.l.s8.bf16 %v1341_v38 }
 0x24f   :  { %1983 = vmatpush2.bf16.msra.mxu0 %v1748_v42  ;;  %2016 = vmatpush1.bf16.msra.mxu1 %v1780_v12  ;;  %v1021_v42 = vrot.slane %v4266_v41, %v4308_v32  ;;  %v1836_v12 = vunpack.c.l.s8.bf16 %v1348_v31 }
 0x250   :  { %1984 = vmatprep.subr.bf16.mxu0 %v1741_v43  ;;  %2017 = vmatprep.subr.bf16.mxu1 %v1773_v44 }
 0x253   :  { %1985 = vmatpush2.bf16.msra.mxu0 %v1740_v47  ;;  %2018 = vmatpush1.bf16.msra.mxu1 %v1772_v48  ;;  %v1071_v48 = vrot.slane %v4270_v45, %v4308_v32 }
 0x254   :  { %1986 = vmatprep.subr.bf16.mxu0 %v1733_v49  ;;  %2019 = vmatprep.subr.bf16.mxu1 %v1765_v51  ;;  %v1025_v49 = vrot.slane %v4266_v41, %v4311_v37 }
 0x257   :  { %1987 = vmatpush2.bf16.msra.mxu0 %v1732_v53  ;;  %2020 = vmatpush1.bf16.msra.mxu1 %v1764_v55  ;;  %v1075_v55 = vrot.slane %v4270_v45, %v4311_v37 }
 0x258   :  { %1988 = vmatprep.subr.bf16.mxu0 %v1725_v58  ;;  %2021 = vmatprep.subr.bf16.mxu1 %v1757_v60  ;;  %v1828_v58 = vunpack.c.h.s8.bf16 %v1340_v25  ;;  %v1167_v25 = vld [vmem:[#allocation8 + $0x198] sm:$0xff] }
 0x25b   :  { %1989 = vmatpush2.bf16.msra.mxu0 %v1724_v63  ;;  %2022 = vmatpush1.bf16.msra.mxu1 %v1756_v0 }
 0x25c   :  { %1990 = vmatprep.subr.bf16.mxu0 %v1717_v1  ;;  %2023 = vmatprep.subr.bf16.mxu1 %v1877_v17  ;;  %v4321_v1 = vld [vmem:[#allocation8 + $0x2d8] sm:$0xff] }
 0x25f   :  { %1991 = vmatpush2.bf16.msra.mxu0 %v1716_v5  ;;  %2024 = vmatpush2.bf16.msra.mxu1 %v1876_v6  ;;  %v1142_v6 = vld [vmem:[#allocation8 + $0xd0] sm:$0xff] }
 0x260   :  { %1992 = vmatprep.subr.bf16.mxu0 %v1709_v7  ;;  %2025 = vmatprep.subr.bf16.mxu1 %v1869_v8  ;;  %v1559_v7 = vunpack.c.h.s8.bf16 %v4321_v1  ;;  %v1430_v11 = vunpack.c.h.s8.bf16 %v1142_v6  ;;  %v1422_v40 = vunpack.c.l.s8.bf16 %v1142_v6 }
 0x263   :  { %1993 = vmatpush2.bf16.msra.mxu0 %v1708_v13  ;;  %2026 = vmatpush2.bf16.msra.mxu1 %v1868_v15  ;;  %v1423_v15 = vunpack.c.l.s8.bf16 %v4304_v24 }
 0x264   :  { %1994 = vmatprep.subr.bf16.mxu0 %v1701_v35  ;;  %2027 = vmatprep.subr.bf16.mxu1 %v1861_v16  ;;  %v1135_v35 = vld [vmem:[#allocation8 + $0x98] sm:$0xff] }
 0x265   :  { %v1415_v16 = vunpack.c.h.s8.bf16 %v1135_v35 }
 0x267   :  { %1995 = vmatpush2.bf16.msra.mxu0 %v1700_v19  ;;  %2028 = vmatpush2.bf16.msra.mxu1 %v1860_v20  ;;  %v1414_v19 = vunpack.c.h.s8.bf16 %v1134_v18  ;;  %v1407_v20 = vunpack.c.l.s8.bf16 %v1135_v35 }
 0x268   :  { %1996 = vmatprep.subr.bf16.mxu0 %v1693_v22  ;;  %2029 = vmatprep.subr.bf16.mxu1 %v1853_v23  ;;  %v1127_v22 = vld [vmem:[#allocation8 + $0x58] sm:$0xff]  ;;  %v1406_v23 = vunpack.c.l.s8.bf16 %v1134_v18 }
 0x269   :  { %v1399_v24 = vunpack.c.h.s8.bf16 %v1127_v22 }
 0x26b   :  { %1997 = vmatpush2.bf16.msra.mxu0 %v1692_v27  ;;  %2030 = vmatpush2.bf16.msra.mxu1 %v1852_v28  ;;  %v1398_v27 = vunpack.c.h.s8.bf16 %v1126_v26  ;;  %v1391_v28 = vunpack.c.l.s8.bf16 %v1127_v22 }
 0x26c   :  { %2048 = vmatprep.subr.bf16.mxu0 %v1431_v29  ;;  %2031 = vmatprep.subr.bf16.mxu1 %v1845_v30  ;;  %v1119_v29 = vld [vmem:[#allocation8 + $0x18] sm:$0xff]  ;;  %v1390_v30 = vunpack.c.l.s8.bf16 %v1126_v26 }
 0x26d   :  { %v1383_v31 = vunpack.c.h.s8.bf16 %v1119_v29  ;;  %v1375_v38 = vunpack.c.l.s8.bf16 %v1119_v29 }
 0x26e   :  { %v870_v39 = vpop.f32.mrf.mxu0 }
 0x26f   :  { %2032 = vmatpush2.bf16.msra.mxu1 %v1844_v33  ;;  %v1118_v33 = vld [vmem:[#allocation8 + $0x10] sm:$0xff] }
 0x270   :  { %v872_v43 = vpop.f32.mrf.mxu0  ;;  %v911_v44 = vpop.f32.mrf.mxu1  ;;  %2033 = vmatprep.subr.bf16.mxu1 %v1837_v34  ;;  %v1382_v34 = vunpack.c.h.s8.bf16 %v1118_v33 }
 0x271   :  { %v912_v47 = vadd.f32 %v911_v44, %v870_v39  ;;  %v1175_v39 = vld [vmem:[#allocation8 + $0x1d8] sm:$0xff] }
 0x272   :  { %v874_v50 = vpop.f32.mrf.mxu0  ;;  %v913_v51 = vpop.f32.mrf.mxu1 }
 0x273   :  { %v1046_v52 = vmul.f32 %v1021_v42, %v912_v47  ;;  %v914_v53 = vadd.f32 %v913_v51, %v872_v43  ;;  %2034 = vmatpush2.bf16.msra.mxu1 %v1836_v12  ;;  %v1374_v42 = vunpack.c.l.s8.bf16 %v1118_v33  ;;  %v1495_v12 = vunpack.c.h.s8.bf16 %v1175_v39  ;;  %v1174_v43 = vld [vmem:[#allocation8 + $0x1d0] sm:$0xff] }
 0x274   :  { %v875_v60 = vpop.f32.mrf.mxu0  ;;  %v915_v61 = vpop.f32.mrf.mxu1  ;;  %2035 = vmatprep.subr.bf16.mxu1 %v1829_v46  ;;  %v1494_v44 = vunpack.c.h.s8.bf16 %v1174_v43  ;;  %v1487_v46 = vunpack.c.l.s8.bf16 %v1175_v39  ;;  %v1486_v47 = vunpack.c.l.s8.bf16 %v1174_v43  ;;  %v1471_v51 = vunpack.c.l.s8.bf16 %v1167_v25 }
 0x275   :  { %v1096_v63 = vadd.f32 %v1071_v48, %v1046_v52  ;;  %v1047_v0 = vmul.f32 %v1025_v49, %v914_v53  ;;  %v1479_v48 = vunpack.c.h.s8.bf16 %v1167_v25  ;;  %v1166_v49 = vld [vmem:[#allocation8 + $0x190] sm:$0xff]  ;;  %v1159_v52 = vld [vmem:[#allocation8 + $0x158] sm:$0xff]  ;;  %v4333_v61 = vsub.s32 6, %v4206_v4 }
 0x276   :  { %v916_v2 = vpop.f32.mrf.mxu1  ;;  %v1478_v50 = vunpack.c.h.s8.bf16 %v1166_v49  ;;  %v1470_v53 = vunpack.c.l.s8.bf16 %v1166_v49  ;;  %v1199_v25 = vld [vmem:[#allocation8 + $0x298] sm:$0xff] }
 0x277   :  { %v1097_v17 = vadd.f32 %v1075_v55, %v1047_v0  ;;  %2036 = vmatpush2.bf16.msra.mxu1 %v1828_v58  ;;  %v1104_v5 = vmax.f32 %v1096_v63, 0.0  ;;  %v1463_v55 = vunpack.c.h.s8.bf16 %v1159_v52  ;;  %v1158_v58 = vld [vmem:[#allocation8 + $0x150] sm:$0xff]  ;;  %v4336_v63 = vsub.s32 7, %v4206_v4  ;;  %v1151_v0 = vld [vmem:[#allocation8 + $0x118] sm:$0xff] }
 0x278   :  { %2037 = vmatprep.subr.bf16.mxu1 %v1821_v62  ;;  %v1462_v60 = vunpack.c.h.s8.bf16 %v1158_v58  ;;  %v1455_v62 = vunpack.c.l.s8.bf16 %v1159_v52  ;;  %v1198_v52 = vld [vmem:[#allocation8 + $0x290] sm:$0xff] }
 0x279   :  { %v1105_v8 = vmax.f32 %v1097_v17, 0.0  ;;  %v4326_v13 = vpack.c.bf16 %v1104_v5, %v1104_v5  ;;  %v1029_v17 = vrot.slane %v4266_v41, %v4333_v61  ;;  %v1033_v4 = vrot.slane %v4266_v41, %v4336_v63 }
 0x27b   :  { %v4324_v21 = vpack.c.bf16 %v1105_v8, %v1105_v8  ;;  %2038 = vmatpush2.bf16.msra.mxu1 %v1820_v3  ;;  %v1454_v3 = vunpack.c.l.s8.bf16 %v1158_v58  ;;  %v1150_v8 = vld [vmem:[#allocation8 + $0x110] sm:$0xff]  ;;  %v1535_v58 = vunpack.c.l.s8.bf16 %v1199_v25 }
 0x27c   :  { %2089 = vmatprep.subr.bf16.mxu1 %v1559_v7  ;;  %v1447_v7 = vunpack.c.h.s8.bf16 %v1151_v0  ;;  %v1438_v41 = vunpack.c.l.s8.bf16 %v1150_v8 }
 0x27d   :  { %1998 = vmatprep.mubr.bf16.mxu0 %v4324_v21 }
 0x27e   :  { %1999 = vmatmul.mubr.bf16.vlgmr.msra.gmra.mxu0 %v4326_v13 }
 0x27f   :  { %2049 = vmatpush1.bf16.msra.mxu0 %v1430_v11  ;;  %2080 = vmatprep.mubr.bf16.mxu0 %v4274_v9 }
 0x280   :  { %2050 = vmatprep.subr.bf16.mxu0 %v1423_v15  ;;  %v1079_v15 = vrot.slane %v4270_v45, %v4333_v61 }
 0x283   :  { %2051 = vmatpush1.bf16.msra.mxu0 %v1422_v40 }
 0x284   :  { %2052 = vmatprep.subr.bf16.mxu0 %v1415_v16 }
 0x287   :  { %2053 = vmatpush1.bf16.msra.mxu0 %v1414_v19  ;;  %v1083_v19 = vrot.slane %v4270_v45, %v4336_v63 }
 0x288   :  { %2054 = vmatprep.subr.bf16.mxu0 %v1407_v20  ;;  %v1446_v20 = vunpack.c.h.s8.bf16 %v1150_v8 }
 0x28b   :  { %2055 = vmatpush1.bf16.msra.mxu0 %v1406_v23 }
 0x28c   :  { %2056 = vmatprep.subr.bf16.mxu0 %v1399_v24  ;;  %v1439_v24 = vunpack.c.l.s8.bf16 %v1151_v0  ;;  %v1255_v0 = vld [vmem:[#allocation8 + $0x458] sm:$0xff] }
 0x28f   :  { %2057 = vmatpush1.bf16.msra.mxu0 %v1398_v27 }
 0x290   :  { %2058 = vmatprep.subr.bf16.mxu0 %v1391_v28  ;;  %v1271_v28 = vld [vmem:[#allocation8 + $0x4d8] sm:$0xff] }
 0x291   :  { %v1687_v33 = vunpack.c.h.s8.bf16 %v1271_v28 }
 0x293   :  { %2059 = vmatpush1.bf16.msra.mxu0 %v1390_v30 }
 0x294   :  { %2060 = vmatprep.subr.bf16.mxu0 %v1383_v31 }
 0x297   :  { %2061 = vmatpush1.bf16.msra.mxu0 %v1382_v34  ;;  %v1206_v34 = vld [vmem:[#allocation8 + $0x2d0] sm:$0xff] }
 0x298   :  { %2062 = vmatprep.subr.bf16.mxu0 %v1375_v38  ;;  %v1270_v38 = vld [vmem:[#allocation8 + $0x4d0] sm:$0xff] }
 0x299   :  { %v1678_v49 = vunpack.c.l.s8.bf16 %v1270_v38 }
 0x29b   :  { %2063 = vmatpush1.bf16.msra.mxu0 %v1374_v42  ;;  %v1558_v42 = vunpack.c.h.s8.bf16 %v1206_v34 }
 0x29c   :  { %2064 = vmatprep.subr.bf16.mxu0 %v1495_v12  ;;  %v1686_v12 = vunpack.c.h.s8.bf16 %v1270_v38  ;;  %v1238_v38 = vld [vmem:[#allocation8 + $0x3d0] sm:$0xff] }
 0x29f   :  { %2065 = vmatpush2.bf16.msra.mxu0 %v1494_v44  ;;  %v1551_v44 = vunpack.c.l.s8.bf16 %v4321_v1  ;;  %v1542_v1 = vunpack.c.h.s8.bf16 %v1198_v52 }
 0x2a0   :  { %2066 = vmatprep.subr.bf16.mxu0 %v1487_v46  ;;  %v1679_v46 = vunpack.c.l.s8.bf16 %v1271_v28 }
 0x2a3   :  { %2067 = vmatpush2.bf16.msra.mxu0 %v1486_v47  ;;  %v1263_v47 = vld [vmem:[#allocation8 + $0x498] sm:$0xff] }
 0x2a4   :  { %2068 = vmatprep.subr.bf16.mxu0 %v1479_v48  ;;  %v1550_v48 = vunpack.c.l.s8.bf16 %v1206_v34 }
 0x2a7   :  { %2069 = vmatpush2.bf16.msra.mxu0 %v1478_v50  ;;  %v1543_v50 = vunpack.c.h.s8.bf16 %v1199_v25  ;;  %v1231_v25 = vld [vmem:[#allocation8 + $0x398] sm:$0xff] }
 0x2a8   :  { %2070 = vmatprep.subr.bf16.mxu0 %v1471_v51  ;;  %v1671_v51 = vunpack.c.h.s8.bf16 %v1263_v47 }
 0x2ab   :  { %2071 = vmatpush2.bf16.msra.mxu0 %v1470_v53  ;;  %v1262_v53 = vld [vmem:[#allocation8 + $0x490] sm:$0xff] }
 0x2ac   :  { %2072 = vmatprep.subr.bf16.mxu0 %v1463_v55  ;;  %v1670_v55 = vunpack.c.h.s8.bf16 %v1262_v53 }
 0x2ae   :  { %v952_v2 = vpop.f32.mrf.mxu0 }
 0x2af   :  { %2073 = vmatpush2.bf16.msra.mxu0 %v1462_v60  ;;  %v1663_v60 = vunpack.c.l.s8.bf16 %v1263_v47  ;;  %v1295_v47 = vld [vmem:[#allocation8 + $0x598] sm:$0xff] }
 0x2b0   :  { %v954_v5 = vpop.f32.mrf.mxu0  ;;  %v993_v6 = vpop.f32.mrf.mxu1  ;;  %2074 = vmatprep.subr.bf16.mxu0 %v1455_v62  ;;  %v1191_v62 = vld [vmem:[#allocation8 + $0x258] sm:$0xff] }
 0x2b1   :  { %v994_v11 = vadd.f32 %v993_v6, %v952_v2  ;;  %v1534_v2 = vunpack.c.l.s8.bf16 %v1198_v52  ;;  %v1190_v6 = vld [vmem:[#allocation8 + $0x250] sm:$0xff] }
 0x2b2   :  { %v956_v35 = vpop.f32.mrf.mxu0  ;;  %v995_v40 = vpop.f32.mrf.mxu1  ;;  %v1526_v8 = vunpack.c.h.s8.bf16 %v1190_v6  ;;  %v1230_v52 = vld [vmem:[#allocation8 + $0x390] sm:$0xff] }
 0x2b3   :  { %v1048_v16 = vmul.f32 %v1029_v17, %v994_v11  ;;  %v996_v18 = vadd.f32 %v995_v40, %v954_v5  ;;  %2075 = vmatpush2.bf16.msra.mxu0 %v1454_v3  ;;  %v1662_v17 = vunpack.c.l.s8.bf16 %v1262_v53  ;;  %v1527_v3 = vunpack.c.h.s8.bf16 %v1191_v62  ;;  %v1183_v35 = vld [vmem:[#allocation8 + $0x218] sm:$0xff]  ;;  %v1294_v53 = vld [vmem:[#allocation8 + $0x590] sm:$0xff] }
 0x2b4   :  { %v957_v22 = vpop.f32.mrf.mxu0  ;;  %v997_v23 = vpop.f32.mrf.mxu1  ;;  %2076 = vmatprep.subr.bf16.mxu0 %v1447_v7  ;;  %v1655_v5 = vunpack.c.h.s8.bf16 %v1255_v0  ;;  %v1254_v7 = vld [vmem:[#allocation8 + $0x450] sm:$0xff]  ;;  %v1247_v40 = vld [vmem:[#allocation8 + $0x418] sm:$0xff] }
 0x2b5   :  { %v1098_v26 = vadd.f32 %v1079_v15, %v1048_v16  ;;  %v1049_v27 = vmul.f32 %v1033_v4, %v996_v18  ;;  %v1654_v11 = vunpack.c.h.s8.bf16 %v1254_v7  ;;  %v1519_v15 = vunpack.c.l.s8.bf16 %v1191_v62  ;;  %v1182_v22 = vld [vmem:[#allocation8 + $0x210] sm:$0xff]  ;;  %v1223_v62 = vld [vmem:[#allocation8 + $0x358] sm:$0xff] }
 0x2b6   :  { %v998_v29 = vpop.f32.mrf.mxu1  ;;  %v1647_v4 = vunpack.c.l.s8.bf16 %v1255_v0  ;;  %v1518_v16 = vunpack.c.l.s8.bf16 %v1190_v6  ;;  %v1646_v18 = vunpack.c.l.s8.bf16 %v1254_v7  ;;  %v1246_v23 = vld [vmem:[#allocation8 + $0x410] sm:$0xff]  ;;  %v1631_v28 = vunpack.c.l.s8.bf16 %v1247_v40  ;;  %v1287_v0 = vld [vmem:[#allocation8 + $0x558] sm:$0xff] }
 0x2b7   :  { %v1099_v30 = vadd.f32 %v1083_v19, %v1049_v27  ;;  %2077 = vmatpush2.bf16.msra.mxu0 %v1446_v20  ;;  %v1106_v31 = vmax.f32 %v1098_v26, 0.0  ;;  %v1511_v19 = vunpack.c.h.s8.bf16 %v1183_v35  ;;  %v1639_v20 = vunpack.c.h.s8.bf16 %v1247_v40  ;;  %v1239_v29 = vld [vmem:[#allocation8 + $0x3d8] sm:$0xff]  ;;  %v1222_v6 = vld [vmem:[#allocation8 + $0x350] sm:$0xff] }
 0x2b8   :  { %2078 = vmatprep.subr.bf16.mxu0 %v1439_v24  ;;  %v1510_v24 = vunpack.c.h.s8.bf16 %v1182_v22  ;;  %v1638_v26 = vunpack.c.h.s8.bf16 %v1246_v23  ;;  %v1503_v27 = vunpack.c.l.s8.bf16 %v1183_v35  ;;  %v1286_v7 = vld [vmem:[#allocation8 + $0x550] sm:$0xff]  ;;  %v1215_v35 = vld [vmem:[#allocation8 + $0x318] sm:$0xff] }
 0x2b9   :  { %v1107_v39 = vmax.f32 %v1099_v30, 0.0  ;;  %v4348_v43 = vpack.c.bf16 %v1106_v31, %v1106_v31  ;;  %v1303_v30 = vld [vmem:[#allocation8 + $0x5d8] sm:$0xff]  ;;  %v1630_v31 = vunpack.c.l.s8.bf16 %v1246_v23 }
 0x2ba   :  { %v1751_v34 = vunpack.c.h.s8.bf16 %v1303_v30  ;;  %v1279_v40 = vld [vmem:[#allocation8 + $0x518] sm:$0xff] }
 0x2bb   :  { %v4346_v45 = vpack.c.bf16 %v1107_v39, %v1107_v39  ;;  %2079 = vmatpush2.bf16.msra.mxu0 %v1438_v41  ;;  %v1502_v41 = vunpack.c.l.s8.bf16 %v1182_v22  ;;  %v1302_v39 = vld [vmem:[#allocation8 + $0x5d0] sm:$0xff]  ;;  %v1575_v22 = vunpack.c.h.s8.bf16 %v1215_v35  ;;  %v1703_v23 = vunpack.c.h.s8.bf16 %v1279_v40 }
 0x2bc   :  { %2130 = vmatprep.subr.bf16.mxu0 %v1687_v33  ;;  %v1623_v33 = vunpack.c.h.s8.bf16 %v1239_v29 }
 0x2bd   :  { %2039 = vmatprep.mubr.bf16.mxu1 %v4346_v45 }
 0x2be   :  { %2081 = vmatmul.mubr.bf16.vlgmr.msra.gmra.mxu0 %v4286_v36  ;;  %2040 = vmatmul.mubr.bf16.vlgmr.msra.gmra.mxu1 %v4348_v43 }
 0x2bf   :  { %2090 = vmatpush1.bf16.msra.mxu1 %v1558_v42  ;;  %2131 = vmatpush1.bf16.msra.mxu0 %v1686_v12  ;;  %v1622_v42 = vunpack.c.h.s8.bf16 %v1238_v38  ;;  %v1750_v12 = vunpack.c.h.s8.bf16 %v1302_v39 }
 0x2c0   :  { %2162 = vmatprep.mubr.bf16.mxu0 %v4324_v21  ;;  %2121 = vmatprep.mubr.bf16.mxu1 %v4297_v10 }
 0x2c1   :  { %2091 = vmatprep.subr.bf16.mxu1 %v1551_v44  ;;  %2132 = vmatprep.subr.bf16.mxu0 %v1679_v46  ;;  %v1615_v44 = vunpack.c.l.s8.bf16 %v1239_v29  ;;  %v1743_v46 = vunpack.c.l.s8.bf16 %v1303_v30 }
 0x2c3   :  { %2092 = vmatpush1.bf16.msra.mxu1 %v1550_v48  ;;  %2133 = vmatpush1.bf16.msra.mxu0 %v1678_v49  ;;  %v1614_v48 = vunpack.c.l.s8.bf16 %v1238_v38  ;;  %v1742_v49 = vunpack.c.l.s8.bf16 %v1302_v39 }
 0x2c4   :  { %2093 = vmatprep.subr.bf16.mxu1 %v1543_v50  ;;  %2134 = vmatprep.subr.bf16.mxu0 %v1671_v51  ;;  %v1607_v50 = vunpack.c.h.s8.bf16 %v1231_v25  ;;  %v1735_v51 = vunpack.c.h.s8.bf16 %v1295_v47 }
 0x2c7   :  { %2094 = vmatpush1.bf16.msra.mxu1 %v1542_v1  ;;  %2135 = vmatpush1.bf16.msra.mxu0 %v1670_v55  ;;  %v1606_v1 = vunpack.c.h.s8.bf16 %v1230_v52  ;;  %v1734_v55 = vunpack.c.h.s8.bf16 %v1294_v53 }
 0x2c8   :  { %2095 = vmatprep.subr.bf16.mxu1 %v1535_v58  ;;  %2136 = vmatprep.subr.bf16.mxu0 %v1663_v60  ;;  %v1599_v58 = vunpack.c.l.s8.bf16 %v1231_v25  ;;  %v1727_v60 = vunpack.c.l.s8.bf16 %v1295_v47 }
 0x2cb   :  { %2096 = vmatpush1.bf16.msra.mxu1 %v1534_v2  ;;  %2137 = vmatpush1.bf16.msra.mxu0 %v1662_v17  ;;  %v1598_v2 = vunpack.c.l.s8.bf16 %v1230_v52  ;;  %v1726_v17 = vunpack.c.l.s8.bf16 %v1294_v53  ;;  %v1137_v52 = vld [vmem:[#allocation8 + $0xa8] sm:$0xff] }
 0x2cc   :  { %2097 = vmatprep.subr.bf16.mxu1 %v1527_v3  ;;  %2138 = vmatprep.subr.bf16.mxu0 %v1655_v5  ;;  %v1591_v3 = vunpack.c.h.s8.bf16 %v1223_v62  ;;  %v1719_v5 = vunpack.c.h.s8.bf16 %v1287_v0 }
 0x2cf   :  { %2098 = vmatpush1.bf16.msra.mxu1 %v1526_v8  ;;  %2139 = vmatpush1.bf16.msra.mxu0 %v1654_v11  ;;  %v1590_v8 = vunpack.c.h.s8.bf16 %v1222_v6  ;;  %v1718_v11 = vunpack.c.h.s8.bf16 %v1286_v7 }
 0x2d0   :  { %2099 = vmatprep.subr.bf16.mxu1 %v1519_v15  ;;  %2140 = vmatprep.subr.bf16.mxu0 %v1647_v4  ;;  %v1583_v15 = vunpack.c.l.s8.bf16 %v1223_v62  ;;  %v1711_v4 = vunpack.c.l.s8.bf16 %v1287_v0  ;;  %v1326_v62 = vld [vmem:[#allocation8 + $0x690] sm:$0xff] }
 0x2d3   :  { %2100 = vmatpush1.bf16.msra.mxu1 %v1518_v16  ;;  %2141 = vmatpush1.bf16.msra.mxu0 %v1646_v18  ;;  %v1582_v18 = vunpack.c.l.s8.bf16 %v1222_v6 }
 0x2d4   :  { %2101 = vmatprep.subr.bf16.mxu1 %v1511_v19  ;;  %2142 = vmatprep.subr.bf16.mxu0 %v1639_v20  ;;  %v1710_v19 = vunpack.c.l.s8.bf16 %v1286_v7 }
 0x2d7   :  { %2102 = vmatpush1.bf16.msra.mxu1 %v1510_v24  ;;  %2143 = vmatpush1.bf16.msra.mxu0 %v1638_v26  ;;  %v1214_v24 = vld [vmem:[#allocation8 + $0x310] sm:$0xff] }
 0x2d8   :  { %2103 = vmatprep.subr.bf16.mxu1 %v1503_v27  ;;  %2144 = vmatprep.subr.bf16.mxu0 %v1631_v28  ;;  %v1278_v26 = vld [vmem:[#allocation8 + $0x510] sm:$0xff]  ;;  %v1574_v28 = vunpack.c.h.s8.bf16 %v1214_v24  ;;  %v1566_v38 = vunpack.c.l.s8.bf16 %v1214_v24 }
 0x2d9   :  { %v1702_v29 = vunpack.c.h.s8.bf16 %v1278_v26  ;;  %v1694_v39 = vunpack.c.l.s8.bf16 %v1278_v26 }
 0x2db   :  { %2104 = vmatpush1.bf16.msra.mxu1 %v1502_v41  ;;  %2145 = vmatpush1.bf16.msra.mxu0 %v1630_v31  ;;  %v1567_v41 = vunpack.c.l.s8.bf16 %v1215_v35  ;;  %v1695_v31 = vunpack.c.l.s8.bf16 %v1279_v40  ;;  %v1790_v35 = vunpack.c.l.s8.bf16 %v1326_v62 }
 0x2dc   :  { %2105 = vmatprep.subr.bf16.mxu1 %v1623_v33  ;;  %2146 = vmatprep.subr.bf16.mxu0 %v1751_v34  ;;  %v1335_v33 = vld [vmem:[#allocation8 + $0x6d8] sm:$0xff]  ;;  %v1145_v34 = vld [vmem:[#allocation8 + $0xe8] sm:$0xff] }
 0x2df   :  { %2106 = vmatpush2.bf16.msra.mxu1 %v1622_v42  ;;  %2147 = vmatpush2.bf16.msra.mxu0 %v1750_v12  ;;  %v1815_v42 = vunpack.c.h.s8.bf16 %v1335_v33  ;;  %v1433_v12 = vunpack.c.h.s8.bf16 %v1145_v34 }
 0x2e0   :  { %2107 = vmatprep.subr.bf16.mxu1 %v1615_v44  ;;  %2148 = vmatprep.subr.bf16.mxu0 %v1743_v46  ;;  %v1334_v44 = vld [vmem:[#allocation8 + $0x6d0] sm:$0xff]  ;;  %v1144_v46 = vld [vmem:[#allocation8 + $0xe0] sm:$0xff] }
 0x2e1   :  { %v1814_v25 = vunpack.c.h.s8.bf16 %v1334_v44  ;;  %v1432_v47 = vunpack.c.h.s8.bf16 %v1144_v46 }
 0x2e3   :  { %2108 = vmatpush2.bf16.msra.mxu1 %v1614_v48  ;;  %2149 = vmatpush2.bf16.msra.mxu0 %v1742_v49  ;;  %v1807_v48 = vunpack.c.l.s8.bf16 %v1335_v33  ;;  %v1425_v49 = vunpack.c.l.s8.bf16 %v1145_v34  ;;  %v1120_v34 = vld [vmem:[#allocation8 + $0x20] sm:$0xff] }
 0x2e4   :  { %2109 = vmatprep.subr.bf16.mxu1 %v1607_v50  ;;  %2150 = vmatprep.subr.bf16.mxu0 %v1735_v51  ;;  %v1327_v50 = vld [vmem:[#allocation8 + $0x698] sm:$0xff] }
 0x2e7   :  { %2110 = vmatpush2.bf16.msra.mxu1 %v1606_v1  ;;  %2151 = vmatpush2.bf16.msra.mxu0 %v1734_v55  ;;  %v1806_v1 = vunpack.c.l.s8.bf16 %v1334_v44  ;;  %v1367_v44 = vld [vmem:[#allocation8 + $0x7d8] sm:$0xff] }
 0x2e8   :  { %2111 = vmatprep.subr.bf16.mxu1 %v1599_v58  ;;  %2152 = vmatprep.subr.bf16.mxu0 %v1727_v60  ;;  %v1424_v58 = vunpack.c.l.s8.bf16 %v1144_v46  ;;  %v1799_v60 = vunpack.c.h.s8.bf16 %v1327_v50  ;;  %v1177_v46 = vld [vmem:[#allocation8 + $0x1e8] sm:$0xff] }
 0x2eb   :  { %2112 = vmatpush2.bf16.msra.mxu1 %v1598_v2  ;;  %2153 = vmatpush2.bf16.msra.mxu0 %v1726_v17  ;;  %v1417_v2 = vunpack.c.h.s8.bf16 %v1137_v52  ;;  %v1136_v17 = vld [vmem:[#allocation8 + $0xa0] sm:$0xff] }
 0x2ec   :  { %2113 = vmatprep.subr.bf16.mxu1 %v1591_v3  ;;  %2154 = vmatprep.subr.bf16.mxu0 %v1719_v5  ;;  %v1798_v5 = vunpack.c.h.s8.bf16 %v1326_v62  ;;  %v1416_v7 = vunpack.c.h.s8.bf16 %v1136_v17  ;;  %v1408_v40 = vunpack.c.l.s8.bf16 %v1136_v17  ;;  %v1169_v62 = vld [vmem:[#allocation8 + $0x1a8] sm:$0xff] }
 0x2ee   :  { %v1918_v16 = vpop.f32.mrf.mxu0 }
 0x2ef   :  { %2114 = vmatpush2.bf16.msra.mxu1 %v1590_v8  ;;  %2155 = vmatpush2.bf16.msra.mxu0 %v1718_v11  ;;  %v1791_v8 = vunpack.c.l.s8.bf16 %v1327_v50  ;;  %v1409_v11 = vunpack.c.l.s8.bf16 %v1137_v52  ;;  %v1497_v50 = vunpack.c.h.s8.bf16 %v1177_v46 }
 0x2f0   :  { %v1920_v20 = vpop.f32.mrf.mxu0  ;;  %2115 = vmatprep.subr.bf16.mxu1 %v1583_v15  ;;  %2156 = vmatprep.subr.bf16.mxu0 %v1711_v4  ;;  %v1319_v15 = vld [vmem:[#allocation8 + $0x658] sm:$0xff]  ;;  %v1129_v4 = vld [vmem:[#allocation8 + $0x68] sm:$0xff] }
 0x2f1   :  { %v1775_v24 = vunpack.c.l.s8.bf16 %v1319_v15  ;;  %v1393_v26 = vunpack.c.l.s8.bf16 %v1129_v4 }
 0x2f2   :  { %v1922_v27 = vpop.f32.mrf.mxu0 }
 0x2f3   :  { %2116 = vmatpush2.bf16.msra.mxu1 %v1582_v18  ;;  %2157 = vmatpush2.bf16.msra.mxu0 %v1710_v19  ;;  %v1318_v18 = vld [vmem:[#allocation8 + $0x650] sm:$0xff]  ;;  %v1401_v19 = vunpack.c.h.s8.bf16 %v1129_v4  ;;  %v1311_v27 = vld [vmem:[#allocation8 + $0x618] sm:$0xff]  ;;  %v1473_v4 = vunpack.c.l.s8.bf16 %v1169_v62 }
 0x2f4   :  { %v1923_v30 = vpop.f32.mrf.mxu0  ;;  %2117 = vmatprep.subr.bf16.mxu1 %v1575_v22  ;;  %2158 = vmatprep.subr.bf16.mxu0 %v1703_v23  ;;  %v1782_v22 = vunpack.c.h.s8.bf16 %v1318_v18 }
 0x2f7   :  { %2118 = vmatpush2.bf16.msra.mxu1 %v1574_v28  ;;  %2159 = vmatpush2.bf16.msra.mxu0 %v1702_v29  ;;  %v1121_v28 = vld [vmem:[#allocation8 + $0x28] sm:$0xff]  ;;  %v1774_v29 = vunpack.c.l.s8.bf16 %v1318_v18 }
 0x2f8   :  { %2119 = vmatprep.subr.bf16.mxu1 %v1567_v41  ;;  %2160 = vmatprep.subr.bf16.mxu0 %v1695_v31  ;;  %v1767_v41 = vunpack.c.h.s8.bf16 %v1311_v27  ;;  %v1310_v31 = vld [vmem:[#allocation8 + $0x610] sm:$0xff]  ;;  %v1385_v33 = vunpack.c.h.s8.bf16 %v1121_v28 }
 0x2fb   :  { %2120 = vmatpush2.bf16.msra.mxu1 %v1566_v38  ;;  %2161 = vmatpush2.bf16.msra.mxu0 %v1694_v39  ;;  %v1766_v38 = vunpack.c.h.s8.bf16 %v1310_v31  ;;  %v1384_v39 = vunpack.c.h.s8.bf16 %v1120_v34 }
 0x2fc   :  { %2171 = vmatprep.subr.bf16.mxu1 %v1815_v42  ;;  %2212 = vmatprep.subr.bf16.mxu0 %v1433_v12  ;;  %v1759_v42 = vunpack.c.l.s8.bf16 %v1311_v27  ;;  %v1377_v12 = vunpack.c.l.s8.bf16 %v1121_v28 }
 0x2fe   :  { %2122 = vmatmul.mubr.bf16.vlgmr.msra.gmra.mxu1 %v4299_v14  ;;  %2163 = vmatmul.mubr.bf16.vlgmr.msra.gmra.mxu0 %v4326_v13  ;;  %v1959_v51 = vpop.f32.mrf.mxu1 }
 0x2ff   :  { %v4358_v53 = vadd.f32 %v1959_v51, %v1918_v16  ;;  %2172 = vmatpush1.bf16.msra.mxu1 %v1814_v25  ;;  %2203 = vmatprep.mubr.bf16.mxu1 %v4346_v45  ;;  %v1783_v16 = vunpack.c.h.s8.bf16 %v1319_v15  ;;  %v1758_v25 = vunpack.c.l.s8.bf16 %v1310_v31  ;;  %v1176_v51 = vld [vmem:[#allocation8 + $0x1e0] sm:$0xff] }
 0x300   :  { %2213 = vmatpush1.bf16.msra.mxu0 %v1432_v47  ;;  %2244 = vmatprep.mubr.bf16.mxu0 %v4274_v9  ;;  %v1961_v55 = vpop.f32.mrf.mxu1  ;;  %v1376_v47 = vunpack.c.l.s8.bf16 %v1120_v34  ;;  %v1488_v17 = vunpack.c.l.s8.bf16 %v1176_v51  ;;  %v1342_v34 = vld [vmem:[#allocation8 + $0x710] sm:$0xff] }
 0x301   :  { %v4362_v0 = vadd.f32 %v1961_v55, %v1920_v20  ;;  %2173 = vmatprep.subr.bf16.mxu1 %v1807_v48  ;;  %2214 = vmatprep.subr.bf16.mxu0 %v1425_v49  ;;  %v1128_v20 = vld [vmem:[#allocation8 + $0x60] sm:$0xff]  ;;  %v1879_v48 = vunpack.c.h.s8.bf16 %v1367_v44  ;;  %v1366_v49 = vld [vmem:[#allocation8 + $0x7d0] sm:$0xff]  ;;  %v1871_v55 = vunpack.c.l.s8.bf16 %v1367_v44 }
 0x302   :  { %v1963_v3 = vpop.f32.mrf.mxu1  ;;  %v1400_v23 = vunpack.c.h.s8.bf16 %v1128_v20  ;;  %v1392_v30 = vunpack.c.l.s8.bf16 %v1128_v20  ;;  %v1878_v52 = vunpack.c.h.s8.bf16 %v1366_v49  ;;  %v1350_v20 = vld [vmem:[#allocation8 + $0x750] sm:$0xff] }
 0x303   :  { %2174 = vmatpush1.bf16.msra.mxu1 %v1806_v1  ;;  %v1496_v1 = vunpack.c.h.s8.bf16 %v1176_v51  ;;  %v1208_v51 = vld [vmem:[#allocation8 + $0x2e0] sm:$0xff] }
 0x304   :  { %2215 = vmatpush1.bf16.msra.mxu0 %v1424_v58  ;;  %v1964_v6 = vpop.f32.mrf.mxu1  ;;  %2175 = vmatprep.subr.bf16.mxu1 %v1799_v60  ;;  %v1489_v58 = vunpack.c.l.s8.bf16 %v1177_v46  ;;  %v1359_v60 = vld [vmem:[#allocation8 + $0x798] sm:$0xff] }
 0x305   :  { %2216 = vmatprep.subr.bf16.mxu0 %v1417_v2  ;;  %v1870_v2 = vunpack.c.l.s8.bf16 %v1366_v49  ;;  %v1863_v3 = vunpack.c.h.s8.bf16 %v1359_v60  ;;  %v1481_v6 = vunpack.c.h.s8.bf16 %v1169_v62  ;;  %v1855_v15 = vunpack.c.l.s8.bf16 %v1359_v60  ;;  %v1201_v62 = vld [vmem:[#allocation8 + $0x2a8] sm:$0xff] }
 0x307   :  { %2176 = vmatpush1.bf16.msra.mxu1 %v1798_v5  ;;  %v1358_v5 = vld [vmem:[#allocation8 + $0x790] sm:$0xff] }
 0x308   :  { %2217 = vmatpush1.bf16.msra.mxu0 %v1416_v7  ;;  %2177 = vmatprep.subr.bf16.mxu1 %v1791_v8  ;;  %v1168_v7 = vld [vmem:[#allocation8 + $0x1a0] sm:$0xff]  ;;  %v1862_v8 = vunpack.c.h.s8.bf16 %v1358_v5 }
 0x309   :  { %2218 = vmatprep.subr.bf16.mxu0 %v1409_v11  ;;  %v1480_v11 = vunpack.c.h.s8.bf16 %v1168_v7  ;;  %v1472_v18 = vunpack.c.l.s8.bf16 %v1168_v7 }
 0x30b   :  { %2178 = vmatpush1.bf16.msra.mxu1 %v1790_v35  ;;  %v1351_v35 = vld [vmem:[#allocation8 + $0x758] sm:$0xff] }
 0x30c   :  { %2219 = vmatpush1.bf16.msra.mxu0 %v1408_v40  ;;  %2179 = vmatprep.subr.bf16.mxu1 %v1783_v16  ;;  %v1161_v40 = vld [vmem:[#allocation8 + $0x168] sm:$0xff]  ;;  %v1854_v16 = vunpack.c.l.s8.bf16 %v1358_v5  ;;  %v1839_v27 = vunpack.c.l.s8.bf16 %v1351_v35 }
 0x30d   :  { %2220 = vmatprep.subr.bf16.mxu0 %v1401_v19  ;;  %v1847_v19 = vunpack.c.h.s8.bf16 %v1351_v35  ;;  %v1457_v28 = vunpack.c.l.s8.bf16 %v1161_v40 }
 0x30f   :  { %2180 = vmatpush1.bf16.msra.mxu1 %v1782_v22  ;;  %v1465_v22 = vunpack.c.h.s8.bf16 %v1161_v40  ;;  %v1264_v40 = vld [vmem:[#allocation8 + $0x4a0] sm:$0xff] }
 0x310   :  { %2221 = vmatpush1.bf16.msra.mxu0 %v1400_v23  ;;  %2181 = vmatprep.subr.bf16.mxu1 %v1775_v24  ;;  %v1160_v23 = vld [vmem:[#allocation8 + $0x160] sm:$0xff]  ;;  %v1846_v24 = vunpack.c.h.s8.bf16 %v1350_v20 }
 0x311   :  { %2222 = vmatprep.subr.bf16.mxu0 %v1393_v26  ;;  %v1464_v26 = vunpack.c.h.s8.bf16 %v1160_v23  ;;  %v1456_v31 = vunpack.c.l.s8.bf16 %v1160_v23  ;;  %v1193_v23 = vld [vmem:[#allocation8 + $0x268] sm:$0xff] }
 0x313   :  { %2182 = vmatpush1.bf16.msra.mxu1 %v1774_v29  ;;  %v1343_v29 = vld [vmem:[#allocation8 + $0x718] sm:$0xff] }
 0x314   :  { %2223 = vmatpush1.bf16.msra.mxu0 %v1392_v30  ;;  %2183 = vmatprep.subr.bf16.mxu1 %v1767_v41  ;;  %v1153_v30 = vld [vmem:[#allocation8 + $0x128] sm:$0xff]  ;;  %v1838_v41 = vunpack.c.l.s8.bf16 %v1350_v20  ;;  %v1823_v44 = vunpack.c.l.s8.bf16 %v1343_v29  ;;  %v1537_v20 = vunpack.c.l.s8.bf16 %v1201_v62 }
 0x315   :  { %2224 = vmatprep.subr.bf16.mxu0 %v1385_v33  ;;  %v1831_v33 = vunpack.c.h.s8.bf16 %v1343_v29  ;;  %v1441_v46 = vunpack.c.l.s8.bf16 %v1153_v30 }
 0x317   :  { %2184 = vmatpush1.bf16.msra.mxu1 %v1766_v38  ;;  %v1449_v38 = vunpack.c.h.s8.bf16 %v1153_v30  ;;  %v1256_v30 = vld [vmem:[#allocation8 + $0x460] sm:$0xff] }
 0x318   :  { %2225 = vmatpush1.bf16.msra.mxu0 %v1384_v39  ;;  %2185 = vmatprep.subr.bf16.mxu1 %v1759_v42  ;;  %v1152_v39 = vld [vmem:[#allocation8 + $0x120] sm:$0xff]  ;;  %v1830_v42 = vunpack.c.h.s8.bf16 %v1342_v34 }
 0x319   :  { %2226 = vmatprep.subr.bf16.mxu0 %v1377_v12  ;;  %v1448_v12 = vunpack.c.h.s8.bf16 %v1152_v39  ;;  %v1440_v49 = vunpack.c.l.s8.bf16 %v1152_v39  ;;  %v1249_v39 = vld [vmem:[#allocation8 + $0x428] sm:$0xff] }
 0x31b   :  { %2186 = vmatpush1.bf16.msra.mxu1 %v1758_v25  ;;  %v1209_v25 = vld [vmem:[#allocation8 + $0x2e8] sm:$0xff] }
 0x31c   :  { %2227 = vmatpush1.bf16.msra.mxu0 %v1376_v47  ;;  %2187 = vmatprep.subr.bf16.mxu1 %v1879_v48  ;;  %v1273_v47 = vld [vmem:[#allocation8 + $0x4e8] sm:$0xff]  ;;  %v1822_v48 = vunpack.c.l.s8.bf16 %v1342_v34  ;;  %v1553_v60 = vunpack.c.l.s8.bf16 %v1209_v25 }
 0x31d   :  { %2228 = vmatprep.subr.bf16.mxu0 %v1497_v50  ;;  %v1561_v50 = vunpack.c.h.s8.bf16 %v1209_v25  ;;  %v1641_v25 = vunpack.c.h.s8.bf16 %v1249_v39 }
 0x31f   :  { %2188 = vmatpush2.bf16.msra.mxu1 %v1878_v52  ;;  %v1689_v52 = vunpack.c.h.s8.bf16 %v1273_v47 }
 0x320   :  { %2229 = vmatpush2.bf16.msra.mxu0 %v1496_v1  ;;  %2189 = vmatprep.subr.bf16.mxu1 %v1871_v55  ;;  %v1272_v1 = vld [vmem:[#allocation8 + $0x4e0] sm:$0xff]  ;;  %v1560_v55 = vunpack.c.h.s8.bf16 %v1208_v51 }
 0x321   :  { %2230 = vmatprep.subr.bf16.mxu0 %v1489_v58  ;;  %v1688_v58 = vunpack.c.h.s8.bf16 %v1272_v1 }
 0x323   :  { %2190 = vmatpush2.bf16.msra.mxu1 %v1870_v2 }
 0x324   :  { %2231 = vmatpush2.bf16.msra.mxu0 %v1488_v17  ;;  %2191 = vmatprep.subr.bf16.mxu1 %v1863_v3  ;;  %v1681_v17 = vunpack.c.l.s8.bf16 %v1273_v47  ;;  %v1265_v3 = vld [vmem:[#allocation8 + $0x4a8] sm:$0xff]  ;;  %v1248_v47 = vld [vmem:[#allocation8 + $0x420] sm:$0xff] }
 0x325   :  { %2232 = vmatprep.subr.bf16.mxu0 %v1481_v6  ;;  %v1552_v6 = vunpack.c.l.s8.bf16 %v1208_v51  ;;  %v1673_v35 = vunpack.c.h.s8.bf16 %v1265_v3  ;;  %v1633_v51 = vunpack.c.l.s8.bf16 %v1249_v39 }
 0x327   :  { %2192 = vmatpush2.bf16.msra.mxu1 %v1862_v8  ;;  %v1680_v8 = vunpack.c.l.s8.bf16 %v1272_v1  ;;  %v1305_v1 = vld [vmem:[#allocation8 + $0x5e8] sm:$0xff] }
 0x328   :  { %2233 = vmatpush2.bf16.msra.mxu0 %v1480_v11  ;;  %2193 = vmatprep.subr.bf16.mxu1 %v1855_v15  ;;  %v1545_v11 = vunpack.c.h.s8.bf16 %v1201_v62  ;;  %v1200_v15 = vld [vmem:[#allocation8 + $0x2a0] sm:$0xff] }
 0x329   :  { %2234 = vmatprep.subr.bf16.mxu0 %v1473_v4  ;;  %v1240_v62 = vld [vmem:[#allocation8 + $0x3e0] sm:$0xff] }
 0x32b   :  { %2194 = vmatpush2.bf16.msra.mxu1 %v1854_v16  ;;  %v1544_v16 = vunpack.c.h.s8.bf16 %v1200_v15 }
 0x32c   :  { %2235 = vmatpush2.bf16.msra.mxu0 %v1472_v18  ;;  %2195 = vmatprep.subr.bf16.mxu1 %v1847_v19  ;;  %v1672_v19 = vunpack.c.h.s8.bf16 %v1264_v40 }
 0x32d   :  { %2236 = vmatprep.subr.bf16.mxu0 %v1465_v22  ;;  %v1665_v22 = vunpack.c.l.s8.bf16 %v1265_v3  ;;  %v1624_v3 = vunpack.c.h.s8.bf16 %v1240_v62 }
 0x32f   :  { %2196 = vmatpush2.bf16.msra.mxu1 %v1846_v24  ;;  %v1257_v24 = vld [vmem:[#allocation8 + $0x468] sm:$0xff] }
 0x330   :  { %2237 = vmatpush2.bf16.msra.mxu0 %v1464_v26  ;;  %2197 = vmatprep.subr.bf16.mxu1 %v1839_v27  ;;  %v1536_v26 = vunpack.c.l.s8.bf16 %v1200_v15  ;;  %v1529_v27 = vunpack.c.h.s8.bf16 %v1193_v23  ;;  %v1657_v29 = vunpack.c.h.s8.bf16 %v1257_v24  ;;  %v1649_v34 = vunpack.c.l.s8.bf16 %v1257_v24  ;;  %v1297_v15 = vld [vmem:[#allocation8 + $0x5a8] sm:$0xff] }
 0x331   :  { %2238 = vmatprep.subr.bf16.mxu0 %v1457_v28  ;;  %v1192_v28 = vld [vmem:[#allocation8 + $0x260] sm:$0xff]  ;;  %v1729_v24 = vunpack.c.l.s8.bf16 %v1297_v15 }
 0x333   :  { %2198 = vmatpush2.bf16.msra.mxu1 %v1838_v41  ;;  %v1528_v41 = vunpack.c.h.s8.bf16 %v1192_v28 }
 0x334   :  { %2239 = vmatpush2.bf16.msra.mxu0 %v1456_v31  ;;  %2199 = vmatprep.subr.bf16.mxu1 %v1831_v33  ;;  %v1656_v31 = vunpack.c.h.s8.bf16 %v1256_v30  ;;  %v1521_v33 = vunpack.c.l.s8.bf16 %v1193_v23 }
 0x335   :  { %2240 = vmatprep.subr.bf16.mxu0 %v1449_v38  ;;  %v1185_v38 = vld [vmem:[#allocation8 + $0x228] sm:$0xff] }
 0x337   :  { %2200 = vmatpush2.bf16.msra.mxu1 %v1830_v42  ;;  %v1520_v42 = vunpack.c.l.s8.bf16 %v1192_v28 }
 0x338   :  { %2241 = vmatpush2.bf16.msra.mxu0 %v1448_v12  ;;  %2201 = vmatprep.subr.bf16.mxu1 %v1823_v44  ;;  %v1648_v12 = vunpack.c.l.s8.bf16 %v1256_v30  ;;  %v1513_v44 = vunpack.c.h.s8.bf16 %v1185_v38  ;;  %v1224_v30 = vld [vmem:[#allocation8 + $0x360] sm:$0xff] }
 0x339   :  { %2242 = vmatprep.subr.bf16.mxu0 %v1441_v46  ;;  %v1184_v46 = vld [vmem:[#allocation8 + $0x220] sm:$0xff] }
 0x33b   :  { %2202 = vmatpush2.bf16.msra.mxu1 %v1822_v48  ;;  %v1512_v48 = vunpack.c.h.s8.bf16 %v1184_v46 }
 0x33c   :  { %2243 = vmatpush2.bf16.msra.mxu0 %v1440_v49  ;;  %2253 = vmatprep.subr.bf16.mxu1 %v1561_v50  ;;  %v1640_v49 = vunpack.c.h.s8.bf16 %v1248_v47  ;;  %v1505_v50 = vunpack.c.l.s8.bf16 %v1185_v38 }
 0x33d   :  { %2294 = vmatprep.subr.bf16.mxu0 %v1689_v52  ;;  %v1241_v52 = vld [vmem:[#allocation8 + $0x3e8] sm:$0xff] }
 0x33e   :  { %2204 = vmatmul.mubr.bf16.vlgmr.msra.gmra.mxu1 %v4348_v43  ;;  %v2000_v2 = vpop.f32.mrf.mxu0 }
 0x33f   :  { %2245 = vmatmul.mubr.bf16.vlgmr.msra.gmra.mxu0 %v4286_v36  ;;  %v4367_v5 = vadd.f32 %v2000_v2, %v4358_v53  ;;  %2254 = vmatpush1.bf16.msra.mxu1 %v1560_v55  ;;  %v1504_v55 = vunpack.c.l.s8.bf16 %v1184_v46  ;;  %v1753_v2 = vunpack.c.h.s8.bf16 %v1305_v1 }
 0x340   :  { %2285 = vmatprep.mubr.bf16.mxu1 %v4297_v10  ;;  %2295 = vmatpush1.bf16.msra.mxu0 %v1688_v58  ;;  %v2002_v7 = vpop.f32.mrf.mxu0  ;;  %v1632_v58 = vunpack.c.l.s8.bf16 %v1248_v47  ;;  %v1216_v47 = vld [vmem:[#allocation8 + $0x320] sm:$0xff] }
 0x341   :  { %2326 = vmatprep.mubr.bf16.mxu0 %v4324_v21  ;;  %v4372_v4 = vadd.f32 %v2002_v7, %v4362_v0  ;;  %2255 = vmatprep.subr.bf16.mxu1 %v1553_v60  ;;  %v1664_v0 = vunpack.c.l.s8.bf16 %v1264_v40  ;;  %v1625_v60 = vunpack.c.h.s8.bf16 %v1241_v52  ;;  %v1617_v7 = vunpack.c.l.s8.bf16 %v1241_v52 }
 0x342   :  { %2296 = vmatprep.subr.bf16.mxu0 %v1681_v17  ;;  %v2004_v53 = vpop.f32.mrf.mxu0  ;;  %v1304_v17 = vld [vmem:[#allocation8 + $0x5e0] sm:$0xff] }
 0x343   :  { %2256 = vmatpush1.bf16.msra.mxu1 %v1552_v6  ;;  %v1752_v6 = vunpack.c.h.s8.bf16 %v1304_v17  ;;  %v1744_v40 = vunpack.c.l.s8.bf16 %v1304_v17  ;;  %v1336_v17 = vld [vmem:[#allocation8 + $0x6e0] sm:$0xff] }
 0x344   :  { %2297 = vmatpush1.bf16.msra.mxu0 %v1680_v8  ;;  %v2005_v18 = vpop.f32.mrf.mxu0  ;;  %2257 = vmatprep.subr.bf16.mxu1 %v1545_v11  ;;  %v1745_v8 = vunpack.c.l.s8.bf16 %v1305_v1  ;;  %v1233_v11 = vld [vmem:[#allocation8 + $0x3a8] sm:$0xff] }
 0x345   :  { %2298 = vmatprep.subr.bf16.mxu0 %v1673_v35  ;;  %v1616_v35 = vunpack.c.l.s8.bf16 %v1240_v62  ;;  %v1609_v53 = vunpack.c.h.s8.bf16 %v1233_v11  ;;  %v1737_v18 = vunpack.c.h.s8.bf16 %v1297_v15  ;;  %v1601_v23 = vunpack.c.l.s8.bf16 %v1233_v11  ;;  %v1329_v15 = vld [vmem:[#allocation8 + $0x6a8] sm:$0xff] }
 0x347   :  { %2258 = vmatpush1.bf16.msra.mxu1 %v1544_v16  ;;  %v1232_v16 = vld [vmem:[#allocation8 + $0x3a0] sm:$0xff] }
 0x348   :  { %2299 = vmatpush1.bf16.msra.mxu0 %v1672_v19  ;;  %2259 = vmatprep.subr.bf16.mxu1 %v1537_v20  ;;  %v1296_v19 = vld [vmem:[#allocation8 + $0x5a0] sm:$0xff]  ;;  %v1608_v20 = vunpack.c.h.s8.bf16 %v1232_v16 }
 0x349   :  { %2300 = vmatprep.subr.bf16.mxu0 %v1665_v22  ;;  %v1736_v22 = vunpack.c.h.s8.bf16 %v1296_v19  ;;  %v1728_v28 = vunpack.c.l.s8.bf16 %v1296_v19  ;;  %v1808_v19 = vunpack.c.l.s8.bf16 %v1336_v17 }
 0x34b   :  { %2260 = vmatpush1.bf16.msra.mxu1 %v1536_v26  ;;  %v1225_v26 = vld [vmem:[#allocation8 + $0x368] sm:$0xff] }
 0x34c   :  { %2301 = vmatpush1.bf16.msra.mxu0 %v1664_v0  ;;  %2261 = vmatprep.subr.bf16.mxu1 %v1529_v27  ;;  %v1289_v0 = vld [vmem:[#allocation8 + $0x568] sm:$0xff]  ;;  %v1600_v27 = vunpack.c.l.s8.bf16 %v1232_v16  ;;  %v1585_v38 = vunpack.c.l.s8.bf16 %v1225_v26  ;;  %v1139_v16 = vld [vmem:[#allocation8 + $0xb8] sm:$0xff] }
 0x34d   :  { %2302 = vmatprep.subr.bf16.mxu0 %v1657_v29  ;;  %v1593_v29 = vunpack.c.h.s8.bf16 %v1225_v26  ;;  %v1713_v39 = vunpack.c.l.s8.bf16 %v1289_v0  ;;  %v1328_v26 = vld [vmem:[#allocation8 + $0x6a0] sm:$0xff] }
 0x34f   :  { %2262 = vmatpush1.bf16.msra.mxu1 %v1528_v41  ;;  %v1721_v41 = vunpack.c.h.s8.bf16 %v1289_v0 }
 0x350   :  { %2303 = vmatpush1.bf16.msra.mxu0 %v1656_v31  ;;  %2263 = vmatprep.subr.bf16.mxu1 %v1521_v33  ;;  %v1288_v31 = vld [vmem:[#allocation8 + $0x560] sm:$0xff]  ;;  %v1592_v33 = vunpack.c.h.s8.bf16 %v1224_v30 }
 0x351   :  { %2304 = vmatprep.subr.bf16.mxu0 %v1649_v34  ;;  %v1720_v34 = vunpack.c.h.s8.bf16 %v1288_v31  ;;  %v1712_v46 = vunpack.c.l.s8.bf16 %v1288_v31 }
 0x353   :  { %2264 = vmatpush1.bf16.msra.mxu1 %v1520_v42  ;;  %v1217_v42 = vld [vmem:[#allocation8 + $0x328] sm:$0xff] }
 0x354   :  { %2305 = vmatpush1.bf16.msra.mxu0 %v1648_v12  ;;  %2265 = vmatprep.subr.bf16.mxu1 %v1513_v44  ;;  %v1281_v12 = vld [vmem:[#allocation8 + $0x528] sm:$0xff]  ;;  %v1584_v44 = vunpack.c.l.s8.bf16 %v1224_v30  ;;  %v1569_v52 = vunpack.c.l.s8.bf16 %v1217_v42  ;;  %v1800_v30 = vunpack.c.h.s8.bf16 %v1328_v26 }
 0x355   :  { %2306 = vmatprep.subr.bf16.mxu0 %v1641_v25  ;;  %v1577_v25 = vunpack.c.h.s8.bf16 %v1217_v42  ;;  %v1697_v1 = vunpack.c.l.s8.bf16 %v1281_v12 }
 0x357   :  { %2266 = vmatpush1.bf16.msra.mxu1 %v1512_v48  ;;  %v1705_v48 = vunpack.c.h.s8.bf16 %v1281_v12 }
 0x358   :  { %2307 = vmatpush1.bf16.msra.mxu0 %v1640_v49  ;;  %2267 = vmatprep.subr.bf16.mxu1 %v1505_v50  ;;  %v1280_v49 = vld [vmem:[#allocation8 + $0x520] sm:$0xff]  ;;  %v1576_v50 = vunpack.c.h.s8.bf16 %v1216_v47 }
 0x359   :  { %2308 = vmatprep.subr.bf16.mxu0 %v1633_v51  ;;  %v1704_v51 = vunpack.c.h.s8.bf16 %v1280_v49  ;;  %v1696_v62 = vunpack.c.l.s8.bf16 %v1280_v49 }
 0x35b   :  { %2268 = vmatpush1.bf16.msra.mxu1 %v1504_v55  ;;  %v1337_v55 = vld [vmem:[#allocation8 + $0x6e8] sm:$0xff] }
 0x35c   :  { %2309 = vmatpush1.bf16.msra.mxu0 %v1632_v58  ;;  %2269 = vmatprep.subr.bf16.mxu1 %v1625_v60  ;;  %v1147_v58 = vld [vmem:[#allocation8 + $0xf8] sm:$0xff]  ;;  %v1568_v60 = vunpack.c.l.s8.bf16 %v1216_v47  ;;  %v1809_v11 = vunpack.c.l.s8.bf16 %v1337_v55 }
 0x35d   :  { %2310 = vmatprep.subr.bf16.mxu0 %v1753_v2  ;;  %v1817_v2 = vunpack.c.h.s8.bf16 %v1337_v55 }
 0x35f   :  { %2270 = vmatpush2.bf16.msra.mxu1 %v1624_v3  ;;  %v1435_v3 = vunpack.c.h.s8.bf16 %v1147_v58 }
 0x360   :  { %2311 = vmatpush2.bf16.msra.mxu0 %v1752_v6  ;;  %2271 = vmatprep.subr.bf16.mxu1 %v1617_v7  ;;  %v1146_v6 = vld [vmem:[#allocation8 + $0xf0] sm:$0xff]  ;;  %v1816_v7 = vunpack.c.h.s8.bf16 %v1336_v17 }
 0x361   :  { %2312 = vmatprep.subr.bf16.mxu0 %v1745_v8  ;;  %v1434_v8 = vunpack.c.h.s8.bf16 %v1146_v6 }
 0x363   :  { %2272 = vmatpush2.bf16.msra.mxu1 %v1616_v35 }
 0x364   :  { %2313 = vmatpush2.bf16.msra.mxu0 %v1744_v40  ;;  %2273 = vmatprep.subr.bf16.mxu1 %v1609_v53  ;;  %v1427_v53 = vunpack.c.l.s8.bf16 %v1147_v58 }
 0x365   :  { %2314 = vmatprep.subr.bf16.mxu0 %v1737_v18 }
 0x367   :  { %2274 = vmatpush2.bf16.msra.mxu1 %v1608_v20 }
 0x368   :  { %2315 = vmatpush2.bf16.msra.mxu0 %v1736_v22  ;;  %2275 = vmatprep.subr.bf16.mxu1 %v1601_v23  ;;  %v1426_v23 = vunpack.c.l.s8.bf16 %v1146_v6 }
 0x369   :  { %2316 = vmatprep.subr.bf16.mxu0 %v1729_v24  ;;  %v1801_v24 = vunpack.c.h.s8.bf16 %v1329_v15 }
 0x36b   :  { %2276 = vmatpush2.bf16.msra.mxu1 %v1600_v27  ;;  %v1419_v27 = vunpack.c.h.s8.bf16 %v1139_v16 }
 0x36c   :  { %2317 = vmatpush2.bf16.msra.mxu0 %v1728_v28  ;;  %2277 = vmatprep.subr.bf16.mxu1 %v1593_v29 }
 0x36d   :  { %2318 = vmatprep.subr.bf16.mxu0 %v1721_v41 }
 0x36f   :  { %2278 = vmatpush2.bf16.msra.mxu1 %v1592_v33 }
 0x370   :  { %2319 = vmatpush2.bf16.msra.mxu0 %v1720_v34  ;;  %2279 = vmatprep.subr.bf16.mxu1 %v1585_v38  ;;  %v1793_v34 = vunpack.c.l.s8.bf16 %v1329_v15  ;;  %v1411_v38 = vunpack.c.l.s8.bf16 %v1139_v16  ;;  %v1368_v16 = vld [vmem:[#allocation8 + $0x7e0] sm:$0xff] }
 0x371   :  { %2320 = vmatprep.subr.bf16.mxu0 %v1713_v39  ;;  %v1131_v39 = vld [vmem:[#allocation8 + $0x78] sm:$0xff] }
 0x373   :  { %2280 = vmatpush2.bf16.msra.mxu1 %v1584_v44  ;;  %v1320_v44 = vld [vmem:[#allocation8 + $0x660] sm:$0xff] }
 0x374   :  { %2321 = vmatpush2.bf16.msra.mxu0 %v1712_v46  ;;  %2281 = vmatprep.subr.bf16.mxu1 %v1577_v25  ;;  %v1403_v46 = vunpack.c.h.s8.bf16 %v1131_v39  ;;  %v1130_v25 = vld [vmem:[#allocation8 + $0x70] sm:$0xff]  ;;  %v1784_v47 = vunpack.c.h.s8.bf16 %v1320_v44 }
 0x375   :  { %2322 = vmatprep.subr.bf16.mxu0 %v1705_v48  ;;  %v1402_v48 = vunpack.c.h.s8.bf16 %v1130_v25  ;;  %v1394_v55 = vunpack.c.l.s8.bf16 %v1130_v25 }
 0x377   :  { %2282 = vmatpush2.bf16.msra.mxu1 %v1576_v50  ;;  %v1395_v50 = vunpack.c.l.s8.bf16 %v1131_v39 }
 0x378   :  { %2323 = vmatpush2.bf16.msra.mxu0 %v1704_v51  ;;  %2283 = vmatprep.subr.bf16.mxu1 %v1569_v52  ;;  %v1313_v51 = vld [vmem:[#allocation8 + $0x628] sm:$0xff]  ;;  %v1123_v52 = vld [vmem:[#allocation8 + $0x38] sm:$0xff] }
 0x379   :  { %2324 = vmatprep.subr.bf16.mxu0 %v1697_v1  ;;  %v1776_v1 = vunpack.c.l.s8.bf16 %v1320_v44  ;;  %v1769_v58 = vunpack.c.h.s8.bf16 %v1313_v51  ;;  %v1761_v6 = vunpack.c.l.s8.bf16 %v1313_v51 }
 0x37b   :  { %2284 = vmatpush2.bf16.msra.mxu1 %v1568_v60  ;;  %v1312_v60 = vld [vmem:[#allocation8 + $0x620] sm:$0xff] }
 0x37c   :  { %2325 = vmatpush2.bf16.msra.mxu0 %v1696_v62  ;;  %2335 = vmatprep.subr.bf16.mxu1 %v1817_v2  ;;  %v1387_v62 = vunpack.c.h.s8.bf16 %v1123_v52  ;;  %v1122_v2 = vld [vmem:[#allocation8 + $0x30] sm:$0xff]  ;;  %v1768_v17 = vunpack.c.h.s8.bf16 %v1312_v60  ;;  %v1760_v15 = vunpack.c.l.s8.bf16 %v1312_v60 }
 0x37d   :  { %2376 = vmatprep.subr.bf16.mxu0 %v1435_v3  ;;  %v1386_v3 = vunpack.c.h.s8.bf16 %v1122_v2 }
 0x37e   :  { %v4374_v35 = vpop.f32.mrf.mxu0  ;;  %2286 = vmatmul.mubr.bf16.vlgmr.msra.gmra.mxu1 %v4299_v14  ;;  %v2041_v40 = vpop.f32.mrf.mxu1 }
 0x37f   :  { %2327 = vmatmul.mubr.bf16.vlgmr.msra.gmra.mxu0 %v4326_v13  ;;  %v4379_v18 = vadd.f32 %v2041_v40, %v4367_v5  ;;  %2336 = vmatpush1.bf16.msra.mxu1 %v1816_v7  ;;  %v1138_v5 = vld [vmem:[#allocation8 + $0xb0] sm:$0xff]  ;;  %v1379_v7 = vunpack.c.l.s8.bf16 %v1123_v52  ;;  %v1378_v40 = vunpack.c.l.s8.bf16 %v1122_v2 }
 0x380   :  { %2367 = vmatprep.mubr.bf16.mxu1 %v4346_v45  ;;  %2377 = vmatpush1.bf16.msra.mxu0 %v1434_v8  ;;  %v4382_v20 = vpop.f32.mrf.mxu0  ;;  %v2043_v22 = vpop.f32.mrf.mxu1  ;;  %v1418_v33 = vunpack.c.h.s8.bf16 %v1138_v5  ;;  %v1410_v42 = vunpack.c.l.s8.bf16 %v1138_v5  ;;  %v1369_v8 = vld [vmem:[#allocation8 + $0x7e8] sm:$0xff] }
 0x381   :  { %2408 = vmatprep.mubr.bf16.mxu0 %v4274_v9  ;;  %v4386_v0 = vadd.f32 %v2043_v22, %v4372_v4  ;;  %2337 = vmatprep.subr.bf16.mxu1 %v1809_v11  ;;  %v1321_v9 = vld [vmem:[#allocation8 + $0x668] sm:$0xff]  ;;  %v1792_v4 = vunpack.c.l.s8.bf16 %v1328_v26  ;;  %v1179_v11 = vld [vmem:[#allocation8 + $0x1f8] sm:$0xff]  ;;  %v1178_v22 = vld [vmem:[#allocation8 + $0x1f0] sm:$0xff]  ;;  %v1873_v26 = vunpack.c.l.s8.bf16 %v1369_v8 }
 0x382   :  { %v2086_v28 = vpop.f32.mrf.mxu0  ;;  %2378 = vmatprep.subr.bf16.mxu0 %v1427_v53  ;;  %v2045_v29 = vpop.f32.mrf.mxu1  ;;  %v1785_v12 = vunpack.c.h.s8.bf16 %v1321_v9  ;;  %v1777_v49 = vunpack.c.l.s8.bf16 %v1321_v9  ;;  %v1881_v53 = vunpack.c.h.s8.bf16 %v1369_v8  ;;  %v1361_v5 = vld [vmem:[#allocation8 + $0x7a8] sm:$0xff] }
 0x383   :  { %2338 = vmatpush1.bf16.msra.mxu1 %v1808_v19  ;;  %v1499_v19 = vunpack.c.h.s8.bf16 %v1179_v11  ;;  %v1171_v28 = vld [vmem:[#allocation8 + $0x1b8] sm:$0xff]  ;;  %v1872_v29 = vunpack.c.l.s8.bf16 %v1368_v16  ;;  %v1857_v39 = vunpack.c.l.s8.bf16 %v1361_v5 }
 0x384   :  { %2379 = vmatpush1.bf16.msra.mxu0 %v1426_v23  ;;  %v2087_v41 = vpop.f32.mrf.mxu0  ;;  %v2046_v31 = vpop.f32.mrf.mxu1  ;;  %2339 = vmatprep.subr.bf16.mxu1 %v1801_v24  ;;  %v1880_v23 = vunpack.c.h.s8.bf16 %v1368_v16  ;;  %v1498_v24 = vunpack.c.h.s8.bf16 %v1178_v22 }
 0x385   :  { %2380 = vmatprep.subr.bf16.mxu0 %v1419_v27  ;;  %v1491_v27 = vunpack.c.l.s8.bf16 %v1179_v11  ;;  %v1865_v41 = vunpack.c.h.s8.bf16 %v1361_v5  ;;  %v1360_v31 = vld [vmem:[#allocation8 + $0x7a0] sm:$0xff] }
 0x386   :  { %v1856_v44 = vunpack.c.l.s8.bf16 %v1360_v31 }
 0x387   :  { %2340 = vmatpush1.bf16.msra.mxu1 %v1800_v30  ;;  %v1490_v30 = vunpack.c.l.s8.bf16 %v1178_v22 }
 0x388   :  { %2381 = vmatpush1.bf16.msra.mxu0 %v1418_v33  ;;  %2341 = vmatprep.subr.bf16.mxu1 %v1793_v34  ;;  %v1483_v33 = vunpack.c.h.s8.bf16 %v1171_v28  ;;  %v1170_v34 = vld [vmem:[#allocation8 + $0x1b0] sm:$0xff] }
 0x389   :  { %2382 = vmatprep.subr.bf16.mxu0 %v1411_v38  ;;  %v1864_v38 = vunpack.c.h.s8.bf16 %v1360_v31  ;;  %v1482_v9 = vunpack.c.h.s8.bf16 %v1170_v34 }
 0x38b   :  { %2342 = vmatpush1.bf16.msra.mxu1 %v1792_v4  ;;  %v1475_v4 = vunpack.c.l.s8.bf16 %v1171_v28 }
 0x38c   :  { %2383 = vmatpush1.bf16.msra.mxu0 %v1410_v42  ;;  %2343 = vmatprep.subr.bf16.mxu1 %v1785_v12  ;;  %v1353_v42 = vld [vmem:[#allocation8 + $0x768] sm:$0xff]  ;;  %v1163_v12 = vld [vmem:[#allocation8 + $0x178] sm:$0xff] }
 0x38d   :  { %2384 = vmatprep.subr.bf16.mxu0 %v1403_v46  ;;  %v1474_v46 = vunpack.c.l.s8.bf16 %v1170_v34  ;;  %v1849_v25 = vunpack.c.h.s8.bf16 %v1353_v42  ;;  %v1841_v52 = vunpack.c.l.s8.bf16 %v1353_v42 }
 0x38f   :  { %2344 = vmatpush1.bf16.msra.mxu1 %v1784_v47  ;;  %v1352_v47 = vld [vmem:[#allocation8 + $0x760] sm:$0xff] }
 0x390   :  { %2385 = vmatpush1.bf16.msra.mxu0 %v1402_v48  ;;  %2345 = vmatprep.subr.bf16.mxu1 %v1777_v49  ;;  %v1467_v48 = vunpack.c.h.s8.bf16 %v1163_v12  ;;  %v1162_v49 = vld [vmem:[#allocation8 + $0x170] sm:$0xff]  ;;  %v1840_v60 = vunpack.c.l.s8.bf16 %v1352_v47 }
 0x391   :  { %2386 = vmatprep.subr.bf16.mxu0 %v1395_v50  ;;  %v1848_v50 = vunpack.c.h.s8.bf16 %v1352_v47  ;;  %v1466_v51 = vunpack.c.h.s8.bf16 %v1162_v49 }
 0x393   :  { %2346 = vmatpush1.bf16.msra.mxu1 %v1776_v1  ;;  %v1459_v1 = vunpack.c.l.s8.bf16 %v1163_v12  ;;  %v1202_v12 = vld [vmem:[#allocation8 + $0x2b0] sm:$0xff] }
 0x394   :  { %2387 = vmatpush1.bf16.msra.mxu0 %v1394_v55  ;;  %2347 = vmatprep.subr.bf16.mxu1 %v1769_v58  ;;  %v1345_v55 = vld [vmem:[#allocation8 + $0x728] sm:$0xff]  ;;  %v1155_v58 = vld [vmem:[#allocation8 + $0x138] sm:$0xff] }
 0x395   :  { %2388 = vmatprep.subr.bf16.mxu0 %v1387_v62  ;;  %v1458_v62 = vunpack.c.l.s8.bf16 %v1162_v49  ;;  %v1833_v2 = vunpack.c.h.s8.bf16 %v1345_v55  ;;  %v1825_v11 = vunpack.c.l.s8.bf16 %v1345_v55  ;;  %v1538_v55 = vunpack.c.l.s8.bf16 %v1202_v12 }
 0x397   :  { %2348 = vmatpush1.bf16.msra.mxu1 %v1768_v17  ;;  %v1344_v17 = vld [vmem:[#allocation8 + $0x720] sm:$0xff] }
 0x398   :  { %2389 = vmatpush1.bf16.msra.mxu0 %v1386_v3  ;;  %2349 = vmatprep.subr.bf16.mxu1 %v1761_v6  ;;  %v1451_v3 = vunpack.c.h.s8.bf16 %v1155_v58  ;;  %v1154_v6 = vld [vmem:[#allocation8 + $0x130] sm:$0xff]  ;;  %v1824_v16 = vunpack.c.l.s8.bf16 %v1344_v17 }
 0x399   :  { %2390 = vmatprep.subr.bf16.mxu0 %v1379_v7  ;;  %v1832_v7 = vunpack.c.h.s8.bf16 %v1344_v17  ;;  %v1450_v8 = vunpack.c.h.s8.bf16 %v1154_v6  ;;  %v1258_v17 = vld [vmem:[#allocation8 + $0x470] sm:$0xff] }
 0x39b   :  { %2350 = vmatpush1.bf16.msra.mxu1 %v1760_v15  ;;  %v1443_v15 = vunpack.c.l.s8.bf16 %v1155_v58 }
 0x39c   :  { %2391 = vmatpush1.bf16.msra.mxu0 %v1378_v40  ;;  %2351 = vmatprep.subr.bf16.mxu1 %v1881_v53  ;;  %v1211_v40 = vld [vmem:[#allocation8 + $0x2f8] sm:$0xff] }
 0x39d   :  { %2392 = vmatprep.subr.bf16.mxu0 %v1499_v19  ;;  %v1275_v53 = vld [vmem:[#allocation8 + $0x4f8] sm:$0xff]  ;;  %v1442_v19 = vunpack.c.l.s8.bf16 %v1154_v6  ;;  %v1563_v22 = vunpack.c.h.s8.bf16 %v1211_v40  ;;  %v1555_v28 = vunpack.c.l.s8.bf16 %v1211_v40  ;;  %v1658_v6 = vunpack.c.h.s8.bf16 %v1258_v17 }
 0x39e   :  { %v1683_v31 = vunpack.c.l.s8.bf16 %v1275_v53 }
 0x39f   :  { %2352 = vmatpush2.bf16.msra.mxu1 %v1880_v23  ;;  %v1210_v23 = vld [vmem:[#allocation8 + $0x2f0] sm:$0xff] }
 0x3a0   :  { %2393 = vmatpush2.bf16.msra.mxu0 %v1498_v24  ;;  %2353 = vmatprep.subr.bf16.mxu1 %v1873_v26  ;;  %v1691_v24 = vunpack.c.h.s8.bf16 %v1275_v53  ;;  %v1274_v26 = vld [vmem:[#allocation8 + $0x4f0] sm:$0xff]  ;;  %v1650_v53 = vunpack.c.l.s8.bf16 %v1258_v17 }
 0x3a1   :  { %2394 = vmatprep.subr.bf16.mxu0 %v1491_v27  ;;  %v1562_v27 = vunpack.c.h.s8.bf16 %v1210_v23  ;;  %v1690_v5 = vunpack.c.h.s8.bf16 %v1274_v26  ;;  %v1290_v17 = vld [vmem:[#allocation8 + $0x570] sm:$0xff] }
 0x3a3   :  { %2354 = vmatpush2.bf16.msra.mxu1 %v1872_v29  ;;  %v1203_v29 = vld [vmem:[#allocation8 + $0x2b8] sm:$0xff] }
 0x3a4   :  { %2395 = vmatpush2.bf16.msra.mxu0 %v1490_v30  ;;  %2355 = vmatprep.subr.bf16.mxu1 %v1865_v41  ;;  %v1547_v42 = vunpack.c.h.s8.bf16 %v1203_v29 }
 0x3a5   :  { %2396 = vmatprep.subr.bf16.mxu0 %v1483_v33  ;;  %v1267_v33 = vld [vmem:[#allocation8 + $0x4b8] sm:$0xff] }
 0x3a7   :  { %2356 = vmatpush2.bf16.msra.mxu1 %v1864_v38  ;;  %v1554_v38 = vunpack.c.l.s8.bf16 %v1210_v23  ;;  %v1250_v23 = vld [vmem:[#allocation8 + $0x430] sm:$0xff] }
 0x3a8   :  { %2397 = vmatpush2.bf16.msra.mxu0 %v1482_v9  ;;  %2357 = vmatprep.subr.bf16.mxu1 %v1857_v39 }
 0x3a9   :  { %2398 = vmatprep.subr.bf16.mxu0 %v1475_v4  ;;  %v1682_v4 = vunpack.c.l.s8.bf16 %v1274_v26  ;;  %v1642_v26 = vunpack.c.h.s8.bf16 %v1250_v23 }
 0x3ab   :  { %2358 = vmatpush2.bf16.msra.mxu1 %v1856_v44 }
 0x3ac   :  { %2399 = vmatpush2.bf16.msra.mxu0 %v1474_v46  ;;  %2359 = vmatprep.subr.bf16.mxu1 %v1849_v25  ;;  %v1266_v25 = vld [vmem:[#allocation8 + $0x4b0] sm:$0xff] }
 0x3ad   :  { %2400 = vmatprep.subr.bf16.mxu0 %v1467_v48  ;;  %v1666_v58 = vunpack.c.l.s8.bf16 %v1266_v25 }
 0x3af   :  { %2360 = vmatpush2.bf16.msra.mxu1 %v1848_v50 }
 0x3b0   :  { %2401 = vmatpush2.bf16.msra.mxu0 %v1466_v51  ;;  %2361 = vmatprep.subr.bf16.mxu1 %v1841_v52  ;;  %v1674_v51 = vunpack.c.h.s8.bf16 %v1266_v25  ;;  %v1539_v52 = vunpack.c.l.s8.bf16 %v1203_v29  ;;  %v1307_v29 = vld [vmem:[#allocation8 + $0x5f8] sm:$0xff] }
 0x3b1   :  { %2402 = vmatprep.subr.bf16.mxu0 %v1459_v1  ;;  %v1195_v1 = vld [vmem:[#allocation8 + $0x278] sm:$0xff] }
 0x3b3   :  { %2362 = vmatpush2.bf16.msra.mxu1 %v1840_v60  ;;  %v1531_v60 = vunpack.c.h.s8.bf16 %v1195_v1 }
 0x3b4   :  { %2403 = vmatpush2.bf16.msra.mxu0 %v1458_v62  ;;  %2363 = vmatprep.subr.bf16.mxu1 %v1833_v2  ;;  %v1194_v62 = vld [vmem:[#allocation8 + $0x270] sm:$0xff] }
 0x3b5   :  { %2404 = vmatprep.subr.bf16.mxu0 %v1451_v3  ;;  %v1530_v3 = vunpack.c.h.s8.bf16 %v1194_v62  ;;  %v1522_v40 = vunpack.c.l.s8.bf16 %v1194_v62  ;;  %v1226_v62 = vld [vmem:[#allocation8 + $0x370] sm:$0xff] }
 0x3b7   :  { %2364 = vmatpush2.bf16.msra.mxu1 %v1832_v7  ;;  %v1523_v7 = vunpack.c.l.s8.bf16 %v1195_v1  ;;  %v1227_v1 = vld [vmem:[#allocation8 + $0x378] sm:$0xff] }
 0x3b8   :  { %2405 = vmatpush2.bf16.msra.mxu0 %v1450_v8  ;;  %2365 = vmatprep.subr.bf16.mxu1 %v1825_v11  ;;  %v1187_v11 = vld [vmem:[#allocation8 + $0x238] sm:$0xff] }
 0x3b9   :  { %2406 = vmatprep.subr.bf16.mxu0 %v1443_v15  ;;  %v1251_v15 = vld [vmem:[#allocation8 + $0x438] sm:$0xff] }
 0x3bb   :  { %2366 = vmatpush2.bf16.msra.mxu1 %v1824_v16  ;;  %v1515_v16 = vunpack.c.h.s8.bf16 %v1187_v11 }
 0x3bc   :  { %2407 = vmatpush2.bf16.msra.mxu0 %v1442_v19  ;;  %2417 = vmatprep.subr.bf16.mxu1 %v1563_v22  ;;  %v1186_v19 = vld [vmem:[#allocation8 + $0x230] sm:$0xff]  ;;  %v1643_v22 = vunpack.c.h.s8.bf16 %v1251_v15 }
 0x3bd   :  { %2458 = vmatprep.subr.bf16.mxu0 %v1691_v24  ;;  %v1514_v24 = vunpack.c.h.s8.bf16 %v1186_v19 }
 0x3be   :  { %v2123_v30 = vpop.f32.mrf.mxu1  ;;  %v2164_v41 = vpop.f32.mrf.mxu0  ;;  %2368 = vmatmul.mubr.bf16.vlgmr.msra.gmra.mxu1 %v4348_v43 }
 0x3bf   :  { %v2124_v34 = vadd.f32 %v2123_v30, %v4374_v35  ;;  %2409 = vmatmul.mubr.bf16.vlgmr.msra.gmra.mxu0 %v4286_v36  ;;  %2418 = vmatpush1.bf16.msra.mxu1 %v1562_v27  ;;  %v1675_v35 = vunpack.c.h.s8.bf16 %v1267_v33  ;;  %v1507_v27 = vunpack.c.l.s8.bf16 %v1187_v11  ;;  %v1506_v30 = vunpack.c.l.s8.bf16 %v1186_v19  ;;  %v1219_v11 = vld [vmem:[#allocation8 + $0x338] sm:$0xff] }
 0x3c0   :  { %2449 = vmatprep.mubr.bf16.mxu1 %v4297_v10  ;;  %2459 = vmatpush1.bf16.msra.mxu0 %v1690_v5  ;;  %v2125_v9 = vpop.f32.mrf.mxu1  ;;  %v2166_v39 = vpop.f32.mrf.mxu0  ;;  %v1546_v10 = vunpack.c.h.s8.bf16 %v1202_v12  ;;  %v1635_v5 = vunpack.c.l.s8.bf16 %v1251_v15  ;;  %v1235_v12 = vld [vmem:[#allocation8 + $0x3b8] sm:$0xff]  ;;  %v1714_v19 = vunpack.c.l.s8.bf16 %v1290_v17 }
 0x3c1   :  { %v4392_v44 = vadd.f32 %v2164_v41, %v2124_v34  ;;  %2490 = vmatprep.mubr.bf16.mxu0 %v4324_v21  ;;  %v2126_v46 = vadd.f32 %v2125_v9, %v4382_v20  ;;  %2419 = vmatprep.subr.bf16.mxu1 %v1555_v28  ;;  %v1667_v21 = vunpack.c.l.s8.bf16 %v1267_v33  ;;  %v1259_v20 = vld [vmem:[#allocation8 + $0x478] sm:$0xff]  ;;  %v1634_v41 = vunpack.c.l.s8.bf16 %v1250_v23  ;;  %v1242_v33 = vld [vmem:[#allocation8 + $0x3f0] sm:$0xff] }
 0x3c2   :  { %v2127_v36 = vpop.f32.mrf.mxu1  ;;  %v2168_v47 = vpop.f32.mrf.mxu0  ;;  %2460 = vmatprep.subr.bf16.mxu0 %v1683_v31  ;;  %v1659_v2 = vunpack.c.h.s8.bf16 %v1259_v20  ;;  %v1651_v8 = vunpack.c.l.s8.bf16 %v1259_v20  ;;  %v1243_v28 = vld [vmem:[#allocation8 + $0x3f8] sm:$0xff]  ;;  %v1755_v34 = vunpack.c.h.s8.bf16 %v1307_v29  ;;  %v1626_v9 = vunpack.c.h.s8.bf16 %v1242_v33  ;;  %v1218_v23 = vld [vmem:[#allocation8 + $0x330] sm:$0xff] }
 0x3c3   :  { %v4396_v48 = vadd.f32 %v2166_v39, %v2126_v46  ;;  %2420 = vmatpush1.bf16.msra.mxu1 %v1554_v38  ;;  %v1627_v31 = vunpack.c.h.s8.bf16 %v1243_v28  ;;  %v1306_v38 = vld [vmem:[#allocation8 + $0x5f0] sm:$0xff]  ;;  %v1299_v46 = vld [vmem:[#allocation8 + $0x5b8] sm:$0xff]  ;;  %v1611_v36 = vunpack.c.h.s8.bf16 %v1235_v12 }
 0x3c4   :  { %2461 = vmatpush1.bf16.msra.mxu0 %v1682_v4  ;;  %v2128_v49 = vpop.f32.mrf.mxu1  ;;  %v2169_v50 = vpop.f32.mrf.mxu0  ;;  %2421 = vmatprep.subr.bf16.mxu1 %v1547_v42  ;;  %v1754_v39 = vunpack.c.h.s8.bf16 %v1306_v38  ;;  %v1619_v4 = vunpack.c.l.s8.bf16 %v1243_v28  ;;  %v1747_v42 = vunpack.c.l.s8.bf16 %v1307_v29  ;;  %v1746_v25 = vunpack.c.l.s8.bf16 %v1306_v38  ;;  %v1234_v47 = vld [vmem:[#allocation8 + $0x3b0] sm:$0xff]  ;;  %v1291_v20 = vld [vmem:[#allocation8 + $0x578] sm:$0xff] }
 0x3c5   :  { %2462 = vmatprep.subr.bf16.mxu0 %v1675_v35  ;;  %v1618_v35 = vunpack.c.l.s8.bf16 %v1242_v33  ;;  %v1298_v49 = vld [vmem:[#allocation8 + $0x5b0] sm:$0xff]  ;;  %v1610_v50 = vunpack.c.h.s8.bf16 %v1234_v47  ;;  %v4401_v15 = vld [vmem:[%s4565_s7] sm:$0xff]  ;;  %v1578_v29 = vunpack.c.h.s8.bf16 %v1218_v23 }
 0x3c6   :  { %v1339_v33 = vld [vmem:[#allocation8 + $0x6f8] sm:$0xff] }
 0x3c7   :  { %2422 = vmatpush1.bf16.msra.mxu1 %v1546_v10  ;;  %v1739_v10 = vunpack.c.h.s8.bf16 %v1299_v46 }
 0x3c8   :  { %2463 = vmatpush1.bf16.msra.mxu0 %v1674_v51  ;;  %2423 = vmatprep.subr.bf16.mxu1 %v1539_v52  ;;  %v1738_v51 = vunpack.c.h.s8.bf16 %v1298_v49  ;;  %v1603_v52 = vunpack.c.l.s8.bf16 %v1235_v12  ;;  %v2668_v12 = vld [vmem:[#allocation11 + $0x60] sm:$0xff] }
 0x3c9   :  { %2464 = vmatprep.subr.bf16.mxu0 %v1667_v21  ;;  %v1731_v21 = vunpack.c.l.s8.bf16 %v1299_v46 }
 0x3cb   :  { %2424 = vmatpush1.bf16.msra.mxu1 %v1538_v55  ;;  %v1602_v55 = vunpack.c.l.s8.bf16 %v1234_v47  ;;  %v1331_v47 = vld [vmem:[#allocation8 + $0x6b8] sm:$0xff] }
 0x3cc   :  { %2465 = vmatpush1.bf16.msra.mxu0 %v1666_v58  ;;  %2425 = vmatprep.subr.bf16.mxu1 %v1531_v60  ;;  %v1730_v58 = vunpack.c.l.s8.bf16 %v1298_v49  ;;  %v1595_v60 = vunpack.c.h.s8.bf16 %v1227_v1 }
 0x3cd   :  { %2466 = vmatprep.subr.bf16.mxu0 %v1659_v2  ;;  %v1723_v2 = vunpack.c.h.s8.bf16 %v1291_v20 }
 0x3cf   :  { %2426 = vmatpush1.bf16.msra.mxu1 %v1530_v3  ;;  %v1594_v3 = vunpack.c.h.s8.bf16 %v1226_v62 }
 0x3d0   :  { %2467 = vmatpush1.bf16.msra.mxu0 %v1658_v6  ;;  %2427 = vmatprep.subr.bf16.mxu1 %v1523_v7  ;;  %v1722_v6 = vunpack.c.h.s8.bf16 %v1290_v17  ;;  %v1587_v7 = vunpack.c.l.s8.bf16 %v1227_v1 }
 0x3d1   :  { %2468 = vmatprep.subr.bf16.mxu0 %v1651_v8  ;;  %v1715_v8 = vunpack.c.l.s8.bf16 %v1291_v20 }
 0x3d3   :  { %2428 = vmatpush1.bf16.msra.mxu1 %v1522_v40  ;;  %v1283_v40 = vld [vmem:[#allocation8 + $0x538] sm:$0xff] }
 0x3d4   :  { %2469 = vmatpush1.bf16.msra.mxu0 %v1650_v53  ;;  %2429 = vmatprep.subr.bf16.mxu1 %v1515_v16  ;;  %v2549_v53 = vrot.slane %v4401_v15, %v4223_v56  ;;  %v1586_v16 = vunpack.c.l.s8.bf16 %v1226_v62  ;;  %v2664_v62 = vld [vmem:[#allocation11 + $0x40] sm:$0xff] }
 0x3d5   :  { %2470 = vmatprep.subr.bf16.mxu0 %v1643_v22  ;;  %v1579_v22 = vunpack.c.h.s8.bf16 %v1219_v11 }
 0x3d7   :  { %2430 = vmatpush1.bf16.msra.mxu1 %v1514_v24  ;;  %v1707_v24 = vunpack.c.h.s8.bf16 %v1283_v40 }
 0x3d8   :  { %2471 = vmatpush1.bf16.msra.mxu0 %v1642_v26  ;;  %2431 = vmatprep.subr.bf16.mxu1 %v1507_v27  ;;  %v1282_v26 = vld [vmem:[#allocation8 + $0x530] sm:$0xff]  ;;  %v4405_v27 = vld [vmem:[#allocation10] sm:$0xff] }
 0x3d9   :  { %2472 = vmatprep.subr.bf16.mxu0 %v1635_v5  ;;  %v2583_v5 = vmul.f32 %v2549_v53, %v4386_v0  ;;  %v2599_v28 = vrot.slane %v4405_v27, %v4223_v56  ;;  %v1819_v0 = vunpack.c.h.s8.bf16 %v1339_v33 }
 0x3db   :  { %2432 = vmatpush1.bf16.msra.mxu1 %v1506_v30  ;;  %v1706_v30 = vunpack.c.h.s8.bf16 %v1282_v26  ;;  %v2633_v38 = vadd.f32 %v2599_v28, %v2583_v5 }
 0x3dc   :  { %2473 = vmatpush1.bf16.msra.mxu0 %v1634_v41  ;;  %2433 = vmatprep.subr.bf16.mxu1 %v1627_v31  ;;  %v1571_v41 = vunpack.c.l.s8.bf16 %v1219_v11  ;;  %v1699_v31 = vunpack.c.l.s8.bf16 %v1283_v40  ;;  %v1323_v11 = vld [vmem:[#allocation8 + $0x678] sm:$0xff]  ;;  %v2661_v40 = vld [vmem:[#allocation11 + $0x28] sm:$0xff] }
 0x3dd   :  { %2474 = vmatprep.subr.bf16.mxu0 %v1755_v34  ;;  %v2669_v34 = vld [vmem:[#allocation11 + $0x68] sm:$0xff]  ;;  %v1779_v28 = vunpack.c.l.s8.bf16 %v1323_v11 }
 0x3de   :  { %v2809_v49 = vunpack.c.l.s8.bf16 %v2669_v34 }
 0x3df   :  { %2434 = vmatpush2.bf16.msra.mxu1 %v1626_v9  ;;  %v1570_v9 = vunpack.c.l.s8.bf16 %v1218_v23  ;;  %v2797_v23 = vunpack.c.h.s8.bf16 %v2661_v40 }
 0x3e0   :  { %2475 = vmatpush2.bf16.msra.mxu0 %v1754_v39  ;;  %2435 = vmatprep.subr.bf16.mxu1 %v1619_v4  ;;  %v1698_v39 = vunpack.c.l.s8.bf16 %v1282_v26  ;;  %v1338_v4 = vld [vmem:[#allocation8 + $0x6f0] sm:$0xff] }
 0x3e1   :  { %2476 = vmatprep.subr.bf16.mxu0 %v1747_v42  ;;  %v2813_v42 = vunpack.c.h.s8.bf16 %v2669_v34  ;;  %v1818_v46 = vunpack.c.h.s8.bf16 %v1338_v4  ;;  %v1810_v1 = vunpack.c.l.s8.bf16 %v1338_v4 }
 0x3e3   :  { %2436 = vmatpush2.bf16.msra.mxu1 %v1618_v35  ;;  %v2641_v35 = vmax.f32 %v2633_v38, 0.0  ;;  %v1314_v38 = vld [vmem:[#allocation8 + $0x630] sm:$0xff] }
 0x3e4   :  { %2477 = vmatpush2.bf16.msra.mxu0 %v1746_v25  ;;  %2437 = vmatprep.subr.bf16.mxu1 %v1611_v36  ;;  %v2812_v25 = vunpack.c.h.s8.bf16 %v2668_v12  ;;  %v1811_v36 = vunpack.c.l.s8.bf16 %v1339_v33 }
 0x3e5   :  { %2478 = vmatprep.subr.bf16.mxu0 %v1739_v10 }
 0x3e7   :  { %2438 = vmatpush2.bf16.msra.mxu1 %v1610_v50  ;;  %v2665_v50 = vld [vmem:[#allocation11 + $0x48] sm:$0xff] }
 0x3e8   :  { %2479 = vmatpush2.bf16.msra.mxu0 %v1738_v51  ;;  %2439 = vmatprep.subr.bf16.mxu1 %v1603_v52 }
 0x3e9   :  { %2480 = vmatprep.subr.bf16.mxu0 %v1731_v21  ;;  %v4417_v21 = vpack.c.bf16 %v2641_v35, %v2641_v35  ;;  %v2685_v35 = vld [vmem:[#allocation11 + $0xe8] sm:$0xff] }
 0x3eb   :  { %2440 = vmatpush2.bf16.msra.mxu1 %v1602_v55  ;;  %v2808_v55 = vunpack.c.l.s8.bf16 %v2668_v12 }
 0x3ec   :  { %2481 = vmatpush2.bf16.msra.mxu0 %v1730_v58  ;;  %2441 = vmatprep.subr.bf16.mxu1 %v1595_v60  ;;  %v1330_v58 = vld [vmem:[#allocation8 + $0x6b0] sm:$0xff]  ;;  %v2805_v60 = vunpack.c.h.s8.bf16 %v2665_v50 }
 0x3ed   :  { %2482 = vmatprep.subr.bf16.mxu0 %v1723_v2  ;;  %v1802_v17 = vunpack.c.h.s8.bf16 %v1330_v58  ;;  %v1794_v53 = vunpack.c.l.s8.bf16 %v1330_v58  ;;  %v2841_v58 = vunpack.c.l.s8.bf16 %v2685_v35 }
 0x3ef   :  { %2442 = vmatpush2.bf16.msra.mxu1 %v1594_v3  ;;  %v2804_v3 = vunpack.c.h.s8.bf16 %v2664_v62 }
 0x3f0   :  { %2483 = vmatpush2.bf16.msra.mxu0 %v1722_v6  ;;  %2443 = vmatprep.subr.bf16.mxu1 %v1587_v7  ;;  %v1795_v6 = vunpack.c.l.s8.bf16 %v1331_v47 }
 0x3f1   :  { %2484 = vmatprep.subr.bf16.mxu0 %v1715_v8  ;;  %v2801_v8 = vunpack.c.l.s8.bf16 %v2665_v50  ;;  %v2684_v50 = vld [vmem:[#allocation11 + $0xe0] sm:$0xff] }
 0x3f3   :  { %2444 = vmatpush2.bf16.msra.mxu1 %v1586_v16  ;;  %v2800_v16 = vunpack.c.l.s8.bf16 %v2664_v62  ;;  %v2681_v62 = vld [vmem:[#allocation11 + $0xc8] sm:$0xff] }
 0x3f4   :  { %2485 = vmatpush2.bf16.msra.mxu0 %v1714_v19  ;;  %2445 = vmatprep.subr.bf16.mxu1 %v1579_v22  ;;  %v1787_v19 = vunpack.c.h.s8.bf16 %v1323_v11  ;;  %v1322_v22 = vld [vmem:[#allocation8 + $0x670] sm:$0xff] }
 0x3f5   :  { %2486 = vmatprep.subr.bf16.mxu0 %v1707_v24  ;;  %v2660_v24 = vld [vmem:[#allocation11 + $0x20] sm:$0xff]  ;;  %v1786_v26 = vunpack.c.h.s8.bf16 %v1322_v22 }
 0x3f6   :  { %v2796_v5 = vunpack.c.h.s8.bf16 %v2660_v24  ;;  %v2792_v33 = vunpack.c.l.s8.bf16 %v2660_v24  ;;  %v1354_v24 = vld [vmem:[#allocation8 + $0x770] sm:$0xff] }
 0x3f7   :  { %2446 = vmatpush2.bf16.msra.mxu1 %v1578_v29  ;;  %v2793_v29 = vunpack.c.l.s8.bf16 %v2661_v40  ;;  %v2833_v40 = vunpack.c.l.s8.bf16 %v2681_v62 }
 0x3f8   :  { %2487 = vmatpush2.bf16.msra.mxu0 %v1706_v30  ;;  %2447 = vmatprep.subr.bf16.mxu1 %v1571_v41  ;;  %v1315_v30 = vld [vmem:[#allocation8 + $0x638] sm:$0xff]  ;;  %v2657_v41 = vld [vmem:[#allocation11 + $0x8] sm:$0xff] }
 0x3f9   :  { %2488 = vmatprep.subr.bf16.mxu0 %v1699_v31  ;;  %v1778_v31 = vunpack.c.l.s8.bf16 %v1322_v22  ;;  %v1771_v34 = vunpack.c.h.s8.bf16 %v1315_v30  ;;  %v2785_v12 = vunpack.c.l.s8.bf16 %v2657_v41 }
 0x3fb   :  { %2448 = vmatpush2.bf16.msra.mxu1 %v1570_v9  ;;  %v2789_v9 = vunpack.c.h.s8.bf16 %v2657_v41  ;;  %v2545_v41 = vrot.slane %v4401_v15, %v4220_v54 }
 0x3fc   :  { %2489 = vmatpush2.bf16.msra.mxu0 %v1698_v39  ;;  %2499 = vmatprep.subr.bf16.mxu1 %v1819_v0  ;;  %v2656_v39 = vld [vmem:[#allocation11] sm:$0xff]  ;;  %v1770_v0 = vunpack.c.h.s8.bf16 %v1314_v38 }
 0x3fd   :  { %3040 = vmatprep.subr.bf16.mxu0 %v2813_v42  ;;  %v2788_v4 = vunpack.c.h.s8.bf16 %v2656_v39  ;;  %v1763_v42 = vunpack.c.l.s8.bf16 %v1315_v30 }
 0x3fe   :  { %v2205_v10 = vpop.f32.mrf.mxu1  ;;  %2450 = vmatmul.mubr.bf16.vlgmr.msra.gmra.mxu1 %v4299_v14  ;;  %v1803_v14 = vunpack.c.h.s8.bf16 %v1331_v47 }
 0x3ff   :  { %v4412_v51 = vadd.f32 %v2205_v10, %v4392_v44  ;;  %v4414_v52 = vpop.f32.mrf.mxu0  ;;  %2491 = vmatmul.mubr.bf16.vlgmr.msra.gmra.mxu0 %v4326_v13  ;;  %2500 = vmatpush1.bf16.msra.mxu1 %v1818_v46  ;;  %v1371_v46 = vld [vmem:[#allocation8 + $0x7f8] sm:$0xff]  ;;  %v1370_v10 = vld [vmem:[#allocation8 + $0x7f0] sm:$0xff] }
 0x400   :  { %2531 = vmatprep.mubr.bf16.mxu1 %v4346_v45  ;;  %3041 = vmatpush1.bf16.msra.mxu0 %v2812_v25  ;;  %v4420_v20 = vpop.f32.mrf.mxu1  ;;  %v1762_v25 = vunpack.c.l.s8.bf16 %v1314_v38  ;;  %v1883_v47 = vunpack.c.h.s8.bf16 %v1371_v46  ;;  %v2557_v38 = vrot.slane %v4401_v15, %v4230_v59 }
 0x401   :  { %3072 = vmatprep.mubr.bf16.mxu0 %v4417_v21  ;;  %v4423_v44 = vpop.f32.mrf.mxu0  ;;  %2501 = vmatprep.subr.bf16.mxu1 %v1811_v36  ;;  %v2784_v36 = vunpack.c.l.s8.bf16 %v2656_v39  ;;  %v1842_v39 = vunpack.c.l.s8.bf16 %v1354_v24 }
 0x402   :  { %v2209_v13 = vpop.f32.mrf.mxu1  ;;  %3042 = vmatprep.subr.bf16.mxu0 %v2809_v49  ;;  %v2845_v49 = vunpack.c.h.s8.bf16 %v2685_v35 }
 0x403   :  { %v2250_v2 = vpop.f32.mrf.mxu0  ;;  %2502 = vmatpush1.bf16.msra.mxu1 %v1810_v1  ;;  %v1882_v1 = vunpack.c.h.s8.bf16 %v1370_v10  ;;  %v1874_v13 = vunpack.c.l.s8.bf16 %v1370_v10 }
 0x404   :  { %3043 = vmatpush1.bf16.msra.mxu0 %v2808_v55  ;;  %v2210_v45 = vpop.f32.mrf.mxu1  ;;  %2503 = vmatprep.subr.bf16.mxu1 %v1803_v14  ;;  %v2844_v55 = vunpack.c.h.s8.bf16 %v2684_v50  ;;  %v1875_v14 = vunpack.c.l.s8.bf16 %v1371_v46  ;;  %v2840_v2 = vunpack.c.l.s8.bf16 %v2684_v50  ;;  %v2595_v46 = vrot.slane %v4405_v27, %v4220_v54 }
 0x405   :  { %v2251_v7 = vpop.f32.mrf.mxu0  ;;  %3044 = vmatprep.subr.bf16.mxu0 %v2805_v60  ;;  %v1363_v60 = vld [vmem:[#allocation8 + $0x7b8] sm:$0xff]  ;;  %v1362_v45 = vld [vmem:[#allocation8 + $0x7b0] sm:$0xff] }
 0x406   :  { %v1866_v7 = vunpack.c.h.s8.bf16 %v1362_v45  ;;  %v1859_v11 = vunpack.c.l.s8.bf16 %v1363_v60 }
 0x407   :  { %2504 = vmatpush1.bf16.msra.mxu1 %v1802_v17  ;;  %v1867_v17 = vunpack.c.h.s8.bf16 %v1363_v60 }
 0x408   :  { %3045 = vmatpush1.bf16.msra.mxu0 %v2804_v3  ;;  %2505 = vmatprep.subr.bf16.mxu1 %v1795_v6  ;;  %v2837_v3 = vunpack.c.h.s8.bf16 %v2681_v62  ;;  %v2680_v6 = vld [vmem:[#allocation11 + $0xc0] sm:$0xff] }
 0x409   :  { %3046 = vmatprep.subr.bf16.mxu0 %v2801_v8  ;;  %v2836_v8 = vunpack.c.h.s8.bf16 %v2680_v6  ;;  %v2832_v22 = vunpack.c.l.s8.bf16 %v2680_v6  ;;  %v2700_v62 = vld [vmem:[#allocation11 + $0x160] sm:$0xff] }
 0x40b   :  { %2506 = vmatpush1.bf16.msra.mxu1 %v1794_v53  ;;  %v1355_v53 = vld [vmem:[#allocation8 + $0x778] sm:$0xff] }
 0x40c   :  { %3047 = vmatpush1.bf16.msra.mxu0 %v2800_v16  ;;  %2507 = vmatprep.subr.bf16.mxu1 %v1787_v19  ;;  %v2677_v16 = vld [vmem:[#allocation11 + $0xa8] sm:$0xff]  ;;  %v1858_v19 = vunpack.c.l.s8.bf16 %v1362_v45  ;;  %v1843_v30 = vunpack.c.l.s8.bf16 %v1355_v53  ;;  %v2732_v45 = vld [vmem:[#allocation11 + $0x260] sm:$0xff] }
 0x40d   :  { %3048 = vmatprep.subr.bf16.mxu0 %v2797_v23  ;;  %v1851_v23 = vunpack.c.h.s8.bf16 %v1355_v53 }
 0x40f   :  { %2508 = vmatpush1.bf16.msra.mxu1 %v1786_v26  ;;  %v2829_v26 = vunpack.c.h.s8.bf16 %v2677_v16 }
 0x410   :  { %3049 = vmatpush1.bf16.msra.mxu0 %v2796_v5  ;;  %2509 = vmatprep.subr.bf16.mxu1 %v1779_v28  ;;  %v2676_v5 = vld [vmem:[#allocation11 + $0xa0] sm:$0xff]  ;;  %v1850_v28 = vunpack.c.h.s8.bf16 %v1354_v24  ;;  %v2729_v24 = vld [vmem:[#allocation11 + $0x248] sm:$0xff] }
 0x411   :  { %3050 = vmatprep.subr.bf16.mxu0 %v2793_v29  ;;  %v2828_v29 = vunpack.c.h.s8.bf16 %v2676_v5 }
 0x413   :  { %2510 = vmatpush1.bf16.msra.mxu1 %v1778_v31  ;;  %v2825_v31 = vunpack.c.l.s8.bf16 %v2677_v16 }
 0x414   :  { %3051 = vmatpush1.bf16.msra.mxu0 %v2792_v33  ;;  %2511 = vmatprep.subr.bf16.mxu1 %v1771_v34  ;;  %v1347_v33 = vld [vmem:[#allocation8 + $0x738] sm:$0xff]  ;;  %v2208_v34 = vadd.f32 %v4420_v20, %v4396_v48  ;;  %v2607_v20 = vrot.slane %v4405_v27, %v4230_v59 }
 0x415   :  { %3052 = vmatprep.subr.bf16.mxu0 %v2789_v9  ;;  %v2673_v9 = vld [vmem:[#allocation11 + $0x88] sm:$0xff]  ;;  %v1827_v10 = vunpack.c.l.s8.bf16 %v1347_v33 }
 0x416   :  { %v2821_v35 = vunpack.c.h.s8.bf16 %v2673_v9  ;;  %v2585_v48 = vmul.f32 %v2557_v38, %v2208_v34  ;;  %v2817_v50 = vunpack.c.l.s8.bf16 %v2673_v9 }
 0x417   :  { %2512 = vmatpush1.bf16.msra.mxu1 %v1770_v0  ;;  %v2824_v0 = vunpack.c.l.s8.bf16 %v2676_v5 }
 0x418   :  { %3053 = vmatpush1.bf16.msra.mxu0 %v2788_v4  ;;  %2513 = vmatprep.subr.bf16.mxu1 %v1763_v42  ;;  %v1835_v4 = vunpack.c.h.s8.bf16 %v1347_v33  ;;  %v1346_v42 = vld [vmem:[#allocation8 + $0x730] sm:$0xff] }
 0x419   :  { %3054 = vmatprep.subr.bf16.mxu0 %v2785_v12  ;;  %v2582_v12 = vmul.f32 %v2545_v41, %v4379_v18  ;;  %v2701_v18 = vld [vmem:[#allocation11 + $0x168] sm:$0xff]  ;;  %v2933_v41 = vunpack.c.h.s8.bf16 %v2729_v24 }
 0x41a   :  { %v2877_v60 = vunpack.c.h.s8.bf16 %v2701_v18  ;;  %v2873_v6 = vunpack.c.l.s8.bf16 %v2701_v18 }
 0x41b   :  { %2514 = vmatpush1.bf16.msra.mxu1 %v1762_v25  ;;  %v2672_v25 = vld [vmem:[#allocation11 + $0x80] sm:$0xff] }
 0x41c   :  { %3055 = vmatpush1.bf16.msra.mxu0 %v2784_v36  ;;  %2515 = vmatprep.subr.bf16.mxu1 %v1883_v47  ;;  %v1834_v36 = vunpack.c.h.s8.bf16 %v1346_v42  ;;  %v2820_v47 = vunpack.c.h.s8.bf16 %v2672_v25 }
 0x41d   :  { %3056 = vmatprep.subr.bf16.mxu0 %v2845_v49  ;;  %v2632_v49 = vadd.f32 %v2595_v46, %v2582_v12  ;;  %v2725_v46 = vld [vmem:[#allocation11 + $0x228] sm:$0xff] }
 0x41e   :  { %v2921_v18 = vunpack.c.l.s8.bf16 %v2725_v46 }
 0x41f   :  { %2516 = vmatpush2.bf16.msra.mxu1 %v1882_v1  ;;  %v2635_v1 = vadd.f32 %v2607_v20, %v2585_v48  ;;  %v2925_v20 = vunpack.c.h.s8.bf16 %v2725_v46 }
 0x420   :  { %3057 = vmatpush2.bf16.msra.mxu0 %v2844_v55  ;;  %2517 = vmatprep.subr.bf16.mxu1 %v1875_v14  ;;  %v2733_v55 = vld [vmem:[#allocation11 + $0x268] sm:$0xff]  ;;  %v1826_v14 = vunpack.c.l.s8.bf16 %v1346_v42  ;;  %v2929_v42 = vunpack.c.l.s8.bf16 %v2729_v24 }
 0x421   :  { %3058 = vmatprep.subr.bf16.mxu0 %v2841_v58  ;;  %v2816_v58 = vunpack.c.l.s8.bf16 %v2672_v25  ;;  %v2937_v16 = vunpack.c.l.s8.bf16 %v2733_v55  ;;  %v2692_v25 = vld [vmem:[#allocation11 + $0x120] sm:$0xff] }
 0x423   :  { %2518 = vmatpush2.bf16.msra.mxu1 %v1874_v13  ;;  %v2640_v13 = vmax.f32 %v2632_v49, 0.0  ;;  %v2689_v49 = vld [vmem:[#allocation11 + $0x108] sm:$0xff] }
 0x424   :  { %3059 = vmatpush2.bf16.msra.mxu0 %v2840_v2  ;;  %2519 = vmatprep.subr.bf16.mxu1 %v1867_v17  ;;  %v2941_v2 = vunpack.c.h.s8.bf16 %v2733_v55  ;;  %v2643_v17 = vmax.f32 %v2635_v1, 0.0  ;;  %v2856_v1 = vunpack.c.l.s8.bf16 %v2692_v25  ;;  %v2721_v55 = vld [vmem:[#allocation11 + $0x208] sm:$0xff] }
 0x425   :  { %3060 = vmatprep.subr.bf16.mxu0 %v2837_v3  ;;  %v2876_v3 = vunpack.c.h.s8.bf16 %v2700_v62 }
 0x426   :  { %v4439_v53 = vpack.c.bf16 %v2643_v17, %v2643_v17  ;;  %v2849_v17 = vunpack.c.l.s8.bf16 %v2689_v49 }
 0x427   :  { %2520 = vmatpush2.bf16.msra.mxu1 %v1866_v7  ;;  %v4436_v7 = vpack.c.bf16 %v2640_v13, %v2640_v13  ;;  %v2720_v13 = vld [vmem:[#allocation11 + $0x200] sm:$0xff] }
 0x428   :  { %3061 = vmatpush2.bf16.msra.mxu0 %v2836_v8  ;;  %2521 = vmatprep.subr.bf16.mxu1 %v1859_v11  ;;  %v2697_v8 = vld [vmem:[#allocation11 + $0x148] sm:$0xff]  ;;  %v2940_v11 = vunpack.c.h.s8.bf16 %v2732_v45 }
 0x429   :  { %3062 = vmatprep.subr.bf16.mxu0 %v2833_v40  ;;  %v2869_v5 = vunpack.c.h.s8.bf16 %v2697_v8  ;;  %v2865_v9 = vunpack.c.l.s8.bf16 %v2697_v8 }
 0x42b   :  { %2522 = vmatpush2.bf16.msra.mxu1 %v1858_v19 }
 0x42c   :  { %3063 = vmatpush2.bf16.msra.mxu0 %v2832_v22  ;;  %2523 = vmatprep.subr.bf16.mxu1 %v1851_v23  ;;  %v2872_v23 = vunpack.c.l.s8.bf16 %v2700_v62  ;;  %v2917_v62 = vunpack.c.h.s8.bf16 %v2721_v55 }
 0x42d   :  { %3064 = vmatprep.subr.bf16.mxu0 %v2829_v26 }
 0x42f   :  { %2524 = vmatpush2.bf16.msra.mxu1 %v1850_v28  ;;  %v2696_v28 = vld [vmem:[#allocation11 + $0x140] sm:$0xff] }
 0x430   :  { %3065 = vmatpush2.bf16.msra.mxu0 %v2828_v29  ;;  %2525 = vmatprep.subr.bf16.mxu1 %v1843_v30  ;;  %v2936_v30 = vunpack.c.l.s8.bf16 %v2732_v45  ;;  %v2868_v34 = vunpack.c.h.s8.bf16 %v2696_v28  ;;  %v2864_v12 = vunpack.c.l.s8.bf16 %v2696_v28  ;;  %v2717_v45 = vld [vmem:[#allocation11 + $0x1e8] sm:$0xff] }
 0x431   :  { %3066 = vmatprep.subr.bf16.mxu0 %v2825_v31  ;;  %v2728_v31 = vld [vmem:[#allocation11 + $0x240] sm:$0xff]  ;;  %v2713_v28 = vld [vmem:[#allocation11 + $0x1c8] sm:$0xff] }
 0x432   :  { %v2928_v48 = vunpack.c.l.s8.bf16 %v2728_v31 }
 0x433   :  { %2526 = vmatpush2.bf16.msra.mxu1 %v1842_v39 }
 0x434   :  { %3067 = vmatpush2.bf16.msra.mxu0 %v2824_v0  ;;  %2527 = vmatprep.subr.bf16.mxu1 %v1835_v4  ;;  %v2693_v0 = vld [vmem:[#allocation11 + $0x128] sm:$0xff]  ;;  %v2932_v4 = vunpack.c.h.s8.bf16 %v2728_v31 }
 0x435   :  { %3068 = vmatprep.subr.bf16.mxu0 %v2821_v35  ;;  %v2861_v35 = vunpack.c.h.s8.bf16 %v2693_v0  ;;  %v2745_v31 = vld [vmem:[#allocation11 + $0x2c8] sm:$0xff] }
 0x436   :  { %v2961_v46 = vunpack.c.l.s8.bf16 %v2745_v31 }
 0x437   :  { %2528 = vmatpush2.bf16.msra.mxu1 %v1834_v36  ;;  %v2724_v36 = vld [vmem:[#allocation11 + $0x220] sm:$0xff] }
 0x438   :  { %3069 = vmatpush2.bf16.msra.mxu0 %v2820_v47  ;;  %2529 = vmatprep.subr.bf16.mxu1 %v1827_v10  ;;  %v2860_v47 = vunpack.c.h.s8.bf16 %v2692_v25  ;;  %v2857_v10 = vunpack.c.l.s8.bf16 %v2693_v0  ;;  %v2741_v25 = vld [vmem:[#allocation11 + $0x2a8] sm:$0xff] }
 0x439   :  { %3070 = vmatprep.subr.bf16.mxu0 %v2817_v50  ;;  %v2924_v50 = vunpack.c.h.s8.bf16 %v2724_v36 }
 0x43b   :  { %2530 = vmatpush2.bf16.msra.mxu1 %v1826_v14  ;;  %v2853_v14 = vunpack.c.h.s8.bf16 %v2689_v49 }
 0x43c   :  { %3071 = vmatpush2.bf16.msra.mxu0 %v2816_v58  ;;  %3081 = vmatprep.subr.bf16.mxu1 %v2877_v60  ;;  %v2688_v58 = vld [vmem:[#allocation11 + $0x100] sm:$0xff]  ;;  %v2920_v60 = vunpack.c.l.s8.bf16 %v2724_v36 }
 0x43d   :  { %3122 = vmatprep.subr.bf16.mxu0 %v2941_v2  ;;  %v2852_v2 = vunpack.c.h.s8.bf16 %v2688_v58  ;;  %v2848_v8 = vunpack.c.l.s8.bf16 %v2688_v58 }
 0x43e   :  { %v2287_v40 = vpop.f32.mrf.mxu1  ;;  %2532 = vmatmul.mubr.bf16.vlgmr.msra.gmra.mxu1 %v4348_v43 }
 0x43f   :  { %v2288_v19 = vadd.f32 %v2287_v40, %v4414_v52  ;;  %v2328_v22 = vpop.f32.mrf.mxu0  ;;  %3073 = vmatmul.mubr.bf16.vlgmr.msra.gmra.mxu0 %v4436_v7  ;;  %3082 = vmatpush1.bf16.msra.mxu1 %v2876_v3  ;;  %v2916_v3 = vunpack.c.h.s8.bf16 %v2720_v13  ;;  %v2909_v40 = vunpack.c.h.s8.bf16 %v2717_v45 }
 0x440   :  { %3113 = vmatprep.mubr.bf16.mxu1 %v4439_v53  ;;  %v4444_v26 = vpop.f32.mrf.mxu1  ;;  %3083 = vmatprep.subr.bf16.mxu1 %v2873_v6  ;;  %v2913_v6 = vunpack.c.l.s8.bf16 %v2721_v55 }
 0x441   :  { %v4446_v29 = vadd.f32 %v2328_v22, %v2288_v19  ;;  %v4448_v43 = vpop.f32.mrf.mxu0  ;;  %3123 = vmatpush1.bf16.msra.mxu0 %v2940_v11  ;;  %v2749_v11 = vld [vmem:[#allocation11 + $0x2e8] sm:$0xff]  ;;  %v2912_v19 = vunpack.c.l.s8.bf16 %v2720_v13  ;;  %v2603_v13 = vrot.slane %v4405_v27, %v4226_v57 }
 0x442   :  { %v2291_v52 = vpop.f32.mrf.mxu1  ;;  %3124 = vmatprep.subr.bf16.mxu0 %v2937_v16  ;;  %v2716_v16 = vld [vmem:[#allocation11 + $0x1e0] sm:$0xff]  ;;  %v2973_v22 = vunpack.c.h.s8.bf16 %v2749_v11 }
 0x443   :  { %v2332_v33 = vpop.f32.mrf.mxu0  ;;  %3084 = vmatpush1.bf16.msra.mxu1 %v2872_v23  ;;  %v2748_v23 = vld [vmem:[#allocation11 + $0x2e0] sm:$0xff]  ;;  %v2908_v24 = vunpack.c.h.s8.bf16 %v2716_v16  ;;  %v2969_v52 = vunpack.c.l.s8.bf16 %v2749_v11 }
 0x444   :  { %v2292_v38 = vpop.f32.mrf.mxu1  ;;  %3085 = vmatprep.subr.bf16.mxu1 %v2869_v5  ;;  %v2905_v5 = vunpack.c.l.s8.bf16 %v2717_v45  ;;  %v2901_v33 = vunpack.c.h.s8.bf16 %v2713_v28 }
 0x445   :  { %v2333_v39 = vpop.f32.mrf.mxu0  ;;  %3125 = vmatpush1.bf16.msra.mxu0 %v2936_v30  ;;  %v2972_v30 = vunpack.c.h.s8.bf16 %v2748_v23  ;;  %v2968_v38 = vunpack.c.l.s8.bf16 %v2748_v23  ;;  %v4455_v23 = vld [vmem:[#allocation11 + $0x78] sm:$0xff] }
 0x446   :  { %3126 = vmatprep.subr.bf16.mxu0 %v2933_v41  ;;  %v2904_v41 = vunpack.c.l.s8.bf16 %v2716_v16  ;;  %v2744_v39 = vld [vmem:[#allocation11 + $0x2c0] sm:$0xff] }
 0x447   :  { %3086 = vmatpush1.bf16.msra.mxu1 %v2868_v34  ;;  %v2712_v34 = vld [vmem:[#allocation11 + $0x1c0] sm:$0xff]  ;;  %v2960_v36 = vunpack.c.l.s8.bf16 %v2744_v39 }
 0x448   :  { %3087 = vmatprep.subr.bf16.mxu1 %v2865_v9  ;;  %v2965_v9 = vunpack.c.h.s8.bf16 %v2745_v31  ;;  %v2900_v0 = vunpack.c.h.s8.bf16 %v2712_v34 }
 0x449   :  { %3127 = vmatpush1.bf16.msra.mxu0 %v2932_v4  ;;  %v2897_v4 = vunpack.c.l.s8.bf16 %v2713_v28  ;;  %v2764_v28 = vld [vmem:[#allocation11 + $0x360] sm:$0xff] }
 0x44a   :  { %3128 = vmatprep.subr.bf16.mxu0 %v2929_v42  ;;  %v2709_v42 = vld [vmem:[#allocation11 + $0x1a8] sm:$0xff]  ;;  %v3004_v31 = vunpack.c.h.s8.bf16 %v2764_v28 }
 0x44b   :  { %3088 = vmatpush1.bf16.msra.mxu1 %v2864_v12  ;;  %v2964_v12 = vunpack.c.h.s8.bf16 %v2744_v39 }
 0x44c   :  { %3089 = vmatprep.subr.bf16.mxu1 %v2861_v35  ;;  %v2896_v35 = vunpack.c.l.s8.bf16 %v2712_v34 }
 0x44d   :  { %3129 = vmatpush1.bf16.msra.mxu0 %v2928_v48  ;;  %v2893_v48 = vunpack.c.h.s8.bf16 %v2709_v42 }
 0x44e   :  { %3130 = vmatprep.subr.bf16.mxu0 %v2925_v20  ;;  %v2708_v20 = vld [vmem:[#allocation11 + $0x1a0] sm:$0xff] }
 0x44f   :  { %3090 = vmatpush1.bf16.msra.mxu1 %v2860_v47  ;;  %v2957_v47 = vunpack.c.h.s8.bf16 %v2741_v25  ;;  %v2892_v49 = vunpack.c.h.s8.bf16 %v2708_v20  ;;  %v2888_v58 = vunpack.c.l.s8.bf16 %v2708_v20  ;;  %v2615_v20 = vrot.slane %v4405_v27, %v4311_v37 }
 0x450   :  { %3091 = vmatprep.subr.bf16.mxu1 %v2857_v10  ;;  %v2740_v10 = vld [vmem:[#allocation11 + $0x2a0] sm:$0xff] }
 0x451   :  { %3131 = vmatpush1.bf16.msra.mxu0 %v2924_v50  ;;  %v2553_v50 = vrot.slane %v4401_v15, %v4226_v57  ;;  %v2956_v55 = vunpack.c.h.s8.bf16 %v2740_v10  ;;  %v2952_v45 = vunpack.c.l.s8.bf16 %v2740_v10 }
 0x452   :  { %3132 = vmatprep.subr.bf16.mxu0 %v2921_v18  ;;  %v2889_v18 = vunpack.c.l.s8.bf16 %v2709_v42  ;;  %v2565_v42 = vrot.slane %v4401_v15, %v4311_v37 }
 0x453   :  { %3092 = vmatpush1.bf16.msra.mxu1 %v2856_v1  ;;  %v2705_v1 = vld [vmem:[#allocation11 + $0x188] sm:$0xff] }
 0x454   :  { %3093 = vmatprep.subr.bf16.mxu1 %v2853_v14  ;;  %v2953_v14 = vunpack.c.l.s8.bf16 %v2741_v25  ;;  %v2760_v25 = vld [vmem:[#allocation11 + $0x340] sm:$0xff] }
 0x455   :  { %3133 = vmatpush1.bf16.msra.mxu0 %v2920_v60  ;;  %v2737_v60 = vld [vmem:[#allocation11 + $0x288] sm:$0xff] }
 0x456   :  { %3134 = vmatprep.subr.bf16.mxu0 %v2917_v62  ;;  %v2584_v62 = vmul.f32 %v2553_v50, %v4412_v51  ;;  %v2945_v51 = vunpack.c.l.s8.bf16 %v2737_v60 }
 0x457   :  { %3094 = vmatpush1.bf16.msra.mxu1 %v2852_v2  ;;  %v2885_v2 = vunpack.c.h.s8.bf16 %v2705_v1 }
 0x458   :  { %3095 = vmatprep.subr.bf16.mxu1 %v2849_v17  ;;  %v2704_v17 = vld [vmem:[#allocation11 + $0x180] sm:$0xff]  ;;  %v2634_v11 = vadd.f32 %v2603_v13, %v2584_v62  ;;  %v2992_v62 = vunpack.c.l.s8.bf16 %v2760_v25 }
 0x459   :  { %3135 = vmatpush1.bf16.msra.mxu0 %v2916_v3  ;;  %v2949_v3 = vunpack.c.h.s8.bf16 %v2737_v60 }
 0x45a   :  { %3136 = vmatprep.subr.bf16.mxu0 %v2913_v6  ;;  %v2736_v6 = vld [vmem:[#allocation11 + $0x280] sm:$0xff] }
 0x45b   :  { %3096 = vmatpush1.bf16.msra.mxu1 %v2848_v8  ;;  %v2884_v8 = vunpack.c.h.s8.bf16 %v2704_v17  ;;  %v2948_v16 = vunpack.c.h.s8.bf16 %v2736_v6 }
 0x45c   :  { %3097 = vmatprep.subr.bf16.mxu1 %v2909_v40  ;;  %v2881_v40 = vunpack.c.l.s8.bf16 %v2705_v1 }
 0x45d   :  { %3137 = vmatpush1.bf16.msra.mxu0 %v2912_v19  ;;  %v2765_v19 = vld [vmem:[#allocation11 + $0x368] sm:$0xff] }
 0x45e   :  { %3138 = vmatprep.subr.bf16.mxu0 %v2973_v22  ;;  %v2880_v22 = vunpack.c.l.s8.bf16 %v2704_v17  ;;  %v3001_v34 = vunpack.c.l.s8.bf16 %v2765_v19 }
 0x45f   :  { %3098 = vmatpush2.bf16.msra.mxu1 %v2908_v24  ;;  %v2642_v24 = vmax.f32 %v2634_v11, 0.0 }
 0x460   :  { %3099 = vmatprep.subr.bf16.mxu1 %v2905_v5  ;;  %v3005_v5 = vunpack.c.h.s8.bf16 %v2765_v19  ;;  %v2666_v19 = vld [vmem:[#allocation11 + $0x50] sm:$0xff] }
 0x461   :  { %3139 = vmatpush2.bf16.msra.mxu0 %v2972_v30  ;;  %v2944_v30 = vunpack.c.l.s8.bf16 %v2736_v6 }
 0x462   :  { %3140 = vmatprep.subr.bf16.mxu0 %v2969_v52  ;;  %v2815_v52 = vunpack.c.h.s8.bf16 %v4455_v23 }
 0x463   :  { %3100 = vmatpush2.bf16.msra.mxu1 %v2904_v41  ;;  %v2290_v41 = vadd.f32 %v4444_v26, %v4423_v44 }
 0x464   :  { %3101 = vmatprep.subr.bf16.mxu1 %v2901_v33  ;;  %v4460_v33 = vpack.c.bf16 %v2642_v24, %v2642_v24  ;;  %v2806_v24 = vunpack.c.h.s8.bf16 %v2666_v19 }
 0x465   :  { %3141 = vmatpush2.bf16.msra.mxu0 %v2968_v38  ;;  %v2561_v38 = vrot.slane %v4401_v15, %v4308_v32  ;;  %v2331_v44 = vadd.f32 %v4448_v43, %v2290_v41  ;;  %v2781_v41 = vld [vmem:[#allocation11 + $0x3e8] sm:$0xff] }
 0x466   :  { %3142 = vmatprep.subr.bf16.mxu0 %v2965_v9  ;;  %v2761_v9 = vld [vmem:[#allocation11 + $0x348] sm:$0xff] }
 0x467   :  { %3102 = vmatpush2.bf16.msra.mxu1 %v2900_v0  ;;  %v2611_v0 = vrot.slane %v4405_v27, %v4308_v32  ;;  %v2993_v50 = vunpack.c.l.s8.bf16 %v2761_v9  ;;  %v2756_v27 = vld [vmem:[#allocation11 + $0x320] sm:$0xff] }
 0x468   :  { %3103 = vmatprep.subr.bf16.mxu1 %v2897_v4  ;;  %v2988_v6 = vunpack.c.h.s8.bf16 %v2756_v27 }
 0x469   :  { %3143 = vmatpush2.bf16.msra.mxu0 %v2964_v12  ;;  %v3000_v12 = vunpack.c.l.s8.bf16 %v2764_v28  ;;  %v2663_v28 = vld [vmem:[#allocation11 + $0x38] sm:$0xff] }
 0x46a   :  { %3144 = vmatprep.subr.bf16.mxu0 %v2961_v46 }
 0x46b   :  { %3104 = vmatpush2.bf16.msra.mxu1 %v2896_v35  ;;  %v2997_v35 = vunpack.c.h.s8.bf16 %v2761_v9  ;;  %v3037_v9 = vunpack.c.h.s8.bf16 %v2781_v41 }
 0x46c   :  { %3105 = vmatprep.subr.bf16.mxu1 %v2893_v48 }
 0x46d   :  { %3145 = vmatpush2.bf16.msra.mxu0 %v2960_v36 }
 0x46e   :  { %3146 = vmatprep.subr.bf16.mxu0 %v2957_v47 }
 0x46f   :  { %3106 = vmatpush2.bf16.msra.mxu1 %v2892_v49  ;;  %v2996_v49 = vunpack.c.h.s8.bf16 %v2760_v25 }
 0x470   :  { %3107 = vmatprep.subr.bf16.mxu1 %v2889_v18 }
 0x471   :  { %3147 = vmatpush2.bf16.msra.mxu0 %v2956_v55  ;;  %v2757_v55 = vld [vmem:[#allocation11 + $0x328] sm:$0xff] }
 0x472   :  { %3148 = vmatprep.subr.bf16.mxu0 %v2953_v14  ;;  %v2989_v37 = vunpack.c.h.s8.bf16 %v2757_v55 }
 0x473   :  { %3108 = vmatpush2.bf16.msra.mxu1 %v2888_v58  ;;  %v2670_v58 = vld [vmem:[#allocation11 + $0x70] sm:$0xff] }
 0x474   :  { %3109 = vmatprep.subr.bf16.mxu1 %v2885_v2  ;;  %v2814_v2 = vunpack.c.h.s8.bf16 %v2670_v58  ;;  %v2810_v11 = vunpack.c.l.s8.bf16 %v2670_v58 }
 0x475   :  { %3149 = vmatpush2.bf16.msra.mxu0 %v2952_v45  ;;  %v2811_v45 = vunpack.c.l.s8.bf16 %v4455_v23  ;;  %v2752_v23 = vld [vmem:[#allocation11 + $0x300] sm:$0xff] }
 0x476   :  { %3150 = vmatprep.subr.bf16.mxu0 %v2949_v3  ;;  %v2667_v3 = vld [vmem:[#allocation11 + $0x58] sm:$0xff] }
 0x477   :  { %3110 = vmatpush2.bf16.msra.mxu1 %v2884_v8  ;;  %v2985_v8 = vunpack.c.l.s8.bf16 %v2757_v55  ;;  %v2686_v55 = vld [vmem:[#allocation11 + $0xf0] sm:$0xff] }
 0x478   :  { %3111 = vmatprep.subr.bf16.mxu1 %v2881_v40  ;;  %v2753_v40 = vld [vmem:[#allocation11 + $0x308] sm:$0xff] }
 0x479   :  { %3151 = vmatpush2.bf16.msra.mxu0 %v2948_v16  ;;  %v2807_v16 = vunpack.c.h.s8.bf16 %v2667_v3 }
 0x47a   :  { %3152 = vmatprep.subr.bf16.mxu0 %v2945_v51  ;;  %v2984_v51 = vunpack.c.l.s8.bf16 %v2756_v27  ;;  %v2683_v27 = vld [vmem:[#allocation11 + $0xd8] sm:$0xff] }
 0x47b   :  { %3112 = vmatpush2.bf16.msra.mxu1 %v2880_v22  ;;  %v2981_v22 = vunpack.c.h.s8.bf16 %v2753_v40 }
 0x47c   :  { %3163 = vmatprep.subr.bf16.mxu1 %v3005_v5  ;;  %v2803_v5 = vunpack.c.l.s8.bf16 %v2667_v3  ;;  %v2842_v3 = vunpack.c.l.s8.bf16 %v2686_v55 }
 0x47d   :  { %3153 = vmatpush2.bf16.msra.mxu0 %v2944_v30  ;;  %v2980_v30 = vunpack.c.h.s8.bf16 %v2752_v23 }
 0x47e   :  { %v2369_v39 = vpop.f32.mrf.mxu1  ;;  %3114 = vmatmul.mubr.bf16.vlgmr.msra.gmra.mxu1 %v4460_v33  ;;  %3204 = vmatprep.subr.bf16.mxu0 %v2815_v52  ;;  %v2977_v52 = vunpack.c.l.s8.bf16 %v2753_v40 }
 0x47f   :  { %v2370_v26 = vadd.f32 %v2369_v39, %v4446_v29  ;;  %v4469_v4 = vpop.f32.mrf.mxu0  ;;  %3164 = vmatpush1.bf16.msra.mxu1 %v3004_v31  ;;  %v2799_v31 = vunpack.c.h.s8.bf16 %v2663_v28  ;;  %v2780_v39 = vld [vmem:[#allocation11 + $0x3e0] sm:$0xff] }
 0x480   :  { %v2371_v46 = vpop.f32.mrf.mxu1  ;;  %3165 = vmatprep.subr.bf16.mxu1 %v3001_v34  ;;  %v2662_v34 = vld [vmem:[#allocation11 + $0x30] sm:$0xff] }
 0x481   :  { %v2586_v48 = vmul.f32 %v2561_v38, %v2370_v26  ;;  %v2372_v32 = vadd.f32 %v2371_v46, %v2331_v44  ;;  %v4475_v36 = vpop.f32.mrf.mxu0  ;;  %v2976_v38 = vunpack.c.l.s8.bf16 %v2752_v23  ;;  %v2795_v44 = vunpack.c.l.s8.bf16 %v2663_v28  ;;  %v2659_v26 = vld [vmem:[#allocation11 + $0x18] sm:$0xff] }
 0x482   :  { %v2373_v43 = vpop.f32.mrf.mxu1  ;;  %v2794_v46 = vunpack.c.l.s8.bf16 %v2662_v34  ;;  %v2791_v25 = vunpack.c.h.s8.bf16 %v2659_v26  ;;  %v2679_v23 = vld [vmem:[#allocation11 + $0xb8] sm:$0xff] }
 0x483   :  { %v2636_v29 = vadd.f32 %v2611_v0, %v2586_v48  ;;  %v2587_v47 = vmul.f32 %v2565_v42, %v2372_v32  ;;  %v2414_v10 = vpop.f32.mrf.mxu0  ;;  %3166 = vmatpush1.bf16.msra.mxu1 %v3000_v12  ;;  %v2798_v0 = vunpack.c.h.s8.bf16 %v2662_v34  ;;  %v3036_v42 = vunpack.c.h.s8.bf16 %v2780_v39  ;;  %v2658_v48 = vld [vmem:[#allocation11 + $0x10] sm:$0xff]  ;;  %v2776_v43 = vld [vmem:[#allocation11 + $0x3c0] sm:$0xff] }
 0x484   :  { %v2374_v15 = vpop.f32.mrf.mxu1  ;;  %3167 = vmatprep.subr.bf16.mxu1 %v2997_v35  ;;  %v3033_v12 = vunpack.c.l.s8.bf16 %v2781_v41  ;;  %v2777_v35 = vld [vmem:[#allocation11 + $0x3c8] sm:$0xff]  ;;  %v3032_v32 = vunpack.c.l.s8.bf16 %v2780_v39  ;;  %v2687_v10 = vld [vmem:[#allocation11 + $0xf8] sm:$0xff] }
 0x485   :  { %v2637_v18 = vadd.f32 %v2615_v20, %v2587_v47  ;;  %v2415_v1 = vpop.f32.mrf.mxu0  ;;  %v2644_v14 = vmax.f32 %v2636_v29, 0.0  ;;  %v3029_v20 = vunpack.c.h.s8.bf16 %v2777_v35  ;;  %v2790_v29 = vunpack.c.h.s8.bf16 %v2658_v48 }
 0x486   :  { %v2787_v47 = vunpack.c.l.s8.bf16 %v2659_v26  ;;  %v3025_v15 = vunpack.c.l.s8.bf16 %v2777_v35  ;;  %v2847_v1 = vunpack.c.h.s8.bf16 %v2687_v10  ;;  %v2674_v26 = vld [vmem:[#allocation11 + $0x90] sm:$0xff] }
 0x487   :  { %v2645_v60 = vmax.f32 %v2637_v18, 0.0  ;;  %3168 = vmatpush1.bf16.msra.mxu1 %v2996_v49  ;;  %v4479_v17 = vpack.c.bf16 %v2644_v14, %v2644_v14  ;;  %v3028_v49 = vunpack.c.h.s8.bf16 %v2776_v43  ;;  %v2773_v18 = vld [vmem:[#allocation11 + $0x3a8] sm:$0xff]  ;;  %v3024_v14 = vunpack.c.l.s8.bf16 %v2776_v43 }
 0x488   :  { %3169 = vmatprep.subr.bf16.mxu1 %v2993_v50  ;;  %v2786_v50 = vunpack.c.l.s8.bf16 %v2658_v48  ;;  %v3021_v58 = vunpack.c.h.s8.bf16 %v2773_v18  ;;  %v2822_v48 = vunpack.c.h.s8.bf16 %v2674_v26 }
 0x489   :  { %v4477_v13 = vpack.c.bf16 %v2645_v60, %v2645_v60  ;;  %v2772_v60 = vld [vmem:[#allocation11 + $0x3a0] sm:$0xff] }
 0x48a   :  { %v3016_v40 = vunpack.c.l.s8.bf16 %v2772_v60 }
 0x48b   :  { %3154 = vmatprep.mubr.bf16.mxu0 %v4477_v13  ;;  %3170 = vmatpush1.bf16.msra.mxu1 %v2992_v62  ;;  %v2846_v62 = vunpack.c.h.s8.bf16 %v2686_v55 }
 0x48c   :  { %3155 = vmatmul.mubr.bf16.vlgmr.msra.gmra.mxu0 %v4479_v17  ;;  %3171 = vmatprep.subr.bf16.mxu1 %v2989_v37  ;;  %v2843_v37 = vunpack.c.l.s8.bf16 %v2687_v10 }
 0x48d   :  { %3205 = vmatpush1.bf16.msra.mxu0 %v2814_v2  ;;  %3236 = vmatprep.mubr.bf16.mxu0 %v4417_v21  ;;  %v2802_v21 = vunpack.c.l.s8.bf16 %v2666_v19  ;;  %v3020_v2 = vunpack.c.h.s8.bf16 %v2772_v60  ;;  %v2768_v19 = vld [vmem:[#allocation11 + $0x380] sm:$0xff] }
 0x48e   :  { %3206 = vmatprep.subr.bf16.mxu0 %v2811_v45  ;;  %v3017_v45 = vunpack.c.l.s8.bf16 %v2773_v18  ;;  %v3008_v41 = vunpack.c.l.s8.bf16 %v2768_v19 }
 0x48f   :  { %3172 = vmatpush1.bf16.msra.mxu1 %v2988_v6  ;;  %v2769_v6 = vld [vmem:[#allocation11 + $0x388] sm:$0xff] }
 0x490   :  { %3173 = vmatprep.subr.bf16.mxu1 %v2985_v8  ;;  %v2839_v8 = vunpack.c.h.s8.bf16 %v2683_v27 }
 0x491   :  { %3207 = vmatpush1.bf16.msra.mxu0 %v2810_v11  ;;  %v2682_v11 = vld [vmem:[#allocation11 + $0xd0] sm:$0xff] }
 0x492   :  { %3208 = vmatprep.subr.bf16.mxu0 %v2807_v16  ;;  %v3013_v16 = vunpack.c.h.s8.bf16 %v2769_v6  ;;  %v2834_v28 = vunpack.c.l.s8.bf16 %v2682_v11 }
 0x493   :  { %3174 = vmatpush1.bf16.msra.mxu1 %v2984_v51  ;;  %v2838_v51 = vunpack.c.h.s8.bf16 %v2682_v11  ;;  %v2722_v11 = vld [vmem:[#allocation11 + $0x210] sm:$0xff] }
 0x494   :  { %3175 = vmatprep.subr.bf16.mxu1 %v2981_v22  ;;  %v2835_v22 = vunpack.c.l.s8.bf16 %v2683_v27 }
 0x495   :  { %3209 = vmatpush1.bf16.msra.mxu0 %v2806_v24  ;;  %v3012_v24 = vunpack.c.h.s8.bf16 %v2768_v19  ;;  %v2751_v19 = vld [vmem:[#allocation11 + $0x2f8] sm:$0xff] }
 0x496   :  { %3210 = vmatprep.subr.bf16.mxu0 %v2803_v5  ;;  %v3009_v5 = vunpack.c.l.s8.bf16 %v2769_v6  ;;  %v2723_v6 = vld [vmem:[#allocation11 + $0x218] sm:$0xff] }
 0x497   :  { %3176 = vmatpush1.bf16.msra.mxu1 %v2980_v30  ;;  %v4485_v30 = vld [vmem:[#allocation11 + $0x178] sm:$0xff] }
 0x498   :  { %3177 = vmatprep.subr.bf16.mxu1 %v2977_v52  ;;  %v2831_v52 = vunpack.c.h.s8.bf16 %v2679_v23 }
 0x499   :  { %3211 = vmatpush1.bf16.msra.mxu0 %v2802_v21  ;;  %v2678_v21 = vld [vmem:[#allocation11 + $0xb0] sm:$0xff] }
 0x49a   :  { %3212 = vmatprep.subr.bf16.mxu0 %v2799_v31  ;;  %v2879_v31 = vunpack.c.h.s8.bf16 %v4485_v30  ;;  %v2830_v34 = vunpack.c.h.s8.bf16 %v2678_v21  ;;  %v2826_v39 = vunpack.c.l.s8.bf16 %v2678_v21 }
 0x49b   :  { %3178 = vmatpush1.bf16.msra.mxu1 %v2976_v38  ;;  %v2827_v38 = vunpack.c.l.s8.bf16 %v2679_v23  ;;  %v2750_v23 = vld [vmem:[#allocation11 + $0x2f0] sm:$0xff] }
 0x49c   :  { %3179 = vmatprep.subr.bf16.mxu1 %v3037_v9  ;;  %v2675_v9 = vld [vmem:[#allocation11 + $0x98] sm:$0xff] }
 0x49d   :  { %3213 = vmatpush1.bf16.msra.mxu0 %v2798_v0 }
 0x49e   :  { %3214 = vmatprep.subr.bf16.mxu0 %v2795_v44  ;;  %v2823_v44 = vunpack.c.h.s8.bf16 %v2675_v9 }
 0x49f   :  { %3180 = vmatpush2.bf16.msra.mxu1 %v3036_v42 }
 0x4a0   :  { %3181 = vmatprep.subr.bf16.mxu1 %v3033_v12 }
 0x4a1   :  { %3215 = vmatpush1.bf16.msra.mxu0 %v2794_v46 }
 0x4a2   :  { %3216 = vmatprep.subr.bf16.mxu0 %v2791_v25 }
 0x4a3   :  { %3182 = vmatpush2.bf16.msra.mxu1 %v3032_v32 }
 0x4a4   :  { %3183 = vmatprep.subr.bf16.mxu1 %v3029_v20  ;;  %v2819_v20 = vunpack.c.l.s8.bf16 %v2675_v9 }
 0x4a5   :  { %3217 = vmatpush1.bf16.msra.mxu0 %v2790_v29  ;;  %v2735_v29 = vld [vmem:[#allocation11 + $0x278] sm:$0xff] }
 0x4a6   :  { %3218 = vmatprep.subr.bf16.mxu0 %v2787_v47  ;;  %v2939_v18 = vunpack.c.l.s8.bf16 %v2735_v29 }
 0x4a7   :  { %3184 = vmatpush2.bf16.msra.mxu1 %v3028_v49  ;;  %v2818_v49 = vunpack.c.l.s8.bf16 %v2674_v26 }
 0x4a8   :  { %3185 = vmatprep.subr.bf16.mxu1 %v3025_v15  ;;  %v2734_v15 = vld [vmem:[#allocation11 + $0x270] sm:$0xff] }
 0x4a9   :  { %3219 = vmatpush1.bf16.msra.mxu0 %v2786_v50  ;;  %v2942_v50 = vunpack.c.h.s8.bf16 %v2734_v15  ;;  %v2938_v55 = vunpack.c.l.s8.bf16 %v2734_v15 }
 0x4aa   :  { %3220 = vmatprep.subr.bf16.mxu0 %v2847_v1  ;;  %v2731_v1 = vld [vmem:[#allocation11 + $0x258] sm:$0xff] }
 0x4ab   :  { %3186 = vmatpush2.bf16.msra.mxu1 %v3024_v14  ;;  %v2935_v14 = vunpack.c.h.s8.bf16 %v2731_v1 }
 0x4ac   :  { %3187 = vmatprep.subr.bf16.mxu1 %v3021_v58  ;;  %v2730_v58 = vld [vmem:[#allocation11 + $0x250] sm:$0xff] }
 0x4ad   :  { %3221 = vmatpush2.bf16.msra.mxu0 %v2846_v62  ;;  %v2934_v60 = vunpack.c.h.s8.bf16 %v2730_v58  ;;  %v2931_v62 = vunpack.c.l.s8.bf16 %v2731_v1  ;;  %v2930_v27 = vunpack.c.l.s8.bf16 %v2730_v58 }
 0x4ae   :  { %3222 = vmatprep.subr.bf16.mxu0 %v2843_v37  ;;  %v2727_v37 = vld [vmem:[#allocation11 + $0x238] sm:$0xff] }
 0x4af   :  { %3188 = vmatpush2.bf16.msra.mxu1 %v3020_v2  ;;  %v2927_v2 = vunpack.c.h.s8.bf16 %v2727_v37 }
 0x4b0   :  { %3189 = vmatprep.subr.bf16.mxu1 %v3017_v45  ;;  %v2726_v45 = vld [vmem:[#allocation11 + $0x230] sm:$0xff] }
 0x4b1   :  { %3223 = vmatpush2.bf16.msra.mxu0 %v2842_v3  ;;  %v2926_v3 = vunpack.c.h.s8.bf16 %v2726_v45 }
 0x4b2   :  { %3224 = vmatprep.subr.bf16.mxu0 %v2839_v8  ;;  %v2919_v8 = vunpack.c.h.s8.bf16 %v2723_v6 }
 0x4b3   :  { %3190 = vmatpush2.bf16.msra.mxu1 %v3016_v40  ;;  %v2918_v40 = vunpack.c.h.s8.bf16 %v2722_v11 }
 0x4b4   :  { %3191 = vmatprep.subr.bf16.mxu1 %v3013_v16  ;;  %v2915_v16 = vunpack.c.l.s8.bf16 %v2723_v6 }
 0x4b5   :  { %3225 = vmatpush2.bf16.msra.mxu0 %v2838_v51  ;;  %v2914_v51 = vunpack.c.l.s8.bf16 %v2722_v11  ;;  %v2875_v11 = vunpack.c.l.s8.bf16 %v4485_v30  ;;  %v3888_v30 = vld [vmem:[#allocation13 + $0x38] sm:$0xff]  }
 0x4b6   :  { %3226 = vmatprep.subr.bf16.mxu0 %v2835_v22  ;;  %v2975_v22 = vunpack.c.h.s8.bf16 %v2751_v19 }
 0x4b7   :  { %3192 = vmatpush2.bf16.msra.mxu1 %v3012_v24  ;;  %v2974_v24 = vunpack.c.h.s8.bf16 %v2750_v23 }
 0x4b8   :  { %3193 = vmatprep.subr.bf16.mxu1 %v3009_v5  ;;  %v2971_v5 = vunpack.c.l.s8.bf16 %v2751_v19 }
 0x4b9   :  { %3227 = vmatpush2.bf16.msra.mxu0 %v2834_v28  ;;  %v2747_v28 = vld [vmem:[#allocation11 + $0x2d8] sm:$0xff] }
 0x4ba   :  { %3228 = vmatprep.subr.bf16.mxu0 %v2831_v52  ;;  %v2970_v52 = vunpack.c.l.s8.bf16 %v2750_v23  ;;  %v2967_v21 = vunpack.c.h.s8.bf16 %v2747_v28 }
 0x4bb   :  { %3194 = vmatpush2.bf16.msra.mxu1 %v3008_v41  ;;  %v2746_v41 = vld [vmem:[#allocation11 + $0x2d0] sm:$0xff] }
 0x4bc   :  { %3245 = vmatprep.subr.bf16.mxu1 %v2879_v31  ;;  %v2966_v31 = vunpack.c.h.s8.bf16 %v2746_v41  ;;  %v2962_v9 = vunpack.c.l.s8.bf16 %v2746_v41  ;;  %v3891_v41 = vld [vmem:[#allocation13 + $0x68] sm:$0xff]  }
 0x4bd   :  { %3229 = vmatpush2.bf16.msra.mxu0 %v2830_v34  ;;  %v2963_v34 = vunpack.c.l.s8.bf16 %v2747_v28  ;;  %v2695_v28 = vld [vmem:[#allocation11 + $0x138] sm:$0xff] }
 0x4be   :  { %v2451_v0 = vpop.f32.mrf.mxu1  ;;  %3230 = vmatprep.subr.bf16.mxu0 %v2827_v38  ;;  %v2743_v38 = vld [vmem:[#allocation11 + $0x2b8] sm:$0xff] }
 0x4bf   :  { %v2452_v42 = vadd.f32 %v2451_v0, %v4469_v4  ;;  %v2492_v12 = vpop.f32.mrf.mxu0  ;;  %v2943_v4 = vunpack.c.h.s8.bf16 %v2735_v29  ;;  %v2742_v0 = vld [vmem:[#allocation11 + $0x2b0] sm:$0xff]  ;;  %v2955_v26 = vunpack.c.l.s8.bf16 %v2743_v38 }
 0x4c0   :  { %v4489_v46 = vpop.f32.mrf.mxu1 }
 0x4c1   :  { %v4491_v35 = vadd.f32 %v2492_v12, %v2452_v42  ;;  %v4493_v25 = vpop.f32.mrf.mxu0  ;;  %3231 = vmatpush2.bf16.msra.mxu0 %v2826_v39  ;;  %v2959_v39 = vunpack.c.h.s8.bf16 %v2743_v38  ;;  %v2454_v42 = vadd.f32 %v4489_v46, %v4475_v36  ;;  %v2739_v12 = vld [vmem:[#allocation11 + $0x298] sm:$0xff]  ;;  %v2859_v38 = vunpack.c.l.s8.bf16 %v2695_v28 }
 0x4c2   :  { %v2455_v32 = vpop.f32.mrf.mxu1  ;;  %3232 = vmatprep.subr.bf16.mxu0 %v2823_v44  ;;  %v2958_v44 = vunpack.c.h.s8.bf16 %v2742_v0  ;;  %v2951_v29 = vunpack.c.h.s8.bf16 %v2739_v12 }
 0x4c3   :  { %v2496_v43 = vpop.f32.mrf.mxu0 }
 0x4c4   :  { %v2456_v47 = vpop.f32.mrf.mxu1 }
 0x4c5   :  { %v2497_v10 = vpop.f32.mrf.mxu0  ;;  %3233 = vmatpush2.bf16.msra.mxu0 %v2822_v48  ;;  %v3919_v48 = vld [vmem:[%s4565_s7] sm:$0xff] }
 0x4c6   :  { %3234 = vmatprep.subr.bf16.mxu0 %v2819_v20  ;;  %v2569_v32 = vrot.slane %v3919_v48, %v4333_v61  ;;  %v2954_v20 = vunpack.c.l.s8.bf16 %v2742_v0  ;;  %v2738_v47 = vld [vmem:[#allocation11 + $0x290] sm:$0xff]  ;;  %v2495_v10 = vadd.f32 %v4493_v25, %v2454_v42  ;;  %v2573_v15 = vrot.slane %v3919_v48, %v4336_v63 }
 0x4c7   :  { %v2950_v58 = vunpack.c.h.s8.bf16 %v2738_v47  ;;  %v2947_v25 = vunpack.c.l.s8.bf16 %v2739_v12  ;;  %v2690_v42 = vld [vmem:[#allocation11 + $0x110] sm:$0xff]  ;;  %v3895_v12 = vld [vmem:[#allocation13 + $0x58] sm:$0xff]  }
 0x4c8   :  { %v2854_v48 = vunpack.c.h.s8.bf16 %v2690_v42 }
 0x4c9   :  { %3235 = vmatpush2.bf16.msra.mxu0 %v2818_v49 }
 0x4ca   :  { %3286 = vmatprep.subr.bf16.mxu0 %v2943_v4  ;;  %v3920_v4 = vld [vmem:[#allocation10] sm:$0xff] }
 0x4cb   :  { %v2619_v36 = vrot.slane %v3920_v4, %v4333_v61 }
 0x4cc   :  { %3237 = vmatmul.mubr.bf16.vlgmr.msra.gmra.mxu0 %v4436_v7  ;;  %v2923_v7 = vunpack.c.l.s8.bf16 %v2727_v37 }
 0x4cd   :  { %3287 = vmatpush1.bf16.msra.mxu0 %v2942_v50  ;;  %3318 = vmatprep.mubr.bf16.mxu0 %v4477_v13  ;;  %v2922_v13 = vunpack.c.l.s8.bf16 %v2726_v45  ;;  %v2946_v45 = vunpack.c.l.s8.bf16 %v2738_v47  ;;  %v2718_v47 = vld [vmem:[#allocation11 + $0x1f0] sm:$0xff] }
 0x4ce   :  { %3288 = vmatprep.subr.bf16.mxu0 %v2939_v18 }
 0x4d1   :  { %3289 = vmatpush1.bf16.msra.mxu0 %v2938_v55  ;;  %v2623_v55 = vrot.slane %v3920_v4, %v4336_v63  ;;  %v2715_v4 = vld [vmem:[#allocation11 + $0x1d8] sm:$0xff] }
 0x4d2   :  { %3290 = vmatprep.subr.bf16.mxu0 %v2935_v14 }
 0x4d5   :  { %3291 = vmatpush1.bf16.msra.mxu0 %v2934_v60 }
 0x4d6   :  { %3292 = vmatprep.subr.bf16.mxu0 %v2931_v62 }
 0x4d9   :  { %3293 = vmatpush1.bf16.msra.mxu0 %v2930_v27 }
 0x4da   :  { %3294 = vmatprep.subr.bf16.mxu0 %v2927_v2 }
 0x4dd   :  { %3295 = vmatpush1.bf16.msra.mxu0 %v2926_v3 }
 0x4de   :  { %3296 = vmatprep.subr.bf16.mxu0 %v2923_v7  ;;  %v2702_v7 = vld [vmem:[#allocation11 + $0x170] sm:$0xff] }
 0x4e1   :  { %3297 = vmatpush1.bf16.msra.mxu0 %v2922_v13  ;;  %v2878_v13 = vunpack.c.h.s8.bf16 %v2702_v7 }
 0x4e2   :  { %3298 = vmatprep.subr.bf16.mxu0 %v2919_v8 }
 0x4e5   :  { %3299 = vmatpush1.bf16.msra.mxu0 %v2918_v40  ;;  %v2699_v40 = vld [vmem:[#allocation11 + $0x158] sm:$0xff] }
 0x4e6   :  { %3300 = vmatprep.subr.bf16.mxu0 %v2915_v16  ;;  %v2874_v16 = vunpack.c.l.s8.bf16 %v2702_v7  ;;  %v2871_v19 = vunpack.c.h.s8.bf16 %v2699_v40  ;;  %v2867_v23 = vunpack.c.l.s8.bf16 %v2699_v40 }
 0x4e9   :  { %3301 = vmatpush1.bf16.msra.mxu0 %v2914_v51  ;;  %v2698_v51 = vld [vmem:[#allocation11 + $0x150] sm:$0xff] }
 0x4ea   :  { %3302 = vmatprep.subr.bf16.mxu0 %v2975_v22  ;;  %v2870_v22 = vunpack.c.h.s8.bf16 %v2698_v51 }
 0x4ed   :  { %3303 = vmatpush2.bf16.msra.mxu0 %v2974_v24  ;;  %v3887_v24 = vld [vmem:[#allocation13 + $0x78] sm:$0xff]  }
 0x4ee   :  { %3304 = vmatprep.subr.bf16.mxu0 %v2971_v5  ;;  %v3889_v5 = vld [vmem:[#allocation13 + $0x70] sm:$0xff]  }
 0x4f1   :  { %3305 = vmatpush2.bf16.msra.mxu0 %v2970_v52  ;;  %v3890_v52 = vld [vmem:[#allocation13 + $0x30] sm:$0xff]  }
 0x4f2   :  { %3306 = vmatprep.subr.bf16.mxu0 %v2967_v21  ;;  %v2863_v21 = vunpack.c.h.s8.bf16 %v2695_v28 }
 0x4f5   :  { %3307 = vmatpush2.bf16.msra.mxu0 %v2966_v31 }
 0x4f6   :  { %3308 = vmatprep.subr.bf16.mxu0 %v2963_v34  ;;  %v3892_v34 = vld [vmem:[#allocation13 + $0x28] sm:$0xff]  }
 0x4f9   :  { %3309 = vmatpush2.bf16.msra.mxu0 %v2962_v9  ;;  %v3893_v9 = vld [vmem:[#allocation13 + $0x60] sm:$0xff]  }
 0x4fa   :  { %3310 = vmatprep.subr.bf16.mxu0 %v2959_v39  ;;  %v2691_v39 = vld [vmem:[#allocation11 + $0x118] sm:$0xff] }
 0x4fd   :  { %3311 = vmatpush2.bf16.msra.mxu0 %v2958_v44  ;;  %v3894_v44 = vld [vmem:[#allocation13 + $0x20] sm:$0xff]  }
 0x4fe   :  { %v2533_v43 = vpop.f32.mrf.mxu1  ;;  %3312 = vmatprep.subr.bf16.mxu0 %v2955_v26  ;;  %v2855_v26 = vunpack.c.h.s8.bf16 %v2691_v39 }
 0x4ff   :  { %v2534_v49 = vadd.f32 %v2533_v43, %v4491_v35  ;;  %v4506_v46 = vpop.f32.mrf.mxu0  ;;  %v2850_v43 = vunpack.c.l.s8.bf16 %v2690_v42  ;;  %v3901_v42 = vld [vmem:[#allocation13 + $0x40] sm:$0xff]  }
 0x500   :  { %v2535_v50 = vpop.f32.mrf.mxu1 }
 0x501   :  { %v2588_v18 = vmul.f32 %v2569_v32, %v2534_v49  ;;  %v2536_v1 = vadd.f32 %v2535_v50, %v2495_v10  ;;  %v4510_v14 = vpop.f32.mrf.mxu0  ;;  %3313 = vmatpush2.bf16.msra.mxu0 %v2954_v20  ;;  %v2851_v32 = vunpack.c.l.s8.bf16 %v2691_v39  ;;  %v2719_v20 = vld [vmem:[#allocation11 + $0x1f8] sm:$0xff]  ;;  %v2910_v10 = vunpack.c.h.s8.bf16 %v2718_v47  ;;  %v2714_v50 = vld [vmem:[#allocation11 + $0x1d0] sm:$0xff] }
 0x502   :  { %v2537_v60 = vpop.f32.mrf.mxu1  ;;  %3314 = vmatprep.subr.bf16.mxu0 %v2951_v29  ;;  %v2911_v29 = vunpack.c.h.s8.bf16 %v2719_v20  ;;  %v2907_v49 = vunpack.c.l.s8.bf16 %v2719_v20 }
 0x503   :  { %v2638_v35 = vadd.f32 %v2619_v36, %v2588_v18  ;;  %v2589_v62 = vmul.f32 %v2573_v15, %v2536_v1  ;;  %v3078_v37 = vpop.f32.mrf.mxu0  ;;  %v2906_v36 = vunpack.c.l.s8.bf16 %v2718_v47  ;;  %v2903_v15 = vunpack.c.h.s8.bf16 %v2715_v4 }
 0x504   :  { %v2538_v61 = vpop.f32.mrf.mxu1  ;;  %v2902_v18 = vunpack.c.h.s8.bf16 %v2714_v50  ;;  %v2899_v1 = vunpack.c.l.s8.bf16 %v2715_v4  ;;  %v2707_v37 = vld [vmem:[#allocation11 + $0x198] sm:$0xff] }
 0x505   :  { %v2639_v27 = vadd.f32 %v2623_v55, %v2589_v62  ;;  %v3079_v2 = vpop.f32.mrf.mxu0  ;;  %3315 = vmatpush2.bf16.msra.mxu0 %v2950_v58  ;;  %v2646_v3 = vmax.f32 %v2638_v35, 0.0  ;;  %v2711_v55 = vld [vmem:[#allocation11 + $0x1b8] sm:$0xff]  ;;  %v2898_v58 = vunpack.c.l.s8.bf16 %v2714_v50  ;;  %v2883_v40 = vunpack.c.l.s8.bf16 %v2707_v37 }
 0x506   :  { %3316 = vmatprep.subr.bf16.mxu0 %v2947_v25  ;;  %v2895_v60 = vunpack.c.h.s8.bf16 %v2711_v55  ;;  %v2710_v25 = vld [vmem:[#allocation11 + $0x1b0] sm:$0xff]  ;;  %v2891_v62 = vunpack.c.l.s8.bf16 %v2711_v55  ;;  %v2887_v2 = vunpack.c.h.s8.bf16 %v2707_v37 }
 0x507   :  { %v2647_v6 = vmax.f32 %v2639_v27, 0.0  ;;  %v4514_v8 = vpack.c.bf16 %v2646_v3, %v2646_v3  ;;  %v2894_v35 = vunpack.c.h.s8.bf16 %v2710_v25  ;;  %v2890_v61 = vunpack.c.l.s8.bf16 %v2710_v25 }
 0x509   :  { %3317 = vmatpush2.bf16.msra.mxu0 %v2946_v45  ;;  %v4512_v63 = vpack.c.bf16 %v2647_v6, %v2647_v6  ;;  %v2706_v45 = vld [vmem:[#allocation11 + $0x190] sm:$0xff] }
 0x50a   :  { %3827 = vmatprep.subr.bf16.mxu0 %v3887_v24 }
 0x50b   :  { %3195 = vmatprep.mubr.bf16.mxu1 %v4512_v63 }
 0x50c   :  { %3319 = vmatmul.mubr.bf16.vlgmr.msra.gmra.mxu0 %v4479_v17  ;;  %3196 = vmatmul.mubr.bf16.vlgmr.msra.gmra.mxu1 %v4514_v8  ;;  %v2866_v17 = vunpack.c.l.s8.bf16 %v2698_v51  ;;  %v2882_v51 = vunpack.c.l.s8.bf16 %v2706_v45 }
 0x50d   :  { %3246 = vmatpush1.bf16.msra.mxu1 %v2878_v13  ;;  %3277 = vmatprep.mubr.bf16.mxu1 %v4439_v53  ;;  %v2694_v53 = vld [vmem:[#allocation11 + $0x130] sm:$0xff]  ;;  %v2886_v13 = vunpack.c.h.s8.bf16 %v2706_v45 }
 0x50e   :  { %3247 = vmatprep.subr.bf16.mxu1 %v2875_v11  ;;  %3828 = vmatpush3.bf16.msra.mxu0 %v3888_v30  ;;  %v2862_v31 = vunpack.c.h.s8.bf16 %v2694_v53  ;;  %v2858_v0 = vunpack.c.l.s8.bf16 %v2694_v53  ;;  %v2762_v53 = vld [vmem:[#allocation11 + $0x350] sm:$0xff] }
 0x50f   :  { %3829 = vmatprep.subr.bf16.mxu0 %v3889_v5  ;;  %v3896_v5 = vld [vmem:[#allocation13 + $0x18] sm:$0xff]  }
 0x511   :  { %3248 = vmatpush1.bf16.msra.mxu1 %v2874_v16  ;;  %v2767_v16 = vld [vmem:[#allocation11 + $0x378] sm:$0xff] }
 0x512   :  { %3249 = vmatprep.subr.bf16.mxu1 %v2871_v19  ;;  %3830 = vmatpush3.bf16.msra.mxu0 %v3890_v52  ;;  %v3003_v30 = vunpack.c.l.s8.bf16 %v2767_v16 }
 0x513   :  { %3831 = vmatprep.subr.bf16.mxu0 %v3891_v41  ;;  %v3897_v41 = vld [vmem:[#allocation13 + $0x50] sm:$0xff]  }
 0x515   :  { %3250 = vmatpush1.bf16.msra.mxu1 %v2870_v22  ;;  %v3007_v22 = vunpack.c.h.s8.bf16 %v2767_v16  ;;  %v2770_v16 = vld [vmem:[#allocation11 + $0x390] sm:$0xff] }
 0x516   :  { %3251 = vmatprep.subr.bf16.mxu1 %v2867_v23  ;;  %3832 = vmatpush3.bf16.msra.mxu0 %v3892_v34  ;;  %v2766_v23 = vld [vmem:[#allocation11 + $0x370] sm:$0xff] }
 0x517   :  { %3833 = vmatprep.subr.bf16.mxu0 %v3893_v9  ;;  %v3006_v24 = vunpack.c.h.s8.bf16 %v2766_v23  ;;  %v3898_v34 = vld [vmem:[#allocation13 + $0x10] sm:$0xff]  }
 0x519   :  { %3252 = vmatpush1.bf16.msra.mxu1 %v2866_v17  ;;  %v3002_v17 = vunpack.c.l.s8.bf16 %v2766_v23 }
 0x51a   :  { %3253 = vmatprep.subr.bf16.mxu1 %v2863_v21  ;;  %3834 = vmatpush3.bf16.msra.mxu0 %v3894_v44  ;;  %v3900_v44 = vld [vmem:[#allocation13 + $0x8] sm:$0xff]  }
 0x51b   :  { %3835 = vmatprep.subr.bf16.mxu0 %v3895_v12 }
 0x51d   :  { %3254 = vmatpush1.bf16.msra.mxu1 %v2862_v31 }
 0x51e   :  { %3255 = vmatprep.subr.bf16.mxu1 %v2859_v38  ;;  %3836 = vmatpush3.bf16.msra.mxu0 %v3896_v5  ;;  %v3903_v5 = vld [vmem:[#allocation13 + $0xf8] sm:$0xff]  }
 0x51f   :  { %3837 = vmatprep.subr.bf16.mxu0 %v3897_v41  ;;  %v3909_v41 = vld [vmem:[#allocation13 + $0xe0] sm:$0xff]  }
 0x521   :  { %3256 = vmatpush1.bf16.msra.mxu1 %v2858_v0  ;;  %v3899_v0 = vld [vmem:[#allocation13 + $0x48] sm:$0xff]  }
 0x522   :  { %3257 = vmatprep.subr.bf16.mxu1 %v2855_v26  ;;  %3838 = vmatpush3.bf16.msra.mxu0 %v3898_v34  ;;  %v2994_v26 = vunpack.c.l.s8.bf16 %v2762_v53  ;;  %v3910_v34 = vld [vmem:[#allocation13 + $0xa0] sm:$0xff]  }
 0x523   :  { %3839 = vmatprep.subr.bf16.mxu0 %v3899_v0 }
 0x525   :  { %3258 = vmatpush1.bf16.msra.mxu1 %v2854_v48  ;;  %v2758_v48 = vld [vmem:[#allocation11 + $0x330] sm:$0xff] }
 0x526   :  { %3259 = vmatprep.subr.bf16.mxu1 %v2851_v32  ;;  %3840 = vmatpush3.bf16.msra.mxu0 %v3900_v44  ;;  %v3902_v32 = vld [vmem:[#allocation13] sm:$0xff]   ;;  %v2990_v20 = vunpack.c.h.s8.bf16 %v2758_v48  ;;  %v2986_v47 = vunpack.c.l.s8.bf16 %v2758_v48 }
 0x527   :  { %3841 = vmatprep.subr.bf16.mxu0 %v3901_v42 }
 0x529   :  { %3260 = vmatpush1.bf16.msra.mxu1 %v2850_v43 }
 0x52a   :  { %3261 = vmatprep.subr.bf16.mxu1 %v2911_v29  ;;  %3842 = vmatpush3.bf16.msra.mxu0 %v3902_v32  ;;  %v2755_v29 = vld [vmem:[#allocation11 + $0x318] sm:$0xff] }
 0x52d   :  { %3262 = vmatpush2.bf16.msra.mxu1 %v2910_v10  ;;  %v2983_v10 = vunpack.c.h.s8.bf16 %v2755_v29 }
 0x52e   :  { %3263 = vmatprep.subr.bf16.mxu1 %v2907_v49  ;;  %v2754_v49 = vld [vmem:[#allocation11 + $0x310] sm:$0xff] }
 0x52f   :  { %v2982_v4 = vunpack.c.h.s8.bf16 %v2754_v49  ;;  %v2978_v50 = vunpack.c.l.s8.bf16 %v2754_v49 }
 0x531   :  { %3264 = vmatpush2.bf16.msra.mxu1 %v2906_v36  ;;  %v2979_v36 = vunpack.c.l.s8.bf16 %v2755_v29 }
 0x532   :  { %3265 = vmatprep.subr.bf16.mxu1 %v2903_v15  ;;  %v2783_v15 = vld [vmem:[#allocation11 + $0x3f8] sm:$0xff] }
 0x535   :  { %3266 = vmatpush2.bf16.msra.mxu1 %v2902_v18  ;;  %v3039_v18 = vunpack.c.h.s8.bf16 %v2783_v15 }
 0x536   :  { %3267 = vmatprep.subr.bf16.mxu1 %v2899_v1  ;;  %v2782_v1 = vld [vmem:[#allocation11 + $0x3f0] sm:$0xff] }
 0x537   :  { %v3038_v55 = vunpack.c.h.s8.bf16 %v2782_v1  ;;  %v3034_v25 = vunpack.c.l.s8.bf16 %v2782_v1 }
 0x539   :  { %3268 = vmatpush2.bf16.msra.mxu1 %v2898_v58  ;;  %v3035_v58 = vunpack.c.l.s8.bf16 %v2783_v15 }
 0x53a   :  { %3269 = vmatprep.subr.bf16.mxu1 %v2895_v60  ;;  %v2779_v60 = vld [vmem:[#allocation11 + $0x3d8] sm:$0xff] }
 0x53d   :  { %3270 = vmatpush2.bf16.msra.mxu1 %v2894_v35  ;;  %v3031_v35 = vunpack.c.h.s8.bf16 %v2779_v60 }
 0x53e   :  { %v3115_v27 = vpop.f32.mrf.mxu1  ;;  %3271 = vmatprep.subr.bf16.mxu1 %v2891_v62  ;;  %v2778_v62 = vld [vmem:[#allocation11 + $0x3d0] sm:$0xff] }
 0x53f   :  { %v3116_v3 = vadd.f32 %v3115_v27, %v4506_v46  ;;  %v2763_v46 = vld [vmem:[#allocation11 + $0x358] sm:$0xff]  ;;  %v3030_v37 = vunpack.c.h.s8.bf16 %v2778_v62 }
 0x540   :  { %v3117_v7 = vpop.f32.mrf.mxu1  ;;  %v2999_v21 = vunpack.c.h.s8.bf16 %v2763_v46  ;;  %v2995_v39 = vunpack.c.l.s8.bf16 %v2763_v46  ;;  %v2775_v27 = vld [vmem:[#allocation11 + $0x3b8] sm:$0xff] }
 0x541   :  { %v3118_v6 = vadd.f32 %v3117_v7, %v4510_v14  ;;  %3272 = vmatpush2.bf16.msra.mxu1 %v2890_v61  ;;  %v3027_v61 = vunpack.c.l.s8.bf16 %v2779_v60  ;;  %v3023_v45 = vunpack.c.h.s8.bf16 %v2775_v27  ;;  %v3918_v60 = vld [vmem:[#allocation13 + $0x80] sm:$0xff]  }
 0x542   :  { %v3119_v11 = vpop.f32.mrf.mxu1  ;;  %3273 = vmatprep.subr.bf16.mxu1 %v2887_v2  ;;  %v3026_v2 = vunpack.c.l.s8.bf16 %v2778_v62 }
 0x544   :  { %v3120_v19 = vpop.f32.mrf.mxu1 }
 0x545   :  { %3274 = vmatpush2.bf16.msra.mxu1 %v2886_v13  ;;  %v2771_v13 = vld [vmem:[#allocation11 + $0x398] sm:$0xff]  ;;  %v3014_v19 = vunpack.c.h.s8.bf16 %v2770_v16 }
 0x546   :  { %3275 = vmatprep.subr.bf16.mxu1 %v2883_v40  ;;  %v3015_v40 = vunpack.c.h.s8.bf16 %v2771_v13 }
 0x549   :  { %3276 = vmatpush2.bf16.msra.mxu1 %v2882_v51  ;;  %v3011_v51 = vunpack.c.l.s8.bf16 %v2771_v13 }
 0x54a   :  { %3327 = vmatprep.subr.bf16.mxu1 %v3007_v22  ;;  %v3010_v22 = vunpack.c.l.s8.bf16 %v2770_v16 }
 0x54c   :  { %3278 = vmatmul.mubr.bf16.vlgmr.msra.gmra.mxu1 %v4460_v33  ;;  %v3156_v14 = vpop.f32.mrf.mxu0  ;;  %v2998_v33 = vunpack.c.h.s8.bf16 %v2762_v53  ;;  %v3908_v53 = vld [vmem:[#allocation13 + $0xa8] sm:$0xff]  }
 0x54d   :  { %v4524_v28 = vadd.f32 %v3156_v14, %v3116_v3  ;;  %3328 = vmatpush1.bf16.msra.mxu1 %v3006_v24  ;;  %3359 = vmatprep.mubr.bf16.mxu1 %v4512_v63  ;;  %v2759_v63 = vld [vmem:[#allocation11 + $0x338] sm:$0xff]  ;;  %v2774_v3 = vld [vmem:[#allocation11 + $0x3b0] sm:$0xff] }
 0x54e   :  { %v3158_v52 = vpop.f32.mrf.mxu0  ;;  %3329 = vmatprep.subr.bf16.mxu1 %v3003_v30  ;;  %v2991_v12 = vunpack.c.h.s8.bf16 %v2759_v63  ;;  %v2987_v43 = vunpack.c.l.s8.bf16 %v2759_v63  ;;  %v3022_v7 = vunpack.c.h.s8.bf16 %v2774_v3  ;;  %v3018_v11 = vunpack.c.l.s8.bf16 %v2774_v3  ;;  %v3904_v14 = vld [vmem:[#allocation13 + $0xb8] sm:$0xff]  }
 0x54f   :  { %v4527_v31 = vadd.f32 %v3158_v52, %v3118_v6  ;;  %v3019_v6 = vunpack.c.l.s8.bf16 %v2775_v27  ;;  %v3906_v52 = vld [vmem:[#allocation13 + $0xb0] sm:$0xff]  }
 0x550   :  { %v3160_v38 = vpop.f32.mrf.mxu0 }
 0x551   :  { %3330 = vmatpush1.bf16.msra.mxu1 %v3002_v17  ;;  %v3905_v17 = vld [vmem:[#allocation13 + $0xf0] sm:$0xff]   ;;  %v3912_v38 = vld [vmem:[#allocation13 + $0x98] sm:$0xff]  }
 0x552   :  { %v3161_v9 = vpop.f32.mrf.mxu0  ;;  %3331 = vmatprep.subr.bf16.mxu1 %v2999_v21  ;;  %v3907_v21 = vld [vmem:[#allocation13 + $0xe8] sm:$0xff]  }
 0x553   :  { %v3394_v9 = vld [vmem:[%s4569_s11] sm:$0xf] }
 0x555   :  { %3332 = vmatpush1.bf16.msra.mxu1 %v2998_v33  ;;  %v3368_v33 = vld [vmem:[%s4568_s10] sm:$0xf] }
 0x556   :  { %3333 = vmatprep.subr.bf16.mxu1 %v2995_v39  ;;  %v3373_v39 = vrot.slane %v3368_v33, %v4220_v54  ;;  %v3377_v42 = vrot.slane %v3368_v33, %v4223_v56 }
 0x559   :  { %3334 = vmatpush1.bf16.msra.mxu1 %v2994_v26  ;;  %v3399_v26 = vrot.slane %v3394_v9, %v4220_v54 }
 0x55a   :  { %3335 = vmatprep.subr.bf16.mxu1 %v2991_v12  ;;  %v3913_v12 = vld [vmem:[#allocation13 + $0xd0] sm:$0xff]  }
 0x55d   :  { %3336 = vmatpush1.bf16.msra.mxu1 %v2990_v20  ;;  %v3914_v20 = vld [vmem:[#allocation13 + $0x90] sm:$0xff]  }
 0x55e   :  { %3337 = vmatprep.subr.bf16.mxu1 %v2987_v43 }
 0x561   :  { %3338 = vmatpush1.bf16.msra.mxu1 %v2986_v47  ;;  %v3403_v47 = vrot.slane %v3394_v9, %v4223_v56 }
 0x562   :  { %3339 = vmatprep.subr.bf16.mxu1 %v2983_v10 }
 0x565   :  { %3340 = vmatpush1.bf16.msra.mxu1 %v2982_v4 }
 0x566   :  { %3341 = vmatprep.subr.bf16.mxu1 %v2979_v36 }
 0x569   :  { %3342 = vmatpush1.bf16.msra.mxu1 %v2978_v50  ;;  %v3916_v50 = vld [vmem:[#allocation13 + $0x88] sm:$0xff]  }
 0x56a   :  { %3343 = vmatprep.subr.bf16.mxu1 %v3039_v18 }
 0x56d   :  { %3344 = vmatpush2.bf16.msra.mxu1 %v3038_v55 }
 0x56e   :  { %3345 = vmatprep.subr.bf16.mxu1 %v3035_v58  ;;  %v3917_v58 = vld [vmem:[#allocation13 + $0xc0] sm:$0xff]  }
 0x571   :  { %3346 = vmatpush2.bf16.msra.mxu1 %v3034_v25 }
 0x572   :  { %3347 = vmatprep.subr.bf16.mxu1 %v3031_v35 }
 0x575   :  { %3348 = vmatpush2.bf16.msra.mxu1 %v3030_v37 }
 0x576   :  { %3349 = vmatprep.subr.bf16.mxu1 %v3027_v61 }
 0x579   :  { %3350 = vmatpush2.bf16.msra.mxu1 %v3026_v2 }
 0x57a   :  { %3351 = vmatprep.subr.bf16.mxu1 %v3023_v45  ;;  %v3381_v45 = vrot.slane %v3368_v33, %v4226_v57 }
 0x57d   :  { %3352 = vmatpush2.bf16.msra.mxu1 %v3022_v7 }
 0x57e   :  { %3353 = vmatprep.subr.bf16.mxu1 %v3019_v6  ;;  %v3407_v6 = vrot.slane %v3394_v9, %v4226_v57 }
 0x581   :  { %3354 = vmatpush2.bf16.msra.mxu1 %v3018_v11  ;;  %v3385_v11 = vrot.slane %v3368_v33, %v4230_v59 }
 0x582   :  { %3355 = vmatprep.subr.bf16.mxu1 %v3015_v40 }
 0x585   :  { %3356 = vmatpush2.bf16.msra.mxu1 %v3014_v19 }
 0x586   :  { %3357 = vmatprep.subr.bf16.mxu1 %v3011_v51  ;;  %v3411_v51 = vrot.slane %v3394_v9, %v4230_v59  ;;  %v3794_v59 = vld [vmem:[%s4571_s13] ss:$0 sm:$0xff] }
 0x589   :  { %3358 = vmatpush2.bf16.msra.mxu1 %v3010_v22 }
 0x58a   :  { %3849 = vmatprep.subr.bf16.mxu1 %v3903_v5 }
 0x58c   :  { %v4529_v23 = vpop.f32.mrf.mxu0  ;;  %3360 = vmatmul.mubr.bf16.vlgmr.msra.gmra.mxu1 %v4514_v8  ;;  %v3911_v8 = vld [vmem:[#allocation13 + $0xd8] sm:$0xff]  }
 0x58d   :  { %3850 = vmatpush3.bf16.msra.mxu1 %v3904_v14 }
 0x58e   :  { %v4532_v24 = vpop.f32.mrf.mxu0  ;;  %3851 = vmatprep.subr.bf16.mxu1 %v3905_v17 }
 0x590   :  { %v3242_v30 = vpop.f32.mrf.mxu0 }
 0x591   :  { %3852 = vmatpush3.bf16.msra.mxu1 %v3906_v52 }
 0x592   :  { %v3243_v46 = vpop.f32.mrf.mxu0  ;;  %3853 = vmatprep.subr.bf16.mxu1 %v3907_v21 }
 0x595   :  { %3854 = vmatpush3.bf16.msra.mxu1 %v3908_v53 }
 0x596   :  { %3855 = vmatprep.subr.bf16.mxu1 %v3909_v41 }
 0x599   :  { %3856 = vmatpush3.bf16.msra.mxu1 %v3910_v34 }
 0x59a   :  { %3857 = vmatprep.subr.bf16.mxu1 %v3911_v8 }
 0x59d   :  { %3858 = vmatpush3.bf16.msra.mxu1 %v3912_v38 }
 0x59e   :  { %3859 = vmatprep.subr.bf16.mxu1 %v3913_v12 }
 0x5a1   :  { %3860 = vmatpush3.bf16.msra.mxu1 %v3914_v20 }
 0x5cc   :  { %v3320_v0 = vpop.f32.mrf.mxu0  ;;  %v3197_v63 = vpop.f32.mrf.mxu1 }
 0x5cd   :  { %v3198_v44 = vadd.f32 %v3197_v63, %v4524_v28  ;;  %v3915_v28 = vld [vmem:[#allocation13 + $0xc8] sm:$0xff]  }
 0x5ce   :  { %v3322_v48 = vpop.f32.mrf.mxu0  ;;  %v3199_v32 = vpop.f32.mrf.mxu1  ;;  %3861 = vmatprep.subr.bf16.mxu1 %v3915_v28 }
 0x5cf   :  { %v3390_v43 = vmul.f32 %v3373_v39, %v3198_v44  ;;  %v3200_v29 = vadd.f32 %v3199_v32, %v4527_v31  ;;  %3862 = vmatpush3.bf16.msra.mxu1 %v3916_v50 }
 0x5d0   :  { %v3324_v10 = vpop.f32.mrf.mxu0  ;;  %v3201_v49 = vpop.f32.mrf.mxu1  ;;  %3863 = vmatprep.subr.bf16.mxu1 %v3917_v58 }
 0x5d1   :  { %v3416_v4 = vadd.f32 %v3399_v26, %v3390_v43  ;;  %v3391_v36 = vmul.f32 %v3377_v42, %v3200_v29 }
 0x5d2   :  { %v3325_v15 = vpop.f32.mrf.mxu0  ;;  %v3202_v54 = vpop.f32.mrf.mxu1 }
 0x5d3   :  { %v3417_v18 = vadd.f32 %v3403_v47, %v3391_v36  ;;  %v3420_v1 = vmax.f32 %v3416_v4, 0.0  ;;  %3864 = vmatpush3.bf16.msra.mxu1 %v3918_v60 }
 0x5d5   :  { %v3421_v55 = vmax.f32 %v3417_v18, 0.0  ;;  %v3424_v56 = vpack.c.bf16 %v3420_v1, %v3420_v1 }
 0x5d7   :  { %v3425_v31 = vpack.c.bf16 %v3421_v55, %v3421_v55 }
 0x5d9   :  { %3723 = vmatprep.mubr.bf16.mxu0 %v3425_v31 }
 0x5da   :  { %3724 = vmatmul.mubr.bf16.vlgmr.msra.gmra.mxu0 %v3424_v56 }
 0x60c   :  { %v3279_v25 = vpop.f32.mrf.mxu1 }
 0x60d   :  { %v3280_v61 = vadd.f32 %v3279_v25, %v4529_v23 }
 0x60e   :  { %v3281_v35 = vpop.f32.mrf.mxu1 }
 0x60f   :  { %v3282_v27 = vadd.f32 %v3281_v35, %v4532_v24  ;;  %v3321_v2 = vadd.f32 %v3320_v0, %v3280_v61 }
 0x610   :  { %v3283_v62 = vpop.f32.mrf.mxu1 }
 0x611   :  { %v3323_v13 = vadd.f32 %v3322_v48, %v3282_v27 }
 0x612   :  { %v3284_v37 = vpop.f32.mrf.mxu1 }
 0x64c   :  { %v3361_v3 = vpop.f32.mrf.mxu1 }
 0x64d   :  { %v3362_v7 = vadd.f32 %v3361_v3, %v3321_v2 }
 0x64e   :  { %v3363_v40 = vpop.f32.mrf.mxu1 }
 0x64f   :  { %v3392_v16 = vmul.f32 %v3381_v45, %v3362_v7  ;;  %v3364_v19 = vadd.f32 %v3363_v40, %v3323_v13 }
 0x650   :  { %v3365_v22 = vpop.f32.mrf.mxu1 }
 0x651   :  { %v3418_v30 = vadd.f32 %v3407_v6, %v3392_v16  ;;  %v3393_v23 = vmul.f32 %v3385_v11, %v3364_v19 }
 0x652   :  { %v3366_v46 = vpop.f32.mrf.mxu1 }
 0x653   :  { %v3419_v24 = vadd.f32 %v3411_v51, %v3393_v23  ;;  %v3422_v5 = vmax.f32 %v3418_v30, 0.0 }
 0x655   :  { %v3423_v14 = vmax.f32 %v3419_v24, 0.0  ;;  %v3426_v52 = vpack.c.bf16 %v3422_v5, %v3422_v5 }
 0x657   :  { %v3427_v17 = vpack.c.bf16 %v3423_v14, %v3423_v14 }
 0x659   :  { %3763 = vmatprep.mubr.bf16.mxu1 %v3427_v17 }
 0x65a   :  { %3764 = vmatmul.mubr.bf16.vlgmr.msra.gmra.mxu1 %v3426_v52 }
 0x69a   :  { %v3843_v57 = vpop.f32.mrf.mxu0 }
 0x69c   :  { %v3844_v21 = vpop.f32.mrf.mxu0 }
 0x69d   :  { %v3845_v53 = vadd.f32 %v3844_v21, %v3843_v57 }
 0x69e   :  { %v3846_v41 = vpop.f32.mrf.mxu0 }
 0x69f   :  { %v3726_v33 = vadd.f32 %v3845_v53, %v3794_v59 }
 0x6a0   :  { %v3847_v34 = vpop.f32.mrf.mxu0 }
 0x71a   :  { %v3865_v8 = vpop.f32.mrf.mxu1 }
 0x71c   :  { %v3866_v38 = vpop.f32.mrf.mxu1 }
 0x71d   :  { %v3867_v9 = vadd.f32 %v3866_v38, %v3865_v8 }
 0x71e   :  { %v3868_v39 = vpop.f32.mrf.mxu1 }
 0x71f   :  { %v3766_v0 = vadd.f32 %v3867_v9, %v3726_v33 }
 0x720   :  { %v3869_v63 = vpop.f32.mrf.mxu1 }
 0x721   :  { %3771 = vst [vmem:[#allocation14] sm:$0xff] %v3766_v0 }
 0x722   :  { %4072 = shalt.err (!%p4069_p11)
}
 0x723   :  { %3781 = dma.vmem_to_hbm [thread:$0]  %s3779_s23, 128, %s4572_s14, [#allocation4]  }
 0x724   :  { %4089 = dma.done.wait [#allocation4], 128  }
 0x725   :  { %4090 = vsyncadd [#allocation4], 4294967168 }
 0x726   :  { %3785 = vsyncpa [#allocation3], 1 }
 0x727   :  { %3786 = vsyncpa [#allocation6], 1 }
 0x728   :  { %3787 = vsyncpa [#allocation9], 1 }
 0x729   :  { %3788 = vsyncpa [#allocation12], 1 }
 0x72a   :  { %3789 = vsyncpa [#allocation4], 1 }

</bundles_post_ra>
